<compile_context>
chip_gen: v6e
topology: v6e:2x2x1
jax: 0.10.0
libtpu: 0.0.40
codegen_flags: <defaults>
</compile_context>

<pallas_src>
import functools

import numpy as np
import jax
import jax.numpy as jnp
from jax.experimental import pallas as pl
from jax.experimental.pallas import tpu as pltpu


# ---------------------------------------------------------------------------
# small helpers
# ---------------------------------------------------------------------------
def _round_up(x, m):
    return ((x + m - 1) // m) * m


def _tpu_plan():
    """Per-generation VMEM budget + whether bf16 gate math is profitable."""
    try:
        kind = jax.devices()[0].device_kind.lower()
    except Exception:
        kind = ""
    if "v7" in kind:                                   # 64 MiB VMEM per TC
        budget = 48 * 1024 * 1024
    elif any(v in kind for v in ("v4", "v5", "v6")):   # 128 MiB VMEM
        budget = 100 * 1024 * 1024
    else:                                              # unknown: conservative
        budget = 32 * 1024 * 1024
    # v5e has no bf16 VPU/EUP path -> keep activations f32 there.
    bf16_act = ("v6" in kind) or ("v7" in kind)
    return budget, bf16_act


def _pick_tile(dim, target, granule):
    """Largest multiple of `granule` that divides `dim` and is <= target
    (falls back to the full dim when dim is small or not granule-aligned)."""
    if dim <= target or dim % granule != 0:
        return dim
    best = granule
    c = granule
    while c <= target:
        if dim % c == 0:
            best = c
        c += granule
    return best


# ---------------------------------------------------------------------------
# Kernel 1: tiled (N, K) @ (K, V) + b  ->  (N, V)
# Used for the hoisted LSTM input projection (gates_x, bf16 out) and the fc
# head (f32 out).  bf16 operands on the MXU, f32 accumulation.
# ---------------------------------------------------------------------------
def _matmul_bias_kernel(x_ref, w_ref, b_ref, o_ref):
    acc = jnp.dot(x_ref[...], w_ref[...], preferred_element_type=jnp.float32)
    o_ref[...] = (acc + b_ref[...]).astype(o_ref.dtype)


def matmul_bias(x, w, b, *, out_dtype=jnp.float32,
                budget_bytes=32 * 1024 * 1024):
    """x: (N, K) bf16, w: (K, V) bf16, b: (1, V) f32 -> (N, V) out_dtype."""
    N, K = x.shape
    V = w.shape[1]
    tn = _pick_tile(N, 512, 8)         # larger row tiles (review: tn=512)
    tv = _pick_tile(V, 2048, 128)      # larger lane tiles (review: tv<=2048)

    cap = int(0.85 * budget_bytes)

    def est(a, c):                      # double-buffered inputs + outputs
        return 2 * (a * K * x.dtype.itemsize + K * c * w.dtype.itemsize
                    + c * 4 + a * c * np.dtype(out_dtype).itemsize)

    while est(tn, tv) > cap and tv > 128:
        new_tv = _pick_tile(V, max(tv // 2, 128), 128)
        if new_tv >= tv:
            break
        tv = new_tv
    while est(tn, tv) > cap and tn > 8:
        new_tn = _pick_tile(N, max(tn // 2, 8), 8)
        if new_tn >= tn:
            break
        tn = new_tn

    grid = (pl.cdiv(N, tn), pl.cdiv(V, tv))
    return pl.pallas_call(
        _matmul_bias_kernel,
        grid_spec=pltpu.PrefetchScalarGridSpec(
            num_scalar_prefetch=0,
            grid=grid,
            in_specs=[
                pl.BlockSpec((tn, K), lambda i, j: (i, 0)),
                pl.BlockSpec((K, tv), lambda i, j: (0, j)),
                pl.BlockSpec((1, tv), lambda i, j: (0, j)),
            ],
            out_specs=pl.BlockSpec((tn, tv), lambda i, j: (i, j)),
        ),
        out_shape=jax.ShapeDtypeStruct((N, V), out_dtype),
        compiler_params=pltpu.CompilerParams(
            dimension_semantics=("parallel", "parallel"),
            vmem_limit_bytes=int(budget_bytes)),
    )(x, w, b)


# ---------------------------------------------------------------------------
# Kernel 2: LSTM recurrence over a chunk of timesteps.
# grid = (batch_blocks ['parallel'], time_chunks ['arbitrary', innermost])
#   gx_ref  : (Bb, Tc, 4Hp) bf16  precomputed x @ W_ih + (b_ih + b_hh)
#   whh_ref : (Hp, 4Hp)     bf16  hidden->hidden weights (block revisited)
#   h0/c0   : (Bb, Hp)      f32   initial state for this batch block
#   y_ref   : (Bb, Tc, Hp)  bf16  layer output for this chunk
#   hT/cT   : (Bb, Hp)      f32   exact final state (written at real step T-1)
#   h_scr/c_scr : f32 VMEM scratch carrying state across chunks
# PyTorch gate order: i, f, g, o.  Gate slices are lane-aligned (Hp % 128 == 0).
# NOTE: hT/cT correctness relies on the time axis being the innermost
# ('arbitrary') grid axis so their (revisited) output blocks stay resident
# until all chunks of a batch block have run.  Do not reorder the grid.
# ---------------------------------------------------------------------------
def _lstm_recurrent_kernel(gx_ref, whh_ref, h0_ref, c0_ref,
                           y_ref, hT_ref, cT_ref, h_scr, c_scr,
                           *, chunk, hp, last_chunk, last_j, act_dtype):
    c_idx = pl.program_id(1)   # time-chunk index (innermost, sequential)

    @pl.when(c_idx == 0)
    def _init():
        h_scr[...] = h0_ref[...]
        c_scr[...] = c0_ref[...]

    # W_hh block index is constant -> DMA'd once and revisited.
    # TODO(synk): pipeline_mode=pl.Buffered(1) / matmul_push_rhs to keep W_hh
    # single-buffered / MXU-resident on v7x (only if VMEM-bound there).
    w_hh = whh_ref[...]        # (Hp, 4Hp) bf16

    def _sigmoid(v):           # one EUP push per gate instead of exp+recip
        return 0.5 * jnp.tanh(0.5 * v) + 0.5

    # Bounded static unroll (chunk <= 16) -> static lane-aligned indices while
    # keeping vreg live ranges bounded; per-grid-step overhead amortized over
    # `chunk` timesteps.
    for j in range(chunk):
        g = gx_ref[:, j, :] + jnp.dot(
            h_scr[...].astype(jnp.bfloat16), w_hh,
            preferred_element_type=jnp.float32)          # (Bb, 4Hp) f32
        ga = g.astype(act_dtype)                         # bf16 on v6e/v7x only
        i_g = _sigmoid(ga[:, 0 * hp:1 * hp])
        f_g = _sigmoid(ga[:, 1 * hp:2 * hp])
        g_g = jnp.tanh(ga[:, 2 * hp:3 * hp])
        o_g = _sigmoid(ga[:, 3 * hp:4 * hp])
        c_new = f_g * c_scr[...] + i_g * g_g             # f32 c carry
        h_new = o_g.astype(jnp.float32) * jnp.tanh(c_new)
        c_scr[...] = c_new
        h_scr[...] = h_new
        y_ref[:, j, :] = h_new.astype(y_ref.dtype)

        if j == last_j:   # capture exact state at the REAL last timestep,
            @pl.when(c_idx == last_chunk)                # before any T padding
            def _capture():
                hT_ref[...] = h_new
                cT_ref[...] = c_new


def _plan_recurrence(Bp, Hp, T, budget_bytes):
    """Pick (batch_block, chunk) against the per-generation VMEM budget."""
    cap = int(0.85 * budget_bytes)

    def vmem_bytes(bb, ch):
        return (2 * bb * ch * 4 * Hp * 2      # gx block (bf16), double-buffered
                + 2 * bb * ch * Hp * 2        # y  block (bf16), double-buffered
                + 2 * Hp * 4 * Hp * 2         # W_hh (bf16), double-buffered
                + 2 * 2 * bb * Hp * 4         # h0/c0 input blocks (f32)
                + 2 * 2 * bb * Hp * 4         # hT/cT output blocks (f32)
                + 2 * bb * Hp * 4)            # h/c carry scratch (f32)

    cands = [c for c in range(8, min(Bp, 128) + 1, 8) if Bp % c == 0]
    cands.sort(reverse=True)                  # prefer big batch blocks (MXU)
    for bb in cands:
        for ch in (16, 8):
            if ch > 8 and T % ch != 0:        # avoid extra time padding
                continue
            if vmem_bytes(bb, ch) <= cap:
                return bb, ch
    return 8, 8


def lstm_layer(gates_x, w_hh, h0, c0, *, hp, chunk, batch_block, t_real,
               act_dtype, budget_bytes):
    """gates_x: (Bp, Tp, 4Hp) bf16.  Returns y (Bp, Tp, Hp) bf16 and the exact
    f32 (h_T, c_T) captured at real step t_real-1."""
    Bp, Tp, G = gates_x.shape
    grid = (Bp // batch_block, Tp // chunk)   # time axis MUST stay innermost
    last_chunk = (t_real - 1) // chunk
    last_j = (t_real - 1) % chunk
    kernel = functools.partial(_lstm_recurrent_kernel, chunk=chunk, hp=hp,
                               last_chunk=last_chunk, last_j=last_j,
                               act_dtype=act_dtype)
    grid_spec = pltpu.PrefetchScalarGridSpec(
        num_scalar_prefetch=0,
        grid=grid,
        in_specs=[
            pl.BlockSpec((batch_block, chunk, G), lambda b, c: (b, c, 0)),
            pl.BlockSpec((hp, G), lambda b, c: (0, 0)),
            pl.BlockSpec((batch_block, hp), lambda b, c: (b, 0)),
            pl.BlockSpec((batch_block, hp), lambda b, c: (b, 0)),
        ],
        out_specs=[
            pl.BlockSpec((batch_block, chunk, hp), lambda b, c: (b, c, 0)),
            pl.BlockSpec((batch_block, hp), lambda b, c: (b, 0)),
            pl.BlockSpec((batch_block, hp), lambda b, c: (b, 0)),
        ],
        scratch_shapes=[
            pltpu.VMEM((batch_block, hp), jnp.float32),   # h carry
            pltpu.VMEM((batch_block, hp), jnp.float32),   # c carry
        ],
    )
    # TODO(synk): v7x with a single batch block leaves one TensorCore idle on
    # the recurrence; a core_map split of the 4Hp gate columns could recover
    # ~2x there (only if profiling shows the recurrence dominates).
    y, hT, cT = pl.pallas_call(
        kernel,
        grid_spec=grid_spec,
        out_shape=(
            jax.ShapeDtypeStruct((Bp, Tp, hp), jnp.bfloat16),
            jax.ShapeDtypeStruct((Bp, hp), jnp.float32),
            jax.ShapeDtypeStruct((Bp, hp), jnp.float32),
        ),
        compiler_params=pltpu.CompilerParams(
            dimension_semantics=("parallel", "arbitrary"),
            vmem_limit_bytes=int(budget_bytes)),
    )(gates_x, w_hh, h0, c0)
    return y, hT, cT


# ---------------------------------------------------------------------------
# Parameters: PyTorch-native init, then a one-time prepare step that
# transposes to right-multiply layout, pads H/V to lane multiples (exact),
# and casts matmul weights to bfloat16.
# ---------------------------------------------------------------------------
def init_params(key, vocab_size, n_hidden, n_layers, embed_dim=200):
    k_emb, k_lstm, k_fc = jax.random.split(key, 3)
    params = {"emb": jax.random.normal(k_emb, (vocab_size, embed_dim),
                                       jnp.float32) * 0.02}
    bound = 1.0 / float(n_hidden) ** 0.5
    lstm = []
    keys = jax.random.split(k_lstm, n_layers)
    for l in range(n_layers):
        d_in = embed_dim if l == 0 else n_hidden
        k1, k2, k3, k4 = jax.random.split(keys[l], 4)
        lstm.append({
            "w_ih": jax.random.uniform(k1, (4 * n_hidden, d_in), jnp.float32,
                                       -bound, bound),
            "w_hh": jax.random.uniform(k2, (4 * n_hidden, n_hidden),
                                       jnp.float32, -bound, bound),
            "b_ih": jax.random.uniform(k3, (4 * n_hidden,), jnp.float32,
                                       -bound, bound),
            "b_hh": jax.random.uniform(k4, (4 * n_hidden,), jnp.float32,
                                       -bound, bound),
        })
    params["lstm"] = lstm
    k5, k6 = jax.random.split(k_fc)
    params["fc_w"] = jax.random.uniform(k5, (vocab_size, n_hidden),
                                        jnp.float32, -bound, bound)
    params["fc_b"] = jax.random.uniform(k6, (vocab_size,), jnp.float32,
                                        -bound, bound)
    return params


def prepare_params(params, n_hidden):
    """Kernel-ready parameters: padded per gate to Hp = roundup(H, 128),
    vocab padded to Vp = roundup(V, 128), matmul weights bf16 (biases f32)."""
    H = n_hidden
    Hp = _round_up(H, 128)
    vocab = params["fc_w"].shape[0]
    Vp = _round_up(vocab, 128)

    def pad_gate_cols(w_t):                      # (K, 4H) -> (K, 4Hp)
        K = w_t.shape[0]
        w4 = w_t.reshape(K, 4, H)
        return jnp.pad(w4, ((0, 0), (0, 0), (0, Hp - H))).reshape(K, 4 * Hp)

    out = {"emb": params["emb"]}
    lstm = []
    for li, layer in enumerate(params["lstm"]):
        w_ih_t = layer["w_ih"].T                 # (D_in, 4H)
        if li > 0:                               # layers >= 1 consume padded h
            w_ih_t = jnp.pad(w_ih_t, ((0, Hp - H), (0, 0)))
        w_hh_t = jnp.pad(layer["w_hh"].T, ((0, Hp - H), (0, 0)))   # (Hp, 4H)
        b = (layer["b_ih"] + layer["b_hh"]).reshape(4, H)
        b = jnp.pad(b, ((0, 0), (0, Hp - H))).reshape(1, 4 * Hp)
        lstm.append({"w_ih": pad_gate_cols(w_ih_t).astype(jnp.bfloat16),
                     "w_hh": pad_gate_cols(w_hh_t).astype(jnp.bfloat16),
                     "b": b})
    out["lstm"] = lstm

    fc_w = jnp.pad(params["fc_w"].T, ((0, Hp - H), (0, Vp - vocab)))
    out["fc_w"] = fc_w.astype(jnp.bfloat16)
    out["fc_b"] = jnp.pad(params["fc_b"], (0, Vp - vocab)).reshape(1, Vp)
    return out


# ---------------------------------------------------------------------------
# ReportModel forward
# ---------------------------------------------------------------------------
@functools.partial(jax.jit, static_argnames=("n_hidden",))
def report_model_forward(params, x, hidden, *, n_hidden):
    """x: (B, T) int32 token ids; hidden = (h0, c0), each (n_layers, B, H).
    Returns (out (B*T, vocab), (h_n, c_n)).  Dropout is identity (inference)."""
    h0_all, c0_all = hidden
    B, T = x.shape
    H = n_hidden
    Hp = params["lstm"][0]["w_hh"].shape[0]
    Vp = params["fc_w"].shape[1]
    vocab = params["emb"].shape[0]
    Bp = _round_up(max(B, 8), 8)

    budget, bf16_act = _tpu_plan()
    act_dtype = jnp.bfloat16 if bf16_act else jnp.float32
    batch_block, chunk = _plan_recurrence(Bp, Hp, T, budget)
    Tp = _round_up(T, chunk)       # pad time; hT/cT captured at real T-1

    # Embedding lookup (plain-JAX glue); bf16 activations, pad batch/time.
    emb = jnp.take(params["emb"], x, axis=0).astype(jnp.bfloat16)  # (B,T,200)
    emb = jnp.pad(emb, ((0, Bp - B), (0, Tp - T), (0, 0)))         # (Bp,Tp,200)

    pad_state = lambda s: jnp.pad(s, ((0, 0), (0, Bp - B), (0, Hp - H)))
    h0_all = pad_state(h0_all)                                     # (L,Bp,Hp)
    c0_all = pad_state(c0_all)

    seq = emb                                  # batch-major throughout
    h_finals, c_finals = [], []
    for l, layer in enumerate(params["lstm"]):
        d_in = seq.shape[-1]
        # Hoisted input projection: one big MXU matmul, bf16 output (gx).
        gx = matmul_bias(seq.reshape(Bp * Tp, d_in), layer["w_ih"], layer["b"],
                         out_dtype=jnp.bfloat16, budget_bytes=budget)
        gx = gx.reshape(Bp, Tp, 4 * Hp)
        seq, hT, cT = lstm_layer(gx, layer["w_hh"], h0_all[l], c0_all[l],
                                 hp=Hp, chunk=chunk, batch_block=batch_block,
                                 t_real=T, act_dtype=act_dtype,
                                 budget_bytes=budget)
        # TODO(synk): inter-layer dropout (p=drop_prob) applies only in
        # training mode; identity at inference.
        h_finals.append(hT)
        c_finals.append(cT)

    # Post-LSTM dropout: identity at inference.  Batch-major layout already
    # matches PyTorch's reshape(-1, n_hidden); no transposes anywhere.
    flat = seq.reshape(Bp * Tp, Hp)
    out_p = matmul_bias(flat, params["fc_w"], params["fc_b"],
                        out_dtype=jnp.float32, budget_bytes=budget)  # (Bp*Tp,Vp)
    if (Bp, Tp, Vp) == (B, T, vocab):
        out = out_p.reshape(B * T, vocab)      # no extra logits copy
    else:
        out = out_p.reshape(Bp, Tp, Vp)[:B, :T, :vocab].reshape(B * T, vocab)

    h_n = jnp.stack(h_finals, axis=0)[:, :B, :H]
    c_n = jnp.stack(c_finals, axis=0)[:, :B, :H]
    return out, (h_n, c_n)


if __name__ == "__main__":
    VOCAB = 32
    N_HIDDEN = 32
    N_LAYERS = 2
    B, T = 2, 8

    key = jax.random.PRNGKey(0)
    k_params, k_x = jax.random.split(key)

    raw_params = init_params(k_params, VOCAB, N_HIDDEN, N_LAYERS)
    params = prepare_params(raw_params, N_HIDDEN)

    x = jax.random.randint(k_x, (B, T), 0, VOCAB, dtype=jnp.int32)
    hidden = (jnp.zeros((N_LAYERS, B, N_HIDDEN), jnp.float32),
              jnp.zeros((N_LAYERS, B, N_HIDDEN), jnp.float32))

    out, (h_n, c_n) = report_model_forward(params, x, hidden,
                                           n_hidden=N_HIDDEN)
    jax.block_until_ready((out, h_n, c_n))

    assert out.shape == (B * T, VOCAB)
    assert h_n.shape == (N_LAYERS, B, N_HIDDEN)
    assert c_n.shape == (N_LAYERS, B, N_HIDDEN)
    assert bool(jnp.all(jnp.isfinite(out)))
    print("KERNEL_OK")
</pallas_src>

<mosaic_0001>
module attributes {stable_mosaic.version = 11 : i64} {
  func.func @_matmul_bias_kernel(%arg0: i32, %arg1: i32, %arg2: memref<64x200xbf16, #tpu.memory_space<vmem>>, %arg3: memref<200x512xbf16, #tpu.memory_space<vmem>>, %arg4: memref<1x512xf32, #tpu.memory_space<vmem>>, %arg5: memref<64x512xbf16, #tpu.memory_space<vmem>>) attributes {dimension_semantics = [#tpu.dimension_semantics<parallel>, #tpu.dimension_semantics<parallel>], iteration_bounds = array<i64: 1, 1>, scalar_prefetch = 0 : i64, scratch_operands = 0 : i64, tpu.core_type = #tpu.core_type<tc>, window_params = [{transform_indices = @transform_0, window_bounds = array<i64: 64, 200>}, {transform_indices = @transform_1, window_bounds = array<i64: 200, 512>}, {transform_indices = @transform_2, window_bounds = array<i64: 1, 512>}, {transform_indices = @transform_3, window_bounds = array<i64: 64, 512>}]} {
    %c0 = arith.constant 0 : index
    %c0_0 = arith.constant 0 : index
    %0 = vector.load %arg2[%c0, %c0_0] : memref<64x200xbf16, #tpu.memory_space<vmem>>, vector<64x200xbf16>
    %c0_1 = arith.constant 0 : index
    %c0_2 = arith.constant 0 : index
    %1 = vector.load %arg3[%c0_1, %c0_2] : memref<200x512xbf16, #tpu.memory_space<vmem>>, vector<200x512xbf16>
    %cst = arith.constant dense<0.000000e+00> : vector<64x512xf32>
    %2 = tpu.matmul %0, %1, %cst {dimension_numbers = #tpu.dot_dimension_numbers<[1], [0], [0], [1], [0, 0, 1, 1], [], []>} : vector<64x200xbf16>, vector<200x512xbf16>, vector<64x512xf32> -> vector<64x512xf32>
    %c0_3 = arith.constant 0 : index
    %c0_4 = arith.constant 0 : index
    %3 = vector.load %arg4[%c0_3, %c0_4] : memref<1x512xf32, #tpu.memory_space<vmem>>, vector<1x512xf32>
    %4 = vector.broadcast %3 : vector<1x512xf32> to vector<64x512xf32>
    %5 = arith.addf %2, %4 : vector<64x512xf32>
    %6 = arith.truncf %5 : vector<64x512xf32> to vector<64x512xbf16>
    %c0_5 = arith.constant 0 : index
    %c0_6 = arith.constant 0 : index
    %7 = vector.load %arg5[%c0_5, %c0_6] : memref<64x512xbf16, #tpu.memory_space<vmem>>, vector<64x512xbf16>
    tpu.vector_store %arg5[%c0_5, %c0_6], %6 {strides = array<i32>} : memref<64x512xbf16, #tpu.memory_space<vmem>>, vector<64x512xbf16>,
    return
  }
  func.func @transform_0(%arg0: i32, %arg1: i32) -> (i32, i32) {
    %c0_i32 = arith.constant 0 : i32
    %c0_i32_0 = arith.constant 0 : i32
    return %arg0, %c0_i32 : i32, i32
  }
  func.func @transform_1(%arg0: i32, %arg1: i32) -> (i32, i32) {
    %c0_i32 = arith.constant 0 : i32
    %c0_i32_0 = arith.constant 0 : i32
    return %c0_i32, %arg1 : i32, i32
  }
  func.func @transform_2(%arg0: i32, %arg1: i32) -> (i32, i32) {
    %c0_i32 = arith.constant 0 : i32
    %c0_i32_0 = arith.constant 0 : i32
    return %c0_i32, %arg1 : i32, i32
  }
  func.func @transform_3(%arg0: i32, %arg1: i32) -> (i32, i32) {
    %c0_i32 = arith.constant 0 : i32
    return %arg0, %arg1 : i32, i32
  }
}

module attributes {stable_mosaic.version = 11 : i64} {
  func.func @_matmul_bias_kernel(%arg0: i32, %arg1: i32, %arg2: memref<64x128xbf16, #tpu.memory_space<vmem>>, %arg3: memref<128x512xbf16, #tpu.memory_space<vmem>>, %arg4: memref<1x512xf32, #tpu.memory_space<vmem>>, %arg5: memref<64x512xbf16, #tpu.memory_space<vmem>>) attributes {dimension_semantics = [#tpu.dimension_semantics<parallel>, #tpu.dimension_semantics<parallel>], iteration_bounds = array<i64: 1, 1>, scalar_prefetch = 0 : i64, scratch_operands = 0 : i64, tpu.core_type = #tpu.core_type<tc>, window_params = [{transform_indices = @transform_0, window_bounds = array<i64: 64, 128>}, {transform_indices = @transform_1, window_bounds = array<i64: 128, 512>}, {transform_indices = @transform_2, window_bounds = array<i64: 1, 512>}, {transform_indices = @transform_3, window_bounds = array<i64: 64, 512>}]} {
    %c0 = arith.constant 0 : index
    %c0_0 = arith.constant 0 : index
    %0 = vector.load %arg2[%c0, %c0_0] : memref<64x128xbf16, #tpu.memory_space<vmem>>, vector<64x128xbf16>
    %c0_1 = arith.constant 0 : index
    %c0_2 = arith.constant 0 : index
    %1 = vector.load %arg3[%c0_1, %c0_2] : memref<128x512xbf16, #tpu.memory_space<vmem>>, vector<128x512xbf16>
    %cst = arith.constant dense<0.000000e+00> : vector<64x512xf32>
    %2 = tpu.matmul %0, %1, %cst {dimension_numbers = #tpu.dot_dimension_numbers<[1], [0], [0], [1], [0, 0, 1, 1], [], []>} : vector<64x128xbf16>, vector<128x512xbf16>, vector<64x512xf32> -> vector<64x512xf32>
    %c0_3 = arith.constant 0 : index
    %c0_4 = arith.constant 0 : index
    %3 = vector.load %arg4[%c0_3, %c0_4] : memref<1x512xf32, #tpu.memory_space<vmem>>, vector<1x512xf32>
    %4 = vector.broadcast %3 : vector<1x512xf32> to vector<64x512xf32>
    %5 = arith.addf %2, %4 : vector<64x512xf32>
    %6 = arith.truncf %5 : vector<64x512xf32> to vector<64x512xbf16>
    %c0_5 = arith.constant 0 : index
    %c0_6 = arith.constant 0 : index
    %7 = vector.load %arg5[%c0_5, %c0_6] : memref<64x512xbf16, #tpu.memory_space<vmem>>, vector<64x512xbf16>
    tpu.vector_store %arg5[%c0_5, %c0_6], %6 {strides = array<i32>} : memref<64x512xbf16, #tpu.memory_space<vmem>>, vector<64x512xbf16>,
    return
  }
  func.func @transform_0(%arg0: i32, %arg1: i32) -> (i32, i32) {
    %c0_i32 = arith.constant 0 : i32
    %c0_i32_0 = arith.constant 0 : i32
    return %arg0, %c0_i32 : i32, i32
  }
  func.func @transform_1(%arg0: i32, %arg1: i32) -> (i32, i32) {
    %c0_i32 = arith.constant 0 : i32
    %c0_i32_0 = arith.constant 0 : i32
    return %c0_i32, %arg1 : i32, i32
  }
  func.func @transform_2(%arg0: i32, %arg1: i32) -> (i32, i32) {
    %c0_i32 = arith.constant 0 : i32
    %c0_i32_0 = arith.constant 0 : i32
    return %c0_i32, %arg1 : i32, i32
  }
  func.func @transform_3(%arg0: i32, %arg1: i32) -> (i32, i32) {
    %c0_i32 = arith.constant 0 : i32
    return %arg0, %arg1 : i32, i32
  }
}

module attributes {stable_mosaic.version = 11 : i64} {
  func.func @_matmul_bias_kernel(%arg0: i32, %arg1: i32, %arg2: memref<64x128xbf16, #tpu.memory_space<vmem>>, %arg3: memref<128x128xbf16, #tpu.memory_space<vmem>>, %arg4: memref<1x128xf32, #tpu.memory_space<vmem>>, %arg5: memref<64x128xf32, #tpu.memory_space<vmem>>) attributes {dimension_semantics = [#tpu.dimension_semantics<parallel>, #tpu.dimension_semantics<parallel>], iteration_bounds = array<i64: 1, 1>, scalar_prefetch = 0 : i64, scratch_operands = 0 : i64, tpu.core_type = #tpu.core_type<tc>, window_params = [{transform_indices = @transform_0, window_bounds = array<i64: 64, 128>}, {transform_indices = @transform_1, window_bounds = array<i64: 128, 128>}, {transform_indices = @transform_2, window_bounds = array<i64: 1, 128>}, {transform_indices = @transform_3, window_bounds = array<i64: 64, 128>}]} {
    %c0 = arith.constant 0 : index
    %c0_0 = arith.constant 0 : index
    %0 = vector.load %arg2[%c0, %c0_0] : memref<64x128xbf16, #tpu.memory_space<vmem>>, vector<64x128xbf16>
    %c0_1 = arith.constant 0 : index
    %c0_2 = arith.constant 0 : index
    %1 = vector.load %arg3[%c0_1, %c0_2] : memref<128x128xbf16, #tpu.memory_space<vmem>>, vector<128x128xbf16>
    %cst = arith.constant dense<0.000000e+00> : vector<64x128xf32>
    %2 = tpu.matmul %0, %1, %cst {dimension_numbers = #tpu.dot_dimension_numbers<[1], [0], [0], [1], [0, 0, 1, 1], [], []>} : vector<64x128xbf16>, vector<128x128xbf16>, vector<64x128xf32> -> vector<64x128xf32>
    %c0_3 = arith.constant 0 : index
    %c0_4 = arith.constant 0 : index
    %3 = vector.load %arg4[%c0_3, %c0_4] : memref<1x128xf32, #tpu.memory_space<vmem>>, vector<1x128xf32>
    %4 = vector.broadcast %3 : vector<1x128xf32> to vector<64x128xf32>
    %5 = arith.addf %2, %4 : vector<64x128xf32>
    %c0_5 = arith.constant 0 : index
    %c0_6 = arith.constant 0 : index
    %6 = vector.load %arg5[%c0_5, %c0_6] : memref<64x128xf32, #tpu.memory_space<vmem>>, vector<64x128xf32>
    tpu.vector_store %arg5[%c0_5, %c0_6], %5 {strides = array<i32>} : memref<64x128xf32, #tpu.memory_space<vmem>>, vector<64x128xf32>,
    return
  }
  func.func @transform_0(%arg0: i32, %arg1: i32) -> (i32, i32) {
    %c0_i32 = arith.constant 0 : i32
    %c0_i32_0 = arith.constant 0 : i32
    return %arg0, %c0_i32 : i32, i32
  }
  func.func @transform_1(%arg0: i32, %arg1: i32) -> (i32, i32) {
    %c0_i32 = arith.constant 0 : i32
    %c0_i32_0 = arith.constant 0 : i32
    return %c0_i32, %arg1 : i32, i32
  }
  func.func @transform_2(%arg0: i32, %arg1: i32) -> (i32, i32) {
    %c0_i32 = arith.constant 0 : i32
    %c0_i32_0 = arith.constant 0 : i32
    return %c0_i32, %arg1 : i32, i32
  }
  func.func @transform_3(%arg0: i32, %arg1: i32) -> (i32, i32) {
    %c0_i32 = arith.constant 0 : i32
    return %arg0, %arg1 : i32, i32
  }
}

module attributes {stable_mosaic.version = 11 : i64} {
  func.func @_lstm_recurrent_kernel(%arg0: i32, %arg1: i32, %arg2: memref<8x8x512xbf16, #tpu.memory_space<vmem>>, %arg3: memref<128x512xbf16, #tpu.memory_space<vmem>>, %arg4: memref<8x128xf32, #tpu.memory_space<vmem>>, %arg5: memref<8x128xf32, #tpu.memory_space<vmem>>, %arg6: memref<8x8x128xbf16, #tpu.memory_space<vmem>>, %arg7: memref<8x128xf32, #tpu.memory_space<vmem>>, %arg8: memref<8x128xf32, #tpu.memory_space<vmem>>, %arg9: memref<8x128xf32, #tpu.memory_space<vmem>>, %arg10: memref<8x128xf32, #tpu.memory_space<vmem>>) attributes {dimension_semantics = [#tpu.dimension_semantics<parallel>, #tpu.dimension_semantics<arbitrary>], iteration_bounds = array<i64: 1, 1>, scalar_prefetch = 0 : i64, scratch_operands = 2 : i64, tpu.core_type = #tpu.core_type<tc>, window_params = [{transform_indices = @transform_0, window_bounds = array<i64: 8, 8, 512>}, {pipeline_mode = #tpu.pipeline_mode<synchronous>, transform_indices = @transform_1, window_bounds = array<i64: 128, 512>}, {transform_indices = @transform_2, window_bounds = array<i64: 8, 128>}, {transform_indices = @transform_3, window_bounds = array<i64: 8, 128>}, {transform_indices = @transform_4, window_bounds = array<i64: 8, 8, 128>}, {transform_indices = @transform_5, window_bounds = array<i64: 8, 128>}, {transform_indices = @transform_6, window_bounds = array<i64: 8, 128>}]} {
    %c0_i32 = arith.constant 0 : i32
    %0 = arith.cmpi eq, %arg1, %c0_i32 : i32
    %1 = arith.extui %0 : i1 to i32
    %c0_i32_0 = arith.constant 0 : i32
    %2 = arith.cmpi ne, %1, %c0_i32_0 : i32
    scf.if %2 {
      %c0_188 = arith.constant 0 : index
      %c0_189 = arith.constant 0 : index
      %367 = vector.load %arg4[%c0_188, %c0_189] : memref<8x128xf32, #tpu.memory_space<vmem>>, vector<8x128xf32>
      %c0_190 = arith.constant 0 : index
      %c0_191 = arith.constant 0 : index
      %368 = vector.load %arg9[%c0_190, %c0_191] : memref<8x128xf32, #tpu.memory_space<vmem>>, vector<8x128xf32>
      tpu.vector_store %arg9[%c0_190, %c0_191], %367 {strides = array<i32>} : memref<8x128xf32, #tpu.memory_space<vmem>>, vector<8x128xf32>,
      %c0_192 = arith.constant 0 : index
      %c0_193 = arith.constant 0 : index
      %369 = vector.load %arg5[%c0_192, %c0_193] : memref<8x128xf32, #tpu.memory_space<vmem>>, vector<8x128xf32>
      %c0_194 = arith.constant 0 : index
      %c0_195 = arith.constant 0 : index
      %370 = vector.load %arg10[%c0_194, %c0_195] : memref<8x128xf32, #tpu.memory_space<vmem>>, vector<8x128xf32>
      tpu.vector_store %arg10[%c0_194, %c0_195], %369 {strides = array<i32>} : memref<8x128xf32, #tpu.memory_space<vmem>>, vector<8x128xf32>,
    } else {
    }
    %c0 = arith.constant 0 : index
    %c0_1 = arith.constant 0 : index
    %3 = vector.load %arg3[%c0, %c0_1] : memref<128x512xbf16, #tpu.memory_space<vmem>>, vector<128x512xbf16>
    %c0_2 = arith.constant 0 : index
    %c0_3 = arith.constant 0 : index
    %c0_4 = arith.constant 0 : index
    %4 = vector.load %arg2[%c0_2, %c0_3, %c0_4] : memref<8x8x512xbf16, #tpu.memory_space<vmem>>, vector<8x1x512xbf16>
    %5 = vector.shape_cast %4 : vector<8x1x512xbf16> to vector<8x512xbf16>
    %c0_5 = arith.constant 0 : index
    %c0_6 = arith.constant 0 : index
    %6 = vector.load %arg9[%c0_5, %c0_6] : memref<8x128xf32, #tpu.memory_space<vmem>>, vector<8x128xf32>
    %7 = arith.truncf %6 : vector<8x128xf32> to vector<8x128xbf16>
    %cst = arith.constant dense<0.000000e+00> : vector<8x512xf32>
    %8 = tpu.matmul %7, %3, %cst {dimension_numbers = #tpu.dot_dimension_numbers<[1], [0], [0], [1], [0, 0, 1, 1], [], []>} : vector<8x128xbf16>, vector<128x512xbf16>, vector<8x512xf32> -> vector<8x512xf32>
    %9 = arith.extf %5 : vector<8x512xbf16> to vector<8x512xf32>
    %10 = arith.addf %9, %8 : vector<8x512xf32>
    %11 = vector.extract_strided_slice %10 {offsets = [0, 0], sizes = [8, 128], strides = [1, 1]} : vector<8x512xf32> to vector<8x128xf32>
    %cst_7 = arith.constant 5.000000e-01 : f32
    %12 = vector.broadcast %cst_7 : f32 to vector<8x128xf32>
    %13 = arith.mulf %12, %11 : vector<8x128xf32>
    %14 = math.tanh %13 : vector<8x128xf32>
    %cst_8 = arith.constant 5.000000e-01 : f32
    %15 = vector.broadcast %cst_8 : f32 to vector<8x128xf32>
    %16 = arith.mulf %15, %14 : vector<8x128xf32>
    %cst_9 = arith.constant 5.000000e-01 : f32
    %17 = vector.broadcast %cst_9 : f32 to vector<8x128xf32>
    %18 = arith.addf %16, %17 : vector<8x128xf32>
    %19 = vector.extract_strided_slice %10 {offsets = [0, 128], sizes = [8, 128], strides = [1, 1]} : vector<8x512xf32> to vector<8x128xf32>
    %cst_10 = arith.constant 5.000000e-01 : f32
    %20 = vector.broadcast %cst_10 : f32 to vector<8x128xf32>
    %21 = arith.mulf %20, %19 : vector<8x128xf32>
    %22 = math.tanh %21 : vector<8x128xf32>
    %cst_11 = arith.constant 5.000000e-01 : f32
    %23 = vector.broadcast %cst_11 : f32 to vector<8x128xf32>
    %24 = arith.mulf %23, %22 : vector<8x128xf32>
    %cst_12 = arith.constant 5.000000e-01 : f32
    %25 = vector.broadcast %cst_12 : f32 to vector<8x128xf32>
    %26 = arith.addf %24, %25 : vector<8x128xf32>
    %27 = vector.extract_strided_slice %10 {offsets = [0, 256], sizes = [8, 128], strides = [1, 1]} : vector<8x512xf32> to vector<8x128xf32>
    %28 = math.tanh %27 : vector<8x128xf32>
    %29 = vector.extract_strided_slice %10 {offsets = [0, 384], sizes = [8, 128], strides = [1, 1]} : vector<8x512xf32> to vector<8x128xf32>
    %cst_13 = arith.constant 5.000000e-01 : f32
    %30 = vector.broadcast %cst_13 : f32 to vector<8x128xf32>
    %31 = arith.mulf %30, %29 : vector<8x128xf32>
    %32 = math.tanh %31 : vector<8x128xf32>
    %cst_14 = arith.constant 5.000000e-01 : f32
    %33 = vector.broadcast %cst_14 : f32 to vector<8x128xf32>
    %34 = arith.mulf %33, %32 : vector<8x128xf32>
    %cst_15 = arith.constant 5.000000e-01 : f32
    %35 = vector.broadcast %cst_15 : f32 to vector<8x128xf32>
    %36 = arith.addf %34, %35 : vector<8x128xf32>
    %c0_16 = arith.constant 0 : index
    %c0_17 = arith.constant 0 : index
    %37 = vector.load %arg10[%c0_16, %c0_17] : memref<8x128xf32, #tpu.memory_space<vmem>>, vector<8x128xf32>
    %38 = arith.mulf %26, %37 : vector<8x128xf32>
    %39 = arith.mulf %18, %28 : vector<8x128xf32>
    %40 = arith.addf %38, %39 : vector<8x128xf32>
    %41 = math.tanh %40 : vector<8x128xf32>
    %42 = arith.mulf %36, %41 : vector<8x128xf32>
    %c0_18 = arith.constant 0 : index
    %c0_19 = arith.constant 0 : index
    %43 = vector.load %arg10[%c0_18, %c0_19] : memref<8x128xf32, #tpu.memory_space<vmem>>, vector<8x128xf32>
    tpu.vector_store %arg10[%c0_18, %c0_19], %40 {strides = array<i32>} : memref<8x128xf32, #tpu.memory_space<vmem>>, vector<8x128xf32>,
    %c0_20 = arith.constant 0 : index
    %c0_21 = arith.constant 0 : index
    %44 = vector.load %arg9[%c0_20, %c0_21] : memref<8x128xf32, #tpu.memory_space<vmem>>, vector<8x128xf32>
    tpu.vector_store %arg9[%c0_20, %c0_21], %42 {strides = array<i32>} : memref<8x128xf32, #tpu.memory_space<vmem>>, vector<8x128xf32>,
    %45 = arith.truncf %42 : vector<8x128xf32> to vector<8x128xbf16>
    %c0_22 = arith.constant 0 : index
    %c0_23 = arith.constant 0 : index
    %c0_24 = arith.constant 0 : index
    %46 = vector.load %arg6[%c0_22, %c0_23, %c0_24] : memref<8x8x128xbf16, #tpu.memory_space<vmem>>, vector<8x1x128xbf16>
    %47 = vector.shape_cast %46 : vector<8x1x128xbf16> to vector<8x128xbf16>
    %48 = vector.shape_cast %45 : vector<8x128xbf16> to vector<8x1x128xbf16>
    tpu.vector_store %arg6[%c0_22, %c0_23, %c0_24], %48 {strides = array<i32>} : memref<8x8x128xbf16, #tpu.memory_space<vmem>>, vector<8x1x128xbf16>,
    %c0_25 = arith.constant 0 : index
    %c1 = arith.constant 1 : index
    %c0_26 = arith.constant 0 : index
    %49 = vector.load %arg2[%c0_25, %c1, %c0_26] : memref<8x8x512xbf16, #tpu.memory_space<vmem>>, vector<8x1x512xbf16>
    %50 = vector.shape_cast %49 : vector<8x1x512xbf16> to vector<8x512xbf16>
    %c0_27 = arith.constant 0 : index
    %c0_28 = arith.constant 0 : index
    %51 = vector.load %arg9[%c0_27, %c0_28] : memref<8x128xf32, #tpu.memory_space<vmem>>, vector<8x128xf32>
    %52 = arith.truncf %51 : vector<8x128xf32> to vector<8x128xbf16>
    %cst_29 = arith.constant dense<0.000000e+00> : vector<8x512xf32>
    %53 = tpu.matmul %52, %3, %cst_29 {dimension_numbers = #tpu.dot_dimension_numbers<[1], [0], [0], [1], [0, 0, 1, 1], [], []>} : vector<8x128xbf16>, vector<128x512xbf16>, vector<8x512xf32> -> vector<8x512xf32>
    %54 = arith.extf %50 : vector<8x512xbf16> to vector<8x512xf32>
    %55 = arith.addf %54, %53 : vector<8x512xf32>
    %56 = vector.extract_strided_slice %55 {offsets = [0, 0], sizes = [8, 128], strides = [1, 1]} : vector<8x512xf32> to vector<8x128xf32>
    %cst_30 = arith.constant 5.000000e-01 : f32
    %57 = vector.broadcast %cst_30 : f32 to vector<8x128xf32>
    %58 = arith.mulf %57, %56 : vector<8x128xf32>
    %59 = math.tanh %58 : vector<8x128xf32>
    %cst_31 = arith.constant 5.000000e-01 : f32
    %60 = vector.broadcast %cst_31 : f32 to vector<8x128xf32>
    %61 = arith.mulf %60, %59 : vector<8x128xf32>
    %cst_32 = arith.constant 5.000000e-01 : f32
    %62 = vector.broadcast %cst_32 : f32 to vector<8x128xf32>
    %63 = arith.addf %61, %62 : vector<8x128xf32>
    %64 = vector.extract_strided_slice %55 {offsets = [0, 128], sizes = [8, 128], strides = [1, 1]} : vector<8x512xf32> to vector<8x128xf32>
    %cst_33 = arith.constant 5.000000e-01 : f32
    %65 = vector.broadcast %cst_33 : f32 to vector<8x128xf32>
    %66 = arith.mulf %65, %64 : vector<8x128xf32>
    %67 = math.tanh %66 : vector<8x128xf32>
    %cst_34 = arith.constant 5.000000e-01 : f32
    %68 = vector.broadcast %cst_34 : f32 to vector<8x128xf32>
    %69 = arith.mulf %68, %67 : vector<8x128xf32>
    %cst_35 = arith.constant 5.000000e-01 : f32
    %70 = vector.broadcast %cst_35 : f32 to vector<8x128xf32>
    %71 = arith.addf %69, %70 : vector<8x128xf32>
    %72 = vector.extract_strided_slice %55 {offsets = [0, 256], sizes = [8, 128], strides = [1, 1]} : vector<8x512xf32> to vector<8x128xf32>
    %73 = math.tanh %72 : vector<8x128xf32>
    %74 = vector.extract_strided_slice %55 {offsets = [0, 384], sizes = [8, 128], strides = [1, 1]} : vector<8x512xf32> to vector<8x128xf32>
    %cst_36 = arith.constant 5.000000e-01 : f32
    %75 = vector.broadcast %cst_36 : f32 to vector<8x128xf32>
    %76 = arith.mulf %75, %74 : vector<8x128xf32>
    %77 = math.tanh %76 : vector<8x128xf32>
    %cst_37 = arith.constant 5.000000e-01 : f32
    %78 = vector.broadcast %cst_37 : f32 to vector<8x128xf32>
    %79 = arith.mulf %78, %77 : vector<8x128xf32>
    %cst_38 = arith.constant 5.000000e-01 : f32
    %80 = vector.broadcast %cst_38 : f32 to vector<8x128xf32>
    %81 = arith.addf %79, %80 : vector<8x128xf32>
    %c0_39 = arith.constant 0 : index
    %c0_40 = arith.constant 0 : index
    %82 = vector.load %arg10[%c0_39, %c0_40] : memref<8x128xf32, #tpu.memory_space<vmem>>, vector<8x128xf32>
    %83 = arith.mulf %71, %82 : vector<8x128xf32>
    %84 = arith.mulf %63, %73 : vector<8x128xf32>
    %85 = arith.addf %83, %84 : vector<8x128xf32>
    %86 = math.tanh %85 : vector<8x128xf32>
    %87 = arith.mulf %81, %86 : vector<8x128xf32>
    %c0_41 = arith.constant 0 : index
    %c0_42 = arith.constant 0 : index
    %88 = vector.load %arg10[%c0_41, %c0_42] : memref<8x128xf32, #tpu.memory_space<vmem>>, vector<8x128xf32>
    tpu.vector_store %arg10[%c0_41, %c0_42], %85 {strides = array<i32>} : memref<8x128xf32, #tpu.memory_space<vmem>>, vector<8x128xf32>,
    %c0_43 = arith.constant 0 : index
    %c0_44 = arith.constant 0 : index
    %89 = vector.load %arg9[%c0_43, %c0_44] : memref<8x128xf32, #tpu.memory_space<vmem>>, vector<8x128xf32>
    tpu.vector_store %arg9[%c0_43, %c0_44], %87 {strides = array<i32>} : memref<8x128xf32, #tpu.memory_space<vmem>>, vector<8x128xf32>,
    %90 = arith.truncf %87 : vector<8x128xf32> to vector<8x128xbf16>
    %c0_45 = arith.constant 0 : index
    %c1_46 = arith.constant 1 : index
    %c0_47 = arith.constant 0 : index
    %91 = vector.load %arg6[%c0_45, %c1_46, %c0_47] : memref<8x8x128xbf16, #tpu.memory_space<vmem>>, vector<8x1x128xbf16>
    %92 = vector.shape_cast %91 : vector<8x1x128xbf16> to vector<8x128xbf16>
    %93 = vector.shape_cast %90 : vector<8x128xbf16> to vector<8x1x128xbf16>
    tpu.vector_store %arg6[%c0_45, %c1_46, %c0_47], %93 {strides = array<i32>} : memref<8x8x128xbf16, #tpu.memory_space<vmem>>, vector<8x1x128xbf16>,
    %c0_48 = arith.constant 0 : index
    %c2 = arith.constant 2 : index
    %c0_49 = arith.constant 0 : index
    %94 = vector.load %arg2[%c0_48, %c2, %c0_49] : memref<8x8x512xbf16, #tpu.memory_space<vmem>>, vector<8x1x512xbf16>
    %95 = vector.shape_cast %94 : vector<8x1x512xbf16> to vector<8x512xbf16>
    %c0_50 = arith.constant 0 : index
    %c0_51 = arith.constant 0 : index
    %96 = vector.load %arg9[%c0_50, %c0_51] : memref<8x128xf32, #tpu.memory_space<vmem>>, vector<8x128xf32>
    %97 = arith.truncf %96 : vector<8x128xf32> to vector<8x128xbf16>
    %cst_52 = arith.constant dense<0.000000e+00> : vector<8x512xf32>
    %98 = tpu.matmul %97, %3, %cst_52 {dimension_numbers = #tpu.dot_dimension_numbers<[1], [0], [0], [1], [0, 0, 1, 1], [], []>} : vector<8x128xbf16>, vector<128x512xbf16>, vector<8x512xf32> -> vector<8x512xf32>
    %99 = arith.extf %95 : vector<8x512xbf16> to vector<8x512xf32>
    %100 = arith.addf %99, %98 : vector<8x512xf32>
    %101 = vector.extract_strided_slice %100 {offsets = [0, 0], sizes = [8, 128], strides = [1, 1]} : vector<8x512xf32> to vector<8x128xf32>
    %cst_53 = arith.constant 5.000000e-01 : f32
    %102 = vector.broadcast %cst_53 : f32 to vector<8x128xf32>
    %103 = arith.mulf %102, %101 : vector<8x128xf32>
    %104 = math.tanh %103 : vector<8x128xf32>
    %cst_54 = arith.constant 5.000000e-01 : f32
    %105 = vector.broadcast %cst_54 : f32 to vector<8x128xf32>
    %106 = arith.mulf %105, %104 : vector<8x128xf32>
    %cst_55 = arith.constant 5.000000e-01 : f32
    %107 = vector.broadcast %cst_55 : f32 to vector<8x128xf32>
    %108 = arith.addf %106, %107 : vector<8x128xf32>
    %109 = vector.extract_strided_slice %100 {offsets = [0, 128], sizes = [8, 128], strides = [1, 1]} : vector<8x512xf32> to vector<8x128xf32>
    %cst_56 = arith.constant 5.000000e-01 : f32
    %110 = vector.broadcast %cst_56 : f32 to vector<8x128xf32>
    %111 = arith.mulf %110, %109 : vector<8x128xf32>
    %112 = math.tanh %111 : vector<8x128xf32>
    %cst_57 = arith.constant 5.000000e-01 : f32
    %113 = vector.broadcast %cst_57 : f32 to vector<8x128xf32>
    %114 = arith.mulf %113, %112 : vector<8x128xf32>
    %cst_58 = arith.constant 5.000000e-01 : f32
    %115 = vector.broadcast %cst_58 : f32 to vector<8x128xf32>
    %116 = arith.addf %114, %115 : vector<8x128xf32>
    %117 = vector.extract_strided_slice %100 {offsets = [0, 256], sizes = [8, 128], strides = [1, 1]} : vector<8x512xf32> to vector<8x128xf32>
    %118 = math.tanh %117 : vector<8x128xf32>
    %119 = vector.extract_strided_slice %100 {offsets = [0, 384], sizes = [8, 128], strides = [1, 1]} : vector<8x512xf32> to vector<8x128xf32>
    %cst_59 = arith.constant 5.000000e-01 : f32
    %120 = vector.broadcast %cst_59 : f32 to vector<8x128xf32>
    %121 = arith.mulf %120, %119 : vector<8x128xf32>
    %122 = math.tanh %121 : vector<8x128xf32>
    %cst_60 = arith.constant 5.000000e-01 : f32
    %123 = vector.broadcast %cst_60 : f32 to vector<8x128xf32>
    %124 = arith.mulf %123, %122 : vector<8x128xf32>
    %cst_61 = arith.constant 5.000000e-01 : f32
    %125 = vector.broadcast %cst_61 : f32 to vector<8x128xf32>
    %126 = arith.addf %124, %125 : vector<8x128xf32>
    %c0_62 = arith.constant 0 : index
    %c0_63 = arith.constant 0 : index
    %127 = vector.load %arg10[%c0_62, %c0_63] : memref<8x128xf32, #tpu.memory_space<vmem>>, vector<8x128xf32>
    %128 = arith.mulf %116, %127 : vector<8x128xf32>
    %129 = arith.mulf %108, %118 : vector<8x128xf32>
    %130 = arith.addf %128, %129 : vector<8x128xf32>
    %131 = math.tanh %130 : vector<8x128xf32>
    %132 = arith.mulf %126, %131 : vector<8x128xf32>
    %c0_64 = arith.constant 0 : index
    %c0_65 = arith.constant 0 : index
    %133 = vector.load %arg10[%c0_64, %c0_65] : memref<8x128xf32, #tpu.memory_space<vmem>>, vector<8x128xf32>
    tpu.vector_store %arg10[%c0_64, %c0_65], %130 {strides = array<i32>} : memref<8x128xf32, #tpu.memory_space<vmem>>, vector<8x128xf32>,
    %c0_66 = arith.constant 0 : index
    %c0_67 = arith.constant 0 : index
    %134 = vector.load %arg9[%c0_66, %c0_67] : memref<8x128xf32, #tpu.memory_space<vmem>>, vector<8x128xf32>
    tpu.vector_store %arg9[%c0_66, %c0_67], %132 {strides = array<i32>} : memref<8x128xf32, #tpu.memory_space<vmem>>, vector<8x128xf32>,
    %135 = arith.truncf %132 : vector<8x128xf32> to vector<8x128xbf16>
    %c0_68 = arith.constant 0 : index
    %c2_69 = arith.constant 2 : index
    %c0_70 = arith.constant 0 : index
    %136 = vector.load %arg6[%c0_68, %c2_69, %c0_70] : memref<8x8x128xbf16, #tpu.memory_space<vmem>>, vector<8x1x128xbf16>
    %137 = vector.shape_cast %136 : vector<8x1x128xbf16> to vector<8x128xbf16>
    %138 = vector.shape_cast %135 : vector<8x128xbf16> to vector<8x1x128xbf16>
    tpu.vector_store %arg6[%c0_68, %c2_69, %c0_70], %138 {strides = array<i32>} : memref<8x8x128xbf16, #tpu.memory_space<vmem>>, vector<8x1x128xbf16>,
    %c0_71 = arith.constant 0 : index
    %c3 = arith.constant 3 : index
    %c0_72 = arith.constant 0 : index
    %139 = vector.load %arg2[%c0_71, %c3, %c0_72] : memref<8x8x512xbf16, #tpu.memory_space<vmem>>, vector<8x1x512xbf16>
    %140 = vector.shape_cast %139 : vector<8x1x512xbf16> to vector<8x512xbf16>
    %c0_73 = arith.constant 0 : index
    %c0_74 = arith.constant 0 : index
    %141 = vector.load %arg9[%c0_73, %c0_74] : memref<8x128xf32, #tpu.memory_space<vmem>>, vector<8x128xf32>
    %142 = arith.truncf %141 : vector<8x128xf32> to vector<8x128xbf16>
    %cst_75 = arith.constant dense<0.000000e+00> : vector<8x512xf32>
    %143 = tpu.matmul %142, %3, %cst_75 {dimension_numbers = #tpu.dot_dimension_numbers<[1], [0], [0], [1], [0, 0, 1, 1], [], []>} : vector<8x128xbf16>, vector<128x512xbf16>, vector<8x512xf32> -> vector<8x512xf32>
    %144 = arith.extf %140 : vector<8x512xbf16> to vector<8x512xf32>
    %145 = arith.addf %144, %143 : vector<8x512xf32>
    %146 = vector.extract_strided_slice %145 {offsets = [0, 0], sizes = [8, 128], strides = [1, 1]} : vector<8x512xf32> to vector<8x128xf32>
    %cst_76 = arith.constant 5.000000e-01 : f32
    %147 = vector.broadcast %cst_76 : f32 to vector<8x128xf32>
    %148 = arith.mulf %147, %146 : vector<8x128xf32>
    %149 = math.tanh %148 : vector<8x128xf32>
    %cst_77 = arith.constant 5.000000e-01 : f32
    %150 = vector.broadcast %cst_77 : f32 to vector<8x128xf32>
    %151 = arith.mulf %150, %149 : vector<8x128xf32>
    %cst_78 = arith.constant 5.000000e-01 : f32
    %152 = vector.broadcast %cst_78 : f32 to vector<8x128xf32>
    %153 = arith.addf %151, %152 : vector<8x128xf32>
    %154 = vector.extract_strided_slice %145 {offsets = [0, 128], sizes = [8, 128], strides = [1, 1]} : vector<8x512xf32> to vector<8x128xf32>
    %cst_79 = arith.constant 5.000000e-01 : f32
    %155 = vector.broadcast %cst_79 : f32 to vector<8x128xf32>
    %156 = arith.mulf %155, %154 : vector<8x128xf32>
    %157 = math.tanh %156 : vector<8x128xf32>
    %cst_80 = arith.constant 5.000000e-01 : f32
    %158 = vector.broadcast %cst_80 : f32 to vector<8x128xf32>
    %159 = arith.mulf %158, %157 : vector<8x128xf32>
    %cst_81 = arith.constant 5.000000e-01 : f32
    %160 = vector.broadcast %cst_81 : f32 to vector<8x128xf32>
    %161 = arith.addf %159, %160 : vector<8x128xf32>
    %162 = vector.extract_strided_slice %145 {offsets = [0, 256], sizes = [8, 128], strides = [1, 1]} : vector<8x512xf32> to vector<8x128xf32>
    %163 = math.tanh %162 : vector<8x128xf32>
    %164 = vector.extract_strided_slice %145 {offsets = [0, 384], sizes = [8, 128], strides = [1, 1]} : vector<8x512xf32> to vector<8x128xf32>
    %cst_82 = arith.constant 5.000000e-01 : f32
    %165 = vector.broadcast %cst_82 : f32 to vector<8x128xf32>
    %166 = arith.mulf %165, %164 : vector<8x128xf32>
    %167 = math.tanh %166 : vector<8x128xf32>
    %cst_83 = arith.constant 5.000000e-01 : f32
    %168 = vector.broadcast %cst_83 : f32 to vector<8x128xf32>
    %169 = arith.mulf %168, %167 : vector<8x128xf32>
    %cst_84 = arith.constant 5.000000e-01 : f32
    %170 = vector.broadcast %cst_84 : f32 to vector<8x128xf32>
    %171 = arith.addf %169, %170 : vector<8x128xf32>
    %c0_85 = arith.constant 0 : index
    %c0_86 = arith.constant 0 : index
    %172 = vector.load %arg10[%c0_85, %c0_86] : memref<8x128xf32, #tpu.memory_space<vmem>>, vector<8x128xf32>
    %173 = arith.mulf %161, %172 : vector<8x128xf32>
    %174 = arith.mulf %153, %163 : vector<8x128xf32>
    %175 = arith.addf %173, %174 : vector<8x128xf32>
    %176 = math.tanh %175 : vector<8x128xf32>
    %177 = arith.mulf %171, %176 : vector<8x128xf32>
    %c0_87 = arith.constant 0 : index
    %c0_88 = arith.constant 0 : index
    %178 = vector.load %arg10[%c0_87, %c0_88] : memref<8x128xf32, #tpu.memory_space<vmem>>, vector<8x128xf32>
    tpu.vector_store %arg10[%c0_87, %c0_88], %175 {strides = array<i32>} : memref<8x128xf32, #tpu.memory_space<vmem>>, vector<8x128xf32>,
    %c0_89 = arith.constant 0 : index
    %c0_90 = arith.constant 0 : index
    %179 = vector.load %arg9[%c0_89, %c0_90] : memref<8x128xf32, #tpu.memory_space<vmem>>, vector<8x128xf32>
    tpu.vector_store %arg9[%c0_89, %c0_90], %177 {strides = array<i32>} : memref<8x128xf32, #tpu.memory_space<vmem>>, vector<8x128xf32>,
    %180 = arith.truncf %177 : vector<8x128xf32> to vector<8x128xbf16>
    %c0_91 = arith.constant 0 : index
    %c3_92 = arith.constant 3 : index
    %c0_93 = arith.constant 0 : index
    %181 = vector.load %arg6[%c0_91, %c3_92, %c0_93] : memref<8x8x128xbf16, #tpu.memory_space<vmem>>, vector<8x1x128xbf16>
    %182 = vector.shape_cast %181 : vector<8x1x128xbf16> to vector<8x128xbf16>
    %183 = vector.shape_cast %180 : vector<8x128xbf16> to vector<8x1x128xbf16>
    tpu.vector_store %arg6[%c0_91, %c3_92, %c0_93], %183 {strides = array<i32>} : memref<8x8x128xbf16, #tpu.memory_space<vmem>>, vector<8x1x128xbf16>,
    %c0_94 = arith.constant 0 : index
    %c4 = arith.constant 4 : index
    %c0_95 = arith.constant 0 : index
    %184 = vector.load %arg2[%c0_94, %c4, %c0_95] : memref<8x8x512xbf16, #tpu.memory_space<vmem>>, vector<8x1x512xbf16>
    %185 = vector.shape_cast %184 : vector<8x1x512xbf16> to vector<8x512xbf16>
    %c0_96 = arith.constant 0 : index
    %c0_97 = arith.constant 0 : index
    %186 = vector.load %arg9[%c0_96, %c0_97] : memref<8x128xf32, #tpu.memory_space<vmem>>, vector<8x128xf32>
    %187 = arith.truncf %186 : vector<8x128xf32> to vector<8x128xbf16>
    %cst_98 = arith.constant dense<0.000000e+00> : vector<8x512xf32>
    %188 = tpu.matmul %187, %3, %cst_98 {dimension_numbers = #tpu.dot_dimension_numbers<[1], [0], [0], [1], [0, 0, 1, 1], [], []>} : vector<8x128xbf16>, vector<128x512xbf16>, vector<8x512xf32> -> vector<8x512xf32>
    %189 = arith.extf %185 : vector<8x512xbf16> to vector<8x512xf32>
    %190 = arith.addf %189, %188 : vector<8x512xf32>
    %191 = vector.extract_strided_slice %190 {offsets = [0, 0], sizes = [8, 128], strides = [1, 1]} : vector<8x512xf32> to vector<8x128xf32>
    %cst_99 = arith.constant 5.000000e-01 : f32
    %192 = vector.broadcast %cst_99 : f32 to vector<8x128xf32>
    %193 = arith.mulf %192, %191 : vector<8x128xf32>
    %194 = math.tanh %193 : vector<8x128xf32>
    %cst_100 = arith.constant 5.000000e-01 : f32
    %195 = vector.broadcast %cst_100 : f32 to vector<8x128xf32>
    %196 = arith.mulf %195, %194 : vector<8x128xf32>
    %cst_101 = arith.constant 5.000000e-01 : f32
    %197 = vector.broadcast %cst_101 : f32 to vector<8x128xf32>
    %198 = arith.addf %196, %197 : vector<8x128xf32>
    %199 = vector.extract_strided_slice %190 {offsets = [0, 128], sizes = [8, 128], strides = [1, 1]} : vector<8x512xf32> to vector<8x128xf32>
    %cst_102 = arith.constant 5.000000e-01 : f32
    %200 = vector.broadcast %cst_102 : f32 to vector<8x128xf32>
    %201 = arith.mulf %200, %199 : vector<8x128xf32>
    %202 = math.tanh %201 : vector<8x128xf32>
    %cst_103 = arith.constant 5.000000e-01 : f32
    %203 = vector.broadcast %cst_103 : f32 to vector<8x128xf32>
    %204 = arith.mulf %203, %202 : vector<8x128xf32>
    %cst_104 = arith.constant 5.000000e-01 : f32
    %205 = vector.broadcast %cst_104 : f32 to vector<8x128xf32>
    %206 = arith.addf %204, %205 : vector<8x128xf32>
    %207 = vector.extract_strided_slice %190 {offsets = [0, 256], sizes = [8, 128], strides = [1, 1]} : vector<8x512xf32> to vector<8x128xf32>
    %208 = math.tanh %207 : vector<8x128xf32>
    %209 = vector.extract_strided_slice %190 {offsets = [0, 384], sizes = [8, 128], strides = [1, 1]} : vector<8x512xf32> to vector<8x128xf32>
    %cst_105 = arith.constant 5.000000e-01 : f32
    %210 = vector.broadcast %cst_105 : f32 to vector<8x128xf32>
    %211 = arith.mulf %210, %209 : vector<8x128xf32>
    %212 = math.tanh %211 : vector<8x128xf32>
    %cst_106 = arith.constant 5.000000e-01 : f32
    %213 = vector.broadcast %cst_106 : f32 to vector<8x128xf32>
    %214 = arith.mulf %213, %212 : vector<8x128xf32>
    %cst_107 = arith.constant 5.000000e-01 : f32
    %215 = vector.broadcast %cst_107 : f32 to vector<8x128xf32>
    %216 = arith.addf %214, %215 : vector<8x128xf32>
    %c0_108 = arith.constant 0 : index
    %c0_109 = arith.constant 0 : index
    %217 = vector.load %arg10[%c0_108, %c0_109] : memref<8x128xf32, #tpu.memory_space<vmem>>, vector<8x128xf32>
    %218 = arith.mulf %206, %217 : vector<8x128xf32>
    %219 = arith.mulf %198, %208 : vector<8x128xf32>
    %220 = arith.addf %218, %219 : vector<8x128xf32>
    %221 = math.tanh %220 : vector<8x128xf32>
    %222 = arith.mulf %216, %221 : vector<8x128xf32>
    %c0_110 = arith.constant 0 : index
    %c0_111 = arith.constant 0 : index
    %223 = vector.load %arg10[%c0_110, %c0_111] : memref<8x128xf32, #tpu.memory_space<vmem>>, vector<8x128xf32>
    tpu.vector_store %arg10[%c0_110, %c0_111], %220 {strides = array<i32>} : memref<8x128xf32, #tpu.memory_space<vmem>>, vector<8x128xf32>,
    %c0_112 = arith.constant 0 : index
    %c0_113 = arith.constant 0 : index
    %224 = vector.load %arg9[%c0_112, %c0_113] : memref<8x128xf32, #tpu.memory_space<vmem>>, vector<8x128xf32>
    tpu.vector_store %arg9[%c0_112, %c0_113], %222 {strides = array<i32>} : memref<8x128xf32, #tpu.memory_space<vmem>>, vector<8x128xf32>,
    %225 = arith.truncf %222 : vector<8x128xf32> to vector<8x128xbf16>
    %c0_114 = arith.constant 0 : index
    %c4_115 = arith.constant 4 : index
    %c0_116 = arith.constant 0 : index
    %226 = vector.load %arg6[%c0_114, %c4_115, %c0_116] : memref<8x8x128xbf16, #tpu.memory_space<vmem>>, vector<8x1x128xbf16>
    %227 = vector.shape_cast %226 : vector<8x1x128xbf16> to vector<8x128xbf16>
    %228 = vector.shape_cast %225 : vector<8x128xbf16> to vector<8x1x128xbf16>
    tpu.vector_store %arg6[%c0_114, %c4_115, %c0_116], %228 {strides = array<i32>} : memref<8x8x128xbf16, #tpu.memory_space<vmem>>, vector<8x1x128xbf16>,
    %c0_117 = arith.constant 0 : index
    %c5 = arith.constant 5 : index
    %c0_118 = arith.constant 0 : index
    %229 = vector.load %arg2[%c0_117, %c5, %c0_118] : memref<8x8x512xbf16, #tpu.memory_space<vmem>>, vector<8x1x512xbf16>
    %230 = vector.shape_cast %229 : vector<8x1x512xbf16> to vector<8x512xbf16>
    %c0_119 = arith.constant 0 : index
    %c0_120 = arith.constant 0 : index
    %231 = vector.load %arg9[%c0_119, %c0_120] : memref<8x128xf32, #tpu.memory_space<vmem>>, vector<8x128xf32>
    %232 = arith.truncf %231 : vector<8x128xf32> to vector<8x128xbf16>
    %cst_121 = arith.constant dense<0.000000e+00> : vector<8x512xf32>
    %233 = tpu.matmul %232, %3, %cst_121 {dimension_numbers = #tpu.dot_dimension_numbers<[1], [0], [0], [1], [0, 0, 1, 1], [], []>} : vector<8x128xbf16>, vector<128x512xbf16>, vector<8x512xf32> -> vector<8x512xf32>
    %234 = arith.extf %230 : vector<8x512xbf16> to vector<8x512xf32>
    %235 = arith.addf %234, %233 : vector<8x512xf32>
    %236 = vector.extract_strided_slice %235 {offsets = [0, 0], sizes = [8, 128], strides = [1, 1]} : vector<8x512xf32> to vector<8x128xf32>
    %cst_122 = arith.constant 5.000000e-01 : f32
    %237 = vector.broadcast %cst_122 : f32 to vector<8x128xf32>
    %238 = arith.mulf %237, %236 : vector<8x128xf32>
    %239 = math.tanh %238 : vector<8x128xf32>
    %cst_123 = arith.constant 5.000000e-01 : f32
    %240 = vector.broadcast %cst_123 : f32 to vector<8x128xf32>
    %241 = arith.mulf %240, %239 : vector<8x128xf32>
    %cst_124 = arith.constant 5.000000e-01 : f32
    %242 = vector.broadcast %cst_124 : f32 to vector<8x128xf32>
    %243 = arith.addf %241, %242 : vector<8x128xf32>
    %244 = vector.extract_strided_slice %235 {offsets = [0, 128], sizes = [8, 128], strides = [1, 1]} : vector<8x512xf32> to vector<8x128xf32>
    %cst_125 = arith.constant 5.000000e-01 : f32
    %245 = vector.broadcast %cst_125 : f32 to vector<8x128xf32>
    %246 = arith.mulf %245, %244 : vector<8x128xf32>
    %247 = math.tanh %246 : vector<8x128xf32>
    %cst_126 = arith.constant 5.000000e-01 : f32
    %248 = vector.broadcast %cst_126 : f32 to vector<8x128xf32>
    %249 = arith.mulf %248, %247 : vector<8x128xf32>
    %cst_127 = arith.constant 5.000000e-01 : f32
    %250 = vector.broadcast %cst_127 : f32 to vector<8x128xf32>
    %251 = arith.addf %249, %250 : vector<8x128xf32>
    %252 = vector.extract_strided_slice %235 {offsets = [0, 256], sizes = [8, 128], strides = [1, 1]} : vector<8x512xf32> to vector<8x128xf32>
    %253 = math.tanh %252 : vector<8x128xf32>
    %254 = vector.extract_strided_slice %235 {offsets = [0, 384], sizes = [8, 128], strides = [1, 1]} : vector<8x512xf32> to vector<8x128xf32>
    %cst_128 = arith.constant 5.000000e-01 : f32
    %255 = vector.broadcast %cst_128 : f32 to vector<8x128xf32>
    %256 = arith.mulf %255, %254 : vector<8x128xf32>
    %257 = math.tanh %256 : vector<8x128xf32>
    %cst_129 = arith.constant 5.000000e-01 : f32
    %258 = vector.broadcast %cst_129 : f32 to vector<8x128xf32>
    %259 = arith.mulf %258, %257 : vector<8x128xf32>
    %cst_130 = arith.constant 5.000000e-01 : f32
    %260 = vector.broadcast %cst_130 : f32 to vector<8x128xf32>
    %261 = arith.addf %259, %260 : vector<8x128xf32>
    %c0_131 = arith.constant 0 : index
    %c0_132 = arith.constant 0 : index
    %262 = vector.load %arg10[%c0_131, %c0_132] : memref<8x128xf32, #tpu.memory_space<vmem>>, vector<8x128xf32>
    %263 = arith.mulf %251, %262 : vector<8x128xf32>
    %264 = arith.mulf %243, %253 : vector<8x128xf32>
    %265 = arith.addf %263, %264 : vector<8x128xf32>
    %266 = math.tanh %265 : vector<8x128xf32>
    %267 = arith.mulf %261, %266 : vector<8x128xf32>
    %c0_133 = arith.constant 0 : index
    %c0_134 = arith.constant 0 : index
    %268 = vector.load %arg10[%c0_133, %c0_134] : memref<8x128xf32, #tpu.memory_space<vmem>>, vector<8x128xf32>
    tpu.vector_store %arg10[%c0_133, %c0_134], %265 {strides = array<i32>} : memref<8x128xf32, #tpu.memory_space<vmem>>, vector<8x128xf32>,
    %c0_135 = arith.constant 0 : index
    %c0_136 = arith.constant 0 : index
    %269 = vector.load %arg9[%c0_135, %c0_136] : memref<8x128xf32, #tpu.memory_space<vmem>>, vector<8x128xf32>
    tpu.vector_store %arg9[%c0_135, %c0_136], %267 {strides = array<i32>} : memref<8x128xf32, #tpu.memory_space<vmem>>, vector<8x128xf32>,
    %270 = arith.truncf %267 : vector<8x128xf32> to vector<8x128xbf16>
    %c0_137 = arith.constant 0 : index
    %c5_138 = arith.constant 5 : index
    %c0_139 = arith.constant 0 : index
    %271 = vector.load %arg6[%c0_137, %c5_138, %c0_139] : memref<8x8x128xbf16, #tpu.memory_space<vmem>>, vector<8x1x128xbf16>
    %272 = vector.shape_cast %271 : vector<8x1x128xbf16> to vector<8x128xbf16>
    %273 = vector.shape_cast %270 : vector<8x128xbf16> to vector<8x1x128xbf16>
    tpu.vector_store %arg6[%c0_137, %c5_138, %c0_139], %273 {strides = array<i32>} : memref<8x8x128xbf16, #tpu.memory_space<vmem>>, vector<8x1x128xbf16>,
    %c0_140 = arith.constant 0 : index
    %c6 = arith.constant 6 : index
    %c0_141 = arith.constant 0 : index
    %274 = vector.load %arg2[%c0_140, %c6, %c0_141] : memref<8x8x512xbf16, #tpu.memory_space<vmem>>, vector<8x1x512xbf16>
    %275 = vector.shape_cast %274 : vector<8x1x512xbf16> to vector<8x512xbf16>
    %c0_142 = arith.constant 0 : index
    %c0_143 = arith.constant 0 : index
    %276 = vector.load %arg9[%c0_142, %c0_143] : memref<8x128xf32, #tpu.memory_space<vmem>>, vector<8x128xf32>
    %277 = arith.truncf %276 : vector<8x128xf32> to vector<8x128xbf16>
    %cst_144 = arith.constant dense<0.000000e+00> : vector<8x512xf32>
    %278 = tpu.matmul %277, %3, %cst_144 {dimension_numbers = #tpu.dot_dimension_numbers<[1], [0], [0], [1], [0, 0, 1, 1], [], []>} : vector<8x128xbf16>, vector<128x512xbf16>, vector<8x512xf32> -> vector<8x512xf32>
    %279 = arith.extf %275 : vector<8x512xbf16> to vector<8x512xf32>
    %280 = arith.addf %279, %278 : vector<8x512xf32>
    %281 = vector.extract_strided_slice %280 {offsets = [0, 0], sizes = [8, 128], strides = [1, 1]} : vector<8x512xf32> to vector<8x128xf32>
    %cst_145 = arith.constant 5.000000e-01 : f32
    %282 = vector.broadcast %cst_145 : f32 to vector<8x128xf32>
    %283 = arith.mulf %282, %281 : vector<8x128xf32>
    %284 = math.tanh %283 : vector<8x128xf32>
    %cst_146 = arith.constant 5.000000e-01 : f32
    %285 = vector.broadcast %cst_146 : f32 to vector<8x128xf32>
    %286 = arith.mulf %285, %284 : vector<8x128xf32>
    %cst_147 = arith.constant 5.000000e-01 : f32
    %287 = vector.broadcast %cst_147 : f32 to vector<8x128xf32>
    %288 = arith.addf %286, %287 : vector<8x128xf32>
    %289 = vector.extract_strided_slice %280 {offsets = [0, 128], sizes = [8, 128], strides = [1, 1]} : vector<8x512xf32> to vector<8x128xf32>
    %cst_148 = arith.constant 5.000000e-01 : f32
    %290 = vector.broadcast %cst_148 : f32 to vector<8x128xf32>
    %291 = arith.mulf %290, %289 : vector<8x128xf32>
    %292 = math.tanh %291 : vector<8x128xf32>
    %cst_149 = arith.constant 5.000000e-01 : f32
    %293 = vector.broadcast %cst_149 : f32 to vector<8x128xf32>
    %294 = arith.mulf %293, %292 : vector<8x128xf32>
    %cst_150 = arith.constant 5.000000e-01 : f32
    %295 = vector.broadcast %cst_150 : f32 to vector<8x128xf32>
    %296 = arith.addf %294, %295 : vector<8x128xf32>
    %297 = vector.extract_strided_slice %280 {offsets = [0, 256], sizes = [8, 128], strides = [1, 1]} : vector<8x512xf32> to vector<8x128xf32>
    %298 = math.tanh %297 : vector<8x128xf32>
    %299 = vector.extract_strided_slice %280 {offsets = [0, 384], sizes = [8, 128], strides = [1, 1]} : vector<8x512xf32> to vector<8x128xf32>
    %cst_151 = arith.constant 5.000000e-01 : f32
    %300 = vector.broadcast %cst_151 : f32 to vector<8x128xf32>
    %301 = arith.mulf %300, %299 : vector<8x128xf32>
    %302 = math.tanh %301 : vector<8x128xf32>
    %cst_152 = arith.constant 5.000000e-01 : f32
    %303 = vector.broadcast %cst_152 : f32 to vector<8x128xf32>
    %304 = arith.mulf %303, %302 : vector<8x128xf32>
    %cst_153 = arith.constant 5.000000e-01 : f32
    %305 = vector.broadcast %cst_153 : f32 to vector<8x128xf32>
    %306 = arith.addf %304, %305 : vector<8x128xf32>
    %c0_154 = arith.constant 0 : index
    %c0_155 = arith.constant 0 : index
    %307 = vector.load %arg10[%c0_154, %c0_155] : memref<8x128xf32, #tpu.memory_space<vmem>>, vector<8x128xf32>
    %308 = arith.mulf %296, %307 : vector<8x128xf32>
    %309 = arith.mulf %288, %298 : vector<8x128xf32>
    %310 = arith.addf %308, %309 : vector<8x128xf32>
    %311 = math.tanh %310 : vector<8x128xf32>
    %312 = arith.mulf %306, %311 : vector<8x128xf32>
    %c0_156 = arith.constant 0 : index
    %c0_157 = arith.constant 0 : index
    %313 = vector.load %arg10[%c0_156, %c0_157] : memref<8x128xf32, #tpu.memory_space<vmem>>, vector<8x128xf32>
    tpu.vector_store %arg10[%c0_156, %c0_157], %310 {strides = array<i32>} : memref<8x128xf32, #tpu.memory_space<vmem>>, vector<8x128xf32>,
    %c0_158 = arith.constant 0 : index
    %c0_159 = arith.constant 0 : index
    %314 = vector.load %arg9[%c0_158, %c0_159] : memref<8x128xf32, #tpu.memory_space<vmem>>, vector<8x128xf32>
    tpu.vector_store %arg9[%c0_158, %c0_159], %312 {strides = array<i32>} : memref<8x128xf32, #tpu.memory_space<vmem>>, vector<8x128xf32>,
    %315 = arith.truncf %312 : vector<8x128xf32> to vector<8x128xbf16>
    %c0_160 = arith.constant 0 : index
    %c6_161 = arith.constant 6 : index
    %c0_162 = arith.constant 0 : index
    %316 = vector.load %arg6[%c0_160, %c6_161, %c0_162] : memref<8x8x128xbf16, #tpu.memory_space<vmem>>, vector<8x1x128xbf16>
    %317 = vector.shape_cast %316 : vector<8x1x128xbf16> to vector<8x128xbf16>
    %318 = vector.shape_cast %315 : vector<8x128xbf16> to vector<8x1x128xbf16>
    tpu.vector_store %arg6[%c0_160, %c6_161, %c0_162], %318 {strides = array<i32>} : memref<8x8x128xbf16, #tpu.memory_space<vmem>>, vector<8x1x128xbf16>,
    %c0_163 = arith.constant 0 : index
    %c7 = arith.constant 7 : index
    %c0_164 = arith.constant 0 : index
    %319 = vector.load %arg2[%c0_163, %c7, %c0_164] : memref<8x8x512xbf16, #tpu.memory_space<vmem>>, vector<8x1x512xbf16>
    %320 = vector.shape_cast %319 : vector<8x1x512xbf16> to vector<8x512xbf16>
    %c0_165 = arith.constant 0 : index
    %c0_166 = arith.constant 0 : index
    %321 = vector.load %arg9[%c0_165, %c0_166] : memref<8x128xf32, #tpu.memory_space<vmem>>, vector<8x128xf32>
    %322 = arith.truncf %321 : vector<8x128xf32> to vector<8x128xbf16>
    %cst_167 = arith.constant dense<0.000000e+00> : vector<8x512xf32>
    %323 = tpu.matmul %322, %3, %cst_167 {dimension_numbers = #tpu.dot_dimension_numbers<[1], [0], [0], [1], [0, 0, 1, 1], [], []>} : vector<8x128xbf16>, vector<128x512xbf16>, vector<8x512xf32> -> vector<8x512xf32>
    %324 = arith.extf %320 : vector<8x512xbf16> to vector<8x512xf32>
    %325 = arith.addf %324, %323 : vector<8x512xf32>
    %326 = vector.extract_strided_slice %325 {offsets = [0, 0], sizes = [8, 128], strides = [1, 1]} : vector<8x512xf32> to vector<8x128xf32>
    %cst_168 = arith.constant 5.000000e-01 : f32
    %327 = vector.broadcast %cst_168 : f32 to vector<8x128xf32>
    %328 = arith.mulf %327, %326 : vector<8x128xf32>
    %329 = math.tanh %328 : vector<8x128xf32>
    %cst_169 = arith.constant 5.000000e-01 : f32
    %330 = vector.broadcast %cst_169 : f32 to vector<8x128xf32>
    %331 = arith.mulf %330, %329 : vector<8x128xf32>
    %cst_170 = arith.constant 5.000000e-01 : f32
    %332 = vector.broadcast %cst_170 : f32 to vector<8x128xf32>
    %333 = arith.addf %331, %332 : vector<8x128xf32>
    %334 = vector.extract_strided_slice %325 {offsets = [0, 128], sizes = [8, 128], strides = [1, 1]} : vector<8x512xf32> to vector<8x128xf32>
    %cst_171 = arith.constant 5.000000e-01 : f32
    %335 = vector.broadcast %cst_171 : f32 to vector<8x128xf32>
    %336 = arith.mulf %335, %334 : vector<8x128xf32>
    %337 = math.tanh %336 : vector<8x128xf32>
    %cst_172 = arith.constant 5.000000e-01 : f32
    %338 = vector.broadcast %cst_172 : f32 to vector<8x128xf32>
    %339 = arith.mulf %338, %337 : vector<8x128xf32>
    %cst_173 = arith.constant 5.000000e-01 : f32
    %340 = vector.broadcast %cst_173 : f32 to vector<8x128xf32>
    %341 = arith.addf %339, %340 : vector<8x128xf32>
    %342 = vector.extract_strided_slice %325 {offsets = [0, 256], sizes = [8, 128], strides = [1, 1]} : vector<8x512xf32> to vector<8x128xf32>
    %343 = math.tanh %342 : vector<8x128xf32>
    %344 = vector.extract_strided_slice %325 {offsets = [0, 384], sizes = [8, 128], strides = [1, 1]} : vector<8x512xf32> to vector<8x128xf32>
    %cst_174 = arith.constant 5.000000e-01 : f32
    %345 = vector.broadcast %cst_174 : f32 to vector<8x128xf32>
    %346 = arith.mulf %345, %344 : vector<8x128xf32>
    %347 = math.tanh %346 : vector<8x128xf32>
    %cst_175 = arith.constant 5.000000e-01 : f32
    %348 = vector.broadcast %cst_175 : f32 to vector<8x128xf32>
    %349 = arith.mulf %348, %347 : vector<8x128xf32>
    %cst_176 = arith.constant 5.000000e-01 : f32
    %350 = vector.broadcast %cst_176 : f32 to vector<8x128xf32>
    %351 = arith.addf %349, %350 : vector<8x128xf32>
    %c0_177 = arith.constant 0 : index
    %c0_178 = arith.constant 0 : index
    %352 = vector.load %arg10[%c0_177, %c0_178] : memref<8x128xf32, #tpu.memory_space<vmem>>, vector<8x128xf32>
    %353 = arith.mulf %341, %352 : vector<8x128xf32>
    %354 = arith.mulf %333, %343 : vector<8x128xf32>
    %355 = arith.addf %353, %354 : vector<8x128xf32>
    %356 = math.tanh %355 : vector<8x128xf32>
    %357 = arith.mulf %351, %356 : vector<8x128xf32>
    %c0_179 = arith.constant 0 : index
    %c0_180 = arith.constant 0 : index
    %358 = vector.load %arg10[%c0_179, %c0_180] : memref<8x128xf32, #tpu.memory_space<vmem>>, vector<8x128xf32>
    tpu.vector_store %arg10[%c0_179, %c0_180], %355 {strides = array<i32>} : memref<8x128xf32, #tpu.memory_space<vmem>>, vector<8x128xf32>,
    %c0_181 = arith.constant 0 : index
    %c0_182 = arith.constant 0 : index
    %359 = vector.load %arg9[%c0_181, %c0_182] : memref<8x128xf32, #tpu.memory_space<vmem>>, vector<8x128xf32>
    tpu.vector_store %arg9[%c0_181, %c0_182], %357 {strides = array<i32>} : memref<8x128xf32, #tpu.memory_space<vmem>>, vector<8x128xf32>,
    %360 = arith.truncf %357 : vector<8x128xf32> to vector<8x128xbf16>
    %c0_183 = arith.constant 0 : index
    %c7_184 = arith.constant 7 : index
    %c0_185 = arith.constant 0 : index
    %361 = vector.load %arg6[%c0_183, %c7_184, %c0_185] : memref<8x8x128xbf16, #tpu.memory_space<vmem>>, vector<8x1x128xbf16>
    %362 = vector.shape_cast %361 : vector<8x1x128xbf16> to vector<8x128xbf16>
    %363 = vector.shape_cast %360 : vector<8x128xbf16> to vector<8x1x128xbf16>
    tpu.vector_store %arg6[%c0_183, %c7_184, %c0_185], %363 {strides = array<i32>} : memref<8x8x128xbf16, #tpu.memory_space<vmem>>, vector<8x1x128xbf16>,
    %c0_i32_186 = arith.constant 0 : i32
    %364 = arith.cmpi eq, %arg1, %c0_i32_186 : i32
    %365 = arith.extui %364 : i1 to i32
    %c0_i32_187 = arith.constant 0 : i32
    %366 = arith.cmpi ne, %365, %c0_i32_187 : i32
    scf.if %366 {
      %c0_188 = arith.constant 0 : index
      %c0_189 = arith.constant 0 : index
      %367 = vector.load %arg7[%c0_188, %c0_189] : memref<8x128xf32, #tpu.memory_space<vmem>>, vector<8x128xf32>
      tpu.vector_store %arg7[%c0_188, %c0_189], %357 {strides = array<i32>} : memref<8x128xf32, #tpu.memory_space<vmem>>, vector<8x128xf32>,
      %c0_190 = arith.constant 0 : index
      %c0_191 = arith.constant 0 : index
      %368 = vector.load %arg8[%c0_190, %c0_191] : memref<8x128xf32, #tpu.memory_space<vmem>>, vector<8x128xf32>
      tpu.vector_store %arg8[%c0_190, %c0_191], %355 {strides = array<i32>} : memref<8x128xf32, #tpu.memory_space<vmem>>, vector<8x128xf32>,
    } else {
    }
    return
  }
  func.func @transform_0(%arg0: i32, %arg1: i32) -> (i32, i32, i32) {
    %c0_i32 = arith.constant 0 : i32
    %c0_i32_0 = arith.constant 0 : i32
    return %arg0, %arg1, %c0_i32 : i32, i32, i32
  }
  func.func @transform_1(%arg0: i32, %arg1: i32) -> (i32, i32) {
    %c0_i32 = arith.constant 0 : i32
    %c0_i32_0 = arith.constant 0 : i32
    %c0_i32_1 = arith.constant 0 : i32
    return %c0_i32, %c0_i32_0 : i32, i32
  }
  func.func @transform_2(%arg0: i32, %arg1: i32) -> (i32, i32) {
    %c0_i32 = arith.constant 0 : i32
    %c0_i32_0 = arith.constant 0 : i32
    return %arg0, %c0_i32 : i32, i32
  }
  func.func @transform_3(%arg0: i32, %arg1: i32) -> (i32, i32) {
    %c0_i32 = arith.constant 0 : i32
    %c0_i32_0 = arith.constant 0 : i32
    return %arg0, %c0_i32 : i32, i32
  }
  func.func @transform_4(%arg0: i32, %arg1: i32) -> (i32, i32, i32) {
    %c0_i32 = arith.constant 0 : i32
    %c0_i32_0 = arith.constant 0 : i32
    return %arg0, %arg1, %c0_i32 : i32, i32, i32
  }
  func.func @transform_5(%arg0: i32, %arg1: i32) -> (i32, i32) {
    %c0_i32 = arith.constant 0 : i32
    %c0_i32_0 = arith.constant 0 : i32
    return %arg0, %c0_i32 : i32, i32
  }
  func.func @transform_6(%arg0: i32, %arg1: i32) -> (i32, i32) {
    %c0_i32 = arith.constant 0 : i32
    %c0_i32_0 = arith.constant 0 : i32
    return %arg0, %c0_i32 : i32, i32
  }
}

</mosaic_0001>

<bundles_post_ra>
// kernel: report_model_forward.9
= control target key start
LH: loop header
LB: loop body
LE: loop exit
PB: predicated region body
PF: predicated region fallthrough
CT: control target
= control target key end

     0   :  { %s355_s1 = inlined_call_operand.vmem [shape: bf16[128,128], index: 1, kind: input, shape index: {}]   ;;  %s356_s0 = inlined_call_operand.vmem [shape: bf16[64,128], index: 0, kind: input, shape index: {}]   ;;  %s357_s2 = inlined_call_operand.vmem [shape: f32[1,128], index: 2, kind: input, shape index: {}]   ;;  %s358_s3 = inlined_call_operand.vmem [shape: f32[64,128], index: 3, kind: output, shape index: {}]  }
   0x1   :  { %v260_v0 = vld [vmem:[%s355_s1 + $0x38] sm:$0xff]   ;;  %v261_v1 = vld [vmem:[%s355_s1 + $0x30] sm:$0xff]   ;;  %v262_v2 = vld [vmem:[%s355_s1 + $0x28] sm:$0xff]  }
   0x2   :  { %220 = vmatprep.subr.bf16.mxu0 %v260_v0  ;;  %244 = vmatprep.subr.bf16.mxu1 %v260_v0  ;;  %v263_v3 = vld [vmem:[%s355_s1 + $0x20] sm:$0xff]   ;;  %v269_v5 = vld [vmem:[%s356_s0 + $0x10] sm:$0xff]   ;;  %v264_v6 = vld [vmem:[%s355_s1 + $0x18] sm:$0xff]  }
   0x3   :  { %221 = vmatpush3.bf16.msra.mxu0 %v260_v0  ;;  %252 = vmatpush3.bf16.msra.mxu1 %v260_v0  ;;  %v268_v4 = vld [vmem:[%s356_s0] sm:$0xff]   ;;  %v265_v7 = vld [vmem:[%s355_s1 + $0x10] sm:$0xff]   ;;  %v266_v8 = vld [vmem:[%s355_s1 + $0x8] sm:$0xff]  }
   0x4   :  { %222 = vmatprep.subr.bf16.mxu0 %v261_v1  ;;  %245 = vmatprep.subr.bf16.mxu1 %v261_v1  ;;  %v267_v9 = vld [vmem:[%s355_s1] sm:$0xff]   ;;  %v270_v10 = vld [vmem:[%s356_s0 + $0x8] sm:$0xff]   ;;  %v271_v11 = vld [vmem:[%s356_s0 + $0x18] sm:$0xff]  }
   0x5   :  { %236 = vmatprep.mubr.bf16.mxu0 %v268_v4  ;;  %240 = vmatprep.mubr.bf16.mxu1 %v269_v5  ;;  %v195_v12 = vld [vmem:[%s357_s2] ss:$0 sm:$0xff] }
   0x7   :  { %223 = vmatpush3.bf16.msra.mxu0 %v261_v1  ;;  %253 = vmatpush3.bf16.msra.mxu1 %v261_v1 }
   0x8   :  { %224 = vmatprep.subr.bf16.mxu0 %v262_v2  ;;  %246 = vmatprep.subr.bf16.mxu1 %v262_v2 }
   0xb   :  { %225 = vmatpush3.bf16.msra.mxu0 %v262_v2  ;;  %254 = vmatpush3.bf16.msra.mxu1 %v262_v2 }
   0xc   :  { %226 = vmatprep.subr.bf16.mxu0 %v263_v3  ;;  %247 = vmatprep.subr.bf16.mxu1 %v263_v3 }
   0xf   :  { %227 = vmatpush3.bf16.msra.mxu0 %v263_v3  ;;  %255 = vmatpush3.bf16.msra.mxu1 %v263_v3 }
  0x10   :  { %228 = vmatprep.subr.bf16.mxu0 %v264_v6  ;;  %248 = vmatprep.subr.bf16.mxu1 %v264_v6 }
  0x13   :  { %229 = vmatpush3.bf16.msra.mxu0 %v264_v6  ;;  %256 = vmatpush3.bf16.msra.mxu1 %v264_v6 }
  0x14   :  { %230 = vmatprep.subr.bf16.mxu0 %v265_v7  ;;  %249 = vmatprep.subr.bf16.mxu1 %v265_v7 }
  0x17   :  { %231 = vmatpush3.bf16.msra.mxu0 %v265_v7  ;;  %257 = vmatpush3.bf16.msra.mxu1 %v265_v7 }
  0x18   :  { %232 = vmatprep.subr.bf16.mxu0 %v266_v8  ;;  %250 = vmatprep.subr.bf16.mxu1 %v266_v8 }
  0x1b   :  { %233 = vmatpush3.bf16.msra.mxu0 %v266_v8  ;;  %258 = vmatpush3.bf16.msra.mxu1 %v266_v8 }
  0x1c   :  { %234 = vmatprep.subr.bf16.mxu0 %v267_v9  ;;  %251 = vmatprep.subr.bf16.mxu1 %v267_v9 }
  0x1f   :  { %235 = vmatpush3.bf16.msra.mxu0 %v267_v9  ;;  %259 = vmatpush3.bf16.msra.mxu1 %v267_v9 }
  0x22   :  { %237 = vmatmul.mubr.bf16.vlgmr.msra.gmra.mxu0 %v270_v10  ;;  %241 = vmatmul.mubr.bf16.vlgmr.msra.gmra.mxu1 %v271_v11 }
  0xe2   :  { %v238_v13 = vpop.f32.mrf.mxu0  ;;  %v242_v14 = vpop.f32.mrf.mxu1 }
  0xe3   :  { %v161_v15 = vadd.f32 %v238_v13, %v195_v12  ;;  %v177_v16 = vadd.f32 %v242_v14, %v195_v12 }
  0xe4   :  { %v152_v17 = vpop.f32.mrf.mxu0  ;;  %v168_v18 = vpop.f32.mrf.mxu1 }
  0xe5   :  { %185 = vst [vmem:[%s358_s3 + $0x10] sm:$0xff] %v161_v15  ;;  %189 = vst [vmem:[%s358_s3 + $0x30] sm:$0xff] %v177_v16  ;;  %v153_v19 = vadd.f32 %v195_v12, %v152_v17  ;;  %v169_v20 = vadd.f32 %v195_v12, %v168_v18 }
  0xe6   :  { %v239_v21 = vpop.f32.mrf.mxu0  ;;  %v243_v22 = vpop.f32.mrf.mxu1 }
  0xe7   :  { %183 = vst [vmem:[%s358_s3] sm:$0xff] %v153_v19  ;;  %187 = vst [vmem:[%s358_s3 + $0x20] sm:$0xff] %v169_v20  ;;  %v164_v23 = vadd.f32 %v239_v21, %v195_v12  ;;  %v180_v24 = vadd.f32 %v243_v22, %v195_v12 }
  0xe8   :  { %v155_v25 = vpop.f32.mrf.mxu0  ;;  %v171_v26 = vpop.f32.mrf.mxu1 }
  0xe9   :  { %186 = vst [vmem:[%s358_s3 + $0x18] sm:$0xff] %v164_v23  ;;  %190 = vst [vmem:[%s358_s3 + $0x38] sm:$0xff] %v180_v24  ;;  %v156_v27 = vadd.f32 %v195_v12, %v155_v25  ;;  %v172_v28 = vadd.f32 %v195_v12, %v171_v26 }
  0xeb   :  { %184 = vst [vmem:[%s358_s3 + $0x8] sm:$0xff] %v156_v27  ;;  %188 = vst [vmem:[%s358_s3 + $0x28] sm:$0xff] %v172_v28 }

// kernel: report_model_forward.7
= control target key start
LH: loop header
LB: loop body
LE: loop exit
PB: predicated region body
PF: predicated region fallthrough
CT: control target
= control target key end

     0   :  { %v644_v1 = vmov 0   ;;  %v57_v37 = vlaneseq  ;;  %s872_s1 = inlined_call_operand.vmem [shape: bf16[128,512], index: 1, kind: input, shape index: {}]   ;;  %s873_s0 = inlined_call_operand.vmem [shape: bf16[64,128], index: 0, kind: input, shape index: {}]   ;;  %s874_s2 = inlined_call_operand.vmem [shape: f32[1,512], index: 2, kind: input, shape index: {}]   ;;  %s875_s3 = inlined_call_operand.vmem [shape: bf16[64,512], index: 3, kind: output, shape index: {}]  }
   0x1   :  { %v592_v0 = vld [vmem:[%s872_s1 + $0xe4] ss:$16 sps:$4 sm:$0xff]   ;;  %293 = vmatprep.mubr.bf16.mxu0 %v644_v1  ;;  %366 = vmatprep.mubr.bf16.mxu1 %v644_v1  ;;  %v594_v2 = vld [vmem:[%s872_s1 + $0xec] ss:$16 sps:$4 sm:$0xff]   ;;  %v596_v3 = vld [vmem:[%s872_s1 + $0xe0] ss:$16 sps:$4 sm:$0xff]  }
   0x2   :  { %261 = vmatprep.subr.bf16.mxu0 %v592_v0  ;;  %v597_v4 = vld [vmem:[%s872_s1 + $0xe8] ss:$16 sps:$4 sm:$0xff]   ;;  %334 = vmatprep.subr.bf16.mxu1 %v594_v2  ;;  %v598_v5 = vld [vmem:[%s872_s1 + $0xc4] ss:$16 sps:$4 sm:$0xff]   ;;  %v600_v6 = vld [vmem:[%s872_s1 + $0xcc] ss:$16 sps:$4 sm:$0xff]  }
   0x3   :  { %262 = vmatpush1.bf16.msra.mxu0 %v596_v3  ;;  %335 = vmatpush1.bf16.msra.mxu1 %v597_v4  ;;  %v602_v7 = vld [vmem:[%s872_s1 + $0xc0] ss:$16 sps:$4 sm:$0xff]   ;;  %v603_v8 = vld [vmem:[%s872_s1 + $0xc8] ss:$16 sps:$4 sm:$0xff]   ;;  %v604_v9 = vld [vmem:[%s872_s1 + $0xa4] ss:$16 sps:$4 sm:$0xff]  }
   0x4   :  { %263 = vmatprep.subr.bf16.mxu0 %v598_v5  ;;  %336 = vmatprep.subr.bf16.mxu1 %v600_v6  ;;  %v606_v10 = vld [vmem:[%s872_s1 + $0xac] ss:$16 sps:$4 sm:$0xff]   ;;  %v608_v11 = vld [vmem:[%s872_s1 + $0xa0] ss:$16 sps:$4 sm:$0xff]   ;;  %v609_v12 = vld [vmem:[%s872_s1 + $0xa8] ss:$16 sps:$4 sm:$0xff]  }
   0x5   :  { %v610_v13 = vld [vmem:[%s872_s1 + $0x84] ss:$16 sps:$4 sm:$0xff]   ;;  %v612_v14 = vld [vmem:[%s872_s1 + $0x8c] ss:$16 sps:$4 sm:$0xff]   ;;  %v614_v15 = vld [vmem:[%s872_s1 + $0x80] ss:$16 sps:$4 sm:$0xff]  }
   0x6   :  { %v615_v16 = vld [vmem:[%s872_s1 + $0x88] ss:$16 sps:$4 sm:$0xff]   ;;  %v616_v17 = vld [vmem:[%s872_s1 + $0x64] ss:$16 sps:$4 sm:$0xff]   ;;  %v618_v18 = vld [vmem:[%s872_s1 + $0x6c] ss:$16 sps:$4 sm:$0xff]  }
   0x7   :  { %264 = vmatpush1.bf16.msra.mxu0 %v602_v7  ;;  %337 = vmatpush1.bf16.msra.mxu1 %v603_v8  ;;  %v620_v19 = vld [vmem:[%s872_s1 + $0x60] ss:$16 sps:$4 sm:$0xff]   ;;  %v621_v20 = vld [vmem:[%s872_s1 + $0x68] ss:$16 sps:$4 sm:$0xff]   ;;  %v622_v21 = vld [vmem:[%s872_s1 + $0x44] ss:$16 sps:$4 sm:$0xff]  }
   0x8   :  { %265 = vmatprep.subr.bf16.mxu0 %v604_v9  ;;  %338 = vmatprep.subr.bf16.mxu1 %v606_v10  ;;  %v624_v22 = vld [vmem:[%s872_s1 + $0x4c] ss:$16 sps:$4 sm:$0xff]   ;;  %v626_v23 = vld [vmem:[%s872_s1 + $0x40] ss:$16 sps:$4 sm:$0xff]   ;;  %v627_v24 = vld [vmem:[%s872_s1 + $0x48] ss:$16 sps:$4 sm:$0xff]  }
   0x9   :  { %v628_v25 = vld [vmem:[%s872_s1 + $0x24] ss:$16 sps:$4 sm:$0xff]   ;;  %v630_v26 = vld [vmem:[%s872_s1 + $0x2c] ss:$16 sps:$4 sm:$0xff]   ;;  %v632_v27 = vld [vmem:[%s872_s1 + $0x20] ss:$16 sps:$4 sm:$0xff]  }
   0xa   :  { %v633_v28 = vld [vmem:[%s872_s1 + $0x28] ss:$16 sps:$4 sm:$0xff]   ;;  %v634_v29 = vld [vmem:[%s872_s1 + $0x4] ss:$16 sps:$4 sm:$0xff]   ;;  %v636_v30 = vld [vmem:[%s872_s1 + $0xc] ss:$16 sps:$4 sm:$0xff]  }
   0xb   :  { %266 = vmatpush1.bf16.msra.mxu0 %v608_v11  ;;  %339 = vmatpush1.bf16.msra.mxu1 %v609_v12  ;;  %v638_v31 = vld [vmem:[%s872_s1] ss:$16 sps:$4 sm:$0xff]   ;;  %v639_v32 = vld [vmem:[%s872_s1 + $0x8] ss:$16 sps:$4 sm:$0xff]   ;;  %v58_v38 = vshrl.u32 %v57_v37, 7 }
   0xc   :  { %267 = vmatprep.subr.bf16.mxu0 %v610_v13  ;;  %340 = vmatprep.subr.bf16.mxu1 %v612_v14  ;;  %v640_v33 = vld [vmem:[%s873_s0] sm:$0xff]   ;;  %v641_v34 = vld [vmem:[%s873_s0 + $0x8] sm:$0xff]   ;;  %v642_v35 = vld [vmem:[%s873_s0 + $0x10] sm:$0xff]  }
   0xd   :  { %v643_v36 = vld [vmem:[%s873_s0 + $0x18] sm:$0xff]   ;;  %v59_v39 = vsub.s32 0, %v58_v38  ;;  %v67_v40 = vsub.s32 2, %v58_v38  ;;  %v63_v41 = vsub.s32 1, %v58_v38  ;;  %v71_v42 = vsub.s32 3, %v58_v38 }
   0xe   :  { %v55_v43 = vld [vmem:[%s874_s2] sm:$0xf] }
   0xf   :  { %268 = vmatpush1.bf16.msra.mxu0 %v614_v15  ;;  %341 = vmatpush1.bf16.msra.mxu1 %v615_v16  ;;  %v784_v44 = vrot.slane %v55_v43, %v59_v39  ;;  %v786_v45 = vrot.slane %v55_v43, %v67_v40  ;;  %v788_v46 = vrot.slane %v55_v43, %v63_v41 }
  0x10   :  { %269 = vmatprep.subr.bf16.mxu0 %v616_v17  ;;  %342 = vmatprep.subr.bf16.mxu1 %v618_v18  ;;  %v790_v47 = vrot.slane %v55_v43, %v71_v42 }
  0x13   :  { %270 = vmatpush1.bf16.msra.mxu0 %v620_v19  ;;  %343 = vmatpush1.bf16.msra.mxu1 %v621_v20 }
  0x14   :  { %271 = vmatprep.subr.bf16.mxu0 %v622_v21  ;;  %344 = vmatprep.subr.bf16.mxu1 %v624_v22 }
  0x17   :  { %272 = vmatpush1.bf16.msra.mxu0 %v626_v23  ;;  %345 = vmatpush1.bf16.msra.mxu1 %v627_v24 }
  0x18   :  { %273 = vmatprep.subr.bf16.mxu0 %v628_v25  ;;  %346 = vmatprep.subr.bf16.mxu1 %v630_v26 }
  0x1b   :  { %274 = vmatpush1.bf16.msra.mxu0 %v632_v27  ;;  %347 = vmatpush1.bf16.msra.mxu1 %v633_v28 }
  0x1c   :  { %275 = vmatprep.subr.bf16.mxu0 %v634_v29  ;;  %348 = vmatprep.subr.bf16.mxu1 %v636_v30 }
  0x1f   :  { %276 = vmatpush1.bf16.msra.mxu0 %v638_v31  ;;  %349 = vmatpush1.bf16.msra.mxu1 %v639_v32 }
  0x22   :  { %294 = vmatmul.mubr.bf16.vlgmr.msra.gmra.mxu0 %v640_v33  ;;  %367 = vmatmul.mubr.bf16.vlgmr.msra.gmra.mxu1 %v640_v33 }
  0x23   :  { %303 = vmatprep.mubr.bf16.mxu0 %v644_v1  ;;  %376 = vmatprep.mubr.bf16.mxu1 %v644_v1 }
  0x2a   :  { %304 = vmatmul.mubr.bf16.gmra.mxu0 %v641_v34  ;;  %377 = vmatmul.mubr.bf16.gmra.mxu1 %v641_v34 }
  0x2b   :  { %313 = vmatprep.mubr.bf16.mxu0 %v644_v1  ;;  %386 = vmatprep.mubr.bf16.mxu1 %v644_v1 }
  0x32   :  { %314 = vmatmul.mubr.bf16.gmra.mxu0 %v642_v35  ;;  %387 = vmatmul.mubr.bf16.gmra.mxu1 %v642_v35 }
  0x33   :  { %323 = vmatprep.mubr.bf16.mxu0 %v644_v1  ;;  %396 = vmatprep.mubr.bf16.mxu1 %v644_v1 }
  0x3a   :  { %324 = vmatmul.mubr.bf16.gmra.mxu0 %v643_v36  ;;  %397 = vmatmul.mubr.bf16.gmra.mxu1 %v643_v36 }
  0xe2   :  { %v295_v48 = vpop.f32.mrf.mxu0  ;;  %v368_v49 = vpop.f32.mrf.mxu1 }
  0xe3   :  { %v296_v52 = vadd.f32 %v295_v48, %v784_v44  ;;  %v369_v53 = vadd.f32 %v368_v49, %v786_v45 }
  0xe4   :  { %v297_v50 = vpop.f32.mrf.mxu0  ;;  %v370_v51 = vpop.f32.mrf.mxu1 }
  0xe5   :  { %v298_v54 = vadd.f32 %v297_v50, %v788_v46  ;;  %v371_v55 = vadd.f32 %v370_v51, %v790_v47 }
  0xe6   :  { %v299_v56 = vpop.f32.mrf.mxu0  ;;  %v372_v57 = vpop.f32.mrf.mxu1 }
  0xe7   :  { %v575_v58 = vpack.c.bf16 %v298_v54, %v296_v52  ;;  %v576_v59 = vpack.c.bf16 %v371_v55, %v369_v53  ;;  %v300_v62 = vadd.f32 %v299_v56, %v784_v44  ;;  %v373_v63 = vadd.f32 %v372_v57, %v786_v45 }
  0xe8   :  { %v301_v60 = vpop.f32.mrf.mxu0  ;;  %v374_v61 = vpop.f32.mrf.mxu1 }
  0xe9   :  { %503 = vst [vmem:[%s875_s3] sm:$0xff] %v575_v58  ;;  %504 = vst [vmem:[%s875_s3 + $0x8] sm:$0xff] %v576_v59  ;;  %v302_v0 = vadd.f32 %v301_v60, %v788_v46  ;;  %v375_v1 = vadd.f32 %v374_v61, %v790_v47 }
  0xea   :  { %v305_v2 = vpop.f32.mrf.mxu0  ;;  %v378_v3 = vpop.f32.mrf.mxu1 }
  0xeb   :  { %v577_v4 = vpack.c.bf16 %v302_v0, %v300_v62  ;;  %v578_v5 = vpack.c.bf16 %v375_v1, %v373_v63  ;;  %v306_v8 = vadd.f32 %v305_v2, %v784_v44  ;;  %v379_v9 = vadd.f32 %v378_v3, %v786_v45 }
  0xec   :  { %v307_v6 = vpop.f32.mrf.mxu0  ;;  %v380_v7 = vpop.f32.mrf.mxu1 }
  0xed   :  { %505 = vst [vmem:[%s875_s3 + $0x10] sm:$0xff] %v577_v4  ;;  %506 = vst [vmem:[%s875_s3 + $0x18] sm:$0xff] %v578_v5  ;;  %v308_v10 = vadd.f32 %v307_v6, %v788_v46  ;;  %v381_v11 = vadd.f32 %v380_v7, %v790_v47 }
  0xee   :  { %v309_v12 = vpop.f32.mrf.mxu0  ;;  %v382_v13 = vpop.f32.mrf.mxu1 }
  0xef   :  { %v579_v14 = vpack.c.bf16 %v308_v10, %v306_v8  ;;  %v580_v15 = vpack.c.bf16 %v381_v11, %v379_v9  ;;  %v310_v18 = vadd.f32 %v309_v12, %v784_v44  ;;  %v383_v19 = vadd.f32 %v382_v13, %v786_v45 }
  0xf0   :  { %v311_v16 = vpop.f32.mrf.mxu0  ;;  %v384_v17 = vpop.f32.mrf.mxu1 }
  0xf1   :  { %507 = vst [vmem:[%s875_s3 + $0x20] sm:$0xff] %v579_v14  ;;  %508 = vst [vmem:[%s875_s3 + $0x28] sm:$0xff] %v580_v15  ;;  %v312_v20 = vadd.f32 %v311_v16, %v788_v46  ;;  %v385_v21 = vadd.f32 %v384_v17, %v790_v47 }
  0xf2   :  { %v315_v22 = vpop.f32.mrf.mxu0  ;;  %v388_v23 = vpop.f32.mrf.mxu1 }
  0xf3   :  { %v581_v24 = vpack.c.bf16 %v312_v20, %v310_v18  ;;  %v582_v25 = vpack.c.bf16 %v385_v21, %v383_v19  ;;  %v316_v28 = vadd.f32 %v315_v22, %v784_v44  ;;  %v389_v29 = vadd.f32 %v388_v23, %v786_v45 }
  0xf4   :  { %v317_v26 = vpop.f32.mrf.mxu0  ;;  %v390_v27 = vpop.f32.mrf.mxu1 }
  0xf5   :  { %509 = vst [vmem:[%s875_s3 + $0x30] sm:$0xff] %v581_v24  ;;  %510 = vst [vmem:[%s875_s3 + $0x38] sm:$0xff] %v582_v25  ;;  %v318_v30 = vadd.f32 %v317_v26, %v788_v46  ;;  %v391_v31 = vadd.f32 %v390_v27, %v790_v47 }
  0xf6   :  { %v319_v32 = vpop.f32.mrf.mxu0  ;;  %v392_v33 = vpop.f32.mrf.mxu1 }
  0xf7   :  { %v583_v34 = vpack.c.bf16 %v318_v30, %v316_v28  ;;  %v584_v35 = vpack.c.bf16 %v391_v31, %v389_v29  ;;  %v320_v38 = vadd.f32 %v319_v32, %v784_v44  ;;  %v393_v39 = vadd.f32 %v392_v33, %v786_v45 }
  0xf8   :  { %v321_v36 = vpop.f32.mrf.mxu0  ;;  %v394_v37 = vpop.f32.mrf.mxu1 }
  0xf9   :  { %511 = vst [vmem:[%s875_s3 + $0x40] sm:$0xff] %v583_v34  ;;  %512 = vst [vmem:[%s875_s3 + $0x48] sm:$0xff] %v584_v35  ;;  %v322_v40 = vadd.f32 %v321_v36, %v788_v46  ;;  %v395_v41 = vadd.f32 %v394_v37, %v790_v47 }
  0xfa   :  { %v325_v42 = vpop.f32.mrf.mxu0  ;;  %v398_v43 = vpop.f32.mrf.mxu1 }
  0xfb   :  { %v585_v48 = vpack.c.bf16 %v322_v40, %v320_v38  ;;  %v586_v49 = vpack.c.bf16 %v395_v41, %v393_v39  ;;  %v326_v52 = vadd.f32 %v325_v42, %v784_v44  ;;  %v399_v53 = vadd.f32 %v398_v43, %v786_v45 }
  0xfc   :  { %v327_v50 = vpop.f32.mrf.mxu0  ;;  %v400_v51 = vpop.f32.mrf.mxu1 }
  0xfd   :  { %513 = vst [vmem:[%s875_s3 + $0x50] sm:$0xff] %v585_v48  ;;  %514 = vst [vmem:[%s875_s3 + $0x58] sm:$0xff] %v586_v49  ;;  %v328_v54 = vadd.f32 %v327_v50, %v788_v46  ;;  %v401_v55 = vadd.f32 %v400_v51, %v790_v47 }
  0xfe   :  { %v329_v56 = vpop.f32.mrf.mxu0  ;;  %v402_v57 = vpop.f32.mrf.mxu1 }
  0xff   :  { %v587_v58 = vpack.c.bf16 %v328_v54, %v326_v52  ;;  %v588_v59 = vpack.c.bf16 %v401_v55, %v399_v53  ;;  %v330_v62 = vadd.f32 %v329_v56, %v784_v44  ;;  %v403_v63 = vadd.f32 %v402_v57, %v786_v45 }
 0x100   :  { %v331_v60 = vpop.f32.mrf.mxu0  ;;  %v404_v61 = vpop.f32.mrf.mxu1 }
 0x101   :  { %515 = vst [vmem:[%s875_s3 + $0x60] sm:$0xff] %v587_v58  ;;  %516 = vst [vmem:[%s875_s3 + $0x68] sm:$0xff] %v588_v59  ;;  %v332_v0 = vadd.f32 %v331_v60, %v788_v46  ;;  %v405_v1 = vadd.f32 %v404_v61, %v790_v47 }
 0x103   :  { %v589_v2 = vpack.c.bf16 %v332_v0, %v330_v62  ;;  %v590_v3 = vpack.c.bf16 %v405_v1, %v403_v63 }
 0x105   :  { %517 = vst [vmem:[%s875_s3 + $0x70] sm:$0xff] %v589_v2  ;;  %518 = vst [vmem:[%s875_s3 + $0x78] sm:$0xff] %v590_v3 }

// kernel: report_model_forward.5
= control target key start
LH: loop header
LB: loop body
LE: loop exit
PB: predicated region body
PF: predicated region fallthrough
CT: control target
= control target key end

     0   :  { %8 = vsyncpa [#allocation3], 0  ;;  %s899_s12 = smov [#allocation2]   ;;  %s1048_s0 = inlined_call_operand.vmem [shape: bf16[64,200], index: 0, kind: input, shape index: {}]   ;;  %s1049_s1 = inlined_call_operand.hbm [shape: bf16[200,512], index: 1, kind: input, shape index: {}]   ;;  %s1050_s2 = inlined_call_operand.vmem [shape: f32[1,512], index: 2, kind: input, shape index: {}]   ;;  %s1051_s3 = inlined_call_operand.vmem [shape: bf16[64,512], index: 3, kind: output, shape index: {}]  }
   0x1   :  { %s16_s13 = sshll.u32 %s899_s12, 4  ;;  %s17_s13 = int_to_ptr.vmem [resolvable:$true] %s16_s13 }
   0x2   :  { %s885_s14 = scalar_lea.vmem %s17_s13, 6400  ;;  %p890_p1 = scmp.lt.s32.totalorder %s17_s13, %s17_s13 }
   0x3   :  { %p886_p0 = scmp.ne.s32.totalorder %s17_s13, %s885_s14  ;;  %p891_p2 = scmp.lt.s32.totalorder %s885_s14, %s885_s14 }
   0x5   :  { %p892_p3 = por %p891_p2, %p890_p1 }
   0x7   :  { %p893_p4 = pnand %p892_p3, %p886_p0 }
   0x9   :  { %896 = shalt.err (!%p893_p4)
}
   0xa   :  { %s900_s15 = smov 256   ;;  %s901_s16 = smov 16  }
   0xb   :  { %22 = dma.hbm_to_vmem [thread:$0]  %s1049_s1, 6400, %s17_s13, [#allocation3], %s900_s15, %s900_s15, %s901_s16  }
   0xc   :  { %897 = dma.done.wait [#allocation3], 6400  }
   0xd   :  { %898 = vsyncadd [#allocation3], 4294960896  ;;  %v789_v0 = vld [vmem:[#allocation2 + $0xe4] ss:$16 sps:$4 sm:$0xff]   ;;  %v791_v1 = vld [vmem:[#allocation2 + $0xec] ss:$16 sps:$4 sm:$0xff]  }
   0xe   :  { %421 = vmatprep.subr.bf16.mxu0 %v789_v0  ;;  %v793_v2 = vld [vmem:[#allocation2 + $0xe0] ss:$16 sps:$4 sm:$0xff]   ;;  %v794_v3 = vld [vmem:[#allocation2 + $0xe8] ss:$16 sps:$4 sm:$0xff]   ;;  %494 = vmatprep.subr.bf16.mxu1 %v791_v1  ;;  %v795_v4 = vld [vmem:[#allocation2 + $0xc4] ss:$16 sps:$4 sm:$0xff]   ;;  %v89_v0 = vlaneseq }
   0xf   :  { %422 = vmatpush1.bf16.msra.mxu0 %v793_v2  ;;  %495 = vmatpush1.bf16.msra.mxu1 %v794_v3  ;;  %v797_v5 = vld [vmem:[#allocation2 + $0xcc] ss:$16 sps:$4 sm:$0xff]   ;;  %v799_v6 = vld [vmem:[#allocation2 + $0xc0] ss:$16 sps:$4 sm:$0xff]   ;;  %v800_v7 = vld [vmem:[#allocation2 + $0xc8] ss:$16 sps:$4 sm:$0xff]  }
  0x10   :  { %423 = vmatprep.subr.bf16.mxu0 %v795_v4  ;;  %496 = vmatprep.subr.bf16.mxu1 %v797_v5  ;;  %v801_v8 = vld [vmem:[#allocation2 + $0xa4] ss:$16 sps:$4 sm:$0xff]   ;;  %v803_v9 = vld [vmem:[#allocation2 + $0xac] ss:$16 sps:$4 sm:$0xff]   ;;  %v805_v10 = vld [vmem:[#allocation2 + $0xa0] ss:$16 sps:$4 sm:$0xff]  }
  0x11   :  { %v806_v11 = vld [vmem:[#allocation2 + $0xa8] ss:$16 sps:$4 sm:$0xff]   ;;  %v807_v12 = vld [vmem:[#allocation2 + $0x84] ss:$16 sps:$4 sm:$0xff]   ;;  %v809_v13 = vld [vmem:[#allocation2 + $0x8c] ss:$16 sps:$4 sm:$0xff]  }
  0x12   :  { %v811_v14 = vld [vmem:[#allocation2 + $0x80] ss:$16 sps:$4 sm:$0xff]   ;;  %v812_v15 = vld [vmem:[#allocation2 + $0x88] ss:$16 sps:$4 sm:$0xff]   ;;  %v813_v16 = vld [vmem:[#allocation2 + $0x64] ss:$16 sps:$4 sm:$0xff]  }
  0x13   :  { %424 = vmatpush1.bf16.msra.mxu0 %v799_v6  ;;  %497 = vmatpush1.bf16.msra.mxu1 %v800_v7  ;;  %v815_v17 = vld [vmem:[#allocation2 + $0x6c] ss:$16 sps:$4 sm:$0xff]   ;;  %v817_v18 = vld [vmem:[#allocation2 + $0x60] ss:$16 sps:$4 sm:$0xff]   ;;  %v818_v19 = vld [vmem:[#allocation2 + $0x68] ss:$16 sps:$4 sm:$0xff]  }
  0x14   :  { %425 = vmatprep.subr.bf16.mxu0 %v801_v8  ;;  %498 = vmatprep.subr.bf16.mxu1 %v803_v9  ;;  %v819_v20 = vld [vmem:[#allocation2 + $0x44] ss:$16 sps:$4 sm:$0xff]   ;;  %v821_v21 = vld [vmem:[#allocation2 + $0x4c] ss:$16 sps:$4 sm:$0xff]   ;;  %v823_v22 = vld [vmem:[#allocation2 + $0x40] ss:$16 sps:$4 sm:$0xff]  }
  0x15   :  { %v824_v23 = vld [vmem:[#allocation2 + $0x48] ss:$16 sps:$4 sm:$0xff]   ;;  %v825_v24 = vld [vmem:[#allocation2 + $0x24] ss:$16 sps:$4 sm:$0xff]   ;;  %v827_v25 = vld [vmem:[#allocation2 + $0x2c] ss:$16 sps:$4 sm:$0xff]  }
  0x16   :  { %v829_v26 = vld [vmem:[#allocation2 + $0x20] ss:$16 sps:$4 sm:$0xff]   ;;  %v830_v27 = vld [vmem:[#allocation2 + $0x28] ss:$16 sps:$4 sm:$0xff]   ;;  %v831_v28 = vld [vmem:[#allocation2 + $0x4] ss:$16 sps:$4 sm:$0xff]  }
  0x17   :  { %426 = vmatpush1.bf16.msra.mxu0 %v805_v10  ;;  %499 = vmatpush1.bf16.msra.mxu1 %v806_v11  ;;  %v833_v29 = vld [vmem:[#allocation2 + $0xc] ss:$16 sps:$4 sm:$0xff]   ;;  %v85_v30 = vld [vmem:[#allocation2 + $0x180] sm:$0xff]  ;;  %v836_v33 = vld [vmem:[#allocation2 + $0x8] ss:$16 sps:$4 sm:$0xff]   ;;  %vm408_vm0 = vcmask 1043456  }
  0x18   :  { %427 = vmatprep.subr.bf16.mxu0 %v807_v12  ;;  %500 = vmatprep.subr.bf16.mxu1 %v809_v13  ;;  %v86_v31 = vld [vmem:[#allocation2 + $0x188] sm:$0xff]  ;;  %v835_v32 = vld [vmem:[#allocation2] ss:$16 sps:$4 sm:$0xff]   ;;  %v741_v34 = vcombine.high %v85_v30, %v85_v30  ;;  %v740_v36 = vcombine.low %v85_v30, %v85_v30  ;;  %v841_v38 = vld [vmem:[#allocation2 + $0x164] ss:$16 sps:$4 sm:$0xff]   ;;  %vm395_vm1 = vcmask 588800  }
  0x19   :  { %v743_v35 = vcombine.high %v86_v31, %v86_v31  ;;  %v742_v37 = vcombine.low %v86_v31, %v86_v31  ;;  %v843_v41 = vld [vmem:[#allocation2 + $0x16c] ss:$16 sps:$4 sm:$0xff]   ;;  %v845_v43 = vld [vmem:[#allocation2 + $0x160] ss:$16 sps:$4 sm:$0xff]   ;;  %v846_v44 = vld [vmem:[#allocation2 + $0x168] ss:$16 sps:$4 sm:$0xff]  }
  0x1a   :  { %v410_v39 = vsel %vm408_vm0, %v740_v36, 0  ;;  %v867_v42 = vld [vmem:[%s1048_s0 + $0x4] ss:$8 sps:$4 sm:$0xff]   ;;  %v851_v47 = vld [vmem:[#allocation2 + $0x140] ss:$16 sps:$4 sm:$0xff]   ;;  %v90_v1 = vshrl.u32 %v89_v0, 7 }
  0x1b   :  { %428 = vmatpush1.bf16.msra.mxu0 %v811_v14  ;;  %501 = vmatpush1.bf16.msra.mxu1 %v812_v15  ;;  %v416_v40 = vsel %vm408_vm0, %v742_v37, 0  ;;  %v847_v45 = vld [vmem:[#allocation2 + $0x144] ss:$16 sps:$4 sm:$0xff]   ;;  %v849_v46 = vld [vmem:[#allocation2 + $0x14c] ss:$16 sps:$4 sm:$0xff]  }
  0x1c   :  { %429 = vmatprep.subr.bf16.mxu0 %v813_v16  ;;  %502 = vmatprep.subr.bf16.mxu1 %v815_v17  ;;  %v852_v48 = vld [vmem:[#allocation2 + $0x148] ss:$16 sps:$4 sm:$0xff]   ;;  %v853_v49 = vld [vmem:[#allocation2 + $0x124] ss:$16 sps:$4 sm:$0xff]   ;;  %v855_v50 = vld [vmem:[#allocation2 + $0x12c] ss:$16 sps:$4 sm:$0xff]  }
  0x1d   :  { %745 = vmatprep.mubr.msk.bf16.mxu0 %vm395_vm1, %v867_v42  ;;  %750 = vmatprep.mubr.msk.bf16.mxu1 %vm395_vm1, %v867_v42  ;;  %v857_v51 = vld [vmem:[#allocation2 + $0x120] ss:$16 sps:$4 sm:$0xff]   ;;  %v858_v52 = vld [vmem:[#allocation2 + $0x128] ss:$16 sps:$4 sm:$0xff]   ;;  %v859_v53 = vld [vmem:[#allocation2 + $0x104] ss:$16 sps:$4 sm:$0xff]  }
  0x1e   :  { %v861_v54 = vld [vmem:[#allocation2 + $0x10c] ss:$16 sps:$4 sm:$0xff]   ;;  %v863_v55 = vld [vmem:[#allocation2 + $0x100] ss:$16 sps:$4 sm:$0xff]   ;;  %v864_v56 = vld [vmem:[#allocation2 + $0x108] ss:$16 sps:$4 sm:$0xff]  }
  0x1f   :  { %430 = vmatpush1.bf16.msra.mxu0 %v817_v18  ;;  %503 = vmatpush1.bf16.msra.mxu1 %v818_v19  ;;  %v865_v57 = vld [vmem:[%s1048_s0] ss:$8 sps:$4 sm:$0xff]   ;;  %v868_v58 = vld [vmem:[%s1048_s0 + $0x14] ss:$8 sps:$4 sm:$0xff]   ;;  %v870_v59 = vld [vmem:[%s1048_s0 + $0x10] ss:$8 sps:$4 sm:$0xff]  }
  0x20   :  { %431 = vmatprep.subr.bf16.mxu0 %v819_v20  ;;  %504 = vmatprep.subr.bf16.mxu1 %v821_v21  ;;  %v871_v60 = vld [vmem:[%s1048_s0 + $0x24] ss:$8 sps:$4 sm:$0xff]   ;;  %v873_v61 = vld [vmem:[%s1048_s0 + $0x20] ss:$8 sps:$4 sm:$0xff]   ;;  %v874_v62 = vld [vmem:[%s1048_s0 + $0x34] ss:$8 sps:$4 sm:$0xff]  }
  0x21   :  { %v876_v63 = vld [vmem:[%s1048_s0 + $0x30] ss:$8 sps:$4 sm:$0xff]   ;;  %v91_v2 = vsub.s32 0, %v90_v1  ;;  %v99_v3 = vsub.s32 2, %v90_v1  ;;  %v95_v4 = vsub.s32 1, %v90_v1  ;;  %v103_v5 = vsub.s32 3, %v90_v1 }
  0x22   :  { %v87_v6 = vld [vmem:[%s1050_s2] sm:$0xf] }
  0x23   :  { %432 = vmatpush1.bf16.msra.mxu0 %v823_v22  ;;  %505 = vmatpush1.bf16.msra.mxu1 %v824_v23  ;;  %v960_v7 = vrot.slane %v87_v6, %v91_v2  ;;  %v962_v8 = vrot.slane %v87_v6, %v99_v3  ;;  %v964_v9 = vrot.slane %v87_v6, %v95_v4 }
  0x24   :  { %433 = vmatprep.subr.bf16.mxu0 %v825_v24  ;;  %506 = vmatprep.subr.bf16.mxu1 %v827_v25  ;;  %v966_v10 = vrot.slane %v87_v6, %v103_v5 }
  0x27   :  { %434 = vmatpush1.bf16.msra.mxu0 %v829_v26  ;;  %507 = vmatpush1.bf16.msra.mxu1 %v830_v27 }
  0x28   :  { %435 = vmatprep.subr.bf16.mxu0 %v831_v28  ;;  %508 = vmatprep.subr.bf16.mxu1 %v833_v29 }
  0x2b   :  { %436 = vmatpush1.bf16.msra.mxu0 %v835_v32  ;;  %509 = vmatpush1.bf16.msra.mxu1 %v836_v33 }
  0x2c   :  { %744 = vmatprep.subr.msk.bf16.mxu0 %vm408_vm0, %v741_v34  ;;  %749 = vmatprep.subr.msk.bf16.mxu1 %vm408_vm0, %v743_v35 }
  0x2f   :  { %444 = vmatpush2.bf16.msra.mxu0 %v410_v39  ;;  %517 = vmatpush2.bf16.msra.mxu1 %v416_v40 }
  0x30   :  { %445 = vmatprep.subr.bf16.mxu0 %v841_v38  ;;  %518 = vmatprep.subr.bf16.mxu1 %v843_v41 }
  0x33   :  { %446 = vmatpush2.bf16.msra.mxu0 %v845_v43  ;;  %519 = vmatpush2.bf16.msra.mxu1 %v846_v44 }
  0x34   :  { %447 = vmatprep.subr.bf16.mxu0 %v847_v45  ;;  %520 = vmatprep.subr.bf16.mxu1 %v849_v46 }
  0x37   :  { %448 = vmatpush2.bf16.msra.mxu0 %v851_v47  ;;  %521 = vmatpush2.bf16.msra.mxu1 %v852_v48 }
  0x38   :  { %449 = vmatprep.subr.bf16.mxu0 %v853_v49  ;;  %522 = vmatprep.subr.bf16.mxu1 %v855_v50 }
  0x3b   :  { %450 = vmatpush2.bf16.msra.mxu0 %v857_v51  ;;  %523 = vmatpush2.bf16.msra.mxu1 %v858_v52 }
  0x3c   :  { %451 = vmatprep.subr.bf16.mxu0 %v859_v53  ;;  %524 = vmatprep.subr.bf16.mxu1 %v861_v54 }
  0x3f   :  { %452 = vmatpush2.bf16.msra.mxu0 %v863_v55  ;;  %525 = vmatpush2.bf16.msra.mxu1 %v864_v56 }
  0x42   :  { %454 = vmatmul.mubr.bf16.vlgmr.msra.gmra.mxu0 %v865_v57  ;;  %527 = vmatmul.mubr.bf16.vlgmr.msra.gmra.mxu1 %v865_v57 }
  0x43   :  { %746 = vmatprep.mubr.msk.bf16.mxu0 %vm395_vm1, %v868_v58  ;;  %751 = vmatprep.mubr.msk.bf16.mxu1 %vm395_vm1, %v868_v58 }
  0x4a   :  { %464 = vmatmul.mubr.bf16.gmra.mxu0 %v870_v59  ;;  %537 = vmatmul.mubr.bf16.gmra.mxu1 %v870_v59 }
  0x4b   :  { %747 = vmatprep.mubr.msk.bf16.mxu0 %vm395_vm1, %v871_v60  ;;  %752 = vmatprep.mubr.msk.bf16.mxu1 %vm395_vm1, %v871_v60 }
  0x52   :  { %474 = vmatmul.mubr.bf16.gmra.mxu0 %v873_v61  ;;  %547 = vmatmul.mubr.bf16.gmra.mxu1 %v873_v61 }
  0x53   :  { %748 = vmatprep.mubr.msk.bf16.mxu0 %vm395_vm1, %v874_v62  ;;  %753 = vmatprep.mubr.msk.bf16.mxu1 %vm395_vm1, %v874_v62 }
  0x5a   :  { %484 = vmatmul.mubr.bf16.gmra.mxu0 %v876_v63  ;;  %557 = vmatmul.mubr.bf16.gmra.mxu1 %v876_v63 }
 0x102   :  { %v455_v11 = vpop.f32.mrf.mxu0  ;;  %v528_v12 = vpop.f32.mrf.mxu1 }
 0x103   :  { %v456_v15 = vadd.f32 %v455_v11, %v960_v7  ;;  %v529_v16 = vadd.f32 %v528_v12, %v962_v8 }
 0x104   :  { %v457_v13 = vpop.f32.mrf.mxu0  ;;  %v530_v14 = vpop.f32.mrf.mxu1 }
 0x105   :  { %v458_v17 = vadd.f32 %v457_v13, %v964_v9  ;;  %v531_v18 = vadd.f32 %v530_v14, %v966_v10 }
 0x106   :  { %v459_v19 = vpop.f32.mrf.mxu0  ;;  %v532_v20 = vpop.f32.mrf.mxu1 }
 0x107   :  { %v770_v21 = vpack.c.bf16 %v458_v17, %v456_v15  ;;  %v771_v22 = vpack.c.bf16 %v531_v18, %v529_v16  ;;  %v460_v25 = vadd.f32 %v459_v19, %v960_v7  ;;  %v533_v26 = vadd.f32 %v532_v20, %v962_v8 }
 0x108   :  { %v461_v23 = vpop.f32.mrf.mxu0  ;;  %v534_v24 = vpop.f32.mrf.mxu1 }
 0x109   :  { %663 = vst [vmem:[%s1051_s3] sm:$0xff] %v770_v21  ;;  %664 = vst [vmem:[%s1051_s3 + $0x8] sm:$0xff] %v771_v22  ;;  %v462_v27 = vadd.f32 %v461_v23, %v964_v9  ;;  %v535_v28 = vadd.f32 %v534_v24, %v966_v10 }
 0x10a   :  { %v465_v29 = vpop.f32.mrf.mxu0  ;;  %v538_v30 = vpop.f32.mrf.mxu1 }
 0x10b   :  { %v772_v31 = vpack.c.bf16 %v462_v27, %v460_v25  ;;  %v773_v32 = vpack.c.bf16 %v535_v28, %v533_v26  ;;  %v466_v35 = vadd.f32 %v465_v29, %v960_v7  ;;  %v539_v36 = vadd.f32 %v538_v30, %v962_v8 }
 0x10c   :  { %v467_v33 = vpop.f32.mrf.mxu0  ;;  %v540_v34 = vpop.f32.mrf.mxu1 }
 0x10d   :  { %665 = vst [vmem:[%s1051_s3 + $0x10] sm:$0xff] %v772_v31  ;;  %666 = vst [vmem:[%s1051_s3 + $0x18] sm:$0xff] %v773_v32  ;;  %v468_v37 = vadd.f32 %v467_v33, %v964_v9  ;;  %v541_v38 = vadd.f32 %v540_v34, %v966_v10 }
 0x10e   :  { %v469_v39 = vpop.f32.mrf.mxu0  ;;  %v542_v40 = vpop.f32.mrf.mxu1 }
 0x10f   :  { %v774_v41 = vpack.c.bf16 %v468_v37, %v466_v35  ;;  %v775_v42 = vpack.c.bf16 %v541_v38, %v539_v36  ;;  %v470_v45 = vadd.f32 %v469_v39, %v960_v7  ;;  %v543_v46 = vadd.f32 %v542_v40, %v962_v8 }
 0x110   :  { %v471_v43 = vpop.f32.mrf.mxu0  ;;  %v544_v44 = vpop.f32.mrf.mxu1 }
 0x111   :  { %667 = vst [vmem:[%s1051_s3 + $0x20] sm:$0xff] %v774_v41  ;;  %668 = vst [vmem:[%s1051_s3 + $0x28] sm:$0xff] %v775_v42  ;;  %v472_v47 = vadd.f32 %v471_v43, %v964_v9  ;;  %v545_v48 = vadd.f32 %v544_v44, %v966_v10 }
 0x112   :  { %v475_v49 = vpop.f32.mrf.mxu0  ;;  %v548_v50 = vpop.f32.mrf.mxu1 }
 0x113   :  { %v776_v51 = vpack.c.bf16 %v472_v47, %v470_v45  ;;  %v777_v52 = vpack.c.bf16 %v545_v48, %v543_v46  ;;  %v476_v55 = vadd.f32 %v475_v49, %v960_v7  ;;  %v549_v56 = vadd.f32 %v548_v50, %v962_v8 }
 0x114   :  { %v477_v53 = vpop.f32.mrf.mxu0  ;;  %v550_v54 = vpop.f32.mrf.mxu1 }
 0x115   :  { %669 = vst [vmem:[%s1051_s3 + $0x30] sm:$0xff] %v776_v51  ;;  %670 = vst [vmem:[%s1051_s3 + $0x38] sm:$0xff] %v777_v52  ;;  %v478_v57 = vadd.f32 %v477_v53, %v964_v9  ;;  %v551_v58 = vadd.f32 %v550_v54, %v966_v10 }
 0x116   :  { %v479_v59 = vpop.f32.mrf.mxu0  ;;  %v552_v60 = vpop.f32.mrf.mxu1 }
 0x117   :  { %v778_v61 = vpack.c.bf16 %v478_v57, %v476_v55  ;;  %v779_v62 = vpack.c.bf16 %v551_v58, %v549_v56  ;;  %v480_v1 = vadd.f32 %v479_v59, %v960_v7  ;;  %v553_v2 = vadd.f32 %v552_v60, %v962_v8 }
 0x118   :  { %v481_v63 = vpop.f32.mrf.mxu0  ;;  %v554_v0 = vpop.f32.mrf.mxu1 }
 0x119   :  { %671 = vst [vmem:[%s1051_s3 + $0x40] sm:$0xff] %v778_v61  ;;  %672 = vst [vmem:[%s1051_s3 + $0x48] sm:$0xff] %v779_v62  ;;  %v482_v3 = vadd.f32 %v481_v63, %v964_v9  ;;  %v555_v4 = vadd.f32 %v554_v0, %v966_v10 }
 0x11a   :  { %v485_v5 = vpop.f32.mrf.mxu0  ;;  %v558_v6 = vpop.f32.mrf.mxu1 }
 0x11b   :  { %v780_v11 = vpack.c.bf16 %v482_v3, %v480_v1  ;;  %v781_v12 = vpack.c.bf16 %v555_v4, %v553_v2  ;;  %v486_v15 = vadd.f32 %v485_v5, %v960_v7  ;;  %v559_v16 = vadd.f32 %v558_v6, %v962_v8 }
 0x11c   :  { %v487_v13 = vpop.f32.mrf.mxu0  ;;  %v560_v14 = vpop.f32.mrf.mxu1 }
 0x11d   :  { %673 = vst [vmem:[%s1051_s3 + $0x50] sm:$0xff] %v780_v11  ;;  %674 = vst [vmem:[%s1051_s3 + $0x58] sm:$0xff] %v781_v12  ;;  %v488_v17 = vadd.f32 %v487_v13, %v964_v9  ;;  %v561_v18 = vadd.f32 %v560_v14, %v966_v10 }
 0x11e   :  { %v489_v19 = vpop.f32.mrf.mxu0  ;;  %v562_v20 = vpop.f32.mrf.mxu1 }
 0x11f   :  { %v782_v21 = vpack.c.bf16 %v488_v17, %v486_v15  ;;  %v783_v22 = vpack.c.bf16 %v561_v18, %v559_v16  ;;  %v490_v25 = vadd.f32 %v489_v19, %v960_v7  ;;  %v563_v26 = vadd.f32 %v562_v20, %v962_v8 }
 0x120   :  { %v491_v23 = vpop.f32.mrf.mxu0  ;;  %v564_v24 = vpop.f32.mrf.mxu1 }
 0x121   :  { %675 = vst [vmem:[%s1051_s3 + $0x60] sm:$0xff] %v782_v21  ;;  %676 = vst [vmem:[%s1051_s3 + $0x68] sm:$0xff] %v783_v22  ;;  %v492_v27 = vadd.f32 %v491_v23, %v964_v9  ;;  %v565_v28 = vadd.f32 %v564_v24, %v966_v10 }
 0x123   :  { %v784_v29 = vpack.c.bf16 %v492_v27, %v490_v25  ;;  %v785_v30 = vpack.c.bf16 %v565_v28, %v563_v26 }
 0x125   :  { %677 = vst [vmem:[%s1051_s3 + $0x70] sm:$0xff] %v784_v29  ;;  %678 = vst [vmem:[%s1051_s3 + $0x78] sm:$0xff] %v785_v30 }
 0x126   :  { %683 = vsyncpa [#allocation3], 1 }

// kernel: report_model_forward.6
= control target key start
LH: loop header
LB: loop body
LE: loop exit
PB: predicated region body
PF: predicated region fallthrough
CT: control target
= control target key end

     0   :  { %v7933_v1 = vmov 0   ;;  %vm619_vm0 = vcmask 1041409   ;;  %vm622_vm1 = vcmask 1042434   ;;  %vm625_vm2 = vcmask 1043459   ;;  %s7926_s1 = inlined_call_operand.vmem [shape: bf16[128,512], index: 1, kind: input, shape index: {}]   ;;  %s7927_s2 = inlined_call_operand.vmem [shape: f32[8,128], index: 2, kind: input, shape index: {}]   ;;  %s7928_s0 = inlined_call_operand.vmem [shape: bf16[8,8,512], index: 0, kind: input, shape index: {}]   ;;  %s7929_s3 = inlined_call_operand.vmem [shape: f32[8,128], index: 3, kind: input, shape index: {}]   ;;  %s7930_s4 = inlined_call_operand.vmem [shape: bf16[8,8,128], index: 4, kind: output, shape index: {0}]   ;;  %s7931_s6 = inlined_call_operand.vmem [shape: f32[8,128], index: 6, kind: output, shape index: {2}]   ;;  %s7932_s5 = inlined_call_operand.vmem [shape: f32[8,128], index: 5, kind: output, shape index: {1}]  }
   0x1   :  { %v4889_v0 = vld [vmem:[%s7926_s1 + $0xe4] ss:$16 sps:$4 sm:$0xff]   ;;  %271 = vmatprep.mubr.bf16.mxu0 %v7933_v1  ;;  %312 = vmatprep.mubr.bf16.mxu1 %v7933_v1  ;;  %v4896_v2 = vld [vmem:[%s7926_s1 + $0xe0] ss:$16 sps:$4 sm:$0xff]   ;;  %v4902_v3 = vld [vmem:[%s7926_s1 + $0xec] ss:$16 sps:$4 sm:$0xff]  }
   0x2   :  { %239 = vmatprep.subr.bf16.mxu0 %v4889_v0  ;;  %v4907_v4 = vld [vmem:[%s7926_s1 + $0xe8] ss:$16 sps:$4 sm:$0xff]   ;;  %v4913_v5 = vld [vmem:[%s7926_s1 + $0xc4] ss:$16 sps:$4 sm:$0xff]   ;;  %v4918_v6 = vld [vmem:[%s7926_s1 + $0xc0] ss:$16 sps:$4 sm:$0xff]   ;;  %280 = vmatprep.subr.bf16.mxu1 %v4902_v3 }
   0x3   :  { %240 = vmatpush1.bf16.msra.mxu0 %v4896_v2  ;;  %v4924_v7 = vld [vmem:[%s7926_s1 + $0xcc] ss:$16 sps:$4 sm:$0xff]   ;;  %281 = vmatpush1.bf16.msra.mxu1 %v4907_v4  ;;  %v4931_v8 = vld [vmem:[%s7926_s1 + $0xc8] ss:$16 sps:$4 sm:$0xff]   ;;  %v4937_v9 = vld [vmem:[%s7926_s1 + $0xa4] ss:$16 sps:$4 sm:$0xff]  }
   0x4   :  { %241 = vmatprep.subr.bf16.mxu0 %v4913_v5  ;;  %282 = vmatprep.subr.bf16.mxu1 %v4924_v7  ;;  %v4943_v10 = vld [vmem:[%s7926_s1 + $0xa0] ss:$16 sps:$4 sm:$0xff]   ;;  %v4948_v11 = vld [vmem:[%s7926_s1 + $0xac] ss:$16 sps:$4 sm:$0xff]   ;;  %v4954_v12 = vld [vmem:[%s7926_s1 + $0x84] ss:$16 sps:$4 sm:$0xff]  }
   0x5   :  { %v4960_v13 = vld [vmem:[%s7926_s1 + $0xa8] ss:$16 sps:$4 sm:$0xff]   ;;  %v4966_v14 = vld [vmem:[%s7926_s1 + $0x8c] ss:$16 sps:$4 sm:$0xff]   ;;  %v4972_v15 = vld [vmem:[%s7926_s1 + $0x80] ss:$16 sps:$4 sm:$0xff]  }
   0x6   :  { %v4978_v16 = vld [vmem:[%s7926_s1 + $0x64] ss:$16 sps:$4 sm:$0xff]   ;;  %v4984_v17 = vld [vmem:[%s7926_s1 + $0x88] ss:$16 sps:$4 sm:$0xff]   ;;  %v4990_v18 = vld [vmem:[%s7926_s1 + $0x6c] ss:$16 sps:$4 sm:$0xff]  }
   0x7   :  { %242 = vmatpush1.bf16.msra.mxu0 %v4918_v6  ;;  %283 = vmatpush1.bf16.msra.mxu1 %v4931_v8  ;;  %v4996_v19 = vld [vmem:[%s7926_s1 + $0x60] ss:$16 sps:$4 sm:$0xff]   ;;  %v5002_v20 = vld [vmem:[%s7926_s1 + $0x44] ss:$16 sps:$4 sm:$0xff]   ;;  %v5008_v21 = vld [vmem:[%s7926_s1 + $0x68] ss:$16 sps:$4 sm:$0xff]  }
   0x8   :  { %243 = vmatprep.subr.bf16.mxu0 %v4937_v9  ;;  %284 = vmatprep.subr.bf16.mxu1 %v4948_v11  ;;  %7982 = vst [vmem:[#allocation4_spill] sm:$0xff] %v5002_v20  ;;  %7983 = vst [vmem:[#allocation5_spill] sm:$0xff] %v5008_v21  ;;  %v5014_v22 = vld [vmem:[%s7926_s1 + $0x4c] ss:$16 sps:$4 sm:$0xff]   ;;  %v5020_v23 = vld [vmem:[%s7926_s1 + $0x40] ss:$16 sps:$4 sm:$0xff]  }
   0x9   :  { %7984 = vst [vmem:[#allocation6_spill] sm:$0xff] %v5014_v22  ;;  %7985 = vst [vmem:[#allocation7_spill] sm:$0xff] %v5020_v23  ;;  %v5026_v24 = vld [vmem:[%s7926_s1 + $0x24] ss:$16 sps:$4 sm:$0xff]   ;;  %v5032_v25 = vld [vmem:[%s7926_s1 + $0x48] ss:$16 sps:$4 sm:$0xff]  }
   0xa   :  { %7986 = vst [vmem:[#allocation8_spill] sm:$0xff] %v5026_v24  ;;  %7987 = vst [vmem:[#allocation9_spill] sm:$0xff] %v5032_v25  ;;  %v5038_v26 = vld [vmem:[%s7926_s1 + $0x2c] ss:$16 sps:$4 sm:$0xff]   ;;  %v5044_v27 = vld [vmem:[%s7926_s1 + $0x20] ss:$16 sps:$4 sm:$0xff]  }
   0xb   :  { %244 = vmatpush1.bf16.msra.mxu0 %v4943_v10  ;;  %285 = vmatpush1.bf16.msra.mxu1 %v4960_v13  ;;  %7988 = vst [vmem:[#allocation10_spill] sm:$0xff] %v5038_v26  ;;  %7989 = vst [vmem:[#allocation11_spill] sm:$0xff] %v5044_v27  ;;  %v5050_v28 = vld [vmem:[%s7926_s1 + $0x4] ss:$16 sps:$4 sm:$0xff]   ;;  %v5056_v29 = vld [vmem:[%s7926_s1 + $0x28] ss:$16 sps:$4 sm:$0xff]  }
   0xc   :  { %245 = vmatprep.subr.bf16.mxu0 %v4954_v12  ;;  %286 = vmatprep.subr.bf16.mxu1 %v4966_v14  ;;  %7990 = vst [vmem:[#allocation12_spill] sm:$0xff] %v5050_v28  ;;  %7991 = vst [vmem:[#allocation13_spill] sm:$0xff] %v5056_v29  ;;  %v5062_v30 = vld [vmem:[%s7926_s1 + $0xc] ss:$16 sps:$4 sm:$0xff]   ;;  %v5068_v31 = vld [vmem:[%s7926_s1] ss:$16 sps:$4 sm:$0xff]  }
   0xd   :  { %7992 = vst [vmem:[#allocation14_spill] sm:$0xff] %v5062_v30  ;;  %7993 = vst [vmem:[#allocation15_spill] sm:$0xff] %v5068_v31  ;;  %v25_v32 = vld [vmem:[%s7927_s2] sm:$0xff]  ;;  %v5078_v33 = vld [vmem:[%s7926_s1 + $0x8] ss:$16 sps:$4 sm:$0xff]   ;;  %vm628_vm3 = vcmask 1044484  }
   0xe   :  { %7994 = vst [vmem:[#allocation16_spill] sm:$0xff] %v5078_v33  ;;  %v78_v34 = vpack.c.bf16 %v25_v32, %v25_v32  ;;  %v5122_v35 = vld [vmem:[%s7928_s0] sm:$0x11]  ;;  %v5127_v36 = vld [vmem:[%s7928_s0 + $0x10] sm:$0x11]  ;;  %vm631_vm4 = vcmask 1045509  }
   0xf   :  { %246 = vmatpush1.bf16.msra.mxu0 %v4972_v15  ;;  %287 = vmatpush1.bf16.msra.mxu1 %v4984_v17  ;;  %v5132_v37 = vld [vmem:[%s7928_s0 + $0x20] sm:$0x11]  ;;  %v5137_v38 = vld [vmem:[%s7928_s0 + $0x30] sm:$0x11]  ;;  %v321_v43 = vunpack.c.l.bf16 %v5122_v35  ;;  %v325_v44 = vunpack.c.l.bf16 %v5127_v36  ;;  %v5165_v46 = vld [vmem:[%s7928_s0 + $0x8] sm:$0x11] }
  0x10   :  { %247 = vmatprep.subr.bf16.mxu0 %v4978_v16  ;;  %288 = vmatprep.subr.bf16.mxu1 %v4990_v18  ;;  %v5142_v39 = vld [vmem:[%s7928_s0 + $0x40] sm:$0x11]  ;;  %v5147_v40 = vld [vmem:[%s7928_s0 + $0x50] sm:$0x11]  ;;  %v329_v45 = vunpack.c.l.bf16 %v5132_v37  ;;  %v333_v47 = vunpack.c.l.bf16 %v5137_v38  ;;  %v5174_v51 = vld [vmem:[%s7928_s0 + $0x18] sm:$0x11] }
  0x11   :  { %v5152_v41 = vld [vmem:[%s7928_s0 + $0x60] sm:$0x11]  ;;  %v5157_v42 = vld [vmem:[%s7928_s0 + $0x70] sm:$0x11]  ;;  %v337_v48 = vunpack.c.l.bf16 %v5142_v39  ;;  %v341_v49 = vunpack.c.l.bf16 %v5147_v40  ;;  %v5179_v52 = vld [vmem:[%s7928_s0 + $0x28] sm:$0x11] }
  0x12   :  { %v345_v50 = vunpack.c.l.bf16 %v5152_v41  ;;  %v5184_v53 = vld [vmem:[%s7928_s0 + $0x38] sm:$0x11]  ;;  %v349_v54 = vunpack.c.l.bf16 %v5157_v42  ;;  %v5193_v58 = vld [vmem:[%s7928_s0 + $0x48] sm:$0x11]  ;;  %vm634_vm5 = vcmask 1046534   ;;  %vm637_vm6 = vcmask 1047559  }
  0x13   :  { %248 = vmatpush1.bf16.msra.mxu0 %v4996_v19  ;;  %289 = vmatpush1.bf16.msra.mxu1 %v5008_v21  ;;  %v5198_v59 = vld [vmem:[%s7928_s0 + $0x58] sm:$0x11]  ;;  %v5203_v60 = vld [vmem:[%s7928_s0 + $0x68] sm:$0x11]  ;;  %vm673_vm7 = vcmask 1040384  }
  0x14   :  { %249 = vmatprep.subr.bf16.mxu0 %v5002_v20  ;;  %290 = vmatprep.subr.bf16.mxu1 %v5014_v22  ;;  %vm674_vm8 = vsmask.f32 256  ;;  %vm1147_vm10 = vsmask.f32 7938  ;;  %vm1621_vm12 = vsmask.f32 1280 }
  0x15   :  { %vm5351_vm9 = vmand %vm673_vm7, %vm674_vm8  ;;  %vm2094_vm14 = vsmask.f32 7942 }
  0x16   :  { %vm5686_vm11 = vmand %vm673_vm7, %vm1147_vm10  ;;  %vm2568_vm7 = vsmask.f32 2304 }
  0x17   :  { %250 = vmatpush1.bf16.msra.mxu0 %v5020_v23  ;;  %291 = vmatpush1.bf16.msra.mxu1 %v5032_v25  ;;  %vm6125_vm13 = vmand %vm619_vm0, %vm1621_vm12 }
  0x18   :  { %251 = vmatprep.subr.bf16.mxu0 %v5026_v24  ;;  %292 = vmatprep.subr.bf16.mxu1 %v5038_v26  ;;  %vm6456_vm15 = vmand %vm619_vm0, %vm2094_vm14 }
  0x19   :  { %vm6893_vm8 = vmand %vm622_vm1, %vm2568_vm7 }
  0x1b   :  { %252 = vmatpush1.bf16.msra.mxu0 %v5044_v27  ;;  %293 = vmatpush1.bf16.msra.mxu1 %v5056_v29 }
  0x1c   :  { %253 = vmatprep.subr.bf16.mxu0 %v5050_v28  ;;  %294 = vmatprep.subr.bf16.mxu1 %v5062_v30 }
  0x1f   :  { %254 = vmatpush1.bf16.msra.mxu0 %v5068_v31  ;;  %295 = vmatpush1.bf16.msra.mxu1 %v5078_v33 }
  0x20   :  { %718 = vmatprep.subr.bf16.mxu0 %v4889_v0  ;;  %759 = vmatprep.subr.bf16.mxu1 %v4902_v3 }
  0x22   :  { %272 = vmatmul.mubr.bf16.vlgmr.msra.gmra.mxu0 %v78_v34  ;;  %313 = vmatmul.mubr.bf16.vlgmr.msra.gmra.mxu1 %v78_v34 }
  0x23   :  { %719 = vmatpush1.bf16.msra.mxu0 %v4896_v2  ;;  %750 = vmatprep.mubr.bf16.mxu0 %v7933_v1  ;;  %v5212_v2 = vld [vmem:[%s7928_s0 + $0x78] sm:$0x11] }
  0x24   :  { %720 = vmatprep.subr.bf16.mxu0 %v4913_v5  ;;  %760 = vmatpush1.bf16.msra.mxu1 %v4907_v4 }
  0x25   :  { %791 = vmatprep.mubr.bf16.mxu1 %v7933_v1  ;;  %761 = vmatprep.subr.bf16.mxu1 %v4924_v7 }
  0x27   :  { %721 = vmatpush1.bf16.msra.mxu0 %v4918_v6 }
  0x28   :  { %722 = vmatprep.subr.bf16.mxu0 %v4937_v9  ;;  %762 = vmatpush1.bf16.msra.mxu1 %v4931_v8 }
  0x29   :  { %763 = vmatprep.subr.bf16.mxu1 %v4948_v11 }
  0x2b   :  { %723 = vmatpush1.bf16.msra.mxu0 %v4943_v10 }
  0x2c   :  { %724 = vmatprep.subr.bf16.mxu0 %v4954_v12  ;;  %764 = vmatpush1.bf16.msra.mxu1 %v4960_v13 }
  0x2d   :  { %765 = vmatprep.subr.bf16.mxu1 %v4966_v14 }
  0x2f   :  { %725 = vmatpush1.bf16.msra.mxu0 %v4972_v15 }
  0x30   :  { %726 = vmatprep.subr.bf16.mxu0 %v4978_v16  ;;  %766 = vmatpush1.bf16.msra.mxu1 %v4984_v17 }
  0x31   :  { %767 = vmatprep.subr.bf16.mxu1 %v4990_v18 }
  0x33   :  { %727 = vmatpush1.bf16.msra.mxu0 %v4996_v19 }
  0x34   :  { %728 = vmatprep.subr.bf16.mxu0 %v5002_v20  ;;  %768 = vmatpush1.bf16.msra.mxu1 %v5008_v21 }
  0x35   :  { %769 = vmatprep.subr.bf16.mxu1 %v5014_v22 }
  0x37   :  { %729 = vmatpush1.bf16.msra.mxu0 %v5020_v23 }
  0x38   :  { %730 = vmatprep.subr.bf16.mxu0 %v5026_v24  ;;  %770 = vmatpush1.bf16.msra.mxu1 %v5032_v25 }
  0x39   :  { %771 = vmatprep.subr.bf16.mxu1 %v5038_v26 }
  0x3b   :  { %731 = vmatpush1.bf16.msra.mxu0 %v5044_v27 }
  0x3c   :  { %732 = vmatprep.subr.bf16.mxu0 %v5050_v28  ;;  %772 = vmatpush1.bf16.msra.mxu1 %v5056_v29 }
  0x3d   :  { %773 = vmatprep.subr.bf16.mxu1 %v5062_v30 }
  0x3f   :  { %733 = vmatpush1.bf16.msra.mxu0 %v5068_v31 }
  0x40   :  { %1191 = vmatprep.subr.bf16.mxu0 %v4889_v0  ;;  %774 = vmatpush1.bf16.msra.mxu1 %v5078_v33 }
  0x41   :  { %1232 = vmatprep.subr.bf16.mxu1 %v4902_v3 }
  0xe2   :  { %v273_v61 = vpop.f32.mrf.mxu0  ;;  %v5230_v31 = vpop.f32.mrf.mxu1 }
  0xe3   :  { %v357_v1 = vrot.slane %v273_v61, 1  ;;  %v361_v57 = vrot.slane %v273_v61, 2  ;;  %v365_v0 = vrot.slane %v273_v61, 3  ;;  %v369_v56 = vrot.slane %v273_v61, 4 }
  0xe4   :  { %v373_v63 = vrot.slane %v273_v61, 5  ;;  %v377_v55 = vrot.slane %v273_v61, 6  ;;  %v381_v62 = vrot.slane %v273_v61, 7  ;;  %v417_v33 = vadd.f32 %v321_v43, %v273_v61  ;;  %v275_v3 = vpop.f32.mrf.mxu0  ;;  %v5232_v26 = vpop.f32.mrf.mxu1 }
  0xe5   :  { %v421_v4 = vadd.f32 %v357_v1, %v325_v44  ;;  %v425_v30 = vadd.f32 %v361_v57, %v329_v45  ;;  %v429_v5 = vadd.f32 %v365_v0, %v333_v47  ;;  %v433_v28 = vadd.f32 %v369_v56, %v337_v48 }
  0xe6   :  { %v437_v6 = vadd.f32 %v373_v63, %v341_v49  ;;  %v441_v29 = vadd.f32 %v377_v55, %v345_v50  ;;  %v445_v32 = vadd.f32 %v381_v62, %v349_v54  ;;  %v449_v27 = vmul.f32 0.5, %v417_v33  ;;  %v277_v34 = vpop.f32.mrf.mxu0  ;;  %v318_v1 = vpop.f32.mrf.mxu1 }
  0xe7   :  { %v450_v24 = vmul.f32 0.5, %v421_v4  ;;  %v451_v25 = vmul.f32 0.5, %v425_v30  ;;  %v452_v23 = vmul.f32 0.5, %v429_v5  ;;  %v453_v22 = vmul.f32 0.5, %v433_v28 }
  0xe8   :  { %v454_v20 = vmul.f32 0.5, %v437_v6  ;;  %v455_v43 = vmul.f32 0.5, %v441_v29  ;;  %v456_v61 = vmul.f32 0.5, %v445_v32  ;;  %4114 = vtanh.f32 %v449_v27  ;;  %v278_v21 = vpop.f32.mrf.mxu0  ;;  %v319_v50 = vpop.f32.mrf.mxu1 }
  0xe9   :  { %4116 = vtanh.f32 %v450_v24  ;;  %v358_v44 = vrot.slane %v275_v3, 1  ;;  %v362_v45 = vrot.slane %v275_v3, 2  ;;  %v366_v47 = vrot.slane %v275_v3, 3  ;;  %v5241_v21 = vld [vmem:[%s7929_s3] sm:$0xff] }
  0xea   :  { %4118 = vtanh.f32 %v451_v25  ;;  %v370_v48 = vrot.slane %v275_v3, 4  ;;  %v374_v33 = vrot.slane %v275_v3, 5  ;;  %v378_v49 = vrot.slane %v275_v3, 6 }
  0xeb   :  { %4120 = vtanh.f32 %v452_v23  ;;  %v382_v54 = vrot.slane %v275_v3, 7  ;;  %v7995_v30 = vunpack.c.h.bf16 %v5122_v35  ;;  %v7996_v29 = vunpack.c.h.bf16 %v5127_v36 }
  0xec   :  { %4122 = vtanh.f32 %v453_v22  ;;  %v7997_v24 = vunpack.c.h.bf16 %v5132_v37  ;;  %v7998_v27 = vunpack.c.h.bf16 %v5137_v38  ;;  %v7999_v23 = vunpack.c.h.bf16 %v5142_v39 }
  0xed   :  { %v418_v28 = vadd.f32 %v7995_v30, %v275_v3  ;;  %v422_v55 = vadd.f32 %v358_v44, %v7996_v29  ;;  %4124 = vtanh.f32 %v454_v20  ;;  %v8000_v35 = vunpack.c.h.bf16 %v5147_v40 }
  0xee   :  { %v426_v25 = vadd.f32 %v362_v45, %v7997_v24  ;;  %v430_v56 = vadd.f32 %v366_v47, %v7998_v27  ;;  %v434_v57 = vadd.f32 %v370_v48, %v7999_v23  ;;  %v8001_v22 = vunpack.c.h.bf16 %v5152_v41 }
  0xef   :  { %v438_v36 = vadd.f32 %v374_v33, %v8000_v35  ;;  %v352_v63 = vunpack.c.h.bf16 %v5212_v2  ;;  %4126 = vtanh.f32 %v455_v43  ;;  %v481_v0 = vmul.f32 0.5, %v418_v28 }
  0xf0   :  { %v442_v62 = vadd.f32 %v378_v49, %v8001_v22  ;;  %v482_v3 = vmul.f32 0.5, %v422_v55  ;;  %v483_v37 = vmul.f32 0.5, %v426_v25  ;;  %4128 = vtanh.f32 %v456_v61 }
  0xf1   :  { %v8002_v38 = vunpack.c.h.bf16 %v5157_v42  ;;  %v484_v5 = vmul.f32 0.5, %v430_v56  ;;  %v555_v39 = vrot.slane %v5241_v21, 1  ;;  %v485_v20 = vmul.f32 0.5, %v434_v57 }
  0xf2   :  { %4130 = vtanh.f32 %v481_v0  ;;  %v556_v40 = vrot.slane %v5241_v21, 2  ;;  %v557_v41 = vrot.slane %v5241_v21, 3  ;;  %v486_v6 = vmul.f32 0.5, %v438_v36 }
  0xf3   :  { %v446_v4 = vadd.f32 %v382_v54, %v8002_v38  ;;  %4132 = vtanh.f32 %v482_v3  ;;  %v558_v32 = vrot.slane %v5241_v21, 4  ;;  %v359_v34 = vrot.slane %v5230_v31, 1 }
  0xf4   :  { %v487_v43 = vmul.f32 0.5, %v442_v62  ;;  %4134 = vtanh.f32 %v483_v37  ;;  %v363_v42 = vrot.slane %v5230_v31, 2  ;;  %v367_v61 = vrot.slane %v5230_v31, 3 }
  0xf5   :  { %v488_v1 = vmul.f32 0.5, %v446_v4  ;;  %4136 = vtanh.f32 %v484_v5  ;;  %v371_v44 = vrot.slane %v5230_v31, 4  ;;  %v375_v45 = vrot.slane %v5230_v31, 5  ;;  %v4115_v50 = vpop.eup %4114 }
  0xf6   :  { %4138 = vtanh.f32 %v485_v20  ;;  %v379_v47 = vrot.slane %v5230_v31, 6  ;;  %v383_v48 = vrot.slane %v5230_v31, 7  ;;  %v8003_v33 = vunpack.c.l.bf16 %v5165_v46  ;;  %v4117_v55 = vpop.eup %4116 }
  0xf7   :  { %4140 = vtanh.f32 %v486_v6  ;;  %v559_v54 = vrot.slane %v5241_v21, 5  ;;  %v560_v30 = vrot.slane %v5241_v21, 6  ;;  %v8004_v28 = vunpack.c.l.bf16 %v5174_v51 }
  0xf8   :  { %v419_v49 = vadd.f32 %v8003_v33, %v5230_v31  ;;  %4142 = vtanh.f32 %v487_v43  ;;  %v561_v24 = vrot.slane %v5241_v21, 7  ;;  %v8005_v25 = vunpack.c.l.bf16 %v5179_v52  ;;  %v4119_v31 = vpop.eup %4118 }
  0xf9   :  { %v423_v29 = vadd.f32 %v359_v34, %v8004_v28  ;;  %v8006_v56 = vunpack.c.l.bf16 %v5184_v53  ;;  %v465_v57 = vmul.f32 0.5, %v4115_v50  ;;  %4144 = vtanh.f32 %v488_v1  ;;  %v4121_v0 = vpop.eup %4120 }
  0xfa   :  { %v427_v27 = vadd.f32 %v363_v42, %v8005_v25  ;;  %v8007_v35 = vunpack.c.l.bf16 %v5193_v58  ;;  %v8008_v22 = vunpack.c.l.bf16 %v5198_v59  ;;  %v466_v3 = vmul.f32 0.5, %v4117_v55  ;;  %v4123_v20 = vpop.eup %4122 }
  0xfb   :  { %v431_v23 = vadd.f32 %v367_v61, %v8006_v56  ;;  %v8009_v37 = vunpack.c.l.bf16 %v5203_v60  ;;  %v8010_v4 = vunpack.c.l.bf16 %v5212_v2  ;;  %4146 = vtanh.f32 %v419_v49  ;;  %v4125_v42 = vpop.eup %4124 }
  0xfc   :  { %v435_v36 = vadd.f32 %v371_v44, %v8007_v35  ;;  %v439_v62 = vadd.f32 %v375_v45, %v8008_v22  ;;  %v467_v6 = vmul.f32 0.5, %v4119_v31  ;;  %4148 = vtanh.f32 %v423_v29  ;;  %v4127_v45 = vpop.eup %4126 }
  0xfd   :  { %v443_v38 = vadd.f32 %v379_v47, %v8009_v37  ;;  %v447_v5 = vadd.f32 %v383_v48, %v8010_v4  ;;  %v360_v34 = vrot.slane %v5232_v26, 1  ;;  %v364_v43 = vrot.slane %v5232_v26, 2  ;;  %v4129_v49 = vpop.eup %4128 }
  0xfe   :  { %v468_v61 = vmul.f32 0.5, %v4121_v0  ;;  %4150 = vtanh.f32 %v427_v27  ;;  %v368_v1 = vrot.slane %v5232_v26, 3  ;;  %v372_v44 = vrot.slane %v5232_v26, 4 }
  0xff   :  { %v473_v47 = vadd.f32 0.5, %v465_v57  ;;  %4152 = vtanh.f32 %v431_v23  ;;  %v376_v48 = vrot.slane %v5232_v26, 5  ;;  %v380_v33 = vrot.slane %v5232_v26, 6  ;;  %v4131_v55 = vpop.eup %4130 }
 0x100   :  { %v469_v50 = vmul.f32 0.5, %v4123_v20  ;;  %v474_v28 = vadd.f32 0.5, %v466_v3  ;;  %4154 = vtanh.f32 %v435_v36  ;;  %v470_v25 = vmul.f32 0.5, %v4125_v42  ;;  %v4133_v57 = vpop.eup %4132 }
 0x101   :  { %v475_v27 = vadd.f32 0.5, %v467_v6  ;;  %4156 = vtanh.f32 %v439_v62  ;;  %v8011_v56 = vunpack.c.h.bf16 %v5165_v46  ;;  %v471_v23 = vmul.f32 0.5, %v4127_v45  ;;  %v4135_v0 = vpop.eup %4134 }
 0x102   :  { %v476_v35 = vadd.f32 0.5, %v468_v61  ;;  %v497_v22 = vmul.f32 0.5, %v4131_v55  ;;  %4158 = vtanh.f32 %v443_v38  ;;  %v472_v37 = vmul.f32 0.5, %v4129_v49  ;;  %v4137_v20 = vpop.eup %4136 }
 0x103   :  { %v420_v31 = vadd.f32 %v8011_v56, %v5232_v26  ;;  %v498_v4 = vmul.f32 0.5, %v4133_v57  ;;  %4160 = vtanh.f32 %v447_v5  ;;  %v8012_v36 = vunpack.c.h.bf16 %v5174_v51  ;;  %v4139_v56 = vpop.eup %4138 }
 0x104   :  { %v477_v42 = vadd.f32 0.5, %v469_v50  ;;  %v499_v6 = vmul.f32 0.5, %v4135_v0  ;;  %v505_v62 = vadd.f32 0.5, %v497_v22  ;;  %v8013_v29 = vunpack.c.h.bf16 %v5179_v52  ;;  %v4141_v5 = vpop.eup %4140 }
 0x105   :  { %v424_v3 = vadd.f32 %v360_v34, %v8012_v36  ;;  %v478_v45 = vadd.f32 0.5, %v470_v25  ;;  %v500_v61 = vmul.f32 0.5, %v4137_v20  ;;  %v506_v55 = vadd.f32 0.5, %v498_v4  ;;  %v4143_v52 = vpop.eup %4142 }
 0x106   :  { %v5301_v46 = vadd.f32 %v364_v43, %v8013_v29  ;;  %v8014_v38 = vunpack.c.h.bf16 %v5184_v53  ;;  %v479_v57 = vadd.f32 0.5, %v471_v23  ;;  %v501_v51 = vmul.f32 0.5, %v4139_v56  ;;  %v4145_v53 = vpop.eup %4144 }
 0x107   :  { %v507_v34 = vadd.f32 0.5, %v499_v6  ;;  %v8015_v50 = vunpack.c.h.bf16 %v5193_v58  ;;  %v480_v43 = vadd.f32 0.5, %v472_v37  ;;  %v502_v29 = vmul.f32 0.5, %v4141_v5 }
 0x108   :  { %v5305_v49 = vadd.f32 %v368_v1, %v8014_v38  ;;  %v508_v0 = vadd.f32 0.5, %v500_v61  ;;  %v8016_v25 = vunpack.c.h.bf16 %v5198_v59  ;;  %v503_v1 = vmul.f32 0.5, %v4143_v52  ;;  %v4147_v6 = vpop.eup %4146 }
 0x109   :  { %v5309_v22 = vadd.f32 %v372_v44, %v8015_v50  ;;  %v509_v36 = vadd.f32 0.5, %v501_v51  ;;  %v570_v23 = vmul.f32 %v505_v62, %v5241_v21  ;;  %v521_v20 = vmul.f32 0.5, %v420_v31  ;;  %v4149_v61 = vpop.eup %4148 }
 0x10a   :  { %v5313_v4 = vadd.f32 %v376_v48, %v8016_v25  ;;  %v504_v56 = vmul.f32 0.5, %v4145_v53  ;;  %v510_v58 = vadd.f32 0.5, %v502_v29  ;;  %v571_v44 = vmul.f32 %v555_v39, %v506_v55 }
 0x10b   :  { %v522_v37 = vmul.f32 0.5, %v424_v3  ;;  %v511_v38 = vadd.f32 0.5, %v503_v1  ;;  %v572_v59 = vmul.f32 %v556_v40, %v507_v34  ;;  %v578_v48 = vmul.f32 %v4147_v6, %v473_v47  ;;  %v4151_v62 = vpop.eup %4150 }
 0x10c   :  { %v8017_v5 = vunpack.c.h.bf16 %v5203_v60  ;;  %v512_v31 = vadd.f32 0.5, %v504_v56  ;;  %v573_v50 = vmul.f32 %v557_v41, %v508_v0  ;;  %v574_v39 = vmul.f32 %v558_v32, %v509_v36  ;;  %v4153_v3 = vpop.eup %4152 }
 0x10d   :  { %v579_v55 = vmul.f32 %v4149_v61, %v474_v28  ;;  %v575_v52 = vmul.f32 %v559_v54, %v510_v58  ;;  %v580_v40 = vmul.f32 %v4151_v62, %v475_v27  ;;  %v586_v47 = vadd.f32 %v578_v48, %v570_v23  ;;  %v4155_v60 = vpop.eup %4154 }
 0x10e   :  { %v444_v51 = vadd.f32 %v380_v33, %v8017_v5  ;;  %4162 = vtanh.f32 %v521_v20  ;;  %v576_v33 = vmul.f32 %v560_v30, %v511_v38  ;;  %v581_v34 = vmul.f32 %v4153_v3, %v476_v35  ;;  %v4157_v41 = vpop.eup %4156 }
 0x10f   :  { %v587_v29 = vadd.f32 %v579_v55, %v571_v44  ;;  %4164 = vtanh.f32 %v522_v37  ;;  %v577_v32 = vmul.f32 %v561_v24, %v512_v31  ;;  %v582_v28 = vmul.f32 %v4155_v60, %v477_v42  ;;  %v4159_v54 = vpop.eup %4158  ;;  %v5435_v60 = vld [vmem:[%s7926_s1 + $0xe8] ss:$16 sps:$4 sm:$0xff]  }
 0x110   :  { %v588_v0 = vadd.f32 %v580_v40, %v572_v59  ;;  %4166 = vtanh.f32 %v586_v47  ;;  %v583_v27 = vmul.f32 %v4157_v41, %v478_v45  ;;  %v589_v25 = vadd.f32 %v581_v34, %v573_v50  ;;  %v4161_v1 = vpop.eup %4160  ;;  %v679_v41 = vld [vmem:[%s7930_s4 + $0x4] sm:$0x1] }
 0x111   :  { %4168 = vtanh.f32 %v587_v29  ;;  %v618_v53 = vrot.slane %v587_v29, 7  ;;  %v584_v36 = vmul.f32 %v4159_v54, %v479_v57  ;;  %v590_v23 = vadd.f32 %v582_v28, %v574_v39 }
 0x112   :  { %v621_v30 = vrot.slane %v588_v0, 6  ;;  %v8018_v35 = vrot.slane %v5232_v26, 7  ;;  %v585_v6 = vmul.f32 %v4161_v1, %v480_v43  ;;  %v591_v21 = vadd.f32 %v583_v27, %v575_v52 }
 0x113   :  { %v620_v24 = vsel %vm619_vm0, %v618_v53, %v586_v47  ;;  %v523_v42 = vmul.f32 0.5, %v5301_v46  ;;  %v592_v56 = vadd.f32 %v584_v36, %v576_v33  ;;  %4170 = vtanh.f32 %v588_v0  ;;  %v676_v33 = vld [vmem:[%s7930_s4] sm:$0x1] }
 0x114   :  { %v448_v20 = vadd.f32 %v8018_v35, %v352_v63  ;;  %v623_v45 = vsel %vm622_vm1, %v621_v30, %v620_v24  ;;  %v624_v58 = vrot.slane %v589_v25, 5  ;;  %v593_v44 = vadd.f32 %v585_v6, %v577_v32 }
 0x115   :  { %4172 = vtanh.f32 %v589_v25  ;;  %v627_v57 = vrot.slane %v590_v23, 4  ;;  %v524_v37 = vmul.f32 0.5, %v5305_v49  ;;  %v630_v2 = vrot.slane %v591_v21, 3 }
 0x116   :  { %4174 = vtanh.f32 %v590_v23  ;;  %v626_v26 = vsel %vm625_vm2, %v624_v58, %v623_v45  ;;  %v525_v63 = vmul.f32 0.5, %v5309_v22  ;;  %v633_v46 = vrot.slane %v592_v56, 2 }
 0x117   :  { %4176 = vtanh.f32 %v591_v21  ;;  %v629_v43 = vsel %vm628_vm3, %v627_v57, %v626_v26  ;;  %v526_v61 = vmul.f32 0.5, %v5313_v4  ;;  %v636_v59 = vrot.slane %v593_v44, 1 }
 0x118   :  { %v632_v38 = vsel %vm631_vm4, %v630_v2, %v629_v43  ;;  %v527_v48 = vmul.f32 0.5, %v444_v51  ;;  %4178 = vtanh.f32 %v523_v42  ;;  %v528_v5 = vmul.f32 0.5, %v448_v20 }
 0x119   :  { %4180 = vtanh.f32 %v524_v37  ;;  %v635_v49 = vsel %vm634_vm5, %v633_v46, %v632_v38 }
 0x11a   :  { %4182 = vtanh.f32 %v525_v63  ;;  %v5347_v62 = vsel %vm637_vm6, %v636_v59, %v635_v49 }
 0x11b   :  { %v4163_v22 = vpop.eup %4162  ;;  %4184 = vtanh.f32 %v526_v61  ;;  %640 = vst [vmem:[#allocation3] sm:$0xff] %v5347_v62 }
 0x11c   :  { %v4165_v31 = vpop.eup %4164  ;;  %4186 = vtanh.f32 %v527_v48  ;;  %v537_v4 = vmul.f32 0.5, %v4163_v22 }
 0x11d   :  { %v4167_v50 = vpop.eup %4166  ;;  %4188 = vtanh.f32 %v528_v5  ;;  %v538_v39 = vmul.f32 0.5, %v4165_v31  ;;  %v682_v31 = vld [vmem:[%s7930_s4 + $0x8] sm:$0x1] }
 0x11e   :  { %v4169_v51 = vpop.eup %4168  ;;  %4190 = vtanh.f32 %v592_v56  ;;  %v545_v55 = vadd.f32 0.5, %v537_v4 }
 0x11f   :  { %4192 = vtanh.f32 %v593_v44  ;;  %v546_v3 = vadd.f32 0.5, %v538_v39 }
 0x120   :  { %v602_v52 = vmul.f32 %v4167_v50, %v545_v55  ;;  %v4171_v40 = vpop.eup %4170  ;;  %v685_v55 = vld [vmem:[%s7930_s4 + $0xc] sm:$0x1] }
 0x121   :  { %v603_v47 = vmul.f32 %v4169_v51, %v546_v3  ;;  %v688_v3 = vld [vmem:[%s7930_s4 + $0x10] sm:$0x1] }
 0x122   :  { %v4173_v34 = vpop.eup %4172  ;;  %v665_v29 = vpack.c.bf16 %v602_v52, %v602_v52 }
 0x123   :  { %v4175_v32 = vpop.eup %4174  ;;  %v666_v28 = vpack.c.bf16 %v603_v47, %v603_v47  ;;  %v649_v30 = vrot.slane %v603_v47, 7 }
 0x124   :  { %v4177_v0 = vpop.eup %4176  ;;  %v677_v54 = vsel %vm5351_vm9, %v665_v29, %v676_v33  ;;  %v694_v29 = vld [vmem:[%s7930_s4 + $0x18] sm:$0x1] }
 0x125   :  { %v4179_v27 = vpop.eup %4178  ;;  %678 = vst [vmem:[%s7930_s4] sm:$0x1] %v677_v54  ;;  %v680_v25 = vsel %vm5351_vm9, %v666_v28, %v679_v41  ;;  %v650_v63 = vsel %vm619_vm0, %v649_v30, %v602_v52  ;;  %v697_v54 = vld [vmem:[%s7930_s4 + $0x1c] sm:$0x1] }
 0x126   :  { %v4181_v53 = vpop.eup %4180  ;;  %v539_v1 = vmul.f32 0.5, %v4179_v27  ;;  %681 = vst [vmem:[%s7930_s4 + $0x4] sm:$0x1] %v680_v25 }
 0x127   :  { %v4183_v36 = vpop.eup %4182  ;;  %v540_v23 = vmul.f32 0.5, %v4181_v53 }
 0x128   :  { %v4185_v35 = vpop.eup %4184  ;;  %v541_v20 = vmul.f32 0.5, %v4183_v36  ;;  %v547_v6 = vadd.f32 0.5, %v539_v1 }
 0x129   :  { %v4187_v21 = vpop.eup %4186  ;;  %v542_v24 = vmul.f32 0.5, %v4185_v35  ;;  %v548_v42 = vadd.f32 0.5, %v540_v23 }
 0x12a   :  { %v4189_v56 = vpop.eup %4188  ;;  %v543_v45 = vmul.f32 0.5, %v4187_v21  ;;  %v549_v58 = vadd.f32 0.5, %v541_v20  ;;  %v604_v44 = vmul.f32 %v4171_v40, %v547_v6 }
 0x12b   :  { %v4191_v57 = vpop.eup %4190  ;;  %v544_v37 = vmul.f32 0.5, %v4189_v56  ;;  %v550_v26 = vadd.f32 0.5, %v542_v24  ;;  %v605_v2 = vmul.f32 %v4173_v34, %v548_v42  ;;  %v691_v34 = vld [vmem:[%s7930_s4 + $0x14] sm:$0x1]  ;;  %v5429_v24 = vld [vmem:[%s7926_s1 + $0xe0] ss:$16 sps:$4 sm:$0xff]  }
 0x12c   :  { %v4193_v43 = vpop.eup %4192  ;;  %v551_v46 = vadd.f32 0.5, %v543_v45  ;;  %v606_v61 = vmul.f32 %v4175_v32, %v549_v58  ;;  %v651_v38 = vrot.slane %v604_v44, 6  ;;  %v667_v59 = vpack.c.bf16 %v604_v44, %v604_v44  ;;  %v5441_v42 = vld [vmem:[%s7926_s1 + $0xc4] ss:$16 sps:$4 sm:$0xff]   ;;  %v5450_v45 = vld [vmem:[%s7926_s1 + $0xc0] ss:$16 sps:$4 sm:$0xff]  }
 0x12d   :  { %v552_v48 = vadd.f32 0.5, %v544_v37  ;;  %v607_v5 = vmul.f32 %v4177_v0, %v550_v26  ;;  %v653_v49 = vrot.slane %v605_v2, 5  ;;  %v668_v22 = vpack.c.bf16 %v605_v2, %v605_v2  ;;  %v5481_v58 = vld [vmem:[%s7926_s1 + $0xe4] ss:$16 sps:$4 sm:$0xff]   ;;  %v5487_v44 = vld [vmem:[%s7926_s1 + $0xec] ss:$16 sps:$4 sm:$0xff]  }
 0x12e   :  { %v608_v4 = vmul.f32 %v4191_v57, %v551_v46  ;;  %v652_v50 = vsel %vm622_vm1, %v651_v38, %v650_v63  ;;  %v655_v39 = vrot.slane %v606_v61, 4  ;;  %v669_v51 = vpack.c.bf16 %v606_v61, %v606_v61  ;;  %v5493_v57 = vld [vmem:[%s7928_s0] sm:$0x11]  ;;  %v5498_v37 = vld [vmem:[%s7928_s0 + $0x10] sm:$0x11] }
 0x12f   :  { %v609_v52 = vmul.f32 %v4193_v43, %v552_v48  ;;  %v654_v40 = vsel %vm625_vm2, %v653_v49, %v652_v50  ;;  %v657_v47 = vrot.slane %v607_v5, 3  ;;  %v670_v33 = vpack.c.bf16 %v607_v5, %v607_v5  ;;  %v5503_v26 = vld [vmem:[%s7928_s0 + $0x20] sm:$0x11]  ;;  %v5508_v2 = vld [vmem:[%s7928_s0 + $0x30] sm:$0x11] }
 0x130   :  { %v656_v41 = vsel %vm628_vm3, %v655_v39, %v654_v40  ;;  %v659_v32 = vrot.slane %v608_v4, 2  ;;  %v671_v28 = vpack.c.bf16 %v608_v4, %v608_v4  ;;  %v683_v0 = vsel %vm5351_vm9, %v667_v59, %v682_v31  ;;  %v5513_v63 = vld [vmem:[%s7928_s0 + $0x40] sm:$0x11]  ;;  %v5518_v43 = vld [vmem:[%s7928_s0 + $0x50] sm:$0x11] }
 0x131   :  { %v658_v27 = vsel %vm631_vm4, %v657_v47, %v656_v41  ;;  %v661_v25 = vrot.slane %v609_v52, 1  ;;  %v672_v53 = vpack.c.bf16 %v609_v52, %v609_v52  ;;  %684 = vst [vmem:[%s7930_s4 + $0x8] sm:$0x1] %v683_v0  ;;  %v686_v1 = vsel %vm5351_vm9, %v668_v22, %v685_v55  ;;  %v5523_v46 = vld [vmem:[%s7928_s0 + $0x60] sm:$0x11] }
 0x132   :  { %v660_v36 = vsel %vm634_vm5, %v659_v32, %v658_v27  ;;  %687 = vst [vmem:[%s7930_s4 + $0xc] sm:$0x1] %v686_v1  ;;  %v689_v23 = vsel %vm5351_vm9, %v669_v51, %v688_v3  ;;  %v692_v30 = vsel %vm5351_vm9, %v670_v33, %v691_v34  ;;  %v695_v35 = vsel %vm5351_vm9, %v671_v28, %v694_v29  ;;  %v5528_v61 = vld [vmem:[%s7928_s0 + $0x70] sm:$0x11]  ;;  %v5536_v5 = vld [vmem:[%s7928_s0 + $0x18] sm:$0x11] }
 0x133   :  { %v662_v20 = vsel %vm637_vm6, %v661_v25, %v660_v36  ;;  %690 = vst [vmem:[%s7930_s4 + $0x10] sm:$0x1] %v689_v23  ;;  %693 = vst [vmem:[%s7930_s4 + $0x14] sm:$0x1] %v692_v30  ;;  %v698_v6 = vsel %vm5351_vm9, %v672_v53, %v697_v54  ;;  %v8021_v56 = vmov 0   ;;  %v800_v55 = vunpack.c.l.bf16 %v5493_v57 }
 0x134   :  { %696 = vst [vmem:[%s7930_s4 + $0x18] sm:$0x1] %v695_v35  ;;  %664 = vst [vmem:[#allocation2] sm:$0xff] %v662_v20  ;;  %v717_v21 = vpack.c.bf16 %v662_v20, %v662_v20  ;;  %v5545_v50 = vld [vmem:[%s7928_s0 + $0x8] sm:$0x11]  ;;  %v804_v3 = vunpack.c.l.bf16 %v5498_v37  ;;  %v808_v52 = vunpack.c.l.bf16 %v5503_v26  ;;  %v812_v40 = vunpack.c.l.bf16 %v5508_v2 }
 0x135   :  { %699 = vst [vmem:[%s7930_s4 + $0x1c] sm:$0x1] %v698_v6  ;;  %v5550_v39 = vld [vmem:[%s7928_s0 + $0x28] sm:$0x11]  ;;  %v5555_v51 = vld [vmem:[%s7928_s0 + $0x38] sm:$0x11]  ;;  %v816_v29 = vunpack.c.l.bf16 %v5513_v63  ;;  %v820_v41 = vunpack.c.l.bf16 %v5518_v43  ;;  %v824_v32 = vunpack.c.l.bf16 %v5523_v46  ;;  %v828_v28 = vunpack.c.l.bf16 %v5528_v61 }
 0x136   :  { %751 = vmatmul.mubr.bf16.vlgmr.msra.gmra.mxu0 %v717_v21  ;;  %792 = vmatmul.mubr.bf16.vlgmr.msra.gmra.mxu1 %v717_v21  ;;  %v5564_v47 = vld [vmem:[%s7928_s0 + $0x48] sm:$0x11]  ;;  %v5569_v33 = vld [vmem:[%s7928_s0 + $0x58] sm:$0x11]  ;;  %v802_v54 = vunpack.c.l.bf16 %v5545_v50  ;;  %v806_v27 = vunpack.c.l.bf16 %v5536_v5  ;;  %v810_v25 = vunpack.c.l.bf16 %v5550_v39  ;;  %v814_v53 = vunpack.c.l.bf16 %v5555_v51 }
 0x137   :  { %1192 = vmatpush1.bf16.msra.mxu0 %v5429_v24  ;;  %1233 = vmatpush1.bf16.msra.mxu1 %v5435_v60  ;;  %v5574_v34 = vld [vmem:[%s7928_s0 + $0x68] sm:$0x11]  ;;  %v5583_v0 = vld [vmem:[%s7928_s0 + $0x78] sm:$0x11]  ;;  %v818_v1 = vunpack.c.l.bf16 %v5564_v47  ;;  %v822_v36 = vunpack.c.l.bf16 %v5569_v33  ;;  %v817_v38 = vunpack.c.h.bf16 %v5513_v63  ;;  %v829_v63 = vunpack.c.h.bf16 %v5528_v61 }
 0x138   :  { %1193 = vmatprep.subr.bf16.mxu0 %v5441_v42  ;;  %1234 = vmatprep.subr.bf16.mxu1 %v4924_v7  ;;  %v8022_v7 = vld [vmem:[#allocation5_spill] sm:$0xff]  ;;  %vm3041_vm9 = vsmask.f32 7946 }
 0x139   :  { %1223 = vmatprep.mubr.bf16.mxu0 %v8021_v56  ;;  %1264 = vmatprep.mubr.bf16.mxu1 %v8021_v56  ;;  %vm7218_vm10 = vmand %vm622_vm1, %vm3041_vm9 }
 0x13b   :  { %1194 = vmatpush1.bf16.msra.mxu0 %v5450_v45  ;;  %1235 = vmatpush1.bf16.msra.mxu1 %v4931_v8  ;;  %v8023_v8 = vld [vmem:[#allocation4_spill] sm:$0xff] }
 0x13c   :  { %1195 = vmatprep.subr.bf16.mxu0 %v4937_v9  ;;  %1236 = vmatprep.subr.bf16.mxu1 %v4948_v11  ;;  %v8024_v9 = vld [vmem:[#allocation6_spill] sm:$0xff]  ;;  %v8026_v11 = vld [vmem:[#allocation9_spill] sm:$0xff] }
 0x13f   :  { %1196 = vmatpush1.bf16.msra.mxu0 %v4943_v10  ;;  %1237 = vmatpush1.bf16.msra.mxu1 %v4960_v13  ;;  %v8025_v10 = vld [vmem:[#allocation7_spill] sm:$0xff]  ;;  %v8028_v13 = vld [vmem:[#allocation10_spill] sm:$0xff] }
 0x140   :  { %1197 = vmatprep.subr.bf16.mxu0 %v4954_v12  ;;  %1238 = vmatprep.subr.bf16.mxu1 %v4966_v14  ;;  %v8027_v12 = vld [vmem:[#allocation8_spill] sm:$0xff]  ;;  %v8029_v14 = vld [vmem:[#allocation11_spill] sm:$0xff] }
 0x143   :  { %1198 = vmatpush1.bf16.msra.mxu0 %v4972_v15  ;;  %1239 = vmatpush1.bf16.msra.mxu1 %v4984_v17  ;;  %v8030_v15 = vld [vmem:[#allocation13_spill] sm:$0xff]  ;;  %v8032_v17 = vld [vmem:[#allocation14_spill] sm:$0xff] }
 0x144   :  { %1199 = vmatprep.subr.bf16.mxu0 %v4978_v16  ;;  %1240 = vmatprep.subr.bf16.mxu1 %v4990_v18  ;;  %v8031_v16 = vld [vmem:[#allocation12_spill] sm:$0xff]  ;;  %v8033_v18 = vld [vmem:[#allocation15_spill] sm:$0xff] }
 0x147   :  { %1200 = vmatpush1.bf16.msra.mxu0 %v4996_v19  ;;  %1241 = vmatpush1.bf16.msra.mxu1 %v8022_v7  ;;  %v8034_v19 = vld [vmem:[#allocation16_spill] sm:$0xff] }
 0x148   :  { %1201 = vmatprep.subr.bf16.mxu0 %v8023_v8  ;;  %1242 = vmatprep.subr.bf16.mxu1 %v8024_v9 }
 0x14b   :  { %1202 = vmatpush1.bf16.msra.mxu0 %v8025_v10  ;;  %1243 = vmatpush1.bf16.msra.mxu1 %v8026_v11 }
 0x14c   :  { %1203 = vmatprep.subr.bf16.mxu0 %v8027_v12  ;;  %1244 = vmatprep.subr.bf16.mxu1 %v8028_v13 }
 0x14f   :  { %1204 = vmatpush1.bf16.msra.mxu0 %v8029_v14  ;;  %1245 = vmatpush1.bf16.msra.mxu1 %v8030_v15 }
 0x150   :  { %1205 = vmatprep.subr.bf16.mxu0 %v8031_v16  ;;  %1246 = vmatprep.subr.bf16.mxu1 %v8032_v17 }
 0x153   :  { %1206 = vmatpush1.bf16.msra.mxu0 %v8033_v18  ;;  %1247 = vmatpush1.bf16.msra.mxu1 %v8034_v19 }
 0x154   :  { %1665 = vmatprep.subr.bf16.mxu0 %v5481_v58  ;;  %1706 = vmatprep.subr.bf16.mxu1 %v5487_v44 }
 0x1f6   :  { %v752_v35 = vpop.f32.mrf.mxu0  ;;  %v5593_v20 = vpop.f32.mrf.mxu1 }
 0x1f7   :  { %v836_v9 = vrot.slane %v752_v35, 7  ;;  %v840_v10 = vrot.slane %v752_v35, 1  ;;  %v844_v11 = vrot.slane %v752_v35, 2  ;;  %v848_v12 = vrot.slane %v752_v35, 3 }
 0x1f8   :  { %v852_v13 = vrot.slane %v752_v35, 4  ;;  %v856_v14 = vrot.slane %v752_v35, 5  ;;  %v860_v15 = vrot.slane %v752_v35, 6  ;;  %v900_v16 = vadd.f32 %v804_v3, %v752_v35  ;;  %v5599_v17 = vpop.f32.mrf.mxu0  ;;  %v5601_v18 = vpop.f32.mrf.mxu1 }
 0x1f9   :  { %v896_v19 = vadd.f32 %v836_v9, %v800_v55  ;;  %v904_v4 = vadd.f32 %v840_v10, %v808_v52  ;;  %v908_v31 = vadd.f32 %v844_v11, %v812_v40  ;;  %v912_v22 = vadd.f32 %v848_v12, %v816_v29 }
 0x1fa   :  { %v916_v49 = vadd.f32 %v852_v13, %v820_v41  ;;  %v920_v48 = vadd.f32 %v856_v14, %v824_v32  ;;  %v929_v59 = vmul.f32 0.5, %v900_v16  ;;  %v756_v8 = vpop.f32.mrf.mxu0  ;;  %v797_v6 = vpop.f32.mrf.mxu1  ;;  %v924_v7 = vadd.f32 %v860_v15, %v828_v28 }
 0x1fb   :  { %v928_v23 = vmul.f32 0.5, %v896_v19  ;;  %v930_v30 = vmul.f32 0.5, %v904_v4  ;;  %v931_v21 = vmul.f32 0.5, %v908_v31  ;;  %v932_v3 = vmul.f32 0.5, %v912_v22 }
 0x1fc   :  { %4194 = vtanh.f32 %v929_v59  ;;  %v821_v35 = vunpack.c.h.bf16 %v5518_v43  ;;  %v825_v55 = vunpack.c.h.bf16 %v5523_v46  ;;  %v757_v52 = vpop.f32.mrf.mxu0  ;;  %v798_v40 = vpop.f32.mrf.mxu1  ;;  %v933_v29 = vmul.f32 0.5, %v916_v49 }
 0x1fd   :  { %4196 = vtanh.f32 %v928_v23  ;;  %v838_v41 = vrot.slane %v5593_v20, 7  ;;  %v934_v32 = vmul.f32 0.5, %v920_v48  ;;  %v842_v28 = vrot.slane %v5593_v20, 1 }
 0x1fe   :  { %4198 = vtanh.f32 %v930_v30  ;;  %v803_v31 = vunpack.c.h.bf16 %v5545_v50  ;;  %v935_v22 = vmul.f32 0.5, %v924_v7  ;;  %v846_v43 = vrot.slane %v5593_v20, 2 }
 0x1ff   :  { %4200 = vtanh.f32 %v931_v21  ;;  %v850_v46 = vrot.slane %v5593_v20, 3  ;;  %v854_v59 = vrot.slane %v5593_v20, 4  ;;  %v898_v49 = vadd.f32 %v838_v41, %v802_v54 }
 0x200   :  { %4202 = vtanh.f32 %v932_v3  ;;  %v807_v4 = vunpack.c.h.bf16 %v5536_v5  ;;  %v858_v61 = vrot.slane %v5593_v20, 5  ;;  %v862_v48 = vrot.slane %v5593_v20, 6 }
 0x201   :  { %4204 = vtanh.f32 %v933_v29  ;;  %v902_v23 = vadd.f32 %v806_v27, %v5593_v20  ;;  %v906_v30 = vadd.f32 %v842_v28, %v810_v25  ;;  %v837_v6 = vrot.slane %v5599_v17, 7 }
 0x202   :  { %4206 = vtanh.f32 %v934_v32  ;;  %v841_v21 = vrot.slane %v5599_v17, 1  ;;  %v910_v54 = vadd.f32 %v846_v43, %v814_v53  ;;  %v914_v7 = vadd.f32 %v850_v46, %v818_v1 }
 0x203   :  { %4208 = vtanh.f32 %v935_v22  ;;  %v845_v8 = vrot.slane %v5599_v17, 2  ;;  %v918_v27 = vadd.f32 %v854_v59, %v822_v36  ;;  %v849_v20 = vrot.slane %v5599_v17, 3 }
 0x204   :  { %4210 = vtanh.f32 %v898_v49  ;;  %v8035_v25 = vunpack.c.h.bf16 %v5493_v57  ;;  %v853_v10 = vrot.slane %v5599_v17, 4  ;;  %v857_v11 = vrot.slane %v5599_v17, 5 }
 0x205   :  { %4212 = vtanh.f32 %v902_v23  ;;  %v8036_v53 = vunpack.c.h.bf16 %v5498_v37  ;;  %v8037_v12 = vunpack.c.l.bf16 %v5574_v34  ;;  %v861_v36 = vrot.slane %v5599_v17, 6 }
 0x206   :  { %v897_v9 = vadd.f32 %v837_v6, %v8035_v25  ;;  %4214 = vtanh.f32 %v906_v30  ;;  %v8038_v14 = vunpack.c.h.bf16 %v5503_v26  ;;  %v8039_v57 = vunpack.c.l.bf16 %v5583_v0 }
 0x207   :  { %v901_v1 = vadd.f32 %v8036_v53, %v5599_v17  ;;  %v922_v13 = vadd.f32 %v858_v61, %v8037_v12  ;;  %4216 = vtanh.f32 %v910_v54  ;;  %v8040_v19 = vunpack.c.h.bf16 %v5508_v2 }
 0x208   :  { %v905_v15 = vadd.f32 %v841_v21, %v8038_v14  ;;  %v926_v16 = vadd.f32 %v862_v48, %v8039_v57  ;;  %v811_v52 = vunpack.c.h.bf16 %v5550_v39  ;;  %4218 = vtanh.f32 %v914_v7 }
 0x209   :  { %v909_v3 = vadd.f32 %v845_v8, %v8040_v19  ;;  %v913_v37 = vadd.f32 %v849_v20, %v817_v38  ;;  %v960_v40 = vmul.f32 0.5, %v897_v9  ;;  %v815_v29 = vunpack.c.h.bf16 %v5555_v51  ;;  %v4195_v41 = vpop.eup %4194 }
 0x20a   :  { %4220 = vtanh.f32 %v918_v27  ;;  %v917_v17 = vadd.f32 %v853_v10, %v821_v35  ;;  %v921_v32 = vadd.f32 %v857_v11, %v825_v55  ;;  %v961_v26 = vmul.f32 0.5, %v901_v1  ;;  %v4197_v28 = vpop.eup %4196 }
 0x20b   :  { %4222 = vtanh.f32 %v922_v13  ;;  %v925_v22 = vadd.f32 %v861_v36, %v829_v63  ;;  %v962_v43 = vmul.f32 0.5, %v905_v15  ;;  %v819_v46 = vunpack.c.h.bf16 %v5564_v47  ;;  %v4199_v2 = vpop.eup %4198 }
 0x20c   :  { %4224 = vtanh.f32 %v926_v16  ;;  %v963_v59 = vmul.f32 0.5, %v909_v3  ;;  %v823_v39 = vunpack.c.h.bf16 %v5569_v33  ;;  %v827_v38 = vunpack.c.h.bf16 %v5574_v34  ;;  %v4201_v49 = vpop.eup %4200 }
 0x20d   :  { %v964_v51 = vmul.f32 0.5, %v913_v37  ;;  %4226 = vtanh.f32 %v960_v40  ;;  %v831_v35 = vunpack.c.h.bf16 %v5583_v0  ;;  %v839_v55 = vrot.slane %v5601_v18, 7  ;;  %v4203_v61 = vpop.eup %4202 }
 0x20e   :  { %v944_v48 = vmul.f32 0.5, %v4197_v28  ;;  %v965_v63 = vmul.f32 0.5, %v917_v17  ;;  %v966_v23 = vmul.f32 0.5, %v921_v32  ;;  %4228 = vtanh.f32 %v961_v26  ;;  %v4205_v47 = vpop.eup %4204 }
 0x20f   :  { %v945_v30 = vmul.f32 0.5, %v4195_v41  ;;  %v967_v6 = vmul.f32 0.5, %v925_v22  ;;  %4230 = vtanh.f32 %v962_v43  ;;  %v843_v33 = vrot.slane %v5601_v18, 1  ;;  %v4207_v21 = vpop.eup %4206 }
 0x210   :  { %4232 = vtanh.f32 %v963_v59  ;;  %v847_v34 = vrot.slane %v5601_v18, 2  ;;  %v851_v54 = vrot.slane %v5601_v18, 3  ;;  %v855_v0 = vrot.slane %v5601_v18, 4  ;;  %v4209_v7 = vpop.eup %4208 }
 0x211   :  { %v946_v8 = vmul.f32 0.5, %v4199_v2  ;;  %4234 = vtanh.f32 %v964_v51  ;;  %v859_v27 = vrot.slane %v5601_v18, 5  ;;  %v899_v20 = vadd.f32 %v839_v55, %v803_v31  ;;  %v4211_v25 = vpop.eup %4210 }
 0x212   :  { %v947_v9 = vmul.f32 0.5, %v4201_v49  ;;  %v952_v10 = vadd.f32 0.5, %v944_v48  ;;  %4236 = vtanh.f32 %v965_v63  ;;  %v903_v11 = vadd.f32 %v807_v4, %v5601_v18  ;;  %v4213_v53 = vpop.eup %4212 }
 0x213   :  { %v948_v1 = vmul.f32 0.5, %v4203_v61  ;;  %v949_v12 = vmul.f32 0.5, %v4205_v47  ;;  %4238 = vtanh.f32 %v966_v23  ;;  %v907_v13 = vadd.f32 %v843_v33, %v811_v52  ;;  %v4215_v36 = vpop.eup %4214 }
 0x214   :  { %v950_v14 = vmul.f32 0.5, %v4207_v21  ;;  %4240 = vtanh.f32 %v967_v6  ;;  %v863_v15 = vrot.slane %v5601_v18, 6  ;;  %v911_v50 = vadd.f32 %v847_v34, %v815_v29  ;;  %v4217_v31 = vpop.eup %4216 }
 0x215   :  { %v951_v57 = vmul.f32 0.5, %v4209_v7  ;;  %v953_v16 = vadd.f32 0.5, %v945_v30  ;;  %v915_v19 = vadd.f32 %v851_v54, %v819_v46  ;;  %v1000_v3 = vmul.f32 0.5, %v899_v20  ;;  %v4219_v37 = vpop.eup %4218 }
 0x216   :  { %v954_v40 = vadd.f32 0.5, %v946_v8  ;;  %v955_v5 = vadd.f32 0.5, %v947_v9  ;;  %v919_v4 = vadd.f32 %v855_v0, %v823_v39  ;;  %v1001_v41 = vmul.f32 0.5, %v903_v11 }
 0x217   :  { %v4221_v17 = vpop.eup %4220  ;;  %v956_v32 = vadd.f32 0.5, %v948_v1  ;;  %v957_v26 = vadd.f32 0.5, %v949_v12  ;;  %v923_v52 = vadd.f32 %v859_v27, %v827_v38  ;;  %v1002_v28 = vmul.f32 0.5, %v907_v13 }
 0x218   :  { %v4223_v22 = vpop.eup %4222  ;;  %v958_v43 = vadd.f32 0.5, %v950_v14  ;;  %v1057_v2 = vmul.f32 %v4211_v25, %v952_v10  ;;  %v927_v18 = vadd.f32 %v863_v15, %v831_v35  ;;  %v1003_v29 = vmul.f32 0.5, %v911_v50 }
 0x219   :  { %v4225_v59 = vpop.eup %4224  ;;  %v959_v49 = vadd.f32 0.5, %v951_v57  ;;  %v1058_v51 = vmul.f32 %v4213_v53, %v953_v16  ;;  %v1004_v46 = vmul.f32 0.5, %v915_v19  ;;  %4242 = vtanh.f32 %v1000_v3 }
 0x21a   :  { %v4227_v55 = vpop.eup %4226  ;;  %v1059_v61 = vmul.f32 %v4215_v36, %v954_v40  ;;  %v1060_v48 = vmul.f32 %v4217_v31, %v955_v5  ;;  %v1005_v39 = vmul.f32 0.5, %v919_v4  ;;  %4244 = vtanh.f32 %v1001_v41 }
 0x21b   :  { %v4229_v63 = vpop.eup %4228  ;;  %v976_v23 = vmul.f32 0.5, %v4227_v55  ;;  %v1061_v47 = vmul.f32 %v4219_v37, %v956_v32  ;;  %v1006_v38 = vmul.f32 0.5, %v923_v52  ;;  %4246 = vtanh.f32 %v1002_v28 }
 0x21c   :  { %v4231_v30 = vpop.eup %4230  ;;  %v977_v6 = vmul.f32 0.5, %v4229_v63  ;;  %v1062_v33 = vmul.f32 %v4221_v17, %v957_v26  ;;  %v1007_v35 = vmul.f32 0.5, %v927_v18  ;;  %4248 = vtanh.f32 %v1003_v29 }
 0x21d   :  { %v4233_v21 = vpop.eup %4232  ;;  %v978_v34 = vmul.f32 0.5, %v4231_v30  ;;  %v984_v54 = vadd.f32 0.5, %v976_v23  ;;  %v1063_v0 = vmul.f32 %v4223_v22, %v958_v43  ;;  %4250 = vtanh.f32 %v1004_v46 }
 0x21e   :  { %v4235_v7 = vpop.eup %4234  ;;  %v979_v8 = vmul.f32 0.5, %v4233_v21  ;;  %v985_v27 = vadd.f32 0.5, %v977_v6  ;;  %v1064_v20 = vmul.f32 %v4225_v59, %v959_v49  ;;  %4252 = vtanh.f32 %v1005_v39 }
 0x21f   :  { %v4237_v25 = vpop.eup %4236  ;;  %v980_v9 = vmul.f32 0.5, %v4235_v7  ;;  %v986_v10 = vadd.f32 0.5, %v978_v34  ;;  %v8041_v11 = vrot.slane %v5347_v62, 7  ;;  %4254 = vtanh.f32 %v1006_v38 }
 0x220   :  { %v4239_v1 = vpop.eup %4238  ;;  %v981_v12 = vmul.f32 0.5, %v4237_v25  ;;  %v987_v13 = vadd.f32 0.5, %v979_v8  ;;  %v1050_v36 = vmul.f32 %v985_v27, %v5347_v62  ;;  %4256 = vtanh.f32 %v1007_v35 }
 0x221   :  { %v1049_v53 = vmul.f32 %v8041_v11, %v984_v54  ;;  %v4241_v14 = vpop.eup %4240  ;;  %v982_v15 = vmul.f32 0.5, %v4239_v1  ;;  %v988_v50 = vadd.f32 0.5, %v980_v9  ;;  %v8042_v31 = vrot.slane %v5347_v62, 1 }
 0x222   :  { %v983_v19 = vmul.f32 0.5, %v4241_v14  ;;  %v989_v3 = vadd.f32 0.5, %v981_v12  ;;  %v8043_v37 = vrot.slane %v5347_v62, 2  ;;  %v1066_v5 = vadd.f32 %v1058_v51, %v1050_v36 }
 0x223   :  { %v1051_v57 = vmul.f32 %v8042_v31, %v986_v10  ;;  %v1065_v16 = vadd.f32 %v1057_v2, %v1049_v53  ;;  %v990_v4 = vadd.f32 0.5, %v982_v15  ;;  %v8044_v41 = vrot.slane %v5347_v62, 3 }
 0x224   :  { %v1052_v40 = vmul.f32 %v8043_v37, %v987_v13  ;;  %v991_v26 = vadd.f32 0.5, %v983_v19  ;;  %v8045_v52 = vrot.slane %v5347_v62, 4  ;;  %v8046_v43 = vrot.slane %v5347_v62, 5 }
 0x225   :  { %v1053_v17 = vmul.f32 %v8044_v41, %v988_v50  ;;  %v1067_v32 = vadd.f32 %v1059_v61, %v1051_v57  ;;  %4258 = vtanh.f32 %v1065_v16  ;;  %v1097_v29 = vrot.slane %v1066_v5, 7 }
 0x226   :  { %v1054_v28 = vmul.f32 %v8045_v52, %v989_v3  ;;  %v1068_v22 = vadd.f32 %v1060_v48, %v1052_v40  ;;  %4260 = vtanh.f32 %v1066_v5  ;;  %v1055_v2 = vmul.f32 %v8046_v43, %v990_v4  ;;  %v4243_v59 = vpop.eup %4242  ;;  %v5871_v43 = vld [vmem:[%s7926_s1 + $0x48] ss:$16 sps:$4 sm:$0xff]  }
 0x227   :  { %v1069_v18 = vadd.f32 %v1061_v47, %v1053_v17  ;;  %4262 = vtanh.f32 %v1067_v32  ;;  %v8047_v49 = vrot.slane %v5347_v62, 6  ;;  %v1099_v55 = vrot.slane %v1067_v32, 6  ;;  %v4245_v61 = vpop.eup %4244  ;;  %8057 = vst [vmem:[#allocation11_spill] sm:$0xff] %v5871_v43 }
 0x228   :  { %v1070_v46 = vadd.f32 %v1062_v33, %v1054_v28  ;;  %4264 = vtanh.f32 %v1068_v22  ;;  %v1071_v39 = vadd.f32 %v1063_v0, %v1055_v2  ;;  %v1098_v63 = vsel %vm622_vm1, %v1097_v29, %v1065_v16  ;;  %v4247_v23 = vpop.eup %4246  ;;  %v1149_v2 = vld [vmem:[%s7930_s4] sm:$0x1] }
 0x229   :  { %v1056_v51 = vmul.f32 %v8047_v49, %v991_v26  ;;  %4266 = vtanh.f32 %v1069_v18  ;;  %v1101_v48 = vrot.slane %v1068_v22, 5  ;;  %v1100_v47 = vsel %vm625_vm2, %v1099_v55, %v1098_v63  ;;  %v4249_v6 = vpop.eup %4248 }
 0x22a   :  { %4268 = vtanh.f32 %v1070_v46  ;;  %v1103_v30 = vrot.slane %v1069_v18, 4  ;;  %v1105_v35 = vrot.slane %v1070_v46, 3  ;;  %v4251_v33 = vpop.eup %4250  ;;  %v1107_v34 = vrot.slane %v1071_v39, 2 }
 0x22b   :  { %v1072_v38 = vadd.f32 %v1064_v20, %v1056_v51  ;;  %4270 = vtanh.f32 %v1071_v39  ;;  %v1102_v62 = vsel %vm628_vm3, %v1101_v48, %v1100_v47  ;;  %v4253_v0 = vpop.eup %4252  ;;  %v1016_v8 = vmul.f32 0.5, %v4243_v59 }
 0x22c   :  { %v1104_v21 = vsel %vm631_vm4, %v1103_v30, %v1102_v62  ;;  %v4255_v27 = vpop.eup %4254  ;;  %v1017_v25 = vmul.f32 0.5, %v4245_v61  ;;  %v1018_v10 = vmul.f32 0.5, %v4247_v23  ;;  %v1019_v11 = vmul.f32 0.5, %v4249_v6 }
 0x22d   :  { %4272 = vtanh.f32 %v1072_v38  ;;  %v1109_v54 = vrot.slane %v1072_v38, 1  ;;  %v1106_v7 = vsel %vm634_vm5, %v1105_v35, %v1104_v21  ;;  %v4257_v9 = vpop.eup %4256  ;;  %v1020_v53 = vmul.f32 0.5, %v4251_v33  ;;  %v1152_v21 = vld [vmem:[%s7930_s4 + $0x4] sm:$0x1] }
 0x22e   :  { %v1108_v20 = vsel %vm637_vm6, %v1107_v34, %v1106_v7  ;;  %v1021_v1 = vmul.f32 0.5, %v4253_v0  ;;  %v1022_v12 = vmul.f32 0.5, %v4255_v27  ;;  %v1024_v13 = vadd.f32 0.5, %v1016_v8  ;;  %v1155_v8 = vld [vmem:[%s7930_s4 + $0x8] sm:$0x1] }
 0x22f   :  { %1113 = vst [vmem:[#allocation3 + $0x7] sm:$0x1] %v1109_v54  ;;  %1112 = vst [vmem:[#allocation3 - $0x1] sm:$0xfe] %v1108_v20  ;;  %v1023_v14 = vmul.f32 0.5, %v4257_v9  ;;  %v1025_v15 = vadd.f32 0.5, %v1017_v25 }
 0x230   :  { %v1026_v31 = vadd.f32 0.5, %v1018_v10  ;;  %v1027_v19 = vadd.f32 0.5, %v1019_v11  ;;  %v1028_v3 = vadd.f32 0.5, %v1020_v53  ;;  %v1029_v5 = vadd.f32 0.5, %v1021_v1  ;;  %v1158_v27 = vld [vmem:[%s7930_s4 + $0xc] sm:$0x1] }
 0x231   :  { %v1030_v4 = vadd.f32 0.5, %v1022_v12  ;;  %v1031_v26 = vadd.f32 0.5, %v1023_v14  ;;  %v1161_v11 = vld [vmem:[%s7930_s4 + $0x10] sm:$0x1]  ;;  %v1164_v53 = vld [vmem:[%s7930_s4 + $0x14] sm:$0x1] }
 0x232   :  { %v4259_v36 = vpop.eup %4258  ;;  %v1167_v14 = vld [vmem:[%s7930_s4 + $0x18] sm:$0x1] }
 0x233   :  { %v4261_v50 = vpop.eup %4260  ;;  %v1081_v57 = vmul.f32 %v4259_v36, %v1024_v13 }
 0x234   :  { %v4263_v16 = vpop.eup %4262  ;;  %v1082_v37 = vmul.f32 %v4261_v50, %v1025_v15  ;;  %v1170_v15 = vld [vmem:[%s7930_s4 + $0x1c] sm:$0x1] }
 0x235   :  { %v4265_v40 = vpop.eup %4264  ;;  %v1083_v41 = vmul.f32 %v4263_v16, %v1026_v31  ;;  %v1139_v17 = vpack.c.bf16 %v1081_v57, %v1081_v57 }
 0x236   :  { %v4267_v32 = vpop.eup %4266  ;;  %v1084_v52 = vmul.f32 %v4265_v40, %v1027_v19  ;;  %v1122_v28 = vrot.slane %v1082_v37, 7  ;;  %v1140_v22 = vpack.c.bf16 %v1082_v37, %v1082_v37  ;;  %v5766_v19 = vld [vmem:[%s7926_s1 + $0xcc] ss:$16 sps:$4 sm:$0xff]   ;;  %v5805_v37 = vld [vmem:[%s7926_s1 + $0x84] ss:$16 sps:$4 sm:$0xff]  }
 0x237   :  { %v4269_v18 = vpop.eup %4268  ;;  %v1085_v29 = vmul.f32 %v4267_v32, %v1028_v3  ;;  %v1124_v59 = vrot.slane %v1083_v41, 6  ;;  %v1141_v49 = vpack.c.bf16 %v1083_v41, %v1083_v41  ;;  %v1150_v51 = vsel %vm5686_vm11, %v1139_v17, %v1149_v2  ;;  %v5799_v3 = vld [vmem:[%s7926_s1 + $0xa8] ss:$16 sps:$4 sm:$0xff]   ;;  %v5811_v40 = vld [vmem:[%s7926_s1 + $0x8c] ss:$16 sps:$4 sm:$0xff]  }
 0x238   :  { %v4271_v46 = vpop.eup %4270  ;;  %v1086_v55 = vmul.f32 %v4269_v18, %v1029_v5  ;;  %v1123_v61 = vsel %vm622_vm1, %v1122_v28, %v1081_v57  ;;  %v1126_v39 = vrot.slane %v1084_v52, 5  ;;  %v1142_v63 = vpack.c.bf16 %v1084_v52, %v1084_v52  ;;  %1151 = vst [vmem:[%s7930_s4] sm:$0x1] %v1150_v51  ;;  %v5817_v5 = vld [vmem:[%s7926_s1 + $0x80] ss:$16 sps:$4 sm:$0xff]   ;;  %v5829_v41 = vld [vmem:[%s7926_s1 + $0x64] ss:$16 sps:$4 sm:$0xff]  }
 0x239   :  { %v1087_v23 = vmul.f32 %v4271_v46, %v1030_v4  ;;  %v1125_v38 = vsel %vm625_vm2, %v1124_v59, %v1123_v61  ;;  %v1128_v47 = vrot.slane %v1085_v29, 4  ;;  %v1143_v30 = vpack.c.bf16 %v1085_v29, %v1085_v29  ;;  %v5823_v4 = vld [vmem:[%s7926_s1 + $0x88] ss:$16 sps:$4 sm:$0xff]   ;;  %8050 = vst [vmem:[#allocation5_spill] sm:$0xff] %v5829_v41  ;;  %v5835_v17 = vld [vmem:[%s7926_s1 + $0x6c] ss:$16 sps:$4 sm:$0xff]  }
 0x23a   :  { %v4273_v48 = vpop.eup %4272  ;;  %v1127_v62 = vsel %vm628_vm3, %v1126_v39, %v1125_v38  ;;  %v1130_v35 = vrot.slane %v1086_v55, 3  ;;  %v1144_v33 = vpack.c.bf16 %v1086_v55, %v1086_v55  ;;  %v1153_v7 = vsel %vm5686_vm11, %v1140_v22, %v1152_v21  ;;  %8051 = vst [vmem:[#allocation4_spill] sm:$0xff] %v5835_v17  ;;  %v5841_v32 = vld [vmem:[%s7926_s1 + $0x60] ss:$16 sps:$4 sm:$0xff]   ;;  %v5853_v52 = vld [vmem:[%s7926_s1 + $0x44] ss:$16 sps:$4 sm:$0xff]  }
 0x23b   :  { %v1088_v6 = vmul.f32 %v4273_v48, %v1031_v26  ;;  %v1129_v34 = vsel %vm631_vm4, %v1128_v47, %v1127_v62  ;;  %v1132_v54 = vrot.slane %v1087_v23, 2  ;;  %v1145_v0 = vpack.c.bf16 %v1087_v23, %v1087_v23  ;;  %1154 = vst [vmem:[%s7930_s4 + $0x4] sm:$0x1] %v1153_v7  ;;  %8052 = vst [vmem:[#allocation6_spill] sm:$0xff] %v5841_v32  ;;  %v5847_v26 = vld [vmem:[%s7926_s1 + $0x68] ss:$16 sps:$4 sm:$0xff]  }
 0x23c   :  { %v1131_v20 = vsel %vm634_vm5, %v1130_v35, %v1129_v34  ;;  %v1156_v10 = vsel %vm5686_vm11, %v1141_v49, %v1155_v8  ;;  %v1159_v12 = vsel %vm5686_vm11, %v1142_v63, %v1158_v27  ;;  %v1162_v13 = vsel %vm5686_vm11, %v1143_v30, %v1161_v11  ;;  %8053 = vst [vmem:[#allocation7_spill] sm:$0xff] %v5847_v26  ;;  %v5859_v28 = vld [vmem:[%s7926_s1 + $0x4c] ss:$16 sps:$4 sm:$0xff]   ;;  %v5865_v22 = vld [vmem:[%s7926_s1 + $0x40] ss:$16 sps:$4 sm:$0xff]  }
 0x23d   :  { %v1134_v25 = vrot.slane %v1088_v6, 1  ;;  %v1146_v9 = vpack.c.bf16 %v1088_v6, %v1088_v6  ;;  %v1133_v1 = vsel %vm637_vm6, %v1132_v54, %v1131_v20  ;;  %1157 = vst [vmem:[%s7930_s4 + $0x8] sm:$0x1] %v1156_v10  ;;  %v1165_v36 = vsel %vm5686_vm11, %v1144_v33, %v1164_v53  ;;  %1160 = vst [vmem:[%s7930_s4 + $0xc] sm:$0x1] %v1159_v12  ;;  %v5924_v61 = vld [vmem:[#allocation3] sm:$0xff] }
 0x23e   :  { %1137 = vst [vmem:[#allocation2 - $0x1] sm:$0xfe] %v1133_v1  ;;  %1163 = vst [vmem:[%s7930_s4 + $0x10] sm:$0x1] %v1162_v13  ;;  %v1168_v50 = vsel %vm5686_vm11, %v1145_v0, %v1167_v14  ;;  %v5877_v2 = vld [vmem:[%s7926_s1 + $0x24] ss:$16 sps:$4 sm:$0xff]  }
 0x23f   :  { %1138 = vst [vmem:[#allocation2 + $0x7] sm:$0x1] %v1134_v25  ;;  %1166 = vst [vmem:[%s7930_s4 + $0x14] sm:$0x1] %v1165_v36  ;;  %v1171_v31 = vsel %vm5686_vm11, %v1146_v9, %v1170_v15  ;;  %v5883_v18 = vld [vmem:[%s7926_s1 + $0x2c] ss:$16 sps:$4 sm:$0xff]  }
 0x240   :  { %1169 = vst [vmem:[%s7930_s4 + $0x18] sm:$0x1] %v1168_v50  ;;  %1172 = vst [vmem:[%s7930_s4 + $0x1c] sm:$0x1] %v1171_v31  ;;  %v5889_v29 = vld [vmem:[%s7926_s1 + $0x20] ss:$16 sps:$4 sm:$0xff]  }
 0x241   :  { %8054 = vst [vmem:[#allocation9_spill] sm:$0xff] %v5853_v52  ;;  %8055 = vst [vmem:[#allocation8_spill] sm:$0xff] %v5859_v28  ;;  %v5895_v59 = vld [vmem:[%s7926_s1 + $0x28] ss:$16 sps:$4 sm:$0xff]   ;;  %v5901_v49 = vld [vmem:[%s7926_s1 + $0x4] ss:$16 sps:$4 sm:$0xff]  }
 0x242   :  { %8056 = vst [vmem:[#allocation10_spill] sm:$0xff] %v5865_v22  ;;  %8058 = vst [vmem:[#allocation13_spill] sm:$0xff] %v5877_v2  ;;  %v5907_v51 = vld [vmem:[%s7926_s1 + $0xc] ss:$16 sps:$4 sm:$0xff]   ;;  %v5913_v46 = vld [vmem:[%s7926_s1] ss:$16 sps:$4 sm:$0xff]  }
 0x243   :  { %8059 = vst [vmem:[#allocation12_spill] sm:$0xff] %v5883_v18  ;;  %8060 = vst [vmem:[#allocation14_spill] sm:$0xff] %v5889_v29  ;;  %v5919_v55 = vld [vmem:[%s7926_s1 + $0x8] ss:$16 sps:$4 sm:$0xff]   ;;  %v5929_v39 = vld [vmem:[%s7928_s0] sm:$0x22] }
 0x244   :  { %8061 = vst [vmem:[#allocation15_spill] sm:$0xff] %v5895_v59  ;;  %8062 = vst [vmem:[#allocation16_spill] sm:$0xff] %v5901_v49  ;;  %v5934_v63 = vld [vmem:[%s7928_s0 + $0x10] sm:$0x22]  ;;  %v5939_v48 = vld [vmem:[%s7928_s0 + $0x20] sm:$0x22]  ;;  %v1273_v27 = vunpack.c.l.bf16 %v5929_v39 }
 0x245   :  { %8063 = vst [vmem:[#allocation17_spill] sm:$0xff] %v5907_v51  ;;  %8064 = vst [vmem:[#allocation18_spill] sm:$0xff] %v5913_v46  ;;  %v5954_v23 = vld [vmem:[%s7928_s0 + $0x50] sm:$0x22]  ;;  %v5959_v38 = vld [vmem:[%s7928_s0 + $0x60] sm:$0x22]  ;;  %v1277_v20 = vunpack.c.l.bf16 %v5934_v63  ;;  %v1281_v25 = vunpack.c.l.bf16 %v5939_v48 }
 0x246   :  { %v1189_v57 = vld [vmem:[#allocation2] sm:$0xff]  ;;  %8065 = vst [vmem:[#allocation19_spill] sm:$0xff] %v5919_v55  ;;  %v5964_v47 = vld [vmem:[%s7928_s0 + $0x70] sm:$0x22]  ;;  %v5972_v35 = vld [vmem:[%s7928_s0 + $0x28] sm:$0x22]  ;;  %v1293_v12 = vunpack.c.l.bf16 %v5954_v23  ;;  %v1297_v13 = vunpack.c.l.bf16 %v5959_v38 }
 0x247   :  { %v1190_v16 = vpack.c.bf16 %v1189_v57, %v1189_v57  ;;  %v5981_v0 = vld [vmem:[%s7928_s0 + $0x8] sm:$0x22]  ;;  %v5986_v7 = vld [vmem:[%s7928_s0 + $0x18] sm:$0x22]  ;;  %v1301_v36 = vunpack.c.l.bf16 %v5964_v47  ;;  %vm3515_vm11 = vsmask.f32 3328 }
 0x248   :  { %v5991_v8 = vld [vmem:[%s7928_s0 + $0x38] sm:$0x22]  ;;  %v6000_v10 = vld [vmem:[%s7928_s0 + $0x48] sm:$0x22]  ;;  %v1275_v15 = vunpack.c.l.bf16 %v5981_v0  ;;  %v1279_v50 = vunpack.c.l.bf16 %v5986_v7  ;;  %vm7575_vm12 = vmand %vm625_vm2, %vm3515_vm11 }
 0x249   :  { %1224 = vmatmul.mubr.bf16.vlgmr.msra.gmra.mxu0 %v1190_v16  ;;  %1265 = vmatmul.mubr.bf16.vlgmr.msra.gmra.mxu1 %v1190_v16  ;;  %v6005_v11 = vld [vmem:[%s7928_s0 + $0x58] sm:$0x22]  ;;  %v6010_v53 = vld [vmem:[%s7928_s0 + $0x68] sm:$0x22] }
 0x24a   :  { %1666 = vmatpush1.bf16.msra.mxu0 %v5429_v24  ;;  %1707 = vmatpush1.bf16.msra.mxu1 %v5435_v60  ;;  %v5775_v24 = vld [vmem:[%s7926_s1 + $0xc8] ss:$16 sps:$4 sm:$0xff]   ;;  %v5781_v60 = vld [vmem:[%s7926_s1 + $0xa4] ss:$16 sps:$4 sm:$0xff]  }
 0x24b   :  { %1667 = vmatprep.subr.bf16.mxu0 %v5441_v42  ;;  %1708 = vmatprep.subr.bf16.mxu1 %v5766_v19  ;;  %v5787_v42 = vld [vmem:[%s7926_s1 + $0xac] ss:$16 sps:$4 sm:$0xff]  }
 0x24c   :  { %1697 = vmatprep.mubr.bf16.mxu0 %v8021_v56  ;;  %1738 = vmatprep.mubr.bf16.mxu1 %v8021_v56  ;;  %v6019_v14 = vld [vmem:[%s7928_s0 + $0x78] sm:$0x22] }
 0x24e   :  { %1668 = vmatpush1.bf16.msra.mxu0 %v5450_v45  ;;  %1709 = vmatpush1.bf16.msra.mxu1 %v5775_v24  ;;  %v5793_v45 = vld [vmem:[%s7926_s1 + $0xa0] ss:$16 sps:$4 sm:$0xff]  }
 0x24f   :  { %1669 = vmatprep.subr.bf16.mxu0 %v5781_v60  ;;  %1710 = vmatprep.subr.bf16.mxu1 %v5787_v42 }
 0x252   :  { %1670 = vmatpush1.bf16.msra.mxu0 %v5793_v45  ;;  %1711 = vmatpush1.bf16.msra.mxu1 %v5799_v3 }
 0x253   :  { %1671 = vmatprep.subr.bf16.mxu0 %v5805_v37  ;;  %1712 = vmatprep.subr.bf16.mxu1 %v5811_v40 }
 0x256   :  { %1672 = vmatpush1.bf16.msra.mxu0 %v5817_v5  ;;  %1713 = vmatpush1.bf16.msra.mxu1 %v5823_v4 }
 0x257   :  { %1673 = vmatprep.subr.bf16.mxu0 %v5829_v41  ;;  %1714 = vmatprep.subr.bf16.mxu1 %v5835_v17 }
 0x25a   :  { %1674 = vmatpush1.bf16.msra.mxu0 %v5841_v32  ;;  %1715 = vmatpush1.bf16.msra.mxu1 %v5847_v26 }
 0x25b   :  { %1675 = vmatprep.subr.bf16.mxu0 %v5853_v52  ;;  %1716 = vmatprep.subr.bf16.mxu1 %v5859_v28 }
 0x25e   :  { %1676 = vmatpush1.bf16.msra.mxu0 %v5865_v22  ;;  %1717 = vmatpush1.bf16.msra.mxu1 %v5871_v43 }
 0x25f   :  { %1677 = vmatprep.subr.bf16.mxu0 %v5877_v2  ;;  %1718 = vmatprep.subr.bf16.mxu1 %v5883_v18 }
 0x262   :  { %1678 = vmatpush1.bf16.msra.mxu0 %v5889_v29  ;;  %1719 = vmatpush1.bf16.msra.mxu1 %v5895_v59 }
 0x263   :  { %1679 = vmatprep.subr.bf16.mxu0 %v5901_v49  ;;  %1720 = vmatprep.subr.bf16.mxu1 %v5907_v51 }
 0x266   :  { %1680 = vmatpush1.bf16.msra.mxu0 %v5913_v46  ;;  %1721 = vmatpush1.bf16.msra.mxu1 %v5919_v55 }
 0x267   :  { %2138 = vmatprep.subr.bf16.mxu0 %v5481_v58  ;;  %2179 = vmatprep.subr.bf16.mxu1 %v5487_v44  ;;  %v5944_v58 = vld [vmem:[%s7928_s0 + $0x30] sm:$0x22]  ;;  %v5949_v44 = vld [vmem:[%s7928_s0 + $0x40] sm:$0x22] }
 0x268   :  { %v1285_v9 = vunpack.c.l.bf16 %v5944_v58  ;;  %v1289_v1 = vunpack.c.l.bf16 %v5949_v44  ;;  %v1290_v31 = vunpack.c.h.bf16 %v5949_v44 }
 0x309   :  { %v1225_v33 = vpop.f32.mrf.mxu0  ;;  %v6029_v62 = vpop.f32.mrf.mxu1 }
 0x30a   :  { %v1309_v57 = vrot.slane %v1225_v33, 6  ;;  %v1313_v46 = vrot.slane %v1225_v33, 7  ;;  %v1317_v16 = vrot.slane %v1225_v33, 1  ;;  %v1321_v51 = vrot.slane %v1225_v33, 2 }
 0x30b   :  { %v1325_v54 = vrot.slane %v1225_v33, 3  ;;  %v1329_v49 = vrot.slane %v1225_v33, 4  ;;  %v1333_v34 = vrot.slane %v1225_v33, 5  ;;  %v1377_v59 = vadd.f32 %v1281_v25, %v1225_v33  ;;  %v6035_v21 = vpop.f32.mrf.mxu0  ;;  %v6037_v29 = vpop.f32.mrf.mxu1 }
 0x30c   :  { %v1369_v18 = vadd.f32 %v1309_v57, %v1273_v27  ;;  %v1373_v6 = vadd.f32 %v1313_v46, %v1277_v20  ;;  %v1381_v2 = vadd.f32 %v1317_v16, %v1285_v9  ;;  %v1385_v30 = vadd.f32 %v1321_v51, %v1289_v1 }
 0x30d   :  { %v1389_v43 = vadd.f32 %v1325_v54, %v1293_v12  ;;  %v1393_v55 = vadd.f32 %v1329_v49, %v1297_v13  ;;  %v1403_v22 = vmul.f32 0.5, %v1377_v59  ;;  %v1229_v28 = vpop.f32.mrf.mxu0  ;;  %v1270_v52 = vpop.f32.mrf.mxu1  ;;  %v1397_v26 = vadd.f32 %v1333_v34, %v1301_v36 }
 0x30e   :  { %v1401_v32 = vmul.f32 0.5, %v1369_v18  ;;  %v1402_v17 = vmul.f32 0.5, %v1373_v6  ;;  %v1404_v41 = vmul.f32 0.5, %v1381_v2  ;;  %v1405_v33 = vmul.f32 0.5, %v1385_v30 }
 0x30f   :  { %4274 = vtanh.f32 %v1403_v22  ;;  %v1294_v25 = vunpack.c.h.bf16 %v5954_v23  ;;  %v1298_v27 = vunpack.c.h.bf16 %v5959_v38  ;;  %v1230_v46 = vpop.f32.mrf.mxu0  ;;  %v1271_v20 = vpop.f32.mrf.mxu1  ;;  %v1406_v51 = vmul.f32 0.5, %v1389_v43 }
 0x310   :  { %4276 = vtanh.f32 %v1401_v32  ;;  %v1311_v59 = vrot.slane %v6029_v62, 6  ;;  %v1315_v49 = vrot.slane %v6029_v62, 7  ;;  %v1407_v28 = vmul.f32 0.5, %v1393_v55 }
 0x311   :  { %4278 = vtanh.f32 %v1402_v17  ;;  %v1302_v52 = vunpack.c.h.bf16 %v5964_v47  ;;  %v1284_v2 = vunpack.c.h.bf16 %v5972_v35  ;;  %v1408_v18 = vmul.f32 0.5, %v1397_v26 }
 0x312   :  { %4280 = vtanh.f32 %v1404_v41  ;;  %v1319_v22 = vrot.slane %v6029_v62, 1  ;;  %v1323_v44 = vrot.slane %v6029_v62, 2  ;;  %v1327_v43 = vrot.slane %v6029_v62, 3 }
 0x313   :  { %4282 = vtanh.f32 %v1405_v33  ;;  %v1371_v32 = vadd.f32 %v1311_v59, %v1275_v15  ;;  %v1276_v23 = vunpack.c.h.bf16 %v5981_v0  ;;  %v1331_v55 = vrot.slane %v6029_v62, 4 }
 0x314   :  { %4284 = vtanh.f32 %v1406_v51  ;;  %v1335_v17 = vrot.slane %v6029_v62, 5  ;;  %v1375_v38 = vadd.f32 %v1315_v49, %v1279_v50  ;;  %v8066_v41 = vunpack.c.l.bf16 %v5972_v35 }
 0x315   :  { %4286 = vtanh.f32 %v1407_v28  ;;  %v1310_v47 = vrot.slane %v6035_v21, 6  ;;  %v1314_v30 = vrot.slane %v6035_v21, 7  ;;  %v8067_v6 = vunpack.c.l.bf16 %v5991_v8 }
 0x316   :  { %v1379_v26 = vadd.f32 %v8066_v41, %v6029_v62  ;;  %4288 = vtanh.f32 %v1408_v18  ;;  %v8068_v54 = vunpack.c.l.bf16 %v6000_v10  ;;  %v1318_v1 = vrot.slane %v6035_v21, 1 }
 0x317   :  { %v1383_v34 = vadd.f32 %v1319_v22, %v8067_v6  ;;  %v8069_v12 = vunpack.c.l.bf16 %v6005_v11  ;;  %4290 = vtanh.f32 %v1371_v32  ;;  %v1322_v36 = vrot.slane %v6035_v21, 2 }
 0x318   :  { %v1387_v9 = vadd.f32 %v1323_v44, %v8068_v54  ;;  %v8070_v62 = vunpack.c.h.bf16 %v5929_v39  ;;  %v8071_v50 = vunpack.c.l.bf16 %v6010_v53  ;;  %4292 = vtanh.f32 %v1375_v38 }
 0x319   :  { %v1391_v13 = vadd.f32 %v1327_v43, %v8069_v12  ;;  %v1326_v16 = vrot.slane %v6035_v21, 3  ;;  %v8072_v33 = vunpack.c.h.bf16 %v5934_v63  ;;  %4294 = vtanh.f32 %v1379_v26 }
 0x31a   :  { %v1370_v15 = vadd.f32 %v1310_v47, %v8070_v62  ;;  %v1395_v57 = vadd.f32 %v1331_v55, %v8071_v50  ;;  %v1330_v20 = vrot.slane %v6035_v21, 4  ;;  %v1334_v51 = vrot.slane %v6035_v21, 5 }
 0x31b   :  { %v1374_v46 = vadd.f32 %v1314_v30, %v8072_v33  ;;  %v8073_v59 = vunpack.c.h.bf16 %v5939_v48  ;;  %v8074_v39 = vunpack.c.l.bf16 %v6019_v14  ;;  %4296 = vtanh.f32 %v1383_v34 }
 0x31c   :  { %v8075_v18 = vunpack.c.h.bf16 %v5944_v58  ;;  %v1280_v44 = vunpack.c.h.bf16 %v5986_v7  ;;  %4298 = vtanh.f32 %v1387_v9  ;;  %v1386_v63 = vadd.f32 %v1322_v36, %v1290_v31  ;;  %v4275_v55 = vpop.eup %4274 }
 0x31d   :  { %v1378_v49 = vadd.f32 %v8073_v59, %v6035_v21  ;;  %v1399_v28 = vadd.f32 %v1335_v17, %v8074_v39  ;;  %v1433_v43 = vmul.f32 0.5, %v1370_v15  ;;  %v1288_v32 = vunpack.c.h.bf16 %v5991_v8  ;;  %v4277_v21 = vpop.eup %4276 }
 0x31e   :  { %v1382_v22 = vadd.f32 %v1318_v1, %v8075_v18  ;;  %4300 = vtanh.f32 %v1391_v13  ;;  %v1390_v38 = vadd.f32 %v1326_v16, %v1294_v25  ;;  %v1434_v41 = vmul.f32 0.5, %v1374_v46  ;;  %v4279_v58 = vpop.eup %4278 }
 0x31f   :  { %v1292_v48 = vunpack.c.h.bf16 %v6000_v10  ;;  %4302 = vtanh.f32 %v1395_v57  ;;  %v1394_v17 = vadd.f32 %v1330_v20, %v1298_v27  ;;  %v1398_v26 = vadd.f32 %v1334_v51, %v1302_v52  ;;  %v4281_v6 = vpop.eup %4280 }
 0x320   :  { %v1435_v47 = vmul.f32 0.5, %v1378_v49  ;;  %4304 = vtanh.f32 %v1399_v28  ;;  %v1436_v30 = vmul.f32 0.5, %v1382_v22  ;;  %v1296_v7 = vunpack.c.h.bf16 %v6005_v11  ;;  %v4283_v10 = vpop.eup %4282 }
 0x321   :  { %v1300_v31 = vunpack.c.h.bf16 %v6010_v53  ;;  %v1437_v8 = vmul.f32 0.5, %v1386_v63  ;;  %4306 = vtanh.f32 %v1433_v43  ;;  %v1304_v25 = vunpack.c.h.bf16 %v6019_v14  ;;  %v4285_v52 = vpop.eup %4284 }
 0x322   :  { %v1312_v34 = vrot.slane %v6037_v29, 6  ;;  %v1417_v54 = vmul.f32 0.5, %v4277_v21  ;;  %v1438_v9 = vmul.f32 0.5, %v1390_v38  ;;  %4308 = vtanh.f32 %v1434_v41  ;;  %v4287_v11 = vpop.eup %4286 }
 0x323   :  { %v1316_v27 = vrot.slane %v6037_v29, 7  ;;  %v1419_v1 = vmul.f32 0.5, %v4275_v55  ;;  %v1439_v12 = vmul.f32 0.5, %v1394_v17  ;;  %v1440_v13 = vmul.f32 0.5, %v1398_v26  ;;  %v4289_v62 = vpop.eup %4288 }
 0x324   :  { %4310 = vtanh.f32 %v1435_v47  ;;  %v1320_v53 = vrot.slane %v6037_v29, 1  ;;  %v1324_v36 = vrot.slane %v6037_v29, 2  ;;  %v1328_v14 = vrot.slane %v6037_v29, 3  ;;  %v4291_v16 = vpop.eup %4290 }
 0x325   :  { %4312 = vtanh.f32 %v1436_v30  ;;  %v1418_v15 = vmul.f32 0.5, %v4279_v58  ;;  %v1332_v50 = vrot.slane %v6037_v29, 4  ;;  %v1372_v57 = vadd.f32 %v1312_v34, %v1276_v23  ;;  %v4293_v51 = vpop.eup %4292 }
 0x326   :  { %4314 = vtanh.f32 %v1437_v8  ;;  %v1420_v33 = vmul.f32 0.5, %v4281_v6  ;;  %v1425_v46 = vadd.f32 0.5, %v1417_v54  ;;  %v1376_v20 = vadd.f32 %v1316_v27, %v1280_v44  ;;  %v4295_v28 = vpop.eup %4294 }
 0x327   :  { %4316 = vtanh.f32 %v1438_v9  ;;  %v1421_v59 = vmul.f32 0.5, %v4283_v10  ;;  %v1422_v49 = vmul.f32 0.5, %v4285_v52  ;;  %v1380_v39 = vadd.f32 %v1284_v2, %v6037_v29 }
 0x328   :  { %4318 = vtanh.f32 %v1439_v12  ;;  %v1423_v18 = vmul.f32 0.5, %v4287_v11  ;;  %v1336_v22 = vrot.slane %v6037_v29, 5  ;;  %v1384_v0 = vadd.f32 %v1320_v53, %v1288_v32  ;;  %v4297_v23 = vpop.eup %4296 }
 0x329   :  { %4320 = vtanh.f32 %v1440_v13  ;;  %v1424_v63 = vmul.f32 0.5, %v4289_v62  ;;  %v1426_v43 = vadd.f32 0.5, %v1418_v15  ;;  %v1388_v55 = vadd.f32 %v1324_v36, %v1292_v48  ;;  %v4299_v44 = vpop.eup %4298 }
 0x32a   :  { %v1473_v38 = vmul.f32 0.5, %v1372_v57  ;;  %v1427_v41 = vadd.f32 0.5, %v1419_v1  ;;  %v1428_v21 = vadd.f32 0.5, %v1420_v33  ;;  %v1392_v17 = vadd.f32 %v1328_v14, %v1296_v7 }
 0x32b   :  { %v1474_v26 = vmul.f32 0.5, %v1376_v20  ;;  %v4301_v47 = vpop.eup %4300  ;;  %v1429_v58 = vadd.f32 0.5, %v1421_v59  ;;  %v1430_v35 = vadd.f32 0.5, %v1422_v49  ;;  %v1396_v2 = vadd.f32 %v1332_v50, %v1300_v31 }
 0x32c   :  { %v1475_v30 = vmul.f32 0.5, %v1380_v39  ;;  %v4303_v6 = vpop.eup %4302  ;;  %v1431_v8 = vadd.f32 0.5, %v1423_v18  ;;  %v1530_v34 = vmul.f32 %v4291_v16, %v1425_v46  ;;  %v1400_v29 = vadd.f32 %v1336_v22, %v1304_v25 }
 0x32d   :  { %v1476_v32 = vmul.f32 0.5, %v1384_v0  ;;  %v4305_v10 = vpop.eup %4304  ;;  %v1432_v54 = vadd.f32 0.5, %v1424_v63  ;;  %v1531_v9 = vmul.f32 %v4293_v51, %v1426_v43  ;;  %v1477_v48 = vmul.f32 0.5, %v1388_v55 }
 0x32e   :  { %4322 = vtanh.f32 %v1473_v38  ;;  %v4307_v27 = vpop.eup %4306  ;;  %v1532_v52 = vmul.f32 %v4295_v28, %v1427_v41  ;;  %v1533_v1 = vmul.f32 %v4297_v23, %v1428_v21  ;;  %v1478_v7 = vmul.f32 0.5, %v1392_v17 }
 0x32f   :  { %4324 = vtanh.f32 %v1474_v26  ;;  %v4309_v12 = vpop.eup %4308  ;;  %v1449_v13 = vmul.f32 0.5, %v4307_v27  ;;  %v1534_v11 = vmul.f32 %v4299_v44, %v1429_v58  ;;  %v1479_v31 = vmul.f32 0.5, %v1396_v2 }
 0x330   :  { %4326 = vtanh.f32 %v1475_v30  ;;  %v1450_v36 = vmul.f32 0.5, %v4309_v12  ;;  %v1535_v14 = vmul.f32 %v4301_v47, %v1430_v35  ;;  %v1480_v25 = vmul.f32 0.5, %v1400_v29 }
 0x331   :  { %v4311_v53 = vpop.eup %4310  ;;  %4328 = vtanh.f32 %v1476_v32  ;;  %v1457_v50 = vadd.f32 0.5, %v1449_v13  ;;  %v1536_v57 = vmul.f32 %v4303_v6, %v1431_v8  ;;  %v1537_v20 = vmul.f32 %v4305_v10, %v1432_v54 }
 0x332   :  { %v4313_v62 = vpop.eup %4312  ;;  %v1451_v15 = vmul.f32 0.5, %v4311_v53  ;;  %4330 = vtanh.f32 %v1477_v48  ;;  %v1458_v46 = vadd.f32 0.5, %v1450_v36  ;;  %v8076_v39 = vrot.slane %v5924_v61, 6 }
 0x333   :  { %v4315_v16 = vpop.eup %4314  ;;  %v1452_v33 = vmul.f32 0.5, %v4313_v62  ;;  %4332 = vtanh.f32 %v1478_v7  ;;  %v8077_v23 = vrot.slane %v5924_v61, 7  ;;  %v8078_v26 = vrot.slane %v5924_v61, 1 }
 0x334   :  { %v4317_v51 = vpop.eup %4316  ;;  %v1453_v59 = vmul.f32 0.5, %v4315_v16  ;;  %v1459_v49 = vadd.f32 0.5, %v1451_v15  ;;  %v1522_v28 = vmul.f32 %v8076_v39, %v1457_v50  ;;  %4334 = vtanh.f32 %v1479_v31 }
 0x335   :  { %v4319_v18 = vpop.eup %4318  ;;  %v1454_v22 = vmul.f32 0.5, %v4317_v51  ;;  %v1460_v0 = vadd.f32 0.5, %v1452_v33  ;;  %v1523_v63 = vmul.f32 %v8077_v23, %v1458_v46  ;;  %4336 = vtanh.f32 %v1480_v25 }
 0x336   :  { %v4321_v43 = vpop.eup %4320  ;;  %v1455_v55 = vmul.f32 0.5, %v4319_v18  ;;  %v1461_v38 = vadd.f32 0.5, %v1453_v59  ;;  %v1524_v44 = vmul.f32 %v5924_v61, %v1459_v49  ;;  %v1538_v41 = vadd.f32 %v1530_v34, %v1522_v28 }
 0x337   :  { %v1456_v21 = vmul.f32 0.5, %v4321_v43  ;;  %v1462_v17 = vadd.f32 0.5, %v1454_v22  ;;  %v1525_v47 = vmul.f32 %v8078_v26, %v1460_v0  ;;  %v1539_v58 = vadd.f32 %v1531_v9, %v1523_v63 }
 0x338   :  { %v1463_v35 = vadd.f32 0.5, %v1455_v55  ;;  %v8079_v2 = vrot.slane %v5924_v61, 2  ;;  %v1540_v6 = vadd.f32 %v1532_v52, %v1524_v44  ;;  %4338 = vtanh.f32 %v1538_v41 }
 0x339   :  { %v1464_v8 = vadd.f32 0.5, %v1456_v21  ;;  %v8080_v29 = vrot.slane %v5924_v61, 3  ;;  %v1541_v10 = vadd.f32 %v1533_v1, %v1525_v47  ;;  %4340 = vtanh.f32 %v1539_v58 }
 0x33a   :  { %v1526_v30 = vmul.f32 %v8079_v2, %v1461_v38  ;;  %v8081_v34 = vrot.slane %v5924_v61, 4  ;;  %4342 = vtanh.f32 %v1540_v6  ;;  %v1570_v27 = vrot.slane %v1539_v58, 7 }
 0x33b   :  { %v1527_v32 = vmul.f32 %v8080_v29, %v1462_v17  ;;  %v4323_v7 = vpop.eup %4322  ;;  %v8082_v9 = vrot.slane %v5924_v61, 5  ;;  %4344 = vtanh.f32 %v1541_v10  ;;  %v1572_v52 = vrot.slane %v1540_v6, 6 }
 0x33c   :  { %v1528_v54 = vmul.f32 %v8081_v34, %v1463_v35  ;;  %v1542_v48 = vadd.f32 %v1534_v11, %v1526_v30  ;;  %v4325_v31 = vpop.eup %4324  ;;  %v1571_v36 = vsel %vm625_vm2, %v1570_v27, %v1538_v41  ;;  %v1574_v1 = vrot.slane %v1541_v10, 5  ;;  %v1623_v30 = vld [vmem:[%s7930_s4] sm:$0x2] }
 0x33d   :  { %v1529_v12 = vmul.f32 %v8082_v9, %v1464_v8  ;;  %v1543_v13 = vadd.f32 %v1535_v14, %v1527_v32  ;;  %v4327_v25 = vpop.eup %4326  ;;  %v1573_v11 = vsel %vm628_vm3, %v1572_v52, %v1571_v36  ;;  %v1489_v49 = vmul.f32 0.5, %v4323_v7  ;;  %v6251_v9 = vld [vmem:[%s7926_s1 + $0xe4] ss:$16 sps:$4 sm:$0xff]  }
 0x33e   :  { %v1544_v53 = vadd.f32 %v1536_v57, %v1528_v54  ;;  %4346 = vtanh.f32 %v1542_v48  ;;  %v1576_v15 = vrot.slane %v1542_v48, 4  ;;  %v4329_v50 = vpop.eup %4328  ;;  %v1575_v61 = vsel %vm631_vm4, %v1574_v1, %v1573_v11 }
 0x33f   :  { %v1545_v62 = vadd.f32 %v1537_v20, %v1529_v12  ;;  %4348 = vtanh.f32 %v1543_v13  ;;  %v1578_v16 = vrot.slane %v1543_v13, 3  ;;  %v4331_v33 = vpop.eup %4330  ;;  %v1490_v28 = vmul.f32 0.5, %v4325_v31 }
 0x340   :  { %4350 = vtanh.f32 %v1544_v53  ;;  %v1580_v14 = vrot.slane %v1544_v53, 2  ;;  %v1577_v57 = vsel %vm634_vm5, %v1576_v15, %v1575_v61  ;;  %v4333_v51 = vpop.eup %4332  ;;  %v1491_v22 = vmul.f32 0.5, %v4327_v25  ;;  %v1626_v15 = vld [vmem:[%s7930_s4 + $0x4] sm:$0x2] }
 0x341   :  { %4352 = vtanh.f32 %v1545_v62  ;;  %v1581_v46 = vrot.slane %v1545_v62, 1  ;;  %v1579_v59 = vsel %vm637_vm6, %v1578_v16, %v1577_v57  ;;  %v4335_v20 = vpop.eup %4334  ;;  %v1492_v0 = vmul.f32 0.5, %v4329_v50  ;;  %v1629_v50 = vld [vmem:[%s7930_s4 + $0x8] sm:$0x2] }
 0x342   :  { %1585 = vst [vmem:[#allocation3 - $0x2] sm:$0xfc] %v1579_v59  ;;  %v4337_v18 = vpop.eup %4336  ;;  %v1493_v23 = vmul.f32 0.5, %v4331_v33  ;;  %v1494_v63 = vmul.f32 0.5, %v4333_v51  ;;  %v1495_v43 = vmul.f32 0.5, %v4335_v20  ;;  %v1497_v55 = vadd.f32 0.5, %v1489_v49 }
 0x343   :  { %v1582_v39 = vsel %vm619_vm0, %v1581_v46, %v1580_v14  ;;  %v1496_v44 = vmul.f32 0.5, %v4337_v18  ;;  %v1498_v41 = vadd.f32 0.5, %v1490_v28  ;;  %v1499_v17 = vadd.f32 0.5, %v1491_v22  ;;  %v1632_v46 = vld [vmem:[%s7930_s4 + $0xc] sm:$0x2] }
 0x344   :  { %1586 = vst [vmem:[#allocation3 + $0x6] sm:$0x3] %v1582_v39  ;;  %v1500_v58 = vadd.f32 0.5, %v1492_v0  ;;  %v1501_v35 = vadd.f32 0.5, %v1493_v23  ;;  %v1502_v8 = vadd.f32 0.5, %v1494_v63  ;;  %v1503_v29 = vadd.f32 0.5, %v1495_v43 }
 0x345   :  { %v4339_v38 = vpop.eup %4338  ;;  %v1504_v54 = vadd.f32 0.5, %v1496_v44  ;;  %v1635_v51 = vld [vmem:[%s7930_s4 + $0x10] sm:$0x2]  ;;  %v1638_v28 = vld [vmem:[%s7930_s4 + $0x14] sm:$0x2] }
 0x346   :  { %v4341_v21 = vpop.eup %4340  ;;  %v1554_v26 = vmul.f32 %v4339_v38, %v1497_v55  ;;  %v1641_v18 = vld [vmem:[%s7930_s4 + $0x18] sm:$0x2]  ;;  %v1644_v43 = vld [vmem:[%s7930_s4 + $0x1c] sm:$0x2] }
 0x347   :  { %v4343_v47 = vpop.eup %4342  ;;  %v1555_v2 = vmul.f32 %v4341_v21, %v1498_v41 }
 0x348   :  { %v4345_v6 = vpop.eup %4344  ;;  %v1556_v32 = vmul.f32 %v4343_v47, %v1499_v17  ;;  %v1612_v10 = vpack.c.bf16 %v1554_v26, %v1554_v26 }
 0x349   :  { %v1557_v48 = vmul.f32 %v4345_v6, %v1500_v58  ;;  %v1595_v27 = vrot.slane %v1555_v2, 7  ;;  %v1613_v7 = vpack.c.bf16 %v1555_v2, %v1555_v2  ;;  %v6199_v6 = vld [vmem:[%s7926_s1 + $0xe0] ss:$16 sps:$4 sm:$0xff]  }
 0x34a   :  { %v1597_v52 = vrot.slane %v1556_v32, 6  ;;  %v1614_v31 = vpack.c.bf16 %v1556_v32, %v1556_v32  ;;  %v1624_v53 = vsel %vm6125_vm13, %v1612_v10, %v1623_v30  ;;  %v6220_v32 = vld [vmem:[%s7926_s1 + $0xc0] ss:$16 sps:$4 sm:$0xff]  }
 0x34b   :  { %v4347_v34 = vpop.eup %4346  ;;  %v1596_v25 = vsel %vm625_vm2, %v1595_v27, %v1554_v26  ;;  %v1599_v62 = vrot.slane %v1557_v48, 5  ;;  %v1615_v11 = vpack.c.bf16 %v1557_v48, %v1557_v48  ;;  %1625 = vst [vmem:[%s7930_s4] sm:$0x2] %v1624_v53  ;;  %v1627_v63 = vsel %vm6125_vm13, %v1613_v7, %v1626_v15  ;;  %v8086_v10 = vld [vmem:[#allocation4_spill] sm:$0xff]  ;;  %v8098_v48 = vld [vmem:[#allocation17_spill] sm:$0xff]  ;;  %v8099_v27 = vld [vmem:[#allocation18_spill] sm:$0xff] }
 0x34c   :  { %v4349_v12 = vpop.eup %4348  ;;  %v1558_v13 = vmul.f32 %v4347_v34, %v1501_v35  ;;  %v1598_v14 = vsel %vm628_vm3, %v1597_v52, %v1596_v25  ;;  %1628 = vst [vmem:[%s7930_s4 + $0x4] sm:$0x2] %v1627_v63  ;;  %v1630_v41 = vsel %vm6125_vm13, %v1614_v31, %v1629_v50  ;;  %v8096_v34 = vld [vmem:[#allocation15_spill] sm:$0xff]  ;;  %v6265_v52 = vld [vmem:[%s7928_s0] sm:$0x22] }
 0x34d   :  { %v4351_v36 = vpop.eup %4350  ;;  %v1559_v1 = vmul.f32 %v4349_v12, %v1502_v8  ;;  %v1600_v49 = vsel %vm631_vm4, %v1599_v62, %v1598_v14  ;;  %1631 = vst [vmem:[%s7930_s4 + $0x8] sm:$0x2] %v1630_v41  ;;  %v1633_v21 = vsel %vm6125_vm13, %v1615_v11, %v1632_v46  ;;  %v6205_v8 = vld [vmem:[%s7926_s1 + $0xe8] ss:$16 sps:$4 sm:$0xff]   ;;  %v6257_v12 = vld [vmem:[%s7926_s1 + $0xec] ss:$16 sps:$4 sm:$0xff]  }
 0x34e   :  { %v4353_v61 = vpop.eup %4352  ;;  %v1560_v16 = vmul.f32 %v4351_v36, %v1503_v29  ;;  %v1601_v33 = vrot.slane %v1558_v13, 4  ;;  %v1616_v57 = vpack.c.bf16 %v1558_v13, %v1558_v13  ;;  %1634 = vst [vmem:[%s7930_s4 + $0xc] sm:$0x2] %v1633_v21  ;;  %v6211_v29 = vld [vmem:[%s7926_s1 + $0xc4] ss:$16 sps:$4 sm:$0xff]   ;;  %v8100_v7 = vld [vmem:[#allocation19_spill] sm:$0xff] }
 0x34f   :  { %v1561_v59 = vmul.f32 %v4353_v61, %v1504_v54  ;;  %v1603_v20 = vrot.slane %v1559_v1, 3  ;;  %v1617_v39 = vpack.c.bf16 %v1559_v1, %v1559_v1  ;;  %v8097_v54 = vld [vmem:[#allocation16_spill] sm:$0xff]  ;;  %v6260_v13 = vld [vmem:[#allocation3] sm:$0xff]  ;;  %v6275_v53 = vld [vmem:[%s7928_s0 + $0x20] sm:$0x22] }
 0x350   :  { %v1602_v22 = vsel %vm634_vm5, %v1601_v33, %v1600_v49  ;;  %v1605_v0 = vrot.slane %v1560_v16, 2  ;;  %v1618_v23 = vpack.c.bf16 %v1560_v16, %v1560_v16  ;;  %v1636_v17 = vsel %vm6125_vm13, %v1616_v57, %v1635_v51  ;;  %v6270_v31 = vld [vmem:[%s7928_s0 + $0x10] sm:$0x22]  ;;  %v6285_v1 = vld [vmem:[%s7928_s0 + $0x40] sm:$0x22] }
 0x351   :  { %v1604_v55 = vsel %vm637_vm6, %v1603_v20, %v1602_v22  ;;  %v1606_v38 = vrot.slane %v1561_v59, 1  ;;  %v1619_v44 = vpack.c.bf16 %v1561_v59, %v1561_v59  ;;  %v1639_v26 = vsel %vm6125_vm13, %v1617_v39, %v1638_v28  ;;  %1637 = vst [vmem:[%s7930_s4 + $0x10] sm:$0x2] %v1636_v17  ;;  %v6280_v36 = vld [vmem:[%s7928_s0 + $0x30] sm:$0x22] }
 0x352   :  { %1610 = vst [vmem:[#allocation2 - $0x2] sm:$0xfc] %v1604_v55  ;;  %v1642_v47 = vsel %vm6125_vm13, %v1618_v23, %v1641_v18  ;;  %1640 = vst [vmem:[%s7930_s4 + $0x14] sm:$0x2] %v1639_v26  ;;  %v6290_v25 = vld [vmem:[%s7928_s0 + $0x50] sm:$0x22]  ;;  %v1747_v20 = vunpack.c.l.bf16 %v6265_v52  ;;  %v1751_v39 = vunpack.c.l.bf16 %v6270_v31  ;;  %v1755_v28 = vunpack.c.l.bf16 %v6275_v53 }
 0x353   :  { %v1607_v58 = vsel %vm619_vm0, %v1606_v38, %v1605_v0  ;;  %1643 = vst [vmem:[%s7930_s4 + $0x18] sm:$0x2] %v1642_v47  ;;  %v1645_v35 = vsel %vm6125_vm13, %v1619_v44, %v1644_v43  ;;  %v6295_v62 = vld [vmem:[%s7928_s0 + $0x60] sm:$0x22]  ;;  %v6300_v11 = vld [vmem:[%s7928_s0 + $0x70] sm:$0x22]  ;;  %v1759_v18 = vunpack.c.l.bf16 %v6280_v36  ;;  %v1763_v63 = vunpack.c.l.bf16 %v6285_v1 }
 0x354   :  { %1611 = vst [vmem:[#allocation2 + $0x6] sm:$0x3] %v1607_v58  ;;  %1646 = vst [vmem:[%s7930_s4 + $0x1c] sm:$0x2] %v1645_v35  ;;  %v6308_v16 = vld [vmem:[%s7928_s0 + $0x38] sm:$0x22]  ;;  %v1767_v43 = vunpack.c.l.bf16 %v6290_v25  ;;  %v1771_v55 = vunpack.c.l.bf16 %v6295_v62  ;;  %v1775_v38 = vunpack.c.l.bf16 %v6300_v11  ;;  %v1764_v15 = vunpack.c.h.bf16 %v6285_v1 }
 0x355   :  { %v6317_v51 = vld [vmem:[%s7928_s0 + $0x8] sm:$0x22]  ;;  %v6322_v59 = vld [vmem:[%s7928_s0 + $0x18] sm:$0x22]  ;;  %v1761_v26 = vunpack.c.l.bf16 %v6308_v16  ;;  %v1768_v58 = vunpack.c.h.bf16 %v6290_v25  ;;  %v1762_v25 = vunpack.c.h.bf16 %v6308_v16 }
 0x356   :  { %v6327_v49 = vld [vmem:[%s7928_s0 + $0x28] sm:$0x22]  ;;  %v6341_v0 = vld [vmem:[%s7928_s0 + $0x58] sm:$0x22]  ;;  %v1749_v41 = vunpack.c.l.bf16 %v6317_v51  ;;  %v1753_v21 = vunpack.c.l.bf16 %v6322_v59 }
 0x357   :  { %v6336_v22 = vld [vmem:[%s7928_s0 + $0x48] sm:$0x22]  ;;  %v6355_v44 = vld [vmem:[%s7928_s0 + $0x78] sm:$0x22]  ;;  %v1757_v17 = vunpack.c.l.bf16 %v6327_v49 }
 0x358   :  { %v6346_v23 = vld [vmem:[%s7928_s0 + $0x68] sm:$0x22]  ;;  %v1765_v47 = vunpack.c.l.bf16 %v6336_v22 }
 0x35b   :  { %v1663_v2 = vld [vmem:[#allocation2] sm:$0xff] }
 0x35c   :  { %v1664_v30 = vpack.c.bf16 %v1663_v2, %v1663_v2 }
 0x35e   :  { %1698 = vmatmul.mubr.bf16.vlgmr.msra.gmra.mxu0 %v1664_v30  ;;  %1739 = vmatmul.mubr.bf16.vlgmr.msra.gmra.mxu1 %v1664_v30 }
 0x35f   :  { %2139 = vmatpush1.bf16.msra.mxu0 %v6199_v6  ;;  %2180 = vmatpush1.bf16.msra.mxu1 %v6205_v8 }
 0x360   :  { %2140 = vmatprep.subr.bf16.mxu0 %v6211_v29  ;;  %2181 = vmatprep.subr.bf16.mxu1 %v5766_v19  ;;  %v8085_v19 = vld [vmem:[#allocation5_spill] sm:$0xff] }
 0x361   :  { %2170 = vmatprep.mubr.bf16.mxu0 %v8021_v56  ;;  %2211 = vmatprep.mubr.bf16.mxu1 %v8021_v56 }
 0x363   :  { %2141 = vmatpush1.bf16.msra.mxu0 %v6220_v32  ;;  %2182 = vmatpush1.bf16.msra.mxu1 %v5775_v24  ;;  %v8087_v24 = vld [vmem:[#allocation6_spill] sm:$0xff] }
 0x364   :  { %2142 = vmatprep.subr.bf16.mxu0 %v5781_v60  ;;  %2183 = vmatprep.subr.bf16.mxu1 %v5787_v42  ;;  %v8088_v60 = vld [vmem:[#allocation7_spill] sm:$0xff]  ;;  %v8089_v42 = vld [vmem:[#allocation9_spill] sm:$0xff] }
 0x367   :  { %2143 = vmatpush1.bf16.msra.mxu0 %v5793_v45  ;;  %2184 = vmatpush1.bf16.msra.mxu1 %v5799_v3  ;;  %v8090_v45 = vld [vmem:[#allocation8_spill] sm:$0xff]  ;;  %v8091_v3 = vld [vmem:[#allocation10_spill] sm:$0xff] }
 0x368   :  { %2144 = vmatprep.subr.bf16.mxu0 %v5805_v37  ;;  %2185 = vmatprep.subr.bf16.mxu1 %v5811_v40  ;;  %v8092_v37 = vld [vmem:[#allocation11_spill] sm:$0xff]  ;;  %v8093_v40 = vld [vmem:[#allocation13_spill] sm:$0xff] }
 0x36b   :  { %2145 = vmatpush1.bf16.msra.mxu0 %v5817_v5  ;;  %2186 = vmatpush1.bf16.msra.mxu1 %v5823_v4  ;;  %v8094_v5 = vld [vmem:[#allocation12_spill] sm:$0xff]  ;;  %v8095_v4 = vld [vmem:[#allocation14_spill] sm:$0xff] }
 0x36c   :  { %2146 = vmatprep.subr.bf16.mxu0 %v8085_v19  ;;  %2187 = vmatprep.subr.bf16.mxu1 %v8086_v10 }
 0x36f   :  { %2147 = vmatpush1.bf16.msra.mxu0 %v8087_v24  ;;  %2188 = vmatpush1.bf16.msra.mxu1 %v8088_v60 }
 0x370   :  { %2148 = vmatprep.subr.bf16.mxu0 %v8089_v42  ;;  %2189 = vmatprep.subr.bf16.mxu1 %v8090_v45 }
 0x373   :  { %2149 = vmatpush1.bf16.msra.mxu0 %v8091_v3  ;;  %2190 = vmatpush1.bf16.msra.mxu1 %v8092_v37 }
 0x374   :  { %2150 = vmatprep.subr.bf16.mxu0 %v8093_v40  ;;  %2191 = vmatprep.subr.bf16.mxu1 %v8094_v5 }
 0x377   :  { %2151 = vmatpush1.bf16.msra.mxu0 %v8095_v4  ;;  %2192 = vmatpush1.bf16.msra.mxu1 %v8096_v34 }
 0x378   :  { %2152 = vmatprep.subr.bf16.mxu0 %v8097_v54  ;;  %2193 = vmatprep.subr.bf16.mxu1 %v8098_v48 }
 0x37b   :  { %2153 = vmatpush1.bf16.msra.mxu0 %v8099_v27  ;;  %2194 = vmatpush1.bf16.msra.mxu1 %v8100_v7 }
 0x37c   :  { %2612 = vmatprep.subr.bf16.mxu0 %v6251_v9  ;;  %2653 = vmatprep.subr.bf16.mxu1 %v6257_v12 }
 0x41e   :  { %v1699_v30 = vpop.f32.mrf.mxu0  ;;  %v6365_v19 = vpop.f32.mrf.mxu1 }
 0x41f   :  { %v1783_v45 = vrot.slane %v1699_v30, 5  ;;  %v1787_v3 = vrot.slane %v1699_v30, 6  ;;  %v1791_v37 = vrot.slane %v1699_v30, 7  ;;  %v1795_v40 = vrot.slane %v1699_v30, 1 }
 0x420   :  { %v1799_v5 = vrot.slane %v1699_v30, 2  ;;  %v1803_v4 = vrot.slane %v1699_v30, 3  ;;  %v1807_v34 = vrot.slane %v1699_v30, 4  ;;  %v1855_v54 = vadd.f32 %v1759_v18, %v1699_v30  ;;  %v6371_v48 = vpop.f32.mrf.mxu0  ;;  %v6373_v27 = vpop.f32.mrf.mxu1 }
 0x421   :  { %v1843_v7 = vadd.f32 %v1783_v45, %v1747_v20  ;;  %v1847_v46 = vadd.f32 %v1787_v3, %v1751_v39  ;;  %v1851_v57 = vadd.f32 %v1791_v37, %v1755_v28  ;;  %v1859_v33 = vadd.f32 %v1795_v40, %v1763_v63 }
 0x422   :  { %v1863_v14 = vadd.f32 %v1799_v5, %v1767_v43  ;;  %v1867_v61 = vadd.f32 %v1803_v4, %v1771_v55  ;;  %v1878_v50 = vmul.f32 0.5, %v1855_v54  ;;  %v1703_v2 = vpop.f32.mrf.mxu0  ;;  %v1744_v10 = vpop.f32.mrf.mxu1  ;;  %v1871_v42 = vadd.f32 %v1807_v34, %v1775_v38 }
 0x423   :  { %v1875_v60 = vmul.f32 0.5, %v1843_v7  ;;  %v1876_v35 = vmul.f32 0.5, %v1847_v46  ;;  %v1877_v24 = vmul.f32 0.5, %v1851_v57  ;;  %v1879_v18 = vmul.f32 0.5, %v1859_v33 }
 0x424   :  { %v1880_v30 = vmul.f32 0.5, %v1863_v14  ;;  %4354 = vtanh.f32 %v1878_v50  ;;  %v1704_v20 = vpop.f32.mrf.mxu0  ;;  %v1745_v39 = vpop.f32.mrf.mxu1  ;;  %v1785_v28 = vrot.slane %v6365_v19, 5  ;;  %v1789_v63 = vrot.slane %v6365_v19, 6 }
 0x425   :  { %4356 = vtanh.f32 %v1875_v60  ;;  %v1793_v1 = vrot.slane %v6365_v19, 7  ;;  %v1881_v43 = vmul.f32 0.5, %v1867_v61  ;;  %v1772_v55 = vunpack.c.h.bf16 %v6295_v62 }
 0x426   :  { %4358 = vtanh.f32 %v1876_v35  ;;  %v1776_v57 = vunpack.c.h.bf16 %v6300_v11  ;;  %v1882_v33 = vmul.f32 0.5, %v1871_v42  ;;  %v1797_v50 = vrot.slane %v6365_v19, 1 }
 0x427   :  { %4360 = vtanh.f32 %v1877_v24  ;;  %v1801_v14 = vrot.slane %v6365_v19, 2  ;;  %v1845_v46 = vadd.f32 %v1785_v28, %v1749_v41  ;;  %v1750_v38 = vunpack.c.h.bf16 %v6317_v51 }
 0x428   :  { %4362 = vtanh.f32 %v1879_v18  ;;  %v1805_v61 = vrot.slane %v6365_v19, 3  ;;  %v1849_v35 = vadd.f32 %v1789_v63, %v1753_v21  ;;  %v1853_v2 = vadd.f32 %v1793_v1, %v1757_v17 }
 0x429   :  { %4364 = vtanh.f32 %v1880_v30  ;;  %v1784_v62 = vrot.slane %v6371_v48, 5  ;;  %v1788_v11 = vrot.slane %v6371_v48, 6  ;;  %v1792_v10 = vrot.slane %v6371_v48, 7 }
 0x42a   :  { %4366 = vtanh.f32 %v1881_v43  ;;  %v1809_v24 = vrot.slane %v6365_v19, 4  ;;  %v1857_v41 = vadd.f32 %v1761_v26, %v6365_v19  ;;  %v1861_v60 = vadd.f32 %v1797_v50, %v1765_v47 }
 0x42b   :  { %4368 = vtanh.f32 %v1882_v33  ;;  %v8101_v21 = vunpack.c.l.bf16 %v6341_v0  ;;  %v1796_v42 = vrot.slane %v6371_v48, 1  ;;  %v8102_v45 = vunpack.c.h.bf16 %v6265_v52 }
 0x42c   :  { %4370 = vtanh.f32 %v1845_v46  ;;  %v8103_v37 = vunpack.c.l.bf16 %v6346_v23  ;;  %v1800_v5 = vrot.slane %v6371_v48, 2  ;;  %v8104_v26 = vunpack.c.h.bf16 %v6270_v31 }
 0x42d   :  { %v1865_v17 = vadd.f32 %v1801_v14, %v8101_v21  ;;  %v1844_v3 = vadd.f32 %v1784_v62, %v8102_v45  ;;  %4372 = vtanh.f32 %v1849_v35  ;;  %v1804_v47 = vrot.slane %v6371_v48, 3 }
 0x42e   :  { %v1869_v40 = vadd.f32 %v1805_v61, %v8103_v37  ;;  %v1848_v19 = vadd.f32 %v1788_v11, %v8104_v26  ;;  %4374 = vtanh.f32 %v1853_v2  ;;  %v1808_v4 = vrot.slane %v6371_v48, 4 }
 0x42f   :  { %v8105_v34 = vunpack.c.h.bf16 %v6275_v53  ;;  %v8106_v52 = vunpack.c.l.bf16 %v6355_v44  ;;  %4376 = vtanh.f32 %v1857_v41  ;;  %v8107_v18 = vunpack.c.h.bf16 %v6280_v36 }
 0x430   :  { %v1754_v20 = vunpack.c.h.bf16 %v6322_v59  ;;  %4378 = vtanh.f32 %v1861_v60  ;;  %v1860_v31 = vadd.f32 %v1796_v42, %v1764_v15  ;;  %v1907_v39 = vmul.f32 0.5, %v1844_v3 }
 0x431   :  { %v1852_v54 = vadd.f32 %v1792_v10, %v8105_v34  ;;  %v1873_v7 = vadd.f32 %v1809_v24, %v8106_v52  ;;  %v1856_v30 = vadd.f32 %v8107_v18, %v6371_v48  ;;  %v1758_v28 = vunpack.c.h.bf16 %v6327_v49  ;;  %v4355_v63 = vpop.eup %4354 }
 0x432   :  { %4380 = vtanh.f32 %v1865_v17  ;;  %v1864_v1 = vadd.f32 %v1800_v5, %v1768_v58  ;;  %v1908_v53 = vmul.f32 0.5, %v1848_v19  ;;  %v1766_v43 = vunpack.c.h.bf16 %v6336_v22  ;;  %v4357_v33 = vpop.eup %4356 }
 0x433   :  { %4382 = vtanh.f32 %v1869_v40  ;;  %v1868_v50 = vadd.f32 %v1804_v47, %v1772_v55  ;;  %v1872_v14 = vadd.f32 %v1808_v4, %v1776_v57  ;;  %v1909_v46 = vmul.f32 0.5, %v1852_v54  ;;  %v4359_v36 = vpop.eup %4358 }
 0x434   :  { %4384 = vtanh.f32 %v1873_v7  ;;  %v1910_v48 = vmul.f32 0.5, %v1856_v30  ;;  %v1770_v59 = vunpack.c.h.bf16 %v6341_v0  ;;  %v1774_v15 = vunpack.c.h.bf16 %v6346_v23  ;;  %v4361_v61 = vpop.eup %4360 }
 0x435   :  { %v1911_v49 = vmul.f32 0.5, %v1860_v31  ;;  %4386 = vtanh.f32 %v1907_v39  ;;  %v1778_v58 = vunpack.c.h.bf16 %v6355_v44  ;;  %v1786_v35 = vrot.slane %v6373_v27, 5  ;;  %v4363_v22 = vpop.eup %4362 }
 0x436   :  { %v1891_v2 = vmul.f32 0.5, %v4357_v33  ;;  %v1912_v62 = vmul.f32 0.5, %v1864_v1  ;;  %4388 = vtanh.f32 %v1908_v53  ;;  %v1790_v55 = vrot.slane %v6373_v27, 6  ;;  %v4365_v57 = vpop.eup %4364 }
 0x437   :  { %v1913_v11 = vmul.f32 0.5, %v1868_v50  ;;  %v1914_v10 = vmul.f32 0.5, %v1872_v14  ;;  %4390 = vtanh.f32 %v1909_v46  ;;  %v1794_v0 = vrot.slane %v6373_v27, 7  ;;  %v4367_v23 = vpop.eup %4366 }
 0x438   :  { %v1894_v24 = vmul.f32 0.5, %v4355_v63  ;;  %4392 = vtanh.f32 %v1910_v48  ;;  %v1798_v41 = vrot.slane %v6373_v27, 1  ;;  %v1802_v44 = vrot.slane %v6373_v27, 2  ;;  %v4369_v60 = vpop.eup %4368 }
 0x439   :  { %v1892_v21 = vmul.f32 0.5, %v4359_v36  ;;  %4394 = vtanh.f32 %v1911_v49  ;;  %v1806_v17 = vrot.slane %v6373_v27, 3  ;;  %v1846_v42 = vadd.f32 %v1786_v35, %v1750_v38  ;;  %v4371_v45 = vpop.eup %4370 }
 0x43a   :  { %v1893_v3 = vmul.f32 0.5, %v4361_v61  ;;  %v1899_v37 = vadd.f32 0.5, %v1891_v2  ;;  %4396 = vtanh.f32 %v1912_v62  ;;  %v1850_v40 = vadd.f32 %v1790_v55, %v1754_v20  ;;  %v4373_v5 = vpop.eup %4372 }
 0x43b   :  { %v1895_v26 = vmul.f32 0.5, %v4363_v22  ;;  %v1896_v19 = vmul.f32 0.5, %v4365_v57  ;;  %4398 = vtanh.f32 %v1913_v11  ;;  %v1854_v47 = vadd.f32 %v1794_v0, %v1758_v28  ;;  %v4375_v4 = vpop.eup %4374 }
 0x43c   :  { %v1897_v34 = vmul.f32 0.5, %v4367_v23  ;;  %4400 = vtanh.f32 %v1914_v10  ;;  %v1810_v54 = vrot.slane %v6373_v27, 4  ;;  %v1858_v51 = vadd.f32 %v1762_v25, %v6373_v27  ;;  %v4377_v38 = vpop.eup %4376 }
 0x43d   :  { %v1898_v52 = vmul.f32 0.5, %v4369_v60  ;;  %v1900_v7 = vadd.f32 0.5, %v1892_v21  ;;  %v1862_v18 = vadd.f32 %v1798_v41, %v1766_v43  ;;  %v1947_v30 = vmul.f32 0.5, %v1846_v42  ;;  %v4379_v20 = vpop.eup %4378 }
 0x43e   :  { %v1901_v31 = vadd.f32 0.5, %v1893_v3  ;;  %v1902_v39 = vadd.f32 0.5, %v1894_v24  ;;  %v1866_v63 = vadd.f32 %v1802_v44, %v1770_v59  ;;  %v1948_v1 = vmul.f32 0.5, %v1850_v40 }
 0x43f   :  { %v4381_v28 = vpop.eup %4380  ;;  %v1903_v53 = vadd.f32 0.5, %v1895_v26  ;;  %v1904_v33 = vadd.f32 0.5, %v1896_v19  ;;  %v1870_v50 = vadd.f32 %v1806_v17, %v1774_v15  ;;  %v1949_v14 = vmul.f32 0.5, %v1854_v47 }
 0x440   :  { %v4383_v46 = vpop.eup %4382  ;;  %v1905_v36 = vadd.f32 0.5, %v1897_v34  ;;  %v2004_v48 = vmul.f32 %v4371_v45, %v1899_v37  ;;  %v1874_v16 = vadd.f32 %v1810_v54, %v1778_v58  ;;  %v1950_v27 = vmul.f32 0.5, %v1858_v51 }
 0x441   :  { %v4385_v25 = vpop.eup %4384  ;;  %v1906_v61 = vadd.f32 0.5, %v1898_v52  ;;  %v2005_v49 = vmul.f32 %v4373_v5, %v1900_v7  ;;  %v1951_v43 = vmul.f32 0.5, %v1862_v18  ;;  %4402 = vtanh.f32 %v1947_v30 }
 0x442   :  { %v4387_v35 = vpop.eup %4386  ;;  %v2006_v22 = vmul.f32 %v4375_v4, %v1901_v31  ;;  %v2007_v2 = vmul.f32 %v4377_v38, %v1902_v39  ;;  %v1952_v59 = vmul.f32 0.5, %v1866_v63  ;;  %4404 = vtanh.f32 %v1948_v1 }
 0x443   :  { %v4389_v62 = vpop.eup %4388  ;;  %v1923_v55 = vmul.f32 0.5, %v4387_v35  ;;  %v2008_v57 = vmul.f32 %v4379_v20, %v1903_v53  ;;  %v1953_v15 = vmul.f32 0.5, %v1870_v50  ;;  %4406 = vtanh.f32 %v1949_v14 }
 0x444   :  { %v4391_v11 = vpop.eup %4390  ;;  %v1924_v10 = vmul.f32 0.5, %v4389_v62  ;;  %v2009_v0 = vmul.f32 %v4381_v28, %v1904_v33  ;;  %v1954_v58 = vmul.f32 0.5, %v1874_v16  ;;  %4408 = vtanh.f32 %v1950_v27 }
 0x445   :  { %v4393_v23 = vpop.eup %4392  ;;  %v1925_v24 = vmul.f32 0.5, %v4391_v11  ;;  %v1931_v41 = vadd.f32 0.5, %v1923_v55  ;;  %v2010_v44 = vmul.f32 %v4383_v46, %v1905_v36  ;;  %4410 = vtanh.f32 %v1951_v43 }
 0x446   :  { %v4395_v60 = vpop.eup %4394  ;;  %v1926_v21 = vmul.f32 0.5, %v4393_v23  ;;  %v1932_v17 = vadd.f32 0.5, %v1924_v10  ;;  %v2011_v42 = vmul.f32 %v4385_v25, %v1906_v61  ;;  %4412 = vtanh.f32 %v1952_v59 }
 0x447   :  { %v4397_v45 = vpop.eup %4396  ;;  %v1927_v3 = vmul.f32 0.5, %v4395_v60  ;;  %v1933_v37 = vadd.f32 0.5, %v1925_v24  ;;  %v8108_v40 = vrot.slane %v6260_v13, 5  ;;  %4414 = vtanh.f32 %v1953_v15 }
 0x448   :  { %v4399_v26 = vpop.eup %4398  ;;  %v1928_v19 = vmul.f32 0.5, %v4397_v45  ;;  %v1934_v47 = vadd.f32 0.5, %v1926_v21  ;;  %v8109_v4 = vrot.slane %v6260_v13, 6  ;;  %4416 = vtanh.f32 %v1954_v58 }
 0x449   :  { %v1996_v5 = vmul.f32 %v8108_v40, %v1931_v41  ;;  %v4401_v54 = vpop.eup %4400  ;;  %v1929_v51 = vmul.f32 0.5, %v4399_v26  ;;  %v1935_v38 = vadd.f32 0.5, %v1927_v3  ;;  %v8110_v52 = vrot.slane %v6260_v13, 7 }
 0x44a   :  { %v1997_v34 = vmul.f32 %v8109_v4, %v1932_v17  ;;  %v1930_v30 = vmul.f32 0.5, %v4401_v54  ;;  %v1936_v20 = vadd.f32 0.5, %v1928_v19  ;;  %v1999_v31 = vmul.f32 %v6260_v13, %v1934_v47 }
 0x44b   :  { %v1998_v7 = vmul.f32 %v8110_v52, %v1933_v37  ;;  %v2012_v18 = vadd.f32 %v2004_v48, %v1996_v5  ;;  %v1937_v63 = vadd.f32 0.5, %v1929_v51  ;;  %v8111_v1 = vrot.slane %v6260_v13, 1 }
 0x44c   :  { %v2013_v39 = vadd.f32 %v2005_v49, %v1997_v34  ;;  %v1938_v33 = vadd.f32 0.5, %v1930_v30  ;;  %v8112_v50 = vrot.slane %v6260_v13, 2  ;;  %v2015_v46 = vadd.f32 %v2007_v2, %v1999_v31 }
 0x44d   :  { %v2000_v28 = vmul.f32 %v8111_v1, %v1935_v38  ;;  %v2014_v53 = vadd.f32 %v2006_v22, %v1998_v7  ;;  %4418 = vtanh.f32 %v2012_v18  ;;  %v8113_v36 = vrot.slane %v6260_v13, 3 }
 0x44e   :  { %v2001_v14 = vmul.f32 %v8112_v50, %v1936_v20  ;;  %4420 = vtanh.f32 %v2013_v39  ;;  %v2044_v27 = vrot.slane %v2013_v39, 7  ;;  %v4403_v25 = vpop.eup %4402  ;;  %v8114_v61 = vrot.slane %v6260_v13, 4 }
 0x44f   :  { %v2002_v48 = vmul.f32 %v8113_v36, %v1937_v63  ;;  %v2016_v16 = vadd.f32 %v2008_v57, %v2000_v28  ;;  %4422 = vtanh.f32 %v2014_v53  ;;  %v2046_v35 = vrot.slane %v2014_v53, 6  ;;  %v4405_v22 = vpop.eup %4404  ;;  %v6641_v36 = vld [vmem:[%s7926_s1 + $0x48] ss:$16 sps:$4 sm:$0xff]  }
 0x450   :  { %v2003_v49 = vmul.f32 %v8114_v61, %v1938_v33  ;;  %v2017_v43 = vadd.f32 %v2009_v0, %v2001_v14  ;;  %4424 = vtanh.f32 %v2015_v46  ;;  %v2045_v62 = vsel %vm628_vm3, %v2044_v27, %v2012_v18  ;;  %v4407_v55 = vpop.eup %4406  ;;  %8126 = vst [vmem:[#allocation12_spill] sm:$0xff] %v6641_v36 }
 0x451   :  { %v2018_v59 = vadd.f32 %v2010_v44, %v2002_v48  ;;  %4426 = vtanh.f32 %v2016_v16  ;;  %v2048_v2 = vrot.slane %v2015_v46, 5  ;;  %v2047_v57 = vsel %vm631_vm4, %v2046_v35, %v2045_v62  ;;  %v4409_v10 = vpop.eup %4408  ;;  %v2096_v48 = vld [vmem:[%s7930_s4] sm:$0x2] }
 0x452   :  { %v2019_v15 = vadd.f32 %v2011_v42, %v2003_v49  ;;  %4428 = vtanh.f32 %v2017_v43  ;;  %v2050_v11 = vrot.slane %v2016_v16, 4  ;;  %v2052_v58 = vrot.slane %v2017_v43, 3  ;;  %v4411_v23 = vpop.eup %4410 }
 0x453   :  { %4430 = vtanh.f32 %v2018_v59  ;;  %v2049_v13 = vsel %vm634_vm5, %v2048_v2, %v2047_v57  ;;  %v2053_v0 = vrot.slane %v2018_v59, 2  ;;  %v4413_v44 = vpop.eup %4412  ;;  %v1963_v21 = vmul.f32 0.5, %v4403_v25 }
 0x454   :  { %4432 = vtanh.f32 %v2019_v15  ;;  %v2051_v24 = vsel %vm637_vm6, %v2050_v11, %v2049_v13  ;;  %v2055_v41 = vrot.slane %v2019_v15, 1  ;;  %v4415_v17 = vpop.eup %4414  ;;  %v1964_v45 = vmul.f32 0.5, %v4405_v22 }
 0x455   :  { %v2054_v60 = vsel %vm619_vm0, %v2053_v0, %v2052_v58  ;;  %2059 = vst [vmem:[#allocation3 - $0x3] sm:$0xf8] %v2051_v24  ;;  %v4417_v3 = vpop.eup %4416  ;;  %v1965_v37 = vmul.f32 0.5, %v4407_v55  ;;  %v1966_v40 = vmul.f32 0.5, %v4409_v10  ;;  %v1967_v5 = vmul.f32 0.5, %v4411_v23 }
 0x456   :  { %v2056_v42 = vsel %vm622_vm1, %v2055_v41, %v2054_v60  ;;  %v1968_v26 = vmul.f32 0.5, %v4413_v44  ;;  %v1969_v19 = vmul.f32 0.5, %v4415_v17  ;;  %v1971_v47 = vadd.f32 0.5, %v1963_v21  ;;  %v2099_v23 = vld [vmem:[%s7930_s4 + $0x4] sm:$0x2] }
 0x457   :  { %2060 = vst [vmem:[#allocation3 + $0x5] sm:$0x7] %v2056_v42  ;;  %v1970_v34 = vmul.f32 0.5, %v4417_v3  ;;  %v1972_v54 = vadd.f32 0.5, %v1964_v45  ;;  %v1973_v38 = vadd.f32 0.5, %v1965_v37  ;;  %v1974_v18 = vadd.f32 0.5, %v1966_v40 }
 0x458   :  { %v1975_v30 = vadd.f32 0.5, %v1967_v5  ;;  %v1976_v39 = vadd.f32 0.5, %v1968_v26  ;;  %v1977_v63 = vadd.f32 0.5, %v1969_v19  ;;  %v2102_v24 = vld [vmem:[%s7930_s4 + $0x8] sm:$0x2] }
 0x459   :  { %v1978_v33 = vadd.f32 0.5, %v1970_v34  ;;  %v2105_v17 = vld [vmem:[%s7930_s4 + $0xc] sm:$0x2]  ;;  %v2108_v42 = vld [vmem:[%s7930_s4 + $0x10] sm:$0x2] }
 0x45a   :  { %v4419_v4 = vpop.eup %4418  ;;  %v2111_v5 = vld [vmem:[%s7930_s4 + $0x14] sm:$0x2]  ;;  %v2114_v26 = vld [vmem:[%s7930_s4 + $0x18] sm:$0x2] }
 0x45b   :  { %v4421_v51 = vpop.eup %4420  ;;  %v2028_v52 = vmul.f32 %v4419_v4, %v1971_v47 }
 0x45c   :  { %v4423_v7 = vpop.eup %4422  ;;  %v2029_v20 = vmul.f32 %v4421_v51, %v1972_v54  ;;  %v2117_v54 = vld [vmem:[%s7930_s4 + $0x1c] sm:$0x2] }
 0x45d   :  { %v4425_v31 = vpop.eup %4424  ;;  %v2030_v1 = vmul.f32 %v4423_v7, %v1973_v38  ;;  %v2086_v28 = vpack.c.bf16 %v2028_v52, %v2028_v52 }
 0x45e   :  { %v4427_v53 = vpop.eup %4426  ;;  %v2031_v50 = vmul.f32 %v4425_v31, %v1974_v18  ;;  %v2069_v14 = vrot.slane %v2029_v20, 7  ;;  %v2087_v46 = vpack.c.bf16 %v2029_v20, %v2029_v20  ;;  %v6536_v18 = vld [vmem:[%s7926_s1 + $0xcc] ss:$16 sps:$4 sm:$0xff]   ;;  %v6575_v20 = vld [vmem:[%s7926_s1 + $0x84] ss:$16 sps:$4 sm:$0xff]  }
 0x45f   :  { %v4429_v16 = vpop.eup %4428  ;;  %v2032_v27 = vmul.f32 %v4427_v53, %v1975_v30  ;;  %v2071_v25 = vrot.slane %v2030_v1, 6  ;;  %v2088_v61 = vpack.c.bf16 %v2030_v1, %v2030_v1  ;;  %v2097_v49 = vsel %vm6456_vm15, %v2086_v28, %v2096_v48  ;;  %v6569_v30 = vld [vmem:[%s7926_s1 + $0xa8] ss:$16 sps:$4 sm:$0xff]   ;;  %v6581_v31 = vld [vmem:[%s7926_s1 + $0x8c] ss:$16 sps:$4 sm:$0xff]  }
 0x460   :  { %v4431_v43 = vpop.eup %4430  ;;  %v2033_v35 = vmul.f32 %v4429_v16, %v1976_v39  ;;  %v2070_v22 = vsel %vm628_vm3, %v2069_v14, %v2028_v52  ;;  %v2073_v59 = vrot.slane %v2031_v50, 5  ;;  %v2089_v62 = vpack.c.bf16 %v2031_v50, %v2031_v50  ;;  %2098 = vst [vmem:[%s7930_s4] sm:$0x2] %v2097_v49  ;;  %v6587_v39 = vld [vmem:[%s7926_s1 + $0x80] ss:$16 sps:$4 sm:$0xff]   ;;  %v6599_v1 = vld [vmem:[%s7926_s1 + $0x64] ss:$16 sps:$4 sm:$0xff]  }
 0x461   :  { %v4433_v2 = vpop.eup %4432  ;;  %v2034_v55 = vmul.f32 %v4431_v43, %v1977_v63  ;;  %v2072_v15 = vsel %vm631_vm4, %v2071_v25, %v2070_v22  ;;  %v2075_v57 = vrot.slane %v2032_v27, 4  ;;  %v2090_v11 = vpack.c.bf16 %v2032_v27, %v2032_v27  ;;  %8117 = vst [vmem:[#allocation5_spill] sm:$0xff] %v6587_v39  ;;  %v6593_v63 = vld [vmem:[%s7926_s1 + $0x88] ss:$16 sps:$4 sm:$0xff]   ;;  %8119 = vst [vmem:[#allocation6_spill] sm:$0xff] %v6599_v1 }
 0x462   :  { %v2035_v10 = vmul.f32 %v4433_v2, %v1978_v33  ;;  %v2074_v13 = vsel %vm634_vm5, %v2073_v59, %v2072_v15  ;;  %v2077_v58 = vrot.slane %v2033_v35, 3  ;;  %v2091_v0 = vpack.c.bf16 %v2033_v35, %v2033_v35  ;;  %8118 = vst [vmem:[#allocation4_spill] sm:$0xff] %v6593_v63  ;;  %v6605_v28 = vld [vmem:[%s7926_s1 + $0x6c] ss:$16 sps:$4 sm:$0xff]   ;;  %v6611_v53 = vld [vmem:[%s7926_s1 + $0x60] ss:$16 sps:$4 sm:$0xff]  }
 0x463   :  { %v2076_v41 = vsel %vm637_vm6, %v2075_v57, %v2074_v13  ;;  %v2078_v44 = vrot.slane %v2034_v55, 2  ;;  %v2092_v60 = vpack.c.bf16 %v2034_v55, %v2034_v55  ;;  %v2100_v21 = vsel %vm6456_vm15, %v2087_v46, %v2099_v23  ;;  %8120 = vst [vmem:[#allocation7_spill] sm:$0xff] %v6605_v28  ;;  %8121 = vst [vmem:[#allocation9_spill] sm:$0xff] %v6611_v53  ;;  %v6617_v33 = vld [vmem:[%s7926_s1 + $0x68] ss:$16 sps:$4 sm:$0xff]  }
 0x464   :  { %v2080_v45 = vrot.slane %v2035_v10, 1  ;;  %2084 = vst [vmem:[#allocation2 - $0x3] sm:$0xf8] %v2076_v41  ;;  %v2093_v3 = vpack.c.bf16 %v2035_v10, %v2035_v10  ;;  %2101 = vst [vmem:[%s7930_s4 + $0x4] sm:$0x2] %v2100_v21  ;;  %v2103_v37 = vsel %vm6456_vm15, %v2088_v61, %v2102_v24  ;;  %v2106_v40 = vsel %vm6456_vm15, %v2089_v62, %v2105_v17  ;;  %v6694_v22 = vld [vmem:[#allocation3] sm:$0xff] }
 0x465   :  { %v2079_v19 = vsel %vm619_vm0, %v2078_v44, %v2077_v58  ;;  %2104 = vst [vmem:[%s7930_s4 + $0x8] sm:$0x2] %v2103_v37  ;;  %2107 = vst [vmem:[%s7930_s4 + $0xc] sm:$0x2] %v2106_v40  ;;  %v2109_v47 = vsel %vm6456_vm15, %v2090_v11, %v2108_v42  ;;  %v2112_v4 = vsel %vm6456_vm15, %v2091_v0, %v2111_v5  ;;  %v6623_v50 = vld [vmem:[%s7926_s1 + $0x44] ss:$16 sps:$4 sm:$0xff]  }
 0x466   :  { %v2115_v34 = vsel %vm6456_vm15, %v2092_v60, %v2114_v26  ;;  %v2081_v51 = vsel %vm622_vm1, %v2080_v45, %v2079_v19  ;;  %2110 = vst [vmem:[%s7930_s4 + $0x10] sm:$0x2] %v2109_v47  ;;  %2113 = vst [vmem:[%s7930_s4 + $0x14] sm:$0x2] %v2112_v4  ;;  %v2118_v38 = vsel %vm6456_vm15, %v2093_v3, %v2117_v54  ;;  %v6629_v14 = vld [vmem:[%s7926_s1 + $0x4c] ss:$16 sps:$4 sm:$0xff]  }
 0x467   :  { %2116 = vst [vmem:[%s7930_s4 + $0x18] sm:$0x2] %v2115_v34  ;;  %2085 = vst [vmem:[#allocation2 + $0x5] sm:$0x7] %v2081_v51  ;;  %v6635_v46 = vld [vmem:[%s7926_s1 + $0x40] ss:$16 sps:$4 sm:$0xff]  }
 0x468   :  { %2119 = vst [vmem:[%s7930_s4 + $0x1c] sm:$0x2] %v2118_v38  ;;  %8122 = vst [vmem:[#allocation8_spill] sm:$0xff] %v6617_v33  ;;  %v6647_v48 = vld [vmem:[%s7926_s1 + $0x24] ss:$16 sps:$4 sm:$0xff]  }
 0x469   :  { %8123 = vst [vmem:[#allocation10_spill] sm:$0xff] %v6623_v50  ;;  %8124 = vst [vmem:[#allocation11_spill] sm:$0xff] %v6629_v14  ;;  %v6653_v16 = vld [vmem:[%s7926_s1 + $0x2c] ss:$16 sps:$4 sm:$0xff]   ;;  %v6659_v27 = vld [vmem:[%s7926_s1 + $0x20] ss:$16 sps:$4 sm:$0xff]  }
 0x46a   :  { %8125 = vst [vmem:[#allocation13_spill] sm:$0xff] %v6635_v46  ;;  %8127 = vst [vmem:[#allocation14_spill] sm:$0xff] %v6647_v48  ;;  %v6665_v25 = vld [vmem:[%s7926_s1 + $0x28] ss:$16 sps:$4 sm:$0xff]   ;;  %v6671_v61 = vld [vmem:[%s7926_s1 + $0x4] ss:$16 sps:$4 sm:$0xff]  }
 0x46b   :  { %8128 = vst [vmem:[#allocation15_spill] sm:$0xff] %v6653_v16  ;;  %8129 = vst [vmem:[#allocation16_spill] sm:$0xff] %v6659_v27  ;;  %v6677_v49 = vld [vmem:[%s7926_s1 + $0xc] ss:$16 sps:$4 sm:$0xff]   ;;  %v6683_v43 = vld [vmem:[%s7926_s1] ss:$16 sps:$4 sm:$0xff]  }
 0x46c   :  { %8130 = vst [vmem:[#allocation17_spill] sm:$0xff] %v6665_v25  ;;  %8131 = vst [vmem:[#allocation18_spill] sm:$0xff] %v6671_v61  ;;  %v6689_v35 = vld [vmem:[%s7926_s1 + $0x8] ss:$16 sps:$4 sm:$0xff]   ;;  %v6699_v59 = vld [vmem:[%s7928_s0] sm:$0x44] }
 0x46d   :  { %8132 = vst [vmem:[#allocation19_spill] sm:$0xff] %v6677_v49  ;;  %8133 = vst [vmem:[#allocation20_spill] sm:$0xff] %v6683_v43  ;;  %v6704_v62 = vld [vmem:[%s7928_s0 + $0x10] sm:$0x44]  ;;  %v6709_v2 = vld [vmem:[%s7928_s0 + $0x20] sm:$0x44]  ;;  %v2220_v17 = vunpack.c.l.bf16 %v6699_v59 }
 0x46e   :  { %v2136_v52 = vld [vmem:[#allocation2] sm:$0xff]  ;;  %8134 = vst [vmem:[#allocation21_spill] sm:$0xff] %v6689_v35  ;;  %v6724_v55 = vld [vmem:[%s7928_s0 + $0x50] sm:$0x44]  ;;  %v6742_v58 = vld [vmem:[%s7928_s0 + $0x48] sm:$0x44]  ;;  %v2224_v42 = vunpack.c.l.bf16 %v6704_v62  ;;  %v2228_v45 = vunpack.c.l.bf16 %v6709_v2 }
 0x46f   :  { %v2137_v7 = vpack.c.bf16 %v2136_v52, %v2136_v52  ;;  %v6729_v15 = vld [vmem:[%s7928_s0 + $0x60] sm:$0x44]  ;;  %v6734_v57 = vld [vmem:[%s7928_s0 + $0x70] sm:$0x44]  ;;  %v6751_v44 = vld [vmem:[%s7928_s0 + $0x8] sm:$0x44]  ;;  %v2240_v19 = vunpack.c.l.bf16 %v6724_v55 }
 0x470   :  { %v6756_v60 = vld [vmem:[%s7928_s0 + $0x18] sm:$0x44]  ;;  %v6761_v21 = vld [vmem:[%s7928_s0 + $0x28] sm:$0x44]  ;;  %v2244_v47 = vunpack.c.l.bf16 %v6729_v15  ;;  %v2248_v4 = vunpack.c.l.bf16 %v6734_v57  ;;  %v2222_v54 = vunpack.c.l.bf16 %v6751_v44 }
 0x471   :  { %2171 = vmatmul.mubr.bf16.vlgmr.msra.gmra.mxu0 %v2137_v7  ;;  %2212 = vmatmul.mubr.bf16.vlgmr.msra.gmra.mxu1 %v2137_v7  ;;  %v6770_v37 = vld [vmem:[%s7928_s0 + $0x38] sm:$0x44]  ;;  %v6780_v5 = vld [vmem:[%s7928_s0 + $0x68] sm:$0x44]  ;;  %v2226_v51 = vunpack.c.l.bf16 %v6756_v60  ;;  %v2230_v38 = vunpack.c.l.bf16 %v6761_v21 }
 0x472   :  { %2613 = vmatpush1.bf16.msra.mxu0 %v6199_v6  ;;  %2654 = vmatpush1.bf16.msra.mxu1 %v6205_v8  ;;  %v6545_v6 = vld [vmem:[%s7926_s1 + $0xc8] ss:$16 sps:$4 sm:$0xff]   ;;  %v6551_v8 = vld [vmem:[%s7926_s1 + $0xa4] ss:$16 sps:$4 sm:$0xff]  }
 0x473   :  { %2614 = vmatprep.subr.bf16.mxu0 %v6211_v29  ;;  %2655 = vmatprep.subr.bf16.mxu1 %v6536_v18  ;;  %v6557_v29 = vld [vmem:[%s7926_s1 + $0xac] ss:$16 sps:$4 sm:$0xff]  }
 0x474   :  { %2644 = vmatprep.mubr.bf16.mxu0 %v8021_v56  ;;  %2685 = vmatprep.mubr.bf16.mxu1 %v8021_v56  ;;  %v6775_v40 = vld [vmem:[%s7928_s0 + $0x58] sm:$0x44] }
 0x475   :  { %v6789_v34 = vld [vmem:[%s7928_s0 + $0x78] sm:$0x44] }
 0x476   :  { %2615 = vmatpush1.bf16.msra.mxu0 %v6220_v32  ;;  %2656 = vmatpush1.bf16.msra.mxu1 %v6545_v6  ;;  %v6563_v32 = vld [vmem:[%s7926_s1 + $0xa0] ss:$16 sps:$4 sm:$0xff]  }
 0x477   :  { %2616 = vmatprep.subr.bf16.mxu0 %v6551_v8  ;;  %2657 = vmatprep.subr.bf16.mxu1 %v6557_v29 }
 0x47a   :  { %2617 = vmatpush1.bf16.msra.mxu0 %v6563_v32  ;;  %2658 = vmatpush1.bf16.msra.mxu1 %v6569_v30 }
 0x47b   :  { %2618 = vmatprep.subr.bf16.mxu0 %v6575_v20  ;;  %2659 = vmatprep.subr.bf16.mxu1 %v6581_v31 }
 0x47e   :  { %2619 = vmatpush1.bf16.msra.mxu0 %v6587_v39  ;;  %2660 = vmatpush1.bf16.msra.mxu1 %v6593_v63  ;;  %v2241_v39 = vunpack.c.h.bf16 %v6724_v55  ;;  %v2223_v55 = vunpack.c.h.bf16 %v6751_v44 }
 0x47f   :  { %2620 = vmatprep.subr.bf16.mxu0 %v6599_v1  ;;  %2661 = vmatprep.subr.bf16.mxu1 %v6605_v28 }
 0x482   :  { %2621 = vmatpush1.bf16.msra.mxu0 %v6611_v53  ;;  %2662 = vmatpush1.bf16.msra.mxu1 %v6617_v33 }
 0x483   :  { %2622 = vmatprep.subr.bf16.mxu0 %v6623_v50  ;;  %2663 = vmatprep.subr.bf16.mxu1 %v6629_v14 }
 0x486   :  { %2623 = vmatpush1.bf16.msra.mxu0 %v6635_v46  ;;  %2664 = vmatpush1.bf16.msra.mxu1 %v6641_v36 }
 0x487   :  { %2624 = vmatprep.subr.bf16.mxu0 %v6647_v48  ;;  %2665 = vmatprep.subr.bf16.mxu1 %v6653_v16 }
 0x48a   :  { %2625 = vmatpush1.bf16.msra.mxu0 %v6659_v27  ;;  %2666 = vmatpush1.bf16.msra.mxu1 %v6665_v25 }
 0x48b   :  { %2626 = vmatprep.subr.bf16.mxu0 %v6671_v61  ;;  %2667 = vmatprep.subr.bf16.mxu1 %v6677_v49 }
 0x48e   :  { %2627 = vmatpush1.bf16.msra.mxu0 %v6683_v43  ;;  %2668 = vmatpush1.bf16.msra.mxu1 %v6689_v35 }
 0x48f   :  { %3085 = vmatprep.subr.bf16.mxu0 %v6251_v9  ;;  %3126 = vmatprep.subr.bf16.mxu1 %v6257_v12  ;;  %v6714_v9 = vld [vmem:[%s7928_s0 + $0x30] sm:$0x44]  ;;  %v6719_v12 = vld [vmem:[%s7928_s0 + $0x40] sm:$0x44] }
 0x490   :  { %v2232_v3 = vunpack.c.l.bf16 %v6714_v9  ;;  %v2236_v26 = vunpack.c.l.bf16 %v6719_v12  ;;  %v2233_v43 = vunpack.c.h.bf16 %v6714_v9 }
 0x531   :  { %v2172_v0 = vpop.f32.mrf.mxu0  ;;  %v6799_v13 = vpop.f32.mrf.mxu1 }
 0x532   :  { %v2256_v52 = vrot.slane %v2172_v0, 4  ;;  %v2260_v49 = vrot.slane %v2172_v0, 5  ;;  %v2264_v7 = vrot.slane %v2172_v0, 6  ;;  %v2268_v61 = vrot.slane %v2172_v0, 7 }
 0x533   :  { %v2272_v41 = vrot.slane %v2172_v0, 1  ;;  %v2276_v25 = vrot.slane %v2172_v0, 2  ;;  %v2280_v24 = vrot.slane %v2172_v0, 3  ;;  %v2332_v27 = vadd.f32 %v2236_v26, %v2172_v0  ;;  %v6805_v23 = vpop.f32.mrf.mxu0  ;;  %v6807_v16 = vpop.f32.mrf.mxu1 }
 0x534   :  { %v2316_v48 = vadd.f32 %v2256_v52, %v2220_v17  ;;  %v2320_v10 = vadd.f32 %v2260_v49, %v2224_v42  ;;  %v2324_v36 = vadd.f32 %v2264_v7, %v2228_v45  ;;  %v2328_v11 = vadd.f32 %v2268_v61, %v2232_v3 }
 0x535   :  { %v2336_v46 = vadd.f32 %v2272_v41, %v2240_v19  ;;  %v2340_v35 = vadd.f32 %v2276_v25, %v2244_v47  ;;  %v2352_v14 = vmul.f32 0.5, %v2332_v27  ;;  %v2176_v50 = vpop.f32.mrf.mxu0  ;;  %v2217_v33 = vpop.f32.mrf.mxu1  ;;  %v2344_v53 = vadd.f32 %v2280_v24, %v2248_v4 }
 0x536   :  { %v2348_v28 = vmul.f32 0.5, %v2316_v48  ;;  %v2349_v1 = vmul.f32 0.5, %v2320_v10  ;;  %v2350_v63 = vmul.f32 0.5, %v2324_v36  ;;  %v2351_v0 = vmul.f32 0.5, %v2328_v11 }
 0x537   :  { %v2353_v26 = vmul.f32 0.5, %v2336_v46  ;;  %4434 = vtanh.f32 %v2352_v14  ;;  %v2177_v17 = vpop.f32.mrf.mxu0  ;;  %v2218_v49 = vpop.f32.mrf.mxu1  ;;  %v2258_v61 = vrot.slane %v6799_v13, 4  ;;  %v2262_v27 = vrot.slane %v6799_v13, 5 }
 0x538   :  { %4436 = vtanh.f32 %v2348_v28  ;;  %v2266_v25 = vrot.slane %v6799_v13, 6  ;;  %v2354_v50 = vmul.f32 0.5, %v2340_v35  ;;  %v2245_v33 = vunpack.c.h.bf16 %v6729_v15 }
 0x539   :  { %4438 = vtanh.f32 %v2349_v1  ;;  %v2249_v36 = vunpack.c.h.bf16 %v6734_v57  ;;  %v2355_v48 = vmul.f32 0.5, %v2344_v53  ;;  %v2270_v14 = vrot.slane %v6799_v13, 7 }
 0x53a   :  { %4440 = vtanh.f32 %v2350_v63  ;;  %v2239_v46 = vunpack.c.h.bf16 %v6742_v58  ;;  %v2274_v28 = vrot.slane %v6799_v13, 1  ;;  %v2318_v9 = vadd.f32 %v2258_v61, %v2222_v54 }
 0x53b   :  { %4442 = vtanh.f32 %v2351_v0  ;;  %v2278_v35 = vrot.slane %v6799_v13, 2  ;;  %v2322_v1 = vadd.f32 %v2262_v27, %v2226_v51  ;;  %v2326_v11 = vadd.f32 %v2266_v25, %v2230_v38 }
 0x53c   :  { %4444 = vtanh.f32 %v2353_v26  ;;  %v2257_v15 = vrot.slane %v6805_v23, 4  ;;  %v2261_v63 = vrot.slane %v6805_v23, 5  ;;  %v2265_v53 = vrot.slane %v6805_v23, 6 }
 0x53d   :  { %4446 = vtanh.f32 %v2354_v50  ;;  %v2282_v57 = vrot.slane %v6799_v13, 3  ;;  %v8135_v10 = vunpack.c.l.bf16 %v6770_v37  ;;  %v2269_v41 = vrot.slane %v6805_v23, 7 }
 0x53e   :  { %4448 = vtanh.f32 %v2355_v48  ;;  %v8136_v42 = vunpack.c.l.bf16 %v6742_v58  ;;  %v8137_v3 = vunpack.c.l.bf16 %v6775_v40  ;;  %v8138_v47 = vunpack.c.h.bf16 %v6699_v59 }
 0x53f   :  { %v2330_v24 = vadd.f32 %v2270_v14, %v8135_v10  ;;  %4450 = vtanh.f32 %v2318_v9  ;;  %v2273_v54 = vrot.slane %v6805_v23, 1  ;;  %v2277_v51 = vrot.slane %v6805_v23, 2 }
 0x540   :  { %v2334_v45 = vadd.f32 %v8136_v42, %v6799_v13  ;;  %v2338_v19 = vadd.f32 %v2274_v28, %v8137_v3  ;;  %v2317_v4 = vadd.f32 %v2257_v15, %v8138_v47  ;;  %4452 = vtanh.f32 %v2322_v1 }
 0x541   :  { %v8139_v38 = vunpack.c.h.bf16 %v6704_v62  ;;  %v8140_v7 = vunpack.c.l.bf16 %v6780_v5  ;;  %4454 = vtanh.f32 %v2326_v11  ;;  %v2281_v13 = vrot.slane %v6805_v23, 3 }
 0x542   :  { %v8141_v26 = vunpack.c.h.bf16 %v6709_v2  ;;  %v8142_v59 = vunpack.c.l.bf16 %v6789_v34  ;;  %4456 = vtanh.f32 %v2330_v24  ;;  %v2329_v61 = vadd.f32 %v2269_v41, %v2233_v43 }
 0x543   :  { %v2321_v52 = vadd.f32 %v2261_v63, %v8139_v38  ;;  %v2342_v0 = vadd.f32 %v2278_v35, %v8140_v7  ;;  %v2227_v27 = vunpack.c.h.bf16 %v6756_v60  ;;  %4458 = vtanh.f32 %v2334_v45 }
 0x544   :  { %v2325_v17 = vadd.f32 %v2265_v53, %v8141_v26  ;;  %v2346_v49 = vadd.f32 %v2282_v57, %v8142_v59  ;;  %v8143_v62 = vunpack.c.h.bf16 %v6719_v12  ;;  %v2380_v50 = vmul.f32 0.5, %v2317_v4  ;;  %v4435_v14 = vpop.eup %4434 }
 0x545   :  { %v2231_v48 = vunpack.c.h.bf16 %v6761_v21  ;;  %4460 = vtanh.f32 %v2338_v19  ;;  %v2337_v28 = vadd.f32 %v2273_v54, %v2241_v39  ;;  %v2341_v2 = vadd.f32 %v2277_v51, %v2245_v33  ;;  %v4437_v35 = vpop.eup %4436 }
 0x546   :  { %v2333_v25 = vadd.f32 %v8143_v62, %v6805_v23  ;;  %v2381_v9 = vmul.f32 0.5, %v2321_v52  ;;  %4462 = vtanh.f32 %v2342_v0  ;;  %v2345_v1 = vadd.f32 %v2281_v13, %v2249_v36  ;;  %v4439_v60 = vpop.eup %4438 }
 0x547   :  { %v2382_v11 = vmul.f32 0.5, %v2325_v17  ;;  %v2235_v43 = vunpack.c.h.bf16 %v6770_v37  ;;  %4464 = vtanh.f32 %v2346_v49  ;;  %v2383_v15 = vmul.f32 0.5, %v2329_v61  ;;  %v4441_v63 = vpop.eup %4440 }
 0x548   :  { %v2243_v12 = vunpack.c.h.bf16 %v6775_v40  ;;  %v2247_v23 = vunpack.c.h.bf16 %v6780_v5  ;;  %v2384_v21 = vmul.f32 0.5, %v2333_v25  ;;  %4466 = vtanh.f32 %v2380_v50  ;;  %v4443_v53 = vpop.eup %4442 }
 0x549   :  { %v2251_v39 = vunpack.c.h.bf16 %v6789_v34  ;;  %v2259_v33 = vrot.slane %v6807_v16, 4  ;;  %v2385_v57 = vmul.f32 0.5, %v2337_v28  ;;  %v2386_v36 = vmul.f32 0.5, %v2341_v2  ;;  %v4445_v10 = vpop.eup %4444 }
 0x54a   :  { %4468 = vtanh.f32 %v2381_v9  ;;  %v2263_v37 = vrot.slane %v6807_v16, 5  ;;  %v2364_v24 = vmul.f32 0.5, %v4437_v35  ;;  %v2387_v41 = vmul.f32 0.5, %v2345_v1  ;;  %v4447_v5 = vpop.eup %4446 }
 0x54b   :  { %4470 = vtanh.f32 %v2382_v11  ;;  %v2267_v40 = vrot.slane %v6807_v16, 6  ;;  %v2368_v42 = vmul.f32 0.5, %v4435_v14  ;;  %v2271_v45 = vrot.slane %v6807_v16, 7  ;;  %v4449_v3 = vpop.eup %4448 }
 0x54c   :  { %4472 = vtanh.f32 %v2383_v15  ;;  %v2275_v34 = vrot.slane %v6807_v16, 1  ;;  %v2365_v19 = vmul.f32 0.5, %v4439_v60  ;;  %v2279_v47 = vrot.slane %v6807_v16, 2  ;;  %v4451_v54 = vpop.eup %4450 }
 0x54d   :  { %4474 = vtanh.f32 %v2384_v21  ;;  %v2319_v4 = vadd.f32 %v2259_v33, %v2223_v55  ;;  %v2366_v51 = vmul.f32 0.5, %v4441_v63  ;;  %v2367_v38 = vmul.f32 0.5, %v4443_v53  ;;  %v4453_v7 = vpop.eup %4452 }
 0x54e   :  { %4476 = vtanh.f32 %v2385_v57  ;;  %v2323_v52 = vadd.f32 %v2263_v37, %v2227_v27  ;;  %v2369_v0 = vmul.f32 0.5, %v4445_v10  ;;  %v2372_v13 = vadd.f32 0.5, %v2364_v24  ;;  %v4455_v17 = vpop.eup %4454 }
 0x54f   :  { %4478 = vtanh.f32 %v2386_v36  ;;  %v2327_v26 = vadd.f32 %v2267_v40, %v2231_v48  ;;  %v2370_v59 = vmul.f32 0.5, %v4447_v5  ;;  %v2283_v49 = vrot.slane %v6807_v16, 3  ;;  %v4457_v62 = vpop.eup %4456 }
 0x550   :  { %4480 = vtanh.f32 %v2387_v41  ;;  %v2331_v61 = vadd.f32 %v2271_v45, %v2235_v43  ;;  %v2371_v25 = vmul.f32 0.5, %v4449_v3  ;;  %v2373_v44 = vadd.f32 0.5, %v2365_v19  ;;  %v4459_v27 = vpop.eup %4458 }
 0x551   :  { %v2335_v55 = vadd.f32 %v2239_v46, %v6807_v16  ;;  %v2420_v50 = vmul.f32 0.5, %v2319_v4  ;;  %v2374_v14 = vadd.f32 0.5, %v2366_v51  ;;  %v2375_v28 = vadd.f32 0.5, %v2367_v38 }
 0x552   :  { %v2339_v2 = vadd.f32 %v2275_v34, %v2243_v12  ;;  %v2421_v9 = vmul.f32 0.5, %v2323_v52  ;;  %v4461_v48 = vpop.eup %4460  ;;  %v2376_v35 = vadd.f32 0.5, %v2368_v42  ;;  %v2377_v1 = vadd.f32 0.5, %v2369_v0 }
 0x553   :  { %v2343_v11 = vadd.f32 %v2279_v47, %v2247_v23  ;;  %v2422_v60 = vmul.f32 0.5, %v2327_v26  ;;  %v4463_v15 = vpop.eup %4462  ;;  %v2378_v43 = vadd.f32 0.5, %v2370_v59  ;;  %v2477_v63 = vmul.f32 %v4451_v54, %v2372_v13 }
 0x554   :  { %v2347_v21 = vadd.f32 %v2283_v49, %v2251_v39  ;;  %v2423_v33 = vmul.f32 0.5, %v2331_v61  ;;  %v4465_v53 = vpop.eup %4464  ;;  %v2379_v57 = vadd.f32 0.5, %v2371_v25  ;;  %v2478_v58 = vmul.f32 %v4453_v7, %v2373_v44 }
 0x555   :  { %v2424_v16 = vmul.f32 0.5, %v2335_v55  ;;  %4482 = vtanh.f32 %v2420_v50  ;;  %v4467_v46 = vpop.eup %4466  ;;  %v2479_v36 = vmul.f32 %v4455_v17, %v2374_v14  ;;  %v2480_v37 = vmul.f32 %v4457_v62, %v2375_v28 }
 0x556   :  { %v2425_v12 = vmul.f32 0.5, %v2339_v2  ;;  %4484 = vtanh.f32 %v2421_v9  ;;  %v2396_v24 = vmul.f32 0.5, %v4467_v46  ;;  %v2481_v41 = vmul.f32 %v4459_v27, %v2376_v35 }
 0x557   :  { %v4469_v10 = vpop.eup %4468  ;;  %v2426_v23 = vmul.f32 0.5, %v2343_v11  ;;  %4486 = vtanh.f32 %v2422_v60  ;;  %v2482_v42 = vmul.f32 %v4461_v48, %v2377_v1  ;;  %v2427_v39 = vmul.f32 0.5, %v2347_v21 }
 0x558   :  { %v4471_v40 = vpop.eup %4470  ;;  %v2397_v5 = vmul.f32 0.5, %v4469_v10  ;;  %4488 = vtanh.f32 %v2423_v33  ;;  %v2404_v3 = vadd.f32 0.5, %v2396_v24  ;;  %v2483_v19 = vmul.f32 %v4463_v15, %v2378_v43 }
 0x559   :  { %v4473_v45 = vpop.eup %4472  ;;  %v2398_v34 = vmul.f32 0.5, %v4471_v40  ;;  %4490 = vtanh.f32 %v2424_v16  ;;  %v2484_v51 = vmul.f32 %v4465_v53, %v2379_v57  ;;  %v8144_v0 = vrot.slane %v6694_v22, 4 }
 0x55a   :  { %v4475_v47 = vpop.eup %4474  ;;  %v2399_v4 = vmul.f32 0.5, %v4473_v45  ;;  %v2405_v54 = vadd.f32 0.5, %v2397_v5  ;;  %4492 = vtanh.f32 %v2425_v12  ;;  %v8145_v49 = vrot.slane %v6694_v22, 5 }
 0x55b   :  { %v4477_v38 = vpop.eup %4476  ;;  %v2400_v52 = vmul.f32 0.5, %v4475_v47  ;;  %v2406_v7 = vadd.f32 0.5, %v2398_v34  ;;  %v2469_v13 = vmul.f32 %v8144_v0, %v2404_v3  ;;  %4494 = vtanh.f32 %v2426_v23 }
 0x55c   :  { %v4479_v26 = vpop.eup %4478  ;;  %v2401_v17 = vmul.f32 0.5, %v4477_v38  ;;  %v2407_v59 = vadd.f32 0.5, %v2399_v4  ;;  %v2470_v61 = vmul.f32 %v8145_v49, %v2405_v54  ;;  %4496 = vtanh.f32 %v2427_v39 }
 0x55d   :  { %v4481_v62 = vpop.eup %4480  ;;  %v2402_v25 = vmul.f32 0.5, %v4479_v26  ;;  %v2408_v44 = vadd.f32 0.5, %v2400_v52  ;;  %v8146_v55 = vrot.slane %v6694_v22, 6  ;;  %v2485_v27 = vadd.f32 %v2477_v63, %v2469_v13 }
 0x55e   :  { %v2403_v14 = vmul.f32 0.5, %v4481_v62  ;;  %v2409_v28 = vadd.f32 0.5, %v2401_v17  ;;  %v8147_v2 = vrot.slane %v6694_v22, 7  ;;  %v2486_v48 = vadd.f32 %v2478_v58, %v2470_v61 }
 0x55f   :  { %v2471_v50 = vmul.f32 %v8146_v55, %v2406_v7  ;;  %v2410_v35 = vadd.f32 0.5, %v2402_v25  ;;  %v2473_v1 = vmul.f32 %v6694_v22, %v2408_v44  ;;  %4498 = vtanh.f32 %v2485_v27 }
 0x560   :  { %v2472_v9 = vmul.f32 %v8147_v2, %v2407_v59  ;;  %v2411_v60 = vadd.f32 0.5, %v2403_v14  ;;  %v8148_v15 = vrot.slane %v6694_v22, 1  ;;  %4500 = vtanh.f32 %v2486_v48 }
 0x561   :  { %v2487_v11 = vadd.f32 %v2479_v36, %v2471_v50  ;;  %v8149_v33 = vrot.slane %v6694_v22, 2  ;;  %v2489_v53 = vadd.f32 %v2481_v41, %v2473_v1  ;;  %v2517_v57 = vrot.slane %v2486_v48, 7  ;;  %v2570_v48 = vld [vmem:[%s7930_s4] sm:$0x4] }
 0x562   :  { %v2474_v43 = vmul.f32 %v8148_v15, %v2409_v28  ;;  %v2488_v21 = vadd.f32 %v2480_v37, %v2472_v9  ;;  %v4483_v16 = vpop.eup %4482  ;;  %v8150_v58 = vrot.slane %v6694_v22, 3 }
 0x563   :  { %v2475_v63 = vmul.f32 %v8149_v33, %v2410_v35  ;;  %4502 = vtanh.f32 %v2487_v11  ;;  %v2519_v36 = vrot.slane %v2487_v11, 6  ;;  %v4485_v10 = vpop.eup %4484  ;;  %v2518_v23 = vsel %vm631_vm4, %v2517_v57, %v2485_v27  ;;  %v8169_v57 = vld [vmem:[#allocation20_spill] sm:$0xff] }
 0x564   :  { %v2476_v46 = vmul.f32 %v8150_v58, %v2411_v60  ;;  %v2490_v12 = vadd.f32 %v2482_v42, %v2474_v43  ;;  %4504 = vtanh.f32 %v2488_v21  ;;  %v2521_v37 = vrot.slane %v2488_v21, 5  ;;  %v4487_v40 = vpop.eup %4486 }
 0x565   :  { %v2491_v24 = vadd.f32 %v2483_v19, %v2475_v63  ;;  %4506 = vtanh.f32 %v2489_v53  ;;  %v2520_v41 = vsel %vm634_vm5, %v2519_v36, %v2518_v23  ;;  %v2523_v39 = vrot.slane %v2489_v53, 4  ;;  %v4489_v45 = vpop.eup %4488 }
 0x566   :  { %v2492_v5 = vadd.f32 %v2484_v51, %v2476_v46  ;;  %4508 = vtanh.f32 %v2490_v12  ;;  %v2522_v22 = vsel %vm637_vm6, %v2521_v37, %v2520_v41  ;;  %v2524_v34 = vrot.slane %v2490_v12, 3  ;;  %v4491_v3 = vpop.eup %4490  ;;  %v2576_v41 = vld [vmem:[%s7930_s4 + $0x8] sm:$0x4] }
 0x567   :  { %4510 = vtanh.f32 %v2491_v24  ;;  %v2526_v42 = vrot.slane %v2491_v24, 2  ;;  %2532 = vst [vmem:[#allocation3 - $0x4] sm:$0xf0] %v2522_v22  ;;  %v4493_v19 = vpop.eup %4492  ;;  %v2436_v54 = vmul.f32 0.5, %v4483_v16  ;;  %v2437_v52 = vmul.f32 0.5, %v4485_v10 }
 0x568   :  { %4512 = vtanh.f32 %v2492_v5  ;;  %v2525_v47 = vsel %vm619_vm0, %v2524_v34, %v2523_v39  ;;  %v2528_v4 = vrot.slane %v2492_v5, 1  ;;  %v4495_v38 = vpop.eup %4494  ;;  %v2438_v13 = vmul.f32 0.5, %v4487_v40  ;;  %v2573_v5 = vld [vmem:[%s7930_s4 + $0x4] sm:$0x4] }
 0x569   :  { %v2527_v51 = vsel %vm622_vm1, %v2526_v42, %v2525_v47  ;;  %v4497_v7 = vpop.eup %4496  ;;  %v2439_v26 = vmul.f32 0.5, %v4489_v45  ;;  %v2440_v17 = vmul.f32 0.5, %v4491_v3  ;;  %v2441_v59 = vmul.f32 0.5, %v4493_v19  ;;  %v2579_v3 = vld [vmem:[%s7930_s4 + $0xc] sm:$0x4] }
 0x56a   :  { %v2529_v0 = vsel %vm625_vm2, %v2528_v4, %v2527_v51  ;;  %v2442_v49 = vmul.f32 0.5, %v4495_v38  ;;  %v2444_v61 = vadd.f32 0.5, %v2436_v54  ;;  %v2443_v25 = vmul.f32 0.5, %v4497_v7  ;;  %v2582_v19 = vld [vmem:[%s7930_s4 + $0x10] sm:$0x4] }
 0x56b   :  { %2533 = vst [vmem:[#allocation3 + $0x4] sm:$0xf] %v2529_v0  ;;  %v2445_v44 = vadd.f32 0.5, %v2437_v52  ;;  %v2446_v50 = vadd.f32 0.5, %v2438_v13  ;;  %v2447_v28 = vadd.f32 0.5, %v2439_v26  ;;  %v2448_v2 = vadd.f32 0.5, %v2440_v17 }
 0x56c   :  { %v4499_v62 = vpop.eup %4498  ;;  %v2449_v1 = vadd.f32 0.5, %v2441_v59  ;;  %v2450_v11 = vadd.f32 0.5, %v2442_v49  ;;  %v2451_v21 = vadd.f32 0.5, %v2443_v25  ;;  %v2585_v51 = vld [vmem:[%s7930_s4 + $0x14] sm:$0x4] }
 0x56d   :  { %v4501_v55 = vpop.eup %4500  ;;  %v2501_v27 = vmul.f32 %v4499_v62, %v2444_v61  ;;  %v2588_v52 = vld [vmem:[%s7930_s4 + $0x18] sm:$0x4]  ;;  %v2591_v17 = vld [vmem:[%s7930_s4 + $0x1c] sm:$0x4] }
 0x56e   :  { %v2502_v9 = vmul.f32 %v4501_v55, %v2445_v44 }
 0x56f   :  { %v2559_v15 = vpack.c.bf16 %v2501_v27, %v2501_v27 }
 0x570   :  { %v4503_v14 = vpop.eup %4502  ;;  %v2542_v63 = vrot.slane %v2502_v9, 7  ;;  %v2560_v53 = vpack.c.bf16 %v2502_v9, %v2502_v9  ;;  %v6967_v9 = vld [vmem:[%s7926_s1 + $0xe0] ss:$16 sps:$4 sm:$0xff]  }
 0x571   :  { %v4505_v35 = vpop.eup %4504  ;;  %v2503_v60 = vmul.f32 %v4503_v14, %v2446_v50  ;;  %v2571_v36 = vsel %vm6893_vm8, %v2559_v15, %v2570_v48  ;;  %v6973_v48 = vld [vmem:[%s7926_s1 + $0xe8] ss:$16 sps:$4 sm:$0xff]  }
 0x572   :  { %v4507_v43 = vpop.eup %4506  ;;  %v2504_v33 = vmul.f32 %v4505_v35, %v2447_v28  ;;  %v2543_v23 = vsel %vm631_vm4, %v2542_v63, %v2501_v27  ;;  %2572 = vst [vmem:[%s7930_s4] sm:$0x4] %v2571_v36  ;;  %v2574_v13 = vsel %vm6893_vm8, %v2560_v53, %v2573_v5  ;;  %v6979_v35 = vld [vmem:[%s7926_s1 + $0xc4] ss:$16 sps:$4 sm:$0xff]   ;;  %v8156_v15 = vld [vmem:[#allocation7_spill] sm:$0xff] }
 0x573   :  { %v4509_v16 = vpop.eup %4508  ;;  %v2505_v58 = vmul.f32 %v4507_v43, %v2448_v2  ;;  %v2544_v46 = vrot.slane %v2503_v60, 6  ;;  %v2561_v12 = vpack.c.bf16 %v2503_v60, %v2503_v60  ;;  %2575 = vst [vmem:[%s7930_s4 + $0x4] sm:$0x4] %v2574_v13  ;;  %v8155_v60 = vld [vmem:[#allocation6_spill] sm:$0xff]  ;;  %v8164_v43 = vld [vmem:[#allocation15_spill] sm:$0xff] }
 0x574   :  { %v4511_v10 = vpop.eup %4510  ;;  %v2506_v24 = vmul.f32 %v4509_v16, %v2449_v1  ;;  %v2546_v37 = vrot.slane %v2504_v33, 5  ;;  %v2562_v40 = vpack.c.bf16 %v2504_v33, %v2504_v33  ;;  %v6988_v1 = vld [vmem:[%s7926_s1 + $0xc0] ss:$16 sps:$4 sm:$0xff]   ;;  %v8166_v33 = vld [vmem:[#allocation17_spill] sm:$0xff]  ;;  %v8168_v53 = vld [vmem:[#allocation19_spill] sm:$0xff] }
 0x575   :  { %v4513_v39 = vpop.eup %4512  ;;  %v2507_v45 = vmul.f32 %v4511_v10, %v2450_v11  ;;  %v2545_v22 = vsel %vm634_vm5, %v2544_v46, %v2543_v23  ;;  %v2548_v34 = vrot.slane %v2505_v58, 4  ;;  %v2563_v42 = vpack.c.bf16 %v2505_v58, %v2505_v58  ;;  %v8154_v11 = vld [vmem:[#allocation4_spill] sm:$0xff]  ;;  %v8167_v63 = vld [vmem:[#allocation18_spill] sm:$0xff]  ;;  %v8170_v16 = vld [vmem:[#allocation21_spill] sm:$0xff] }
 0x576   :  { %v2508_v47 = vmul.f32 %v4513_v39, %v2451_v21  ;;  %v2547_v4 = vsel %vm637_vm6, %v2546_v37, %v2545_v22  ;;  %v2549_v54 = vrot.slane %v2506_v24, 3  ;;  %v2564_v38 = vpack.c.bf16 %v2506_v24, %v2506_v24  ;;  %v8165_v21 = vld [vmem:[#allocation16_spill] sm:$0xff]  ;;  %v4823_v46 = vld [vmem:[%s7926_s1 + $0xec] ss:$16 sps:$4 sm:$0xff]   ;;  %v7027_v36 = vld [vmem:[%s7928_s0] sm:$0x44] }
 0x577   :  { %v2551_v7 = vrot.slane %v2507_v45, 2  ;;  %2557 = vst [vmem:[#allocation2 - $0x4] sm:$0xf0] %v2547_v4  ;;  %v2565_v0 = vpack.c.bf16 %v2507_v45, %v2507_v45  ;;  %v2577_v26 = vsel %vm6893_vm8, %v2561_v12, %v2576_v41  ;;  %v2580_v62 = vsel %vm6893_vm8, %v2562_v40, %v2579_v3  ;;  %v4822_v58 = vld [vmem:[%s7926_s1 + $0xe4] ss:$16 sps:$4 sm:$0xff]   ;;  %v7022_v12 = vld [vmem:[#allocation3] sm:$0xff] }
 0x578   :  { %v2550_v59 = vsel %vm619_vm0, %v2549_v54, %v2548_v34  ;;  %v2553_v49 = vrot.slane %v2508_v47, 1  ;;  %v2566_v61 = vpack.c.bf16 %v2508_v47, %v2508_v47  ;;  %2578 = vst [vmem:[%s7930_s4 + $0x8] sm:$0x4] %v2577_v26  ;;  %2581 = vst [vmem:[%s7930_s4 + $0xc] sm:$0x4] %v2580_v62  ;;  %v2583_v44 = vsel %vm6893_vm8, %v2563_v42, %v2582_v19 }
 0x579   :  { %v2552_v25 = vsel %vm622_vm1, %v2551_v7, %v2550_v59  ;;  %v2586_v55 = vsel %vm6893_vm8, %v2564_v38, %v2585_v51  ;;  %v2589_v50 = vsel %vm6893_vm8, %v2565_v0, %v2588_v52  ;;  %2584 = vst [vmem:[%s7930_s4 + $0x10] sm:$0x4] %v2583_v44  ;;  %v7032_v10 = vld [vmem:[%s7928_s0 + $0x10] sm:$0x44]  ;;  %v7037_v24 = vld [vmem:[%s7928_s0 + $0x20] sm:$0x44]  ;;  %v2694_v52 = vunpack.c.l.bf16 %v7027_v36 }
 0x57a   :  { %v2554_v27 = vsel %vm625_vm2, %v2553_v49, %v2552_v25  ;;  %2587 = vst [vmem:[%s7930_s4 + $0x14] sm:$0x4] %v2586_v55  ;;  %2590 = vst [vmem:[%s7930_s4 + $0x18] sm:$0x4] %v2589_v50  ;;  %v2592_v14 = vsel %vm6893_vm8, %v2566_v61, %v2591_v17  ;;  %v7042_v23 = vld [vmem:[%s7928_s0 + $0x30] sm:$0x44]  ;;  %v2698_v7 = vunpack.c.l.bf16 %v7032_v10  ;;  %v2702_v0 = vunpack.c.l.bf16 %v7037_v24 }
 0x57b   :  { %2558 = vst [vmem:[#allocation2 + $0x4] sm:$0xf] %v2554_v27  ;;  %2593 = vst [vmem:[%s7930_s4 + $0x1c] sm:$0x4] %v2592_v14  ;;  %v7047_v37 = vld [vmem:[%s7928_s0 + $0x40] sm:$0x44]  ;;  %v2706_v13 = vunpack.c.l.bf16 %v7042_v23  ;;  %v2707_v22 = vunpack.c.h.bf16 %v7042_v23 }
 0x57c   :  { %v7052_v40 = vld [vmem:[%s7928_s0 + $0x50] sm:$0x44]  ;;  %v7057_v5 = vld [vmem:[%s7928_s0 + $0x60] sm:$0x44]  ;;  %v7072_v3 = vld [vmem:[%s7928_s0 + $0x8] sm:$0x44]  ;;  %v2710_v49 = vunpack.c.l.bf16 %v7047_v37 }
 0x57d   :  { %v7063_v39 = vld [vmem:[%s7928_s0 + $0x70] sm:$0x44]  ;;  %v7077_v19 = vld [vmem:[%s7928_s0 + $0x58] sm:$0x44]  ;;  %v7089_v38 = vld [vmem:[%s7928_s0 + $0x28] sm:$0x44]  ;;  %v2714_v61 = vunpack.c.l.bf16 %v7052_v40  ;;  %v2718_v62 = vunpack.c.l.bf16 %v7057_v5  ;;  %v2696_v44 = vunpack.c.l.bf16 %v7072_v3 }
 0x57e   :  { %v7084_v54 = vld [vmem:[%s7928_s0 + $0x18] sm:$0x44]  ;;  %v7103_v26 = vld [vmem:[%s7928_s0 + $0x48] sm:$0x44]  ;;  %v2722_v25 = vunpack.c.l.bf16 %v7063_v39  ;;  %v2704_v50 = vunpack.c.l.bf16 %v7089_v38  ;;  %v2716_v27 = vunpack.c.l.bf16 %v7077_v19 }
 0x57f   :  { %v7094_v51 = vld [vmem:[%s7928_s0 + $0x38] sm:$0x44]  ;;  %v7108_v17 = vld [vmem:[%s7928_s0 + $0x68] sm:$0x44]  ;;  %v2700_v55 = vunpack.c.l.bf16 %v7084_v54 }
 0x580   :  { %v7113_v59 = vld [vmem:[%s7928_s0 + $0x78] sm:$0x44]  ;;  %v2708_v14 = vunpack.c.l.bf16 %v7094_v51 }
 0x582   :  { %v2610_v28 = vld [vmem:[#allocation2] sm:$0xff] }
 0x583   :  { %v2611_v2 = vpack.c.bf16 %v2610_v28, %v2610_v28  ;;  %v2712_v28 = vunpack.c.l.bf16 %v7103_v26 }
 0x585   :  { %2645 = vmatmul.mubr.bf16.vlgmr.msra.gmra.mxu0 %v2611_v2  ;;  %2686 = vmatmul.mubr.bf16.vlgmr.msra.gmra.mxu1 %v2611_v2 }
 0x586   :  { %3086 = vmatpush1.bf16.msra.mxu0 %v6967_v9  ;;  %3127 = vmatpush1.bf16.msra.mxu1 %v6973_v48 }
 0x587   :  { %3087 = vmatprep.subr.bf16.mxu0 %v6979_v35  ;;  %3128 = vmatprep.subr.bf16.mxu1 %v6536_v18  ;;  %v8153_v18 = vld [vmem:[#allocation5_spill] sm:$0xff] }
 0x588   :  { %3117 = vmatprep.mubr.bf16.mxu0 %v8021_v56  ;;  %3158 = vmatprep.mubr.bf16.mxu1 %v8021_v56 }
 0x58a   :  { %3088 = vmatpush1.bf16.msra.mxu0 %v6988_v1  ;;  %3129 = vmatpush1.bf16.msra.mxu1 %v6545_v6  ;;  %v8157_v6 = vld [vmem:[#allocation9_spill] sm:$0xff] }
 0x58b   :  { %3089 = vmatprep.subr.bf16.mxu0 %v6551_v8  ;;  %3130 = vmatprep.subr.bf16.mxu1 %v6557_v29  ;;  %v8158_v8 = vld [vmem:[#allocation8_spill] sm:$0xff]  ;;  %v8159_v29 = vld [vmem:[#allocation10_spill] sm:$0xff] }
 0x58e   :  { %3090 = vmatpush1.bf16.msra.mxu0 %v6563_v32  ;;  %3131 = vmatpush1.bf16.msra.mxu1 %v6569_v30  ;;  %v8160_v32 = vld [vmem:[#allocation11_spill] sm:$0xff]  ;;  %v8161_v30 = vld [vmem:[#allocation13_spill] sm:$0xff] }
 0x58f   :  { %3091 = vmatprep.subr.bf16.mxu0 %v6575_v20  ;;  %3132 = vmatprep.subr.bf16.mxu1 %v6581_v31  ;;  %v8162_v20 = vld [vmem:[#allocation12_spill] sm:$0xff]  ;;  %v8163_v31 = vld [vmem:[#allocation14_spill] sm:$0xff] }
 0x592   :  { %3092 = vmatpush1.bf16.msra.mxu0 %v8153_v18  ;;  %3133 = vmatpush1.bf16.msra.mxu1 %v8154_v11 }
 0x593   :  { %3093 = vmatprep.subr.bf16.mxu0 %v8155_v60  ;;  %3134 = vmatprep.subr.bf16.mxu1 %v8156_v15  ;;  %v2695_v15 = vunpack.c.h.bf16 %v7027_v36 }
 0x596   :  { %3094 = vmatpush1.bf16.msra.mxu0 %v8157_v6  ;;  %3135 = vmatpush1.bf16.msra.mxu1 %v8158_v8  ;;  %v2711_v6 = vunpack.c.h.bf16 %v7047_v37  ;;  %v2717_v37 = vunpack.c.h.bf16 %v7077_v19 }
 0x597   :  { %3095 = vmatprep.subr.bf16.mxu0 %v8159_v29  ;;  %3136 = vmatprep.subr.bf16.mxu1 %v8160_v32 }
 0x59a   :  { %3096 = vmatpush1.bf16.msra.mxu0 %v8161_v30  ;;  %3137 = vmatpush1.bf16.msra.mxu1 %v8162_v20 }
 0x59b   :  { %3097 = vmatprep.subr.bf16.mxu0 %v8163_v31  ;;  %3138 = vmatprep.subr.bf16.mxu1 %v8164_v43 }
 0x59e   :  { %3098 = vmatpush1.bf16.msra.mxu0 %v8165_v21  ;;  %3139 = vmatpush1.bf16.msra.mxu1 %v8166_v33 }
 0x59f   :  { %3099 = vmatprep.subr.bf16.mxu0 %v8167_v63  ;;  %3140 = vmatprep.subr.bf16.mxu1 %v8168_v53 }
 0x5a2   :  { %3100 = vmatpush1.bf16.msra.mxu0 %v8169_v57  ;;  %3141 = vmatpush1.bf16.msra.mxu1 %v8170_v16 }
 0x5a3   :  { %3559 = vmatprep.subr.bf16.mxu0 %v4822_v58  ;;  %3600 = vmatprep.subr.bf16.mxu1 %v4823_v46 }
 0x645   :  { %v2646_v11 = vpop.f32.mrf.mxu0  ;;  %v7127_v60 = vpop.f32.mrf.mxu1 }
 0x646   :  { %v2730_v32 = vrot.slane %v2646_v11, 3  ;;  %v2734_v30 = vrot.slane %v2646_v11, 4  ;;  %v2738_v20 = vrot.slane %v2646_v11, 5  ;;  %v2742_v31 = vrot.slane %v2646_v11, 6 }
 0x647   :  { %v2746_v43 = vrot.slane %v2646_v11, 7  ;;  %v2750_v21 = vrot.slane %v2646_v11, 1  ;;  %v2754_v33 = vrot.slane %v2646_v11, 2  ;;  %v2810_v63 = vadd.f32 %v2714_v61, %v2646_v11  ;;  %v7133_v53 = vpop.f32.mrf.mxu0  ;;  %v7135_v57 = vpop.f32.mrf.mxu1 }
 0x648   :  { %v2790_v16 = vadd.f32 %v2730_v32, %v2694_v52  ;;  %v2794_v58 = vadd.f32 %v2734_v30, %v2698_v7  ;;  %v2798_v46 = vadd.f32 %v2738_v20, %v2702_v0  ;;  %v2802_v4 = vadd.f32 %v2742_v31, %v2706_v13 }
 0x649   :  { %v2806_v47 = vadd.f32 %v2746_v43, %v2710_v49  ;;  %v2814_v42 = vadd.f32 %v2750_v21, %v2718_v62  ;;  %v2827_v34 = vmul.f32 0.5, %v2810_v63  ;;  %v2650_v45 = vpop.f32.mrf.mxu0  ;;  %v2691_v41 = vpop.f32.mrf.mxu1  ;;  %v2818_v29 = vadd.f32 %v2754_v33, %v2722_v25 }
 0x64a   :  { %v2822_v18 = vmul.f32 0.5, %v2790_v16  ;;  %v2823_v8 = vmul.f32 0.5, %v2794_v58  ;;  %v2824_v2 = vmul.f32 0.5, %v2798_v46  ;;  %v2825_v61 = vmul.f32 0.5, %v2802_v4 }
 0x64b   :  { %v2826_v11 = vmul.f32 0.5, %v2806_v47  ;;  %4514 = vtanh.f32 %v2827_v34  ;;  %v2651_v52 = vpop.f32.mrf.mxu0  ;;  %v2692_v7 = vpop.f32.mrf.mxu1  ;;  %v2732_v0 = vrot.slane %v7127_v60, 3  ;;  %v2736_v13 = vrot.slane %v7127_v60, 4 }
 0x64c   :  { %4516 = vtanh.f32 %v2822_v18  ;;  %v2740_v23 = vrot.slane %v7127_v60, 5  ;;  %v2828_v45 = vmul.f32 0.5, %v2814_v42  ;;  %v2719_v41 = vunpack.c.h.bf16 %v7057_v5 }
 0x64d   :  { %4518 = vtanh.f32 %v2823_v8  ;;  %v2723_v49 = vunpack.c.h.bf16 %v7063_v39  ;;  %v2829_v4 = vmul.f32 0.5, %v2818_v29  ;;  %v2744_v34 = vrot.slane %v7127_v60, 6 }
 0x64e   :  { %4520 = vtanh.f32 %v2824_v2  ;;  %v2748_v47 = vrot.slane %v7127_v60, 7  ;;  %v2792_v62 = vadd.f32 %v2732_v0, %v2696_v44  ;;  %v2697_v25 = vunpack.c.h.bf16 %v7072_v3 }
 0x64f   :  { %4522 = vtanh.f32 %v2825_v61  ;;  %v2752_v42 = vrot.slane %v7127_v60, 1  ;;  %v2796_v18 = vadd.f32 %v2736_v13, %v2700_v55  ;;  %v2800_v8 = vadd.f32 %v2740_v23, %v2704_v50 }
 0x650   :  { %4524 = vtanh.f32 %v2826_v11  ;;  %v2731_v5 = vrot.slane %v7133_v53, 3  ;;  %v2735_v39 = vrot.slane %v7133_v53, 4  ;;  %v2739_v2 = vrot.slane %v7133_v53, 5 }
 0x651   :  { %4526 = vtanh.f32 %v2828_v45  ;;  %v2756_v29 = vrot.slane %v7127_v60, 2  ;;  %v2804_v44 = vadd.f32 %v2744_v34, %v2708_v14  ;;  %v2743_v32 = vrot.slane %v7133_v53, 6 }
 0x652   :  { %4528 = vtanh.f32 %v2829_v4  ;;  %v2808_v30 = vadd.f32 %v2748_v47, %v2712_v28  ;;  %v2747_v55 = vrot.slane %v7133_v53, 7  ;;  %v2791_v50 = vadd.f32 %v2731_v5, %v2695_v15 }
 0x653   :  { %4530 = vtanh.f32 %v2792_v62  ;;  %v2812_v20 = vadd.f32 %v2716_v27, %v7127_v60  ;;  %v2751_v31 = vrot.slane %v7133_v53, 1  ;;  %v8171_v14 = vunpack.c.h.bf16 %v7032_v10 }
 0x654   :  { %4532 = vtanh.f32 %v2796_v18  ;;  %v8172_v21 = vunpack.c.l.bf16 %v7108_v17  ;;  %v2755_v28 = vrot.slane %v7133_v53, 2  ;;  %v8173_v63 = vunpack.c.h.bf16 %v7037_v24 }
 0x655   :  { %v2795_v43 = vadd.f32 %v2735_v39, %v8171_v14  ;;  %4534 = vtanh.f32 %v2800_v8  ;;  %v8174_v15 = vunpack.c.l.bf16 %v7113_v59  ;;  %v2803_v27 = vadd.f32 %v2743_v32, %v2707_v22 }
 0x656   :  { %v2816_v33 = vadd.f32 %v2752_v42, %v8172_v21  ;;  %v2799_v36 = vadd.f32 %v2739_v2, %v8173_v63  ;;  %4536 = vtanh.f32 %v2804_v44  ;;  %v2701_v60 = vunpack.c.h.bf16 %v7084_v54 }
 0x657   :  { %v2820_v16 = vadd.f32 %v2756_v29, %v8174_v15  ;;  %4538 = vtanh.f32 %v2808_v30  ;;  %v2807_v58 = vadd.f32 %v2747_v55, %v2711_v6  ;;  %v2854_v10 = vmul.f32 0.5, %v2791_v50 }
 0x658   :  { %v2705_v46 = vunpack.c.h.bf16 %v7089_v38  ;;  %v4515_v61 = vpop.eup %4514  ;;  %4540 = vtanh.f32 %v2812_v20  ;;  %v8175_v11 = vunpack.c.h.bf16 %v7052_v40  ;;  %v2815_v24 = vadd.f32 %v2751_v31, %v2719_v41 }
 0x659   :  { %v2855_v7 = vmul.f32 0.5, %v2795_v43  ;;  %v4517_v0 = vpop.eup %4516  ;;  %4542 = vtanh.f32 %v2816_v33  ;;  %v2819_v13 = vadd.f32 %v2755_v28, %v2723_v49  ;;  %v2856_v23 = vmul.f32 0.5, %v2799_v36 }
 0x65a   :  { %v2811_v52 = vadd.f32 %v8175_v11, %v7133_v53  ;;  %v2709_v22 = vunpack.c.h.bf16 %v7094_v51  ;;  %v4519_v54 = vpop.eup %4518  ;;  %4544 = vtanh.f32 %v2820_v16  ;;  %v2857_v6 = vmul.f32 0.5, %v2803_v27 }
 0x65b   :  { %v2713_v45 = vunpack.c.h.bf16 %v7103_v26  ;;  %v2721_v38 = vunpack.c.h.bf16 %v7108_v17  ;;  %v4521_v4 = vpop.eup %4520  ;;  %v2858_v34 = vmul.f32 0.5, %v2807_v58  ;;  %4546 = vtanh.f32 %v2854_v10 }
 0x65c   :  { %v2725_v40 = vunpack.c.h.bf16 %v7113_v59  ;;  %v2733_v53 = vrot.slane %v7135_v57, 3  ;;  %v4523_v41 = vpop.eup %4522  ;;  %v2859_v47 = vmul.f32 0.5, %v2811_v52  ;;  %v2860_v49 = vmul.f32 0.5, %v2815_v24 }
 0x65d   :  { %4548 = vtanh.f32 %v2855_v7  ;;  %v2737_v51 = vrot.slane %v7135_v57, 4  ;;  %v4525_v62 = vpop.eup %4524  ;;  %v2838_v42 = vmul.f32 0.5, %v4517_v0  ;;  %v2861_v18 = vmul.f32 0.5, %v2819_v13 }
 0x65e   :  { %4550 = vtanh.f32 %v2856_v23  ;;  %v2741_v26 = vrot.slane %v7135_v57, 5  ;;  %v4527_v17 = vpop.eup %4526  ;;  %v2843_v8 = vmul.f32 0.5, %v4515_v61  ;;  %v2745_v5 = vrot.slane %v7135_v57, 6 }
 0x65f   :  { %4552 = vtanh.f32 %v2857_v6  ;;  %v2749_v59 = vrot.slane %v7135_v57, 7  ;;  %v4529_v39 = vpop.eup %4528  ;;  %v2839_v2 = vmul.f32 0.5, %v4519_v54  ;;  %v2753_v29 = vrot.slane %v7135_v57, 1 }
 0x660   :  { %4554 = vtanh.f32 %v2858_v34  ;;  %v2793_v44 = vadd.f32 %v2733_v53, %v2697_v25  ;;  %v4531_v32 = vpop.eup %4530  ;;  %v2840_v30 = vmul.f32 0.5, %v4521_v4  ;;  %v2841_v55 = vmul.f32 0.5, %v4523_v41 }
 0x661   :  { %4556 = vtanh.f32 %v2859_v47  ;;  %v2797_v50 = vadd.f32 %v2737_v51, %v2701_v60  ;;  %v4533_v20 = vpop.eup %4532  ;;  %v2842_v31 = vmul.f32 0.5, %v4525_v62  ;;  %v2846_v14 = vadd.f32 0.5, %v2838_v42 }
 0x662   :  { %4558 = vtanh.f32 %v2860_v49  ;;  %v2801_v43 = vadd.f32 %v2741_v26, %v2705_v46  ;;  %v4535_v21 = vpop.eup %4534  ;;  %v2844_v33 = vmul.f32 0.5, %v4527_v17  ;;  %v2757_v28 = vrot.slane %v7135_v57, 2 }
 0x663   :  { %4560 = vtanh.f32 %v2861_v18  ;;  %v2805_v63 = vadd.f32 %v2745_v5, %v2709_v22  ;;  %v4537_v36 = vpop.eup %4536  ;;  %v2845_v15 = vmul.f32 0.5, %v4529_v39  ;;  %v2847_v3 = vadd.f32 0.5, %v2839_v2 }
 0x664   :  { %v2809_v25 = vadd.f32 %v2749_v59, %v2713_v45  ;;  %v2894_v16 = vmul.f32 0.5, %v2793_v44  ;;  %v4539_v27 = vpop.eup %4538  ;;  %v2848_v58 = vadd.f32 0.5, %v2840_v30  ;;  %v2849_v10 = vadd.f32 0.5, %v2841_v55 }
 0x665   :  { %v2813_v60 = vadd.f32 %v2717_v37, %v7135_v57  ;;  %v2895_v61 = vmul.f32 0.5, %v2797_v50  ;;  %v4541_v46 = vpop.eup %4540  ;;  %v2850_v11 = vadd.f32 0.5, %v2842_v31  ;;  %v2851_v52 = vadd.f32 0.5, %v2843_v8 }
 0x666   :  { %v2817_v24 = vadd.f32 %v2753_v29, %v2721_v38  ;;  %v2896_v7 = vmul.f32 0.5, %v2801_v43  ;;  %v4543_v0 = vpop.eup %4542  ;;  %v2852_v13 = vadd.f32 0.5, %v2844_v33  ;;  %v2951_v23 = vmul.f32 %v4531_v32, %v2846_v14 }
 0x667   :  { %v2821_v22 = vadd.f32 %v2757_v28, %v2725_v40  ;;  %v2897_v54 = vmul.f32 0.5, %v2805_v63  ;;  %v4545_v6 = vpop.eup %4544  ;;  %v2853_v45 = vadd.f32 0.5, %v2845_v15  ;;  %v2952_v4 = vmul.f32 %v4533_v20, %v2847_v3 }
 0x668   :  { %v2898_v34 = vmul.f32 0.5, %v2809_v25  ;;  %4562 = vtanh.f32 %v2894_v16  ;;  %v4547_v53 = vpop.eup %4546  ;;  %v2953_v41 = vmul.f32 %v4535_v21, %v2848_v58  ;;  %v2954_v19 = vmul.f32 %v4537_v36, %v2849_v10 }
 0x669   :  { %v2899_v57 = vmul.f32 0.5, %v2813_v60  ;;  %4564 = vtanh.f32 %v2895_v61  ;;  %v2870_v47 = vmul.f32 0.5, %v4547_v53  ;;  %v2955_v49 = vmul.f32 %v4539_v27, %v2850_v11 }
 0x66a   :  { %v4549_v37 = vpop.eup %4548  ;;  %v2900_v38 = vmul.f32 0.5, %v2817_v24  ;;  %4566 = vtanh.f32 %v2896_v7  ;;  %v2956_v42 = vmul.f32 %v4541_v46, %v2851_v52  ;;  %v2901_v40 = vmul.f32 0.5, %v2821_v22 }
 0x66b   :  { %v4551_v51 = vpop.eup %4550  ;;  %v2871_v62 = vmul.f32 0.5, %v4549_v37  ;;  %4568 = vtanh.f32 %v2897_v54  ;;  %v2878_v17 = vadd.f32 0.5, %v2870_v47  ;;  %v2957_v8 = vmul.f32 %v4543_v0, %v2852_v13 }
 0x66c   :  { %v4553_v18 = vpop.eup %4552  ;;  %v2872_v26 = vmul.f32 0.5, %v4551_v51  ;;  %4570 = vtanh.f32 %v2898_v34  ;;  %v2958_v2 = vmul.f32 %v4545_v6, %v2853_v45  ;;  %v8176_v30 = vrot.slane %v7022_v12, 3 }
 0x66d   :  { %v4555_v5 = vpop.eup %4554  ;;  %v2873_v59 = vmul.f32 0.5, %v4553_v18  ;;  %v2879_v39 = vadd.f32 0.5, %v2871_v62  ;;  %4572 = vtanh.f32 %v2899_v57  ;;  %v8177_v14 = vrot.slane %v7022_v12, 4 }
 0x66e   :  { %v4557_v29 = vpop.eup %4556  ;;  %v2874_v44 = vmul.f32 0.5, %v4555_v5  ;;  %v2880_v32 = vadd.f32 0.5, %v2872_v26  ;;  %v2943_v55 = vmul.f32 %v8176_v30, %v2878_v17  ;;  %4574 = vtanh.f32 %v2900_v38 }
 0x66f   :  { %v4559_v50 = vpop.eup %4558  ;;  %v2875_v20 = vmul.f32 0.5, %v4557_v29  ;;  %v2881_v31 = vadd.f32 0.5, %v2873_v59  ;;  %v2944_v43 = vmul.f32 %v8177_v14, %v2879_v39  ;;  %4576 = vtanh.f32 %v2901_v40 }
 0x670   :  { %v4561_v21 = vpop.eup %4560  ;;  %v2876_v33 = vmul.f32 0.5, %v4559_v50  ;;  %v2882_v28 = vadd.f32 0.5, %v2874_v44  ;;  %v8178_v63 = vrot.slane %v7022_v12, 5  ;;  %v2959_v15 = vadd.f32 %v2951_v23, %v2943_v55 }
 0x671   :  { %v2877_v3 = vmul.f32 0.5, %v4561_v21  ;;  %v2883_v25 = vadd.f32 0.5, %v2875_v20  ;;  %v8179_v16 = vrot.slane %v7022_v12, 6  ;;  %v2960_v58 = vadd.f32 %v2952_v4, %v2944_v43 }
 0x672   :  { %v2945_v36 = vmul.f32 %v8178_v63, %v2880_v32  ;;  %v2884_v10 = vadd.f32 0.5, %v2876_v33  ;;  %v8180_v60 = vrot.slane %v7022_v12, 7  ;;  %4578 = vtanh.f32 %v2959_v15 }
 0x673   :  { %v2946_v27 = vmul.f32 %v8179_v16, %v2881_v31  ;;  %v2885_v11 = vadd.f32 0.5, %v2877_v3  ;;  %v2948_v52 = vmul.f32 %v7022_v12, %v2883_v25  ;;  %4580 = vtanh.f32 %v2960_v58 }
 0x674   :  { %v2947_v61 = vmul.f32 %v8180_v60, %v2882_v28  ;;  %v2961_v46 = vadd.f32 %v2953_v41, %v2945_v36  ;;  %v8181_v7 = vrot.slane %v7022_v12, 1  ;;  %v2991_v23 = vrot.slane %v2960_v58, 7 }
 0x675   :  { %v2962_v24 = vadd.f32 %v2954_v19, %v2946_v27  ;;  %v4563_v22 = vpop.eup %4562  ;;  %v8182_v54 = vrot.slane %v7022_v12, 2  ;;  %v2964_v45 = vadd.f32 %v2956_v42, %v2948_v52  ;;  %v4844_v52 = vld [vmem:[%s7926_s1 + $0x20] ss:$16 sps:$4 sm:$0xff]  }
 0x676   :  { %v2949_v0 = vmul.f32 %v8181_v7, %v2884_v10  ;;  %v2963_v13 = vadd.f32 %v2955_v49, %v2947_v61  ;;  %4582 = vtanh.f32 %v2961_v46  ;;  %v2993_v4 = vrot.slane %v2961_v46, 6  ;;  %v4565_v34 = vpop.eup %4564 }
 0x677   :  { %v2950_v6 = vmul.f32 %v8182_v54, %v2885_v11  ;;  %4584 = vtanh.f32 %v2962_v24  ;;  %v2992_v41 = vsel %vm634_vm5, %v2991_v23, %v2959_v15  ;;  %v2995_v19 = vrot.slane %v2962_v24, 5  ;;  %v4567_v57 = vpop.eup %4566  ;;  %v3043_v24 = vld [vmem:[%s7930_s4] sm:$0x4] }
 0x678   :  { %v2965_v53 = vadd.f32 %v2957_v8, %v2949_v0  ;;  %4586 = vtanh.f32 %v2963_v13  ;;  %v2994_v47 = vsel %vm637_vm6, %v2993_v4, %v2992_v41  ;;  %v2996_v49 = vrot.slane %v2963_v13, 4  ;;  %v4569_v38 = vpop.eup %4568 }
 0x679   :  { %v2966_v37 = vadd.f32 %v2958_v2, %v2950_v6  ;;  %4588 = vtanh.f32 %v2964_v45  ;;  %v2998_v51 = vrot.slane %v2964_v45, 3  ;;  %3006 = vst [vmem:[#allocation3 - $0x5] sm:$0xe0] %v2994_v47  ;;  %v4571_v12 = vpop.eup %4570  ;;  %v2910_v17 = vmul.f32 0.5, %v4563_v22  ;;  %v3046_v47 = vld [vmem:[%s7930_s4 + $0x4] sm:$0x4] }
 0x67a   :  { %4590 = vtanh.f32 %v2965_v53  ;;  %v2997_v62 = vsel %vm619_vm0, %v2996_v49, %v2995_v19  ;;  %v3000_v42 = vrot.slane %v2965_v53, 2  ;;  %v4573_v40 = vpop.eup %4572  ;;  %v2911_v59 = vmul.f32 0.5, %v4565_v34 }
 0x67b   :  { %4592 = vtanh.f32 %v2966_v37  ;;  %v2999_v18 = vsel %vm622_vm1, %v2998_v51, %v2997_v62  ;;  %v3002_v26 = vrot.slane %v2966_v37, 1  ;;  %v4575_v8 = vpop.eup %4574  ;;  %v2912_v29 = vmul.f32 0.5, %v4567_v57  ;;  %v3049_v62 = vld [vmem:[%s7930_s4 + $0x8] sm:$0x4] }
 0x67c   :  { %v3001_v5 = vsel %vm625_vm2, %v3000_v42, %v2999_v18  ;;  %v4577_v39 = vpop.eup %4576  ;;  %v2913_v44 = vmul.f32 0.5, %v4569_v38  ;;  %v2914_v32 = vmul.f32 0.5, %v4571_v12  ;;  %v2915_v30 = vmul.f32 0.5, %v4573_v40 }
 0x67d   :  { %v3003_v2 = vsel %vm628_vm3, %v3002_v26, %v3001_v5  ;;  %v2916_v55 = vmul.f32 0.5, %v4575_v8  ;;  %v2918_v50 = vadd.f32 0.5, %v2910_v17  ;;  %v2917_v31 = vmul.f32 0.5, %v4577_v39  ;;  %v3052_v17 = vld [vmem:[%s7930_s4 + $0xc] sm:$0x4] }
 0x67e   :  { %3007 = vst [vmem:[#allocation3 + $0x3] sm:$0x1f] %v3003_v2  ;;  %v2919_v14 = vadd.f32 0.5, %v2911_v59  ;;  %v2920_v21 = vadd.f32 0.5, %v2912_v29  ;;  %v2921_v63 = vadd.f32 0.5, %v2913_v44  ;;  %v2922_v36 = vadd.f32 0.5, %v2914_v32 }
 0x67f   :  { %v4579_v20 = vpop.eup %4578  ;;  %v2923_v25 = vadd.f32 0.5, %v2915_v30  ;;  %v2924_v16 = vadd.f32 0.5, %v2916_v55  ;;  %v2925_v60 = vadd.f32 0.5, %v2917_v31  ;;  %v3055_v8 = vld [vmem:[%s7930_s4 + $0x10] sm:$0x4] }
 0x680   :  { %v4581_v43 = vpop.eup %4580  ;;  %v2975_v33 = vmul.f32 %v4579_v20, %v2918_v50  ;;  %v3058_v29 = vld [vmem:[%s7930_s4 + $0x14] sm:$0x4]  ;;  %v3061_v44 = vld [vmem:[%s7930_s4 + $0x18] sm:$0x4]  ;;  %v3064_v20 = vld [vmem:[%s7930_s4 + $0x1c] sm:$0x4] }
 0x681   :  { %v2976_v15 = vmul.f32 %v4581_v43, %v2919_v14 }
 0x682   :  { %v3033_v58 = vpack.c.bf16 %v2975_v33, %v2975_v33 }
 0x683   :  { %v4583_v28 = vpop.eup %4582  ;;  %v3016_v46 = vrot.slane %v2976_v15, 7  ;;  %v3034_v11 = vpack.c.bf16 %v2976_v15, %v2976_v15  ;;  %v4833_v15 = vld [vmem:[%s7926_s1 + $0x88] ss:$16 sps:$4 sm:$0xff]  }
 0x684   :  { %v4585_v3 = vpop.eup %4584  ;;  %v2977_v27 = vmul.f32 %v4583_v28, %v2920_v21  ;;  %v3044_v22 = vsel %vm7218_vm10, %v3033_v58, %v3043_v24  ;;  %v4825_v28 = vld [vmem:[%s7926_s1 + $0xc8] ss:$16 sps:$4 sm:$0xff]   ;;  %v4838_v58 = vld [vmem:[%s7926_s1 + $0x44] ss:$16 sps:$4 sm:$0xff]  }
 0x685   :  { %v4587_v10 = vpop.eup %4586  ;;  %v2978_v61 = vmul.f32 %v4585_v3, %v2921_v63  ;;  %v3017_v45 = vsel %vm634_vm5, %v3016_v46, %v2975_v33  ;;  %3045 = vst [vmem:[%s7930_s4] sm:$0x4] %v3044_v22  ;;  %v3047_v12 = vsel %vm7218_vm10, %v3034_v11, %v3046_v47  ;;  %v4824_v33 = vld [vmem:[%s7926_s1 + $0xcc] ss:$16 sps:$4 sm:$0xff]   ;;  %v4834_v3 = vld [vmem:[%s7926_s1 + $0x64] ss:$16 sps:$4 sm:$0xff]  }
 0x686   :  { %v4589_v7 = vpop.eup %4588  ;;  %v2979_v0 = vmul.f32 %v4587_v10, %v2922_v36  ;;  %v3018_v13 = vrot.slane %v2977_v27, 6  ;;  %v3035_v23 = vpack.c.bf16 %v2977_v27, %v2977_v27  ;;  %3048 = vst [vmem:[%s7930_s4 + $0x4] sm:$0x4] %v3047_v12  ;;  %v4831_v63 = vld [vmem:[%s7926_s1 + $0x8c] ss:$16 sps:$4 sm:$0xff]  }
 0x687   :  { %v4591_v54 = vpop.eup %4590  ;;  %v2980_v6 = vmul.f32 %v4589_v7, %v2923_v25  ;;  %v3020_v4 = vrot.slane %v2978_v61, 5  ;;  %v3036_v34 = vpack.c.bf16 %v2978_v61, %v2978_v61  ;;  %v4832_v36 = vld [vmem:[%s7926_s1 + $0x80] ss:$16 sps:$4 sm:$0xff]   ;;  %v4835_v25 = vld [vmem:[%s7926_s1 + $0x6c] ss:$16 sps:$4 sm:$0xff]  }
 0x688   :  { %v4593_v53 = vpop.eup %4592  ;;  %v2981_v41 = vmul.f32 %v4591_v54, %v2924_v16  ;;  %v3019_v19 = vsel %vm637_vm6, %v3018_v13, %v3017_v45  ;;  %v3021_v57 = vrot.slane %v2979_v0, 4  ;;  %v3037_v37 = vpack.c.bf16 %v2979_v0, %v2979_v0  ;;  %v4836_v16 = vld [vmem:[%s7926_s1 + $0x60] ss:$16 sps:$4 sm:$0xff]   ;;  %v4837_v27 = vld [vmem:[%s7926_s1 + $0x68] ss:$16 sps:$4 sm:$0xff]  }
 0x689   :  { %v2982_v49 = vmul.f32 %v4593_v53, %v2925_v60  ;;  %v3023_v38 = vrot.slane %v2980_v6, 3  ;;  %v3038_v51 = vpack.c.bf16 %v2980_v6, %v2980_v6  ;;  %3031 = vst [vmem:[#allocation2 - $0x5] sm:$0xe0] %v3019_v19  ;;  %v3050_v26 = vsel %vm7218_vm10, %v3035_v23, %v3049_v62  ;;  %v4839_v10 = vld [vmem:[%s7926_s1 + $0x4c] ss:$16 sps:$4 sm:$0xff]  }
 0x68a   :  { %v3022_v42 = vsel %vm619_vm0, %v3021_v57, %v3020_v4  ;;  %v3025_v40 = vrot.slane %v2981_v41, 2  ;;  %v3039_v18 = vpack.c.bf16 %v2981_v41, %v2981_v41  ;;  %3051 = vst [vmem:[%s7930_s4 + $0x8] sm:$0x4] %v3050_v26  ;;  %v3053_v2 = vsel %vm7218_vm10, %v3036_v34, %v3052_v17  ;;  %v4840_v60 = vld [vmem:[%s7926_s1 + $0x40] ss:$16 sps:$4 sm:$0xff]   ;;  %v7376_v22 = vld [vmem:[#allocation3] sm:$0xff] }
 0x68b   :  { %v3024_v5 = vsel %vm622_vm1, %v3023_v38, %v3022_v42  ;;  %v3027_v59 = vrot.slane %v2982_v49, 1  ;;  %v3040_v39 = vpack.c.bf16 %v2982_v49, %v2982_v49  ;;  %3054 = vst [vmem:[%s7930_s4 + $0xc] sm:$0x4] %v3053_v2  ;;  %v3056_v30 = vsel %vm7218_vm10, %v3037_v37, %v3055_v8  ;;  %v4841_v61 = vld [vmem:[%s7926_s1 + $0x48] ss:$16 sps:$4 sm:$0xff]  }
 0x68c   :  { %v3026_v32 = vsel %vm625_vm2, %v3025_v40, %v3024_v5  ;;  %v3059_v55 = vsel %vm7218_vm10, %v3038_v51, %v3058_v29  ;;  %v3062_v50 = vsel %vm7218_vm10, %v3039_v18, %v3061_v44  ;;  %3057 = vst [vmem:[%s7930_s4 + $0x10] sm:$0x4] %v3056_v30  ;;  %v4842_v46 = vld [vmem:[%s7926_s1 + $0x24] ss:$16 sps:$4 sm:$0xff]   ;;  %v4843_v11 = vld [vmem:[%s7926_s1 + $0x2c] ss:$16 sps:$4 sm:$0xff]  }
 0x68d   :  { %v3028_v31 = vsel %vm628_vm3, %v3027_v59, %v3026_v32  ;;  %3060 = vst [vmem:[%s7930_s4 + $0x14] sm:$0x4] %v3059_v55  ;;  %3063 = vst [vmem:[%s7930_s4 + $0x18] sm:$0x4] %v3062_v50  ;;  %v3065_v14 = vsel %vm7218_vm10, %v3040_v39, %v3064_v20  ;;  %v4845_v24 = vld [vmem:[%s7926_s1 + $0x28] ss:$16 sps:$4 sm:$0xff]  }
 0x68e   :  { %3066 = vst [vmem:[%s7930_s4 + $0x1c] sm:$0x4] %v3065_v14  ;;  %3032 = vst [vmem:[#allocation2 + $0x3] sm:$0x1f] %v3028_v31  ;;  %v4846_v7 = vld [vmem:[%s7926_s1 + $0x4] ss:$16 sps:$4 sm:$0xff]  }
 0x68f   :  { %v4847_v0 = vld [vmem:[%s7926_s1 + $0xc] ss:$16 sps:$4 sm:$0xff]   ;;  %v4848_v13 = vld [vmem:[%s7926_s1] ss:$16 sps:$4 sm:$0xff]   ;;  %v4849_v23 = vld [vmem:[%s7926_s1 + $0x8] ss:$16 sps:$4 sm:$0xff]  }
 0x690   :  { %v7381_v54 = vld [vmem:[%s7928_s0] sm:$0x88]  ;;  %v7386_v6 = vld [vmem:[%s7928_s0 + $0x10] sm:$0x88]  ;;  %v7426_v51 = vld [vmem:[%s7928_s0 + $0x8] sm:$0x88] }
 0x691   :  { %v7391_v45 = vld [vmem:[%s7928_s0 + $0x20] sm:$0x88]  ;;  %v7396_v4 = vld [vmem:[%s7928_s0 + $0x30] sm:$0x88]  ;;  %v7431_v12 = vld [vmem:[%s7928_s0 + $0x68] sm:$0x88]  ;;  %v3167_v17 = vunpack.c.l.bf16 %v7381_v54  ;;  %v3171_v8 = vunpack.c.l.bf16 %v7386_v6  ;;  %v3169_v50 = vunpack.c.l.bf16 %v7426_v51 }
 0x692   :  { %v7401_v34 = vld [vmem:[%s7928_s0 + $0x40] sm:$0x88]  ;;  %v7406_v53 = vld [vmem:[%s7928_s0 + $0x50] sm:$0x88]  ;;  %v7438_v40 = vld [vmem:[%s7928_s0 + $0x18] sm:$0x88]  ;;  %v3175_v5 = vunpack.c.l.bf16 %v7391_v45  ;;  %v3179_v59 = vunpack.c.l.bf16 %v7396_v4  ;;  %v3193_v14 = vunpack.c.l.bf16 %v7431_v12 }
 0x693   :  { %v7411_v41 = vld [vmem:[%s7928_s0 + $0x60] sm:$0x88]  ;;  %v7417_v57 = vld [vmem:[%s7928_s0 + $0x70] sm:$0x88]  ;;  %v7443_v18 = vld [vmem:[%s7928_s0 + $0x28] sm:$0x88]  ;;  %v3183_v44 = vunpack.c.l.bf16 %v7401_v34  ;;  %v3187_v32 = vunpack.c.l.bf16 %v7406_v53  ;;  %v3173_v20 = vunpack.c.l.bf16 %v7438_v40  ;;  %v3184_v19 = vunpack.c.h.bf16 %v7401_v34 }
 0x694   :  { %v7448_v26 = vld [vmem:[%s7928_s0 + $0x38] sm:$0x88]  ;;  %v7457_v39 = vld [vmem:[%s7928_s0 + $0x48] sm:$0x88]  ;;  %v3191_v30 = vunpack.c.l.bf16 %v7411_v41  ;;  %v3195_v55 = vunpack.c.l.bf16 %v7417_v57  ;;  %v3177_v31 = vunpack.c.l.bf16 %v7443_v18  ;;  %v3194_v34 = vunpack.c.h.bf16 %v7431_v12 }
 0x695   :  { %v3083_v43 = vld [vmem:[#allocation2] sm:$0xff]  ;;  %v7462_v2 = vld [vmem:[%s7928_s0 + $0x58] sm:$0x88] }
 0x696   :  { %v3084_v21 = vpack.c.bf16 %v3083_v43, %v3083_v43  ;;  %v7467_v29 = vld [vmem:[%s7928_s0 + $0x78] sm:$0x88]  ;;  %v3181_v43 = vunpack.c.l.bf16 %v7448_v26 }
 0x698   :  { %3118 = vmatmul.mubr.bf16.vlgmr.msra.gmra.mxu0 %v3084_v21  ;;  %3159 = vmatmul.mubr.bf16.vlgmr.msra.gmra.mxu1 %v3084_v21  ;;  %v3185_v21 = vunpack.c.l.bf16 %v7457_v39 }
 0x699   :  { %3560 = vmatpush1.bf16.msra.mxu0 %v6967_v9  ;;  %3601 = vmatpush1.bf16.msra.mxu1 %v6973_v48  ;;  %v4826_v9 = vld [vmem:[%s7926_s1 + $0xa4] ss:$16 sps:$4 sm:$0xff]   ;;  %v4827_v48 = vld [vmem:[%s7926_s1 + $0xac] ss:$16 sps:$4 sm:$0xff]  }
 0x69a   :  { %3561 = vmatprep.subr.bf16.mxu0 %v6979_v35  ;;  %3602 = vmatprep.subr.bf16.mxu1 %v4824_v33  ;;  %v4829_v35 = vld [vmem:[%s7926_s1 + $0xa8] ss:$16 sps:$4 sm:$0xff]   ;;  %v3189_v33 = vunpack.c.l.bf16 %v7462_v2 }
 0x69b   :  { %3591 = vmatprep.mubr.bf16.mxu0 %v8021_v56  ;;  %3632 = vmatprep.mubr.bf16.mxu1 %v8021_v56  ;;  %v4828_v56 = vld [vmem:[%s7926_s1 + $0xa0] ss:$16 sps:$4 sm:$0xff]  }
 0x69d   :  { %3562 = vmatpush1.bf16.msra.mxu0 %v6988_v1  ;;  %3603 = vmatpush1.bf16.msra.mxu1 %v4825_v28  ;;  %v4830_v1 = vld [vmem:[%s7926_s1 + $0x84] ss:$16 sps:$4 sm:$0xff]   ;;  %v3197_v28 = vunpack.c.l.bf16 %v7467_v29 }
 0x69e   :  { %3563 = vmatprep.subr.bf16.mxu0 %v4826_v9  ;;  %3604 = vmatprep.subr.bf16.mxu1 %v4827_v48 }
 0x6a1   :  { %3564 = vmatpush1.bf16.msra.mxu0 %v4828_v56  ;;  %3605 = vmatpush1.bf16.msra.mxu1 %v4829_v35  ;;  %v3168_v56 = vunpack.c.h.bf16 %v7381_v54  ;;  %v3172_v35 = vunpack.c.h.bf16 %v7386_v6 }
 0x6a2   :  { %3565 = vmatprep.subr.bf16.mxu0 %v4830_v1  ;;  %3606 = vmatprep.subr.bf16.mxu1 %v4831_v63  ;;  %v3176_v1 = vunpack.c.h.bf16 %v7391_v45  ;;  %v3192_v63 = vunpack.c.h.bf16 %v7411_v41  ;;  %v3198_v41 = vunpack.c.h.bf16 %v7467_v29 }
 0x6a5   :  { %3566 = vmatpush1.bf16.msra.mxu0 %v4832_v36  ;;  %3607 = vmatpush1.bf16.msra.mxu1 %v4833_v15 }
 0x6a6   :  { %3567 = vmatprep.subr.bf16.mxu0 %v4834_v3  ;;  %3608 = vmatprep.subr.bf16.mxu1 %v4835_v25 }
 0x6a9   :  { %3568 = vmatpush1.bf16.msra.mxu0 %v4836_v16  ;;  %3609 = vmatpush1.bf16.msra.mxu1 %v4837_v27 }
 0x6aa   :  { %3569 = vmatprep.subr.bf16.mxu0 %v4838_v58  ;;  %3610 = vmatprep.subr.bf16.mxu1 %v4839_v10 }
 0x6ad   :  { %3570 = vmatpush1.bf16.msra.mxu0 %v4840_v60  ;;  %3611 = vmatpush1.bf16.msra.mxu1 %v4841_v61 }
 0x6ae   :  { %3571 = vmatprep.subr.bf16.mxu0 %v4842_v46  ;;  %3612 = vmatprep.subr.bf16.mxu1 %v4843_v11 }
 0x6b1   :  { %3572 = vmatpush1.bf16.msra.mxu0 %v4844_v52  ;;  %3613 = vmatpush1.bf16.msra.mxu1 %v4845_v24 }
 0x6b2   :  { %3573 = vmatprep.subr.bf16.mxu0 %v4846_v7  ;;  %3614 = vmatprep.subr.bf16.mxu1 %v4847_v0 }
 0x6b5   :  { %3574 = vmatpush1.bf16.msra.mxu0 %v4848_v13  ;;  %3615 = vmatpush1.bf16.msra.mxu1 %v4849_v23  ;;  %v3180_v23 = vunpack.c.h.bf16 %v7396_v4 }
 0x758   :  { %v3119_v9 = vpop.f32.mrf.mxu0  ;;  %v7481_v48 = vpop.f32.mrf.mxu1 }
 0x759   :  { %v3203_v36 = vrot.slane %v3119_v9, 2  ;;  %v3207_v15 = vrot.slane %v3119_v9, 3  ;;  %v3211_v3 = vrot.slane %v3119_v9, 4  ;;  %v3215_v25 = vrot.slane %v3119_v9, 5 }
 0x75a   :  { %v3219_v16 = vrot.slane %v3119_v9, 6  ;;  %v3223_v27 = vrot.slane %v3119_v9, 7  ;;  %v3227_v58 = vrot.slane %v3119_v9, 1  ;;  %v3287_v10 = vadd.f32 %v3191_v30, %v3119_v9  ;;  %v7487_v60 = vpop.f32.mrf.mxu0  ;;  %v7489_v61 = vpop.f32.mrf.mxu1 }
 0x75b   :  { %v3263_v46 = vadd.f32 %v3203_v36, %v3167_v17  ;;  %v3267_v11 = vadd.f32 %v3207_v15, %v3171_v8  ;;  %v3271_v52 = vadd.f32 %v3211_v3, %v3175_v5  ;;  %v3275_v24 = vadd.f32 %v3215_v25, %v3179_v59 }
 0x75c   :  { %v3279_v7 = vadd.f32 %v3219_v16, %v3183_v44  ;;  %v3283_v0 = vadd.f32 %v3223_v27, %v3187_v32  ;;  %v3301_v13 = vmul.f32 0.5, %v3287_v10  ;;  %v3123_v42 = vpop.f32.mrf.mxu0  ;;  %v3164_v62 = vpop.f32.mrf.mxu1  ;;  %v3291_v38 = vadd.f32 %v3227_v58, %v3195_v55 }
 0x75d   :  { %v3295_v49 = vmul.f32 0.5, %v3263_v46  ;;  %v3296_v47 = vmul.f32 0.5, %v3267_v11  ;;  %v3297_v37 = vmul.f32 0.5, %v3271_v52  ;;  %v3298_v30 = vmul.f32 0.5, %v3275_v24 }
 0x75e   :  { %v3299_v9 = vmul.f32 0.5, %v3279_v7  ;;  %4594 = vtanh.f32 %v3301_v13  ;;  %v3124_v17 = vpop.f32.mrf.mxu0  ;;  %v3165_v8 = vpop.f32.mrf.mxu1  ;;  %v3205_v5 = vrot.slane %v7481_v48, 2  ;;  %v3209_v59 = vrot.slane %v7481_v48, 3 }
 0x75f   :  { %4596 = vtanh.f32 %v3295_v49  ;;  %v3213_v4 = vrot.slane %v7481_v48, 4  ;;  %v3300_v42 = vmul.f32 0.5, %v3283_v0  ;;  %v3188_v62 = vunpack.c.h.bf16 %v7406_v53 }
 0x760   :  { %4598 = vtanh.f32 %v3296_v47  ;;  %v3196_v44 = vunpack.c.h.bf16 %v7417_v57  ;;  %v3302_v32 = vmul.f32 0.5, %v3291_v38  ;;  %v3217_v55 = vrot.slane %v7481_v48, 5 }
 0x761   :  { %4600 = vtanh.f32 %v3297_v37  ;;  %v3221_v49 = vrot.slane %v7481_v48, 6  ;;  %v3265_v36 = vadd.f32 %v3205_v5, %v3169_v50  ;;  %v3170_v15 = vunpack.c.h.bf16 %v7426_v51 }
 0x762   :  { %4602 = vtanh.f32 %v3298_v30  ;;  %v3225_v3 = vrot.slane %v7481_v48, 7  ;;  %v3269_v47 = vadd.f32 %v3209_v59, %v3173_v20  ;;  %v3273_v25 = vadd.f32 %v3213_v4, %v3177_v31 }
 0x763   :  { %4604 = vtanh.f32 %v3299_v9  ;;  %v3204_v53 = vrot.slane %v7487_v60, 2  ;;  %v3208_v57 = vrot.slane %v7487_v60, 3  ;;  %v3212_v37 = vrot.slane %v7487_v60, 4 }
 0x764   :  { %4606 = vtanh.f32 %v3300_v42  ;;  %v3229_v38 = vrot.slane %v7481_v48, 1  ;;  %v3277_v50 = vadd.f32 %v3217_v55, %v3181_v43  ;;  %v3216_v16 = vrot.slane %v7487_v60, 5 }
 0x765   :  { %4608 = vtanh.f32 %v3302_v32  ;;  %v3281_v27 = vadd.f32 %v3221_v49, %v3185_v21  ;;  %v3220_v20 = vrot.slane %v7487_v60, 6  ;;  %v3264_v31 = vadd.f32 %v3204_v53, %v3168_v56 }
 0x766   :  { %4610 = vtanh.f32 %v3265_v36  ;;  %v3285_v58 = vadd.f32 %v3225_v3, %v3189_v33  ;;  %v3224_v10 = vrot.slane %v7487_v60, 7  ;;  %v3268_v43 = vadd.f32 %v3208_v57, %v3172_v35 }
 0x767   :  { %4612 = vtanh.f32 %v3269_v47  ;;  %v3289_v46 = vadd.f32 %v3193_v14, %v7481_v48  ;;  %v3228_v21 = vrot.slane %v7487_v60, 1  ;;  %v3272_v54 = vadd.f32 %v3212_v37, %v3176_v1 }
 0x768   :  { %4614 = vtanh.f32 %v3273_v25  ;;  %v3293_v56 = vadd.f32 %v3229_v38, %v3197_v28  ;;  %v3276_v33 = vadd.f32 %v3216_v16, %v3180_v23  ;;  %v3174_v11 = vunpack.c.h.bf16 %v7438_v40 }
 0x769   :  { %4616 = vtanh.f32 %v3277_v50  ;;  %v3280_v6 = vadd.f32 %v3220_v20, %v3184_v19  ;;  %v3327_v35 = vmul.f32 0.5, %v3264_v31  ;;  %v3178_v52 = vunpack.c.h.bf16 %v7443_v18 }
 0x76a   :  { %4618 = vtanh.f32 %v3281_v27  ;;  %v3284_v14 = vadd.f32 %v3224_v10, %v3188_v62  ;;  %v3288_v45 = vadd.f32 %v3192_v63, %v7487_v60  ;;  %v3328_v48 = vmul.f32 0.5, %v3268_v43 }
 0x76b   :  { %v4595_v24 = vpop.eup %4594  ;;  %4620 = vtanh.f32 %v3285_v58  ;;  %v3292_v28 = vadd.f32 %v3228_v21, %v3196_v44  ;;  %v3329_v7 = vmul.f32 0.5, %v3272_v54  ;;  %v3182_v0 = vunpack.c.h.bf16 %v7448_v26 }
 0x76c   :  { %v4597_v1 = vpop.eup %4596  ;;  %4622 = vtanh.f32 %v3289_v46  ;;  %v3330_v19 = vmul.f32 0.5, %v3276_v33  ;;  %v3186_v13 = vunpack.c.h.bf16 %v7457_v39  ;;  %v3190_v18 = vunpack.c.h.bf16 %v7462_v2 }
 0x76d   :  { %v4599_v40 = vpop.eup %4598  ;;  %4624 = vtanh.f32 %v3293_v56  ;;  %v3331_v30 = vmul.f32 0.5, %v3280_v6  ;;  %v3206_v63 = vrot.slane %v7489_v61, 2  ;;  %v3332_v9 = vmul.f32 0.5, %v3284_v14 }
 0x76e   :  { %v4601_v23 = vpop.eup %4600  ;;  %4626 = vtanh.f32 %v3327_v35  ;;  %v3333_v17 = vmul.f32 0.5, %v3288_v45  ;;  %v3210_v26 = vrot.slane %v7489_v61, 3  ;;  %v3311_v5 = vmul.f32 0.5, %v4597_v1 }
 0x76f   :  { %v4603_v60 = vpop.eup %4602  ;;  %4628 = vtanh.f32 %v3328_v48  ;;  %v3334_v59 = vmul.f32 0.5, %v3292_v28  ;;  %v3214_v39 = vrot.slane %v7489_v61, 4  ;;  %v3317_v4 = vmul.f32 0.5, %v4595_v24 }
 0x770   :  { %v4605_v8 = vpop.eup %4604  ;;  %4630 = vtanh.f32 %v3329_v7  ;;  %v3218_v42 = vrot.slane %v7489_v61, 5  ;;  %v3222_v29 = vrot.slane %v7489_v61, 6  ;;  %v3312_v44 = vmul.f32 0.5, %v4599_v40 }
 0x771   :  { %v4607_v2 = vpop.eup %4606  ;;  %4632 = vtanh.f32 %v3330_v19  ;;  %v3226_v32 = vrot.slane %v7489_v61, 7  ;;  %v3266_v55 = vadd.f32 %v3206_v63, %v3170_v15  ;;  %v3313_v36 = vmul.f32 0.5, %v4601_v23 }
 0x772   :  { %v4609_v62 = vpop.eup %4608  ;;  %4634 = vtanh.f32 %v3331_v30  ;;  %v3314_v3 = vmul.f32 0.5, %v4603_v60  ;;  %v3270_v47 = vadd.f32 %v3210_v26, %v3174_v11  ;;  %v3315_v53 = vmul.f32 0.5, %v4605_v8 }
 0x773   :  { %v4611_v49 = vpop.eup %4610  ;;  %4636 = vtanh.f32 %v3332_v9  ;;  %v3319_v57 = vadd.f32 0.5, %v3311_v5  ;;  %v3274_v37 = vadd.f32 %v3214_v39, %v3178_v52  ;;  %v3316_v50 = vmul.f32 0.5, %v4607_v2 }
 0x774   :  { %v4613_v25 = vpop.eup %4612  ;;  %4638 = vtanh.f32 %v3333_v17  ;;  %v3230_v16 = vrot.slane %v7489_v61, 1  ;;  %v3278_v27 = vadd.f32 %v3218_v42, %v3182_v0  ;;  %v3318_v31 = vmul.f32 0.5, %v4609_v62 }
 0x775   :  { %v4615_v38 = vpop.eup %4614  ;;  %4640 = vtanh.f32 %v3334_v59  ;;  %v3320_v51 = vadd.f32 0.5, %v3312_v44  ;;  %v3282_v15 = vadd.f32 %v3222_v29, %v3186_v13  ;;  %v3367_v58 = vmul.f32 0.5, %v3266_v55 }
 0x776   :  { %v4617_v20 = vpop.eup %4616  ;;  %v3321_v43 = vadd.f32 0.5, %v3313_v36  ;;  %v3322_v46 = vadd.f32 0.5, %v3314_v3  ;;  %v3286_v21 = vadd.f32 %v3226_v32, %v3190_v18  ;;  %v3368_v54 = vmul.f32 0.5, %v3270_v47 }
 0x777   :  { %v4619_v10 = vpop.eup %4618  ;;  %v3323_v33 = vadd.f32 0.5, %v3315_v53  ;;  %v3325_v11 = vadd.f32 0.5, %v3317_v4  ;;  %v3290_v6 = vadd.f32 %v3194_v34, %v7489_v61  ;;  %v3369_v35 = vmul.f32 0.5, %v3274_v37 }
 0x778   :  { %v4621_v56 = vpop.eup %4620  ;;  %v3324_v24 = vadd.f32 0.5, %v3316_v50  ;;  %v3424_v14 = vmul.f32 %v4611_v49, %v3319_v57  ;;  %v3294_v45 = vadd.f32 %v3230_v16, %v3198_v41  ;;  %v3370_v48 = vmul.f32 0.5, %v3278_v27 }
 0x779   :  { %v4623_v52 = vpop.eup %4622  ;;  %v3326_v28 = vadd.f32 0.5, %v3318_v31  ;;  %v3425_v7 = vmul.f32 %v4613_v25, %v3320_v51  ;;  %v3371_v0 = vmul.f32 0.5, %v3282_v15  ;;  %4642 = vtanh.f32 %v3367_v58 }
 0x77a   :  { %v4625_v1 = vpop.eup %4624  ;;  %v3426_v19 = vmul.f32 %v4615_v38, %v3321_v43  ;;  %v3427_v13 = vmul.f32 %v4617_v20, %v3322_v46  ;;  %v3372_v18 = vmul.f32 0.5, %v3286_v21  ;;  %4644 = vtanh.f32 %v3368_v54 }
 0x77b   :  { %v4627_v40 = vpop.eup %4626  ;;  %v3428_v12 = vmul.f32 %v4619_v10, %v3323_v33  ;;  %v3373_v61 = vmul.f32 0.5, %v3290_v6  ;;  %4646 = vtanh.f32 %v3369_v35  ;;  %v3429_v60 = vmul.f32 %v4621_v56, %v3324_v24 }
 0x77c   :  { %v4629_v23 = vpop.eup %4628  ;;  %v3343_v30 = vmul.f32 0.5, %v4627_v40  ;;  %v3374_v41 = vmul.f32 0.5, %v3294_v45  ;;  %4648 = vtanh.f32 %v3370_v48  ;;  %v3430_v8 = vmul.f32 %v4623_v52, %v3325_v11 }
 0x77d   :  { %v4631_v34 = vpop.eup %4630  ;;  %v3344_v63 = vmul.f32 0.5, %v4629_v23  ;;  %4650 = vtanh.f32 %v3371_v0  ;;  %v3431_v2 = vmul.f32 %v4625_v1, %v3326_v28  ;;  %v8185_v62 = vrot.slane %v7376_v22, 2 }
 0x77e   :  { %v4633_v9 = vpop.eup %4632  ;;  %v3345_v17 = vmul.f32 0.5, %v4631_v34  ;;  %v3351_v26 = vadd.f32 0.5, %v3343_v30  ;;  %4652 = vtanh.f32 %v3372_v18  ;;  %v8186_v36 = vrot.slane %v7376_v22, 3 }
 0x77f   :  { %v4635_v5 = vpop.eup %4634  ;;  %v3346_v59 = vmul.f32 0.5, %v4633_v9  ;;  %v3352_v39 = vadd.f32 0.5, %v3344_v63  ;;  %4654 = vtanh.f32 %v3373_v61  ;;  %v8187_v57 = vrot.slane %v7376_v22, 4 }
 0x780   :  { %v4637_v4 = vpop.eup %4636  ;;  %v3347_v42 = vmul.f32 0.5, %v4635_v5  ;;  %v3353_v29 = vadd.f32 0.5, %v3345_v17  ;;  %v3416_v44 = vmul.f32 %v8185_v62, %v3351_v26  ;;  %4656 = vtanh.f32 %v3374_v41 }
 0x781   :  { %v4639_v32 = vpop.eup %4638  ;;  %v3348_v55 = vmul.f32 0.5, %v4637_v4  ;;  %v3354_v49 = vadd.f32 0.5, %v3346_v59  ;;  %v3417_v3 = vmul.f32 %v8186_v36, %v3352_v39  ;;  %v8188_v27 = vrot.slane %v7376_v22, 5 }
 0x782   :  { %v4641_v47 = vpop.eup %4640  ;;  %v3349_v25 = vmul.f32 0.5, %v4639_v32  ;;  %v3355_v53 = vadd.f32 0.5, %v3347_v42  ;;  %v3418_v37 = vmul.f32 %v8187_v57, %v3353_v29  ;;  %v3432_v38 = vadd.f32 %v3424_v14, %v3416_v44 }
 0x783   :  { %v3350_v50 = vmul.f32 0.5, %v4641_v47  ;;  %v3356_v16 = vadd.f32 0.5, %v3348_v55  ;;  %v3419_v20 = vmul.f32 %v8188_v27, %v3354_v49  ;;  %v3433_v31 = vadd.f32 %v3425_v7, %v3417_v3 }
 0x784   :  { %v3357_v51 = vadd.f32 0.5, %v3349_v25  ;;  %v8189_v15 = vrot.slane %v7376_v22, 6  ;;  %v3434_v10 = vadd.f32 %v3426_v19, %v3418_v37  ;;  %4658 = vtanh.f32 %v3432_v38  ;;  %v3517_v25 = vld [vmem:[%s7930_s4] sm:$0x8] }
 0x785   :  { %v3358_v43 = vadd.f32 0.5, %v3350_v50  ;;  %v8190_v46 = vrot.slane %v7376_v22, 7  ;;  %v3435_v54 = vadd.f32 %v3427_v13, %v3419_v20  ;;  %4660 = vtanh.f32 %v3433_v31 }
 0x786   :  { %v3420_v58 = vmul.f32 %v8189_v15, %v3355_v53  ;;  %v3422_v56 = vmul.f32 %v7376_v22, %v3357_v51  ;;  %4662 = vtanh.f32 %v3434_v10  ;;  %v3464_v11 = vrot.slane %v3433_v31, 7  ;;  %v4643_v6 = vpop.eup %4642 }
 0x787   :  { %v3421_v21 = vmul.f32 %v8190_v46, %v3356_v16  ;;  %v8191_v35 = vrot.slane %v7376_v22, 1  ;;  %4664 = vtanh.f32 %v3435_v54  ;;  %v3466_v14 = vrot.slane %v3434_v10, 6  ;;  %v4645_v45 = vpop.eup %4644 }
 0x788   :  { %v3436_v33 = vadd.f32 %v3428_v12, %v3420_v58  ;;  %v3438_v48 = vadd.f32 %v3430_v8, %v3422_v56  ;;  %v3465_v1 = vsel %vm637_vm6, %v3464_v11, %v3432_v38  ;;  %v3467_v28 = vrot.slane %v3435_v54, 5  ;;  %v4647_v7 = vpop.eup %4646  ;;  %v3520_v58 = vld [vmem:[%s7930_s4 + $0x4] sm:$0x8] }
 0x789   :  { %v3423_v52 = vmul.f32 %v8191_v35, %v3358_v43  ;;  %v3437_v24 = vadd.f32 %v3429_v60, %v3421_v21  ;;  %3479 = vst [vmem:[#allocation3 - $0x6] sm:$0xc0] %v3465_v1  ;;  %v4649_v19 = vpop.eup %4648  ;;  %v3383_v63 = vmul.f32 0.5, %v4643_v6  ;;  %v3384_v9 = vmul.f32 0.5, %v4645_v45 }
 0x78a   :  { %4666 = vtanh.f32 %v3436_v33  ;;  %v3469_v40 = vrot.slane %v3436_v33, 4  ;;  %v3468_v13 = vsel %vm619_vm0, %v3467_v28, %v3466_v14  ;;  %v4651_v18 = vpop.eup %4650  ;;  %v3473_v30 = vrot.slane %v3438_v48, 2  ;;  %v3526_v28 = vld [vmem:[%s7930_s4 + $0xc] sm:$0x8] }
 0x78b   :  { %v3439_v0 = vadd.f32 %v3431_v2, %v3423_v52  ;;  %4668 = vtanh.f32 %v3437_v24  ;;  %v3471_v22 = vrot.slane %v3437_v24, 3  ;;  %v4653_v12 = vpop.eup %4652  ;;  %v3385_v8 = vmul.f32 0.5, %v4647_v7  ;;  %v3523_v52 = vld [vmem:[%s7930_s4 + $0x8] sm:$0x8]  ;;  %v3529_v7 = vld [vmem:[%s7930_s4 + $0x10] sm:$0x8] }
 0x78c   :  { %4670 = vtanh.f32 %v3438_v48  ;;  %v3470_v23 = vsel %vm622_vm1, %v3469_v40, %v3468_v13  ;;  %v4655_v60 = vpop.eup %4654  ;;  %v3386_v5 = vmul.f32 0.5, %v4649_v19  ;;  %v3387_v59 = vmul.f32 0.5, %v4651_v18  ;;  %v3535_v18 = vld [vmem:[%s7930_s4 + $0x18] sm:$0x8] }
 0x78d   :  { %4672 = vtanh.f32 %v3439_v0  ;;  %v3472_v61 = vsel %vm625_vm2, %v3471_v22, %v3470_v23  ;;  %v3475_v34 = vrot.slane %v3439_v0, 1  ;;  %v4657_v17 = vpop.eup %4656  ;;  %v3388_v39 = vmul.f32 0.5, %v4653_v12  ;;  %v3532_v22 = vld [vmem:[%s7930_s4 + $0x14] sm:$0x8] }
 0x78e   :  { %v3474_v41 = vsel %vm628_vm3, %v3473_v30, %v3472_v61  ;;  %v3389_v2 = vmul.f32 0.5, %v4655_v60  ;;  %v3391_v4 = vadd.f32 0.5, %v3383_v63  ;;  %v3390_v29 = vmul.f32 0.5, %v4657_v17 }
 0x78f   :  { %v3476_v26 = vsel %vm631_vm4, %v3475_v34, %v3474_v41  ;;  %v3392_v62 = vadd.f32 0.5, %v3384_v9  ;;  %v3393_v32 = vadd.f32 0.5, %v3385_v8  ;;  %v3394_v36 = vadd.f32 0.5, %v3386_v5  ;;  %v3538_v34 = vld [vmem:[%s7930_s4 + $0x1c] sm:$0x8] }
 0x790   :  { %3480 = vst [vmem:[#allocation3 + $0x2] sm:$0x3f] %v3476_v26  ;;  %v3395_v3 = vadd.f32 0.5, %v3387_v59  ;;  %v3396_v57 = vadd.f32 0.5, %v3388_v39  ;;  %v3397_v37 = vadd.f32 0.5, %v3389_v2  ;;  %v3398_v27 = vadd.f32 0.5, %v3390_v29 }
 0x791   :  { %v4659_v42 = vpop.eup %4658  ;;  %v7651_v29 = vld [vmem:[%s7928_s0] sm:$0x88] }
 0x792   :  { %v4661_v44 = vpop.eup %4660  ;;  %v3448_v55 = vmul.f32 %v4659_v42, %v3391_v4  ;;  %v3641_v15 = vunpack.c.l.bf16 %v7651_v29 }
 0x793   :  { %v4663_v49 = vpop.eup %4662  ;;  %v3449_v47 = vmul.f32 %v4661_v44, %v3392_v62  ;;  %v7656_v62 = vld [vmem:[%s7928_s0 + $0x10] sm:$0x88]  ;;  %v7661_v44 = vld [vmem:[%s7928_s0 + $0x20] sm:$0x88] }
 0x794   :  { %v4665_v53 = vpop.eup %4664  ;;  %v3450_v38 = vmul.f32 %v4663_v49, %v3393_v32  ;;  %v3506_v50 = vpack.c.bf16 %v3448_v55, %v3448_v55  ;;  %v7666_v32 = vld [vmem:[%s7928_s0 + $0x30] sm:$0x88] }
 0x795   :  { %v3451_v20 = vmul.f32 %v4665_v53, %v3394_v36  ;;  %v3489_v31 = vrot.slane %v3449_v47, 7  ;;  %v3507_v51 = vpack.c.bf16 %v3449_v47, %v3449_v47  ;;  %v7676_v49 = vld [vmem:[%s7928_s0 + $0x50] sm:$0x88]  ;;  %v7681_v36 = vld [vmem:[%s7928_s0 + $0x60] sm:$0x88] }
 0x796   :  { %v3491_v46 = vrot.slane %v3450_v38, 6  ;;  %v3508_v21 = vpack.c.bf16 %v3450_v38, %v3450_v38  ;;  %v3518_v54 = vsel %vm7575_vm12, %v3506_v50, %v3517_v25  ;;  %v7687_v47 = vld [vmem:[%s7928_s0 + $0x70] sm:$0x88]  ;;  %v7696_v38 = vld [vmem:[%s7928_s0 + $0x8] sm:$0x88] }
 0x797   :  { %v4667_v16 = vpop.eup %4666  ;;  %v3490_v11 = vsel %vm637_vm6, %v3489_v31, %v3448_v55  ;;  %v3492_v6 = vrot.slane %v3451_v20, 5  ;;  %v3509_v35 = vpack.c.bf16 %v3451_v20, %v3451_v20  ;;  %3519 = vst [vmem:[%s7930_s4] sm:$0x8] %v3518_v54  ;;  %v3521_v1 = vsel %vm7575_vm12, %v3507_v51, %v3520_v58  ;;  %v7646_v42 = vld [vmem:[#allocation3] sm:$0xff]  ;;  %v7671_v55 = vld [vmem:[%s7928_s0 + $0x40] sm:$0x88] }
 0x798   :  { %v4669_v10 = vpop.eup %4668  ;;  %v3452_v43 = vmul.f32 %v4667_v16, %v3395_v3  ;;  %3504 = vst [vmem:[#allocation2 - $0x6] sm:$0xc0] %v3490_v11  ;;  %3522 = vst [vmem:[%s7930_s4 + $0x4] sm:$0x8] %v3521_v1  ;;  %v3524_v61 = vsel %vm7575_vm12, %v3508_v21, %v3523_v52  ;;  %v7701_v50 = vld [vmem:[%s7928_s0 + $0x78] sm:$0x88]  ;;  %v3645_v58 = vunpack.c.l.bf16 %v7656_v62  ;;  %v3665_v11 = vunpack.c.l.bf16 %v7681_v36 }
 0x799   :  { %v4671_v56 = vpop.eup %4670  ;;  %v3453_v33 = vmul.f32 %v4669_v10, %v3396_v57  ;;  %v3493_v40 = vsel %vm619_vm0, %v3492_v6, %v3491_v46  ;;  %3525 = vst [vmem:[%s7930_s4 + $0x8] sm:$0x8] %v3524_v61  ;;  %v3527_v9 = vsel %vm7575_vm12, %v3509_v35, %v3526_v28  ;;  %v7708_v20 = vld [vmem:[%s7928_s0 + $0x18] sm:$0x88]  ;;  %v7713_v31 = vld [vmem:[%s7928_s0 + $0x28] sm:$0x88]  ;;  %v3649_v10 = vunpack.c.l.bf16 %v7661_v44 }
 0x79a   :  { %v4673_v24 = vpop.eup %4672  ;;  %v3454_v14 = vmul.f32 %v4671_v56, %v3397_v37  ;;  %v3494_v45 = vrot.slane %v3452_v43, 4  ;;  %v3510_v48 = vpack.c.bf16 %v3452_v43, %v3452_v43  ;;  %3528 = vst [vmem:[%s7930_s4 + $0xc] sm:$0x8] %v3527_v9  ;;  %v7718_v51 = vld [vmem:[%s7928_s0 + $0x38] sm:$0x88]  ;;  %v3653_v43 = vunpack.c.l.bf16 %v7666_v32 }
 0x79b   :  { %v3455_v0 = vmul.f32 %v4673_v24, %v3398_v27  ;;  %v3496_v19 = vrot.slane %v3453_v33, 3  ;;  %v3511_v13 = vpack.c.bf16 %v3453_v33, %v3453_v33  ;;  %v7727_v46 = vld [vmem:[%s7928_s0 + $0x48] sm:$0x88]  ;;  %v7732_v21 = vld [vmem:[%s7928_s0 + $0x58] sm:$0x88]  ;;  %v3657_v56 = vunpack.c.l.bf16 %v7671_v55 }
 0x79c   :  { %v3495_v23 = vsel %vm622_vm1, %v3494_v45, %v3493_v40  ;;  %v3498_v30 = vrot.slane %v3454_v14, 2  ;;  %v3512_v12 = vpack.c.bf16 %v3454_v14, %v3454_v14  ;;  %v3530_v26 = vsel %vm7575_vm12, %v3510_v48, %v3529_v7  ;;  %v7737_v54 = vld [vmem:[%s7928_s0 + $0x68] sm:$0x88] }
 0x79d   :  { %v3497_v63 = vsel %vm625_vm2, %v3496_v19, %v3495_v23  ;;  %v3500_v60 = vrot.slane %v3455_v0, 1  ;;  %v3513_v41 = vpack.c.bf16 %v3455_v0, %v3455_v0  ;;  %v3533_v8 = vsel %vm7575_vm12, %v3511_v13, %v3532_v22  ;;  %3531 = vst [vmem:[%s7930_s4 + $0x10] sm:$0x8] %v3530_v26 }
 0x79e   :  { %v3499_v17 = vsel %vm628_vm3, %v3498_v30, %v3497_v63  ;;  %v3536_v5 = vsel %vm7575_vm12, %v3512_v12, %v3535_v18  ;;  %3534 = vst [vmem:[%s7930_s4 + $0x14] sm:$0x8] %v3533_v8  ;;  %v3661_v33 = vunpack.c.l.bf16 %v7676_v49  ;;  %v3669_v6 = vunpack.c.l.bf16 %v7687_v47 }
 0x79f   :  { %v3501_v59 = vsel %vm631_vm4, %v3500_v60, %v3499_v17  ;;  %3537 = vst [vmem:[%s7930_s4 + $0x18] sm:$0x8] %v3536_v5  ;;  %v3539_v39 = vsel %vm7575_vm12, %v3513_v41, %v3538_v34  ;;  %v3643_v35 = vunpack.c.l.bf16 %v7696_v38  ;;  %v3647_v52 = vunpack.c.l.bf16 %v7708_v20 }
 0x7a0   :  { %3540 = vst [vmem:[%s7930_s4 + $0x1c] sm:$0x8] %v3539_v39  ;;  %3505 = vst [vmem:[#allocation2 + $0x2] sm:$0x3f] %v3501_v59  ;;  %v3651_v24 = vunpack.c.l.bf16 %v7713_v31  ;;  %v3671_v14 = vunpack.c.l.bf16 %v7701_v50  ;;  %v3655_v45 = vunpack.c.l.bf16 %v7718_v51  ;;  %v3659_v48 = vunpack.c.l.bf16 %v7727_v46 }
 0x7a1   :  { %v3663_v1 = vunpack.c.l.bf16 %v7732_v21  ;;  %v3667_v28 = vunpack.c.l.bf16 %v7737_v54  ;;  %v3642_v40 = vunpack.c.h.bf16 %v7651_v29  ;;  %v3646_v19 = vunpack.c.h.bf16 %v7656_v62 }
 0x7a2   :  { %v3650_v13 = vunpack.c.h.bf16 %v7661_v44  ;;  %v3670_v22 = vunpack.c.h.bf16 %v7687_v47  ;;  %v3658_v3 = vunpack.c.h.bf16 %v7671_v55  ;;  %vm3988_vm6 = vsmask.f32 7950 }
 0x7a3   :  { %vm7849_vm13 = vmand %vm625_vm2, %vm3988_vm6 }
 0x7a7   :  { %v3557_v2 = vld [vmem:[#allocation2] sm:$0xff] }
 0x7a8   :  { %v3558_v4 = vpack.c.bf16 %v3557_v2, %v3557_v2 }
 0x7aa   :  { %3592 = vmatmul.mubr.bf16.vlgmr.msra.gmra.mxu0 %v3558_v4  ;;  %3633 = vmatmul.mubr.bf16.vlgmr.msra.gmra.mxu1 %v3558_v4  ;;  %v3654_v4 = vunpack.c.h.bf16 %v7666_v32 }
 0x86a   :  { %v3593_v7 = vpop.f32.mrf.mxu0  ;;  %v7751_v0 = vpop.f32.mrf.mxu1 }
 0x86b   :  { %v3677_v18 = vrot.slane %v3593_v7, 1  ;;  %v3681_v23 = vrot.slane %v3593_v7, 2  ;;  %v3685_v30 = vrot.slane %v3593_v7, 3  ;;  %v3689_v12 = vrot.slane %v3593_v7, 4 }
 0x86c   :  { %v3693_v61 = vrot.slane %v3593_v7, 5  ;;  %v3697_v34 = vrot.slane %v3593_v7, 6  ;;  %v3701_v63 = vrot.slane %v3593_v7, 7  ;;  %v3765_v60 = vadd.f32 %v3669_v6, %v3593_v7  ;;  %v7757_v41 = vpop.f32.mrf.mxu0  ;;  %v7759_v9 = vpop.f32.mrf.mxu1 }
 0x86d   :  { %v3737_v17 = vadd.f32 %v3677_v18, %v3641_v15  ;;  %v3741_v26 = vadd.f32 %v3681_v23, %v3645_v58  ;;  %v3745_v8 = vadd.f32 %v3685_v30, %v3649_v10  ;;  %v3749_v5 = vadd.f32 %v3689_v12, %v3653_v43 }
 0x86e   :  { %v3753_v59 = vadd.f32 %v3693_v61, %v3657_v56  ;;  %v3757_v39 = vadd.f32 %v3697_v34, %v3661_v33  ;;  %v3776_v2 = vmul.f32 0.5, %v3765_v60  ;;  %v3597_v27 = vpop.f32.mrf.mxu0  ;;  %v3638_v16 = vpop.f32.mrf.mxu1  ;;  %v3761_v37 = vadd.f32 %v3701_v63, %v3665_v11 }
 0x86f   :  { %v3769_v57 = vmul.f32 0.5, %v3737_v17  ;;  %v3770_v53 = vmul.f32 0.5, %v3741_v26  ;;  %v3771_v25 = vmul.f32 0.5, %v3745_v8  ;;  %v3772_v6 = vmul.f32 0.5, %v3749_v5 }
 0x870   :  { %v3773_v7 = vmul.f32 0.5, %v3753_v59  ;;  %4674 = vtanh.f32 %v3776_v2  ;;  %v3598_v15 = vpop.f32.mrf.mxu0  ;;  %v3639_v58 = vpop.f32.mrf.mxu1  ;;  %v3679_v10 = vrot.slane %v7751_v0, 1  ;;  %v3683_v43 = vrot.slane %v7751_v0, 2 }
 0x871   :  { %4676 = vtanh.f32 %v3769_v57  ;;  %v3687_v32 = vrot.slane %v7751_v0, 3  ;;  %v3774_v27 = vmul.f32 0.5, %v3757_v39  ;;  %v3662_v16 = vunpack.c.h.bf16 %v7676_v49 }
 0x872   :  { %4678 = vtanh.f32 %v3770_v53  ;;  %v3666_v56 = vunpack.c.h.bf16 %v7681_v36  ;;  %v3775_v33 = vmul.f32 0.5, %v3761_v37  ;;  %v3691_v11 = vrot.slane %v7751_v0, 4 }
 0x873   :  { %4680 = vtanh.f32 %v3771_v25  ;;  %v3695_v55 = vrot.slane %v7751_v0, 5  ;;  %v3699_v57 = vrot.slane %v7751_v0, 6  ;;  %v3739_v18 = vadd.f32 %v3679_v10, %v3643_v35 }
 0x874   :  { %4682 = vtanh.f32 %v3772_v6  ;;  %v3672_v23 = vunpack.c.h.bf16 %v7701_v50  ;;  %v3703_v30 = vrot.slane %v7751_v0, 7  ;;  %v3743_v53 = vadd.f32 %v3683_v43, %v3647_v52 }
 0x875   :  { %4684 = vtanh.f32 %v3773_v7  ;;  %v3747_v12 = vadd.f32 %v3687_v32, %v3651_v24  ;;  %v3678_v49 = vrot.slane %v7757_v41, 1  ;;  %v3682_v36 = vrot.slane %v7757_v41, 2 }
 0x876   :  { %4686 = vtanh.f32 %v3774_v27  ;;  %v3686_v25 = vrot.slane %v7757_v41, 3  ;;  %v3751_v37 = vadd.f32 %v3691_v11, %v3655_v45  ;;  %v3755_v35 = vadd.f32 %v3695_v55, %v3659_v48 }
 0x877   :  { %4688 = vtanh.f32 %v3775_v33  ;;  %v3690_v61 = vrot.slane %v7757_v41, 4  ;;  %v3759_v52 = vadd.f32 %v3699_v57, %v3663_v1  ;;  %v3694_v24 = vrot.slane %v7757_v41, 5 }
 0x878   :  { %4690 = vtanh.f32 %v3739_v18  ;;  %v3738_v34 = vadd.f32 %v3678_v49, %v3642_v40  ;;  %v3698_v63 = vrot.slane %v7757_v41, 6  ;;  %v3702_v60 = vrot.slane %v7757_v41, 7 }
 0x879   :  { %4692 = vtanh.f32 %v3743_v53  ;;  %v3742_v45 = vadd.f32 %v3682_v36, %v3646_v19  ;;  %v3763_v48 = vadd.f32 %v3703_v30, %v3667_v28  ;;  %v3746_v1 = vadd.f32 %v3686_v25, %v3650_v13 }
 0x87a   :  { %4694 = vtanh.f32 %v3747_v12  ;;  %v3644_v17 = vunpack.c.h.bf16 %v7696_v38  ;;  %v3767_v29 = vadd.f32 %v3671_v14, %v7751_v0  ;;  %v3750_v40 = vadd.f32 %v3690_v61, %v3654_v4 }
 0x87b   :  { %4696 = vtanh.f32 %v3751_v37  ;;  %v3648_v26 = vunpack.c.h.bf16 %v7708_v20  ;;  %v3754_v62 = vadd.f32 %v3694_v24, %v3658_v3  ;;  %v3801_v19 = vmul.f32 0.5, %v3738_v34 }
 0x87c   :  { %4698 = vtanh.f32 %v3755_v35  ;;  %v3652_v8 = vunpack.c.h.bf16 %v7713_v31  ;;  %v3758_v5 = vadd.f32 %v3698_v63, %v3662_v16  ;;  %v3762_v44 = vadd.f32 %v3702_v60, %v3666_v56 }
 0x87d   :  { %v4675_v28 = vpop.eup %4674  ;;  %4700 = vtanh.f32 %v3759_v52  ;;  %v3802_v13 = vmul.f32 0.5, %v3742_v45  ;;  %v3766_v38 = vadd.f32 %v3670_v22, %v7757_v41  ;;  %v3803_v14 = vmul.f32 0.5, %v3746_v1 }
 0x87e   :  { %v4677_v59 = vpop.eup %4676  ;;  %4702 = vtanh.f32 %v3763_v48  ;;  %v3656_v0 = vunpack.c.h.bf16 %v7718_v51  ;;  %v3804_v3 = vmul.f32 0.5, %v3750_v40  ;;  %v3660_v39 = vunpack.c.h.bf16 %v7727_v46 }
 0x87f   :  { %v4679_v20 = vpop.eup %4678  ;;  %4704 = vtanh.f32 %v3767_v29  ;;  %v3664_v31 = vunpack.c.h.bf16 %v7732_v21  ;;  %v3805_v4 = vmul.f32 0.5, %v3754_v62  ;;  %v3668_v6 = vunpack.c.h.bf16 %v7737_v54 }
 0x880   :  { %v4681_v2 = vpop.eup %4680  ;;  %4706 = vtanh.f32 %v3801_v19  ;;  %v3680_v7 = vrot.slane %v7759_v9, 1  ;;  %v3806_v47 = vmul.f32 0.5, %v3758_v5  ;;  %v3807_v22 = vmul.f32 0.5, %v3762_v44 }
 0x881   :  { %v4683_v15 = vpop.eup %4682  ;;  %4708 = vtanh.f32 %v3802_v13  ;;  %v3684_v51 = vrot.slane %v7759_v9, 2  ;;  %v3792_v58 = vmul.f32 0.5, %v4675_v28  ;;  %v3808_v10 = vmul.f32 0.5, %v3766_v38 }
 0x882   :  { %v4685_v41 = vpop.eup %4684  ;;  %4710 = vtanh.f32 %v3803_v14  ;;  %v3688_v46 = vrot.slane %v7759_v9, 3  ;;  %v3785_v43 = vmul.f32 0.5, %v4677_v59  ;;  %v3692_v32 = vrot.slane %v7759_v9, 4 }
 0x883   :  { %v4687_v21 = vpop.eup %4686  ;;  %4712 = vtanh.f32 %v3804_v3  ;;  %v3696_v54 = vrot.slane %v7759_v9, 5  ;;  %v3786_v16 = vmul.f32 0.5, %v4679_v20  ;;  %v3700_v56 = vrot.slane %v7759_v9, 6 }
 0x884   :  { %v4689_v27 = vpop.eup %4688  ;;  %4714 = vtanh.f32 %v3805_v4  ;;  %v3740_v33 = vadd.f32 %v3680_v7, %v3644_v17  ;;  %v3787_v55 = vmul.f32 0.5, %v4681_v2  ;;  %v3788_v57 = vmul.f32 0.5, %v4683_v15 }
 0x885   :  { %v4691_v11 = vpop.eup %4690  ;;  %4716 = vtanh.f32 %v3806_v47  ;;  %v3744_v18 = vadd.f32 %v3684_v51, %v3648_v26  ;;  %v3789_v53 = vmul.f32 0.5, %v4685_v41  ;;  %v3704_v12 = vrot.slane %v7759_v9, 7 }
 0x886   :  { %v4693_v30 = vpop.eup %4692  ;;  %4718 = vtanh.f32 %v3807_v22  ;;  %v3748_v49 = vadd.f32 %v3688_v46, %v3652_v8  ;;  %v3790_v25 = vmul.f32 0.5, %v4687_v21  ;;  %v3793_v37 = vadd.f32 0.5, %v3785_v43 }
 0x887   :  { %v4695_v36 = vpop.eup %4694  ;;  %4720 = vtanh.f32 %v3808_v10  ;;  %v3752_v35 = vadd.f32 %v3692_v32, %v3656_v0  ;;  %v3791_v52 = vmul.f32 0.5, %v4689_v27  ;;  %v3794_v24 = vadd.f32 0.5, %v3786_v16 }
 0x888   :  { %v4697_v61 = vpop.eup %4696  ;;  %v3756_v34 = vadd.f32 %v3696_v54, %v3660_v39  ;;  %v3841_v63 = vmul.f32 0.5, %v3740_v33  ;;  %v3795_v45 = vadd.f32 0.5, %v3787_v55  ;;  %v3796_v48 = vadd.f32 0.5, %v3788_v57 }
 0x889   :  { %v4699_v60 = vpop.eup %4698  ;;  %v3760_v1 = vadd.f32 %v3700_v56, %v3664_v31  ;;  %v3842_v17 = vmul.f32 0.5, %v3744_v18  ;;  %v3797_v40 = vadd.f32 0.5, %v3789_v53  ;;  %v3800_v26 = vadd.f32 0.5, %v3792_v58 }
 0x88a   :  { %v4701_v29 = vpop.eup %4700  ;;  %v3764_v62 = vadd.f32 %v3704_v12, %v3668_v6  ;;  %v3843_v19 = vmul.f32 0.5, %v3748_v49  ;;  %v3798_v28 = vadd.f32 0.5, %v3790_v25  ;;  %v3898_v5 = vmul.f32 %v4691_v11, %v3793_v37 }
 0x88b   :  { %v4703_v8 = vpop.eup %4702  ;;  %v3768_v44 = vadd.f32 %v3672_v23, %v7759_v9  ;;  %v3844_v13 = vmul.f32 0.5, %v3752_v35  ;;  %v3799_v38 = vadd.f32 0.5, %v3791_v52  ;;  %v3899_v14 = vmul.f32 %v4693_v30, %v3794_v24 }
 0x88c   :  { %v4705_v59 = vpop.eup %4704  ;;  %v3845_v0 = vmul.f32 0.5, %v3756_v34  ;;  %4722 = vtanh.f32 %v3841_v63  ;;  %v3900_v3 = vmul.f32 %v4695_v36, %v3795_v45  ;;  %v3901_v39 = vmul.f32 %v4697_v61, %v3796_v48 }
 0x88d   :  { %v4707_v20 = vpop.eup %4706  ;;  %v3846_v31 = vmul.f32 0.5, %v3760_v1  ;;  %4724 = vtanh.f32 %v3842_v17  ;;  %v3902_v6 = vmul.f32 %v4699_v60, %v3797_v40  ;;  %v3847_v7 = vmul.f32 0.5, %v3764_v62 }
 0x88e   :  { %v4709_v2 = vpop.eup %4708  ;;  %v3817_v4 = vmul.f32 0.5, %v4707_v20  ;;  %4726 = vtanh.f32 %v3843_v19  ;;  %v3903_v50 = vmul.f32 %v4701_v29, %v3798_v28  ;;  %v3848_v9 = vmul.f32 0.5, %v3768_v44 }
 0x88f   :  { %v4711_v15 = vpop.eup %4710  ;;  %v3818_v47 = vmul.f32 0.5, %v4709_v2  ;;  %4728 = vtanh.f32 %v3844_v13  ;;  %v3904_v41 = vmul.f32 %v4703_v8, %v3799_v38  ;;  %v3905_v21 = vmul.f32 %v4705_v59, %v3800_v26 }
 0x890   :  { %v4713_v23 = vpop.eup %4712  ;;  %v3819_v22 = vmul.f32 0.5, %v4711_v15  ;;  %v3825_v51 = vadd.f32 0.5, %v3817_v4  ;;  %4730 = vtanh.f32 %v3845_v0  ;;  %v8194_v27 = vrot.slane %v7646_v42, 1 }
 0x891   :  { %v4715_v58 = vpop.eup %4714  ;;  %v3820_v10 = vmul.f32 0.5, %v4713_v23  ;;  %v3826_v46 = vadd.f32 0.5, %v3818_v47  ;;  %4732 = vtanh.f32 %v3846_v31  ;;  %v8195_v55 = vrot.slane %v7646_v42, 2 }
 0x892   :  { %v4717_v43 = vpop.eup %4716  ;;  %v3821_v32 = vmul.f32 0.5, %v4715_v58  ;;  %v3827_v54 = vadd.f32 0.5, %v3819_v22  ;;  %v3890_v16 = vmul.f32 %v8194_v27, %v3825_v51  ;;  %4734 = vtanh.f32 %v3847_v7 }
 0x893   :  { %v4719_v56 = vpop.eup %4718  ;;  %v3822_v33 = vmul.f32 0.5, %v4717_v43  ;;  %v3828_v11 = vadd.f32 0.5, %v3820_v10  ;;  %v3891_v57 = vmul.f32 %v8195_v55, %v3826_v46  ;;  %4736 = vtanh.f32 %v3848_v9 }
 0x894   :  { %v4721_v18 = vpop.eup %4720  ;;  %v3823_v30 = vmul.f32 0.5, %v4719_v56  ;;  %v3829_v53 = vadd.f32 0.5, %v3821_v32  ;;  %v8196_v12 = vrot.slane %v7646_v42, 3  ;;  %v3906_v36 = vadd.f32 %v3898_v5, %v3890_v16 }
 0x895   :  { %v3824_v25 = vmul.f32 0.5, %v4721_v18  ;;  %v3830_v37 = vadd.f32 0.5, %v3822_v33  ;;  %v8197_v35 = vrot.slane %v7646_v42, 4  ;;  %v3907_v52 = vadd.f32 %v3899_v14, %v3891_v57 }
 0x896   :  { %v3892_v49 = vmul.f32 %v8196_v12, %v3827_v54  ;;  %v3831_v24 = vadd.f32 0.5, %v3823_v30  ;;  %v8198_v34 = vrot.slane %v7646_v42, 5  ;;  %4738 = vtanh.f32 %v3906_v36  ;;  %3953 = vst [vmem:[#allocation3 - $0x7] sm:$0x80] %v3906_v36  ;;  %4019 = vst [vmem:[%s7931_s6 - $0x7] sm:$0x80] %v3906_v36 }
 0x897   :  { %v3893_v61 = vmul.f32 %v8197_v35, %v3828_v11  ;;  %v3832_v45 = vadd.f32 0.5, %v3824_v25  ;;  %v8199_v48 = vrot.slane %v7646_v42, 6  ;;  %4740 = vtanh.f32 %v3907_v52 }
 0x898   :  { %v3894_v63 = vmul.f32 %v8198_v34, %v3829_v53  ;;  %v3908_v60 = vadd.f32 %v3900_v3, %v3892_v49  ;;  %v8200_v29 = vrot.slane %v7646_v42, 7  ;;  %v3938_v62 = vrot.slane %v3907_v52, 7  ;;  %v3990_v34 = vld [vmem:[%s7930_s4] sm:$0x8] }
 0x899   :  { %v3895_v1 = vmul.f32 %v8199_v48, %v3830_v37  ;;  %v3909_v17 = vadd.f32 %v3901_v39, %v3893_v61  ;;  %v4723_v19 = vpop.eup %4722  ;;  %v3897_v8 = vmul.f32 %v7646_v42, %v3832_v45 }
 0x89a   :  { %v3896_v40 = vmul.f32 %v8200_v29, %v3831_v24  ;;  %v3910_v26 = vadd.f32 %v3902_v6, %v3894_v63  ;;  %4742 = vtanh.f32 %v3908_v60  ;;  %v3939_v5 = vrot.slane %v3908_v60, 6  ;;  %v4725_v44 = vpop.eup %4724 }
 0x89b   :  { %v3911_v28 = vadd.f32 %v3903_v50, %v3895_v1  ;;  %4744 = vtanh.f32 %v3909_v17  ;;  %v3941_v59 = vrot.slane %v3909_v17, 5  ;;  %v4727_v38 = vpop.eup %4726  ;;  %v3913_v14 = vadd.f32 %v3905_v21, %v3897_v8  ;;  %v3993_v17 = vld [vmem:[%s7930_s4 + $0x4] sm:$0x8] }
 0x89c   :  { %v3912_v13 = vadd.f32 %v3904_v41, %v3896_v40  ;;  %4746 = vtanh.f32 %v3910_v26  ;;  %v3940_v0 = vsel %vm619_vm0, %v3939_v5, %v3938_v62  ;;  %v3943_v20 = vrot.slane %v3910_v26, 4  ;;  %v4729_v3 = vpop.eup %4728 }
 0x89d   :  { %4748 = vtanh.f32 %v3911_v28  ;;  %v3942_v39 = vsel %vm622_vm1, %v3941_v59, %v3940_v0  ;;  %v3945_v31 = vrot.slane %v3911_v28, 3  ;;  %v4731_v2 = vpop.eup %4730  ;;  %v3949_v15 = vrot.slane %v3913_v14, 1 }
 0x89e   :  { %4750 = vtanh.f32 %v3912_v13  ;;  %v3944_v42 = vsel %vm625_vm2, %v3943_v20, %v3942_v39  ;;  %v3947_v4 = vrot.slane %v3912_v13, 2  ;;  %v4733_v6 = vpop.eup %4732  ;;  %v3857_v47 = vmul.f32 0.5, %v4723_v19  ;;  %v3996_v20 = vld [vmem:[%s7930_s4 + $0x8] sm:$0x8] }
 0x89f   :  { %4752 = vtanh.f32 %v3913_v14  ;;  %v3946_v7 = vsel %vm628_vm3, %v3945_v31, %v3944_v42  ;;  %v4735_v50 = vpop.eup %4734  ;;  %v3858_v23 = vmul.f32 0.5, %v4725_v44  ;;  %v3859_v41 = vmul.f32 0.5, %v4727_v38  ;;  %v3999_v42 = vld [vmem:[%s7930_s4 + $0xc] sm:$0x8] }
 0x8a0   :  { %v3948_v9 = vsel %vm631_vm4, %v3947_v4, %v3946_v7  ;;  %v4737_v22 = vpop.eup %4736  ;;  %v3860_v58 = vmul.f32 0.5, %v4729_v3  ;;  %v3861_v10 = vmul.f32 0.5, %v4731_v2  ;;  %v3862_v46 = vmul.f32 0.5, %v4733_v6  ;;  %v4002_v4 = vld [vmem:[%s7930_s4 + $0x10] sm:$0x8] }
 0x8a1   :  { %v3950_v51 = vsel %vm634_vm5, %v3949_v15, %v3948_v9  ;;  %v3863_v21 = vmul.f32 0.5, %v4735_v50  ;;  %v3865_v43 = vadd.f32 0.5, %v3857_v47  ;;  %v3864_v54 = vmul.f32 0.5, %v4737_v22  ;;  %v4005_v50 = vld [vmem:[%s7930_s4 + $0x14] sm:$0x8] }
 0x8a2   :  { %3954 = vst [vmem:[#allocation3 + $0x1] sm:$0x7f] %v3950_v51  ;;  %4020 = vst [vmem:[%s7931_s6 + $0x1] sm:$0x7f] %v3950_v51  ;;  %v3866_v27 = vadd.f32 0.5, %v3858_v23  ;;  %v3867_v56 = vadd.f32 0.5, %v3859_v41 }
 0x8a3   :  { %v4739_v32 = vpop.eup %4738  ;;  %v3868_v55 = vadd.f32 0.5, %v3860_v58  ;;  %v3869_v57 = vadd.f32 0.5, %v3861_v10  ;;  %v3870_v53 = vadd.f32 0.5, %v3862_v46  ;;  %v3871_v12 = vadd.f32 0.5, %v3863_v21  ;;  %v4008_v9 = vld [vmem:[%s7930_s4 + $0x18] sm:$0x8] }
 0x8a4   :  { %v4741_v16 = vpop.eup %4740  ;;  %v3922_v33 = vmul.f32 %v4739_v32, %v3865_v43  ;;  %v3872_v37 = vadd.f32 0.5, %v3864_v54  ;;  %v4011_v58 = vld [vmem:[%s7930_s4 + $0x1c] sm:$0x8] }
 0x8a5   :  { %v3923_v18 = vmul.f32 %v4741_v16, %v3866_v27 }
 0x8a6   :  { %3978 = vst [vmem:[#allocation2 - $0x7] sm:$0x80] %v3922_v33  ;;  %v3980_v36 = vpack.c.bf16 %v3922_v33, %v3922_v33  ;;  %4017 = vst [vmem:[%s7932_s5 - $0x7] sm:$0x80] %v3922_v33 }
 0x8a7   :  { %v4743_v11 = vpop.eup %4742  ;;  %v3963_v61 = vrot.slane %v3923_v18, 7  ;;  %v3981_v52 = vpack.c.bf16 %v3923_v18, %v3923_v18 }
 0x8a8   :  { %v4745_v30 = vpop.eup %4744  ;;  %v3924_v49 = vmul.f32 %v4743_v11, %v3867_v56  ;;  %v3991_v1 = vsel %vm7849_vm13, %v3980_v36, %v3990_v34 }
 0x8a9   :  { %v4747_v25 = vpop.eup %4746  ;;  %v3925_v35 = vmul.f32 %v4745_v30, %v3868_v55  ;;  %3992 = vst [vmem:[%s7930_s4] sm:$0x8] %v3991_v1  ;;  %v3994_v19 = vsel %vm7849_vm13, %v3981_v52, %v3993_v17 }
 0x8aa   :  { %v4749_v63 = vpop.eup %4748  ;;  %v3926_v60 = vmul.f32 %v4747_v25, %v3869_v57  ;;  %v3964_v45 = vrot.slane %v3924_v49, 6  ;;  %v3982_v48 = vpack.c.bf16 %v3924_v49, %v3924_v49  ;;  %3995 = vst [vmem:[%s7930_s4 + $0x4] sm:$0x8] %v3994_v19 }
 0x8ab   :  { %v4751_v29 = vpop.eup %4750  ;;  %v3927_v40 = vmul.f32 %v4749_v63, %v3870_v53  ;;  %v3966_v26 = vrot.slane %v3925_v35, 5  ;;  %v3983_v62 = vpack.c.bf16 %v3925_v35, %v3925_v35 }
 0x8ac   :  { %v4753_v8 = vpop.eup %4752  ;;  %v3928_v28 = vmul.f32 %v4751_v29, %v3871_v12  ;;  %v3965_v5 = vsel %vm619_vm0, %v3964_v45, %v3963_v61  ;;  %v3968_v44 = vrot.slane %v3926_v60, 4  ;;  %v3984_v13 = vpack.c.bf16 %v3926_v60, %v3926_v60 }
 0x8ad   :  { %v3929_v59 = vmul.f32 %v4753_v8, %v3872_v37  ;;  %v3967_v38 = vsel %vm622_vm1, %v3966_v26, %v3965_v5  ;;  %v3970_v14 = vrot.slane %v3927_v40, 3  ;;  %v3985_v0 = vpack.c.bf16 %v3927_v40, %v3927_v40 }
 0x8ae   :  { %v3969_v3 = vsel %vm625_vm2, %v3968_v44, %v3967_v38  ;;  %v3972_v39 = vrot.slane %v3928_v28, 2  ;;  %v3986_v31 = vpack.c.bf16 %v3928_v28, %v3928_v28  ;;  %v3997_v2 = vsel %vm7849_vm13, %v3982_v48, %v3996_v20 }
 0x8af   :  { %v3971_v6 = vsel %vm628_vm3, %v3970_v14, %v3969_v3  ;;  %v3974_v7 = vrot.slane %v3929_v59, 1  ;;  %v3987_v15 = vpack.c.bf16 %v3929_v59, %v3929_v59  ;;  %3998 = vst [vmem:[%s7930_s4 + $0x8] sm:$0x8] %v3997_v2  ;;  %v4000_v47 = vsel %vm7849_vm13, %v3983_v62, %v3999_v42 }
 0x8b0   :  { %v3973_v23 = vsel %vm631_vm4, %v3972_v39, %v3971_v6  ;;  %4001 = vst [vmem:[%s7930_s4 + $0xc] sm:$0x8] %v4000_v47  ;;  %v4003_v22 = vsel %vm7849_vm13, %v3984_v13, %v4002_v4  ;;  %v4006_v51 = vsel %vm7849_vm13, %v3985_v0, %v4005_v50  ;;  %v4009_v41 = vsel %vm7849_vm13, %v3986_v31, %v4008_v9 }
 0x8b1   :  { %v3975_v10 = vsel %vm634_vm5, %v3974_v7, %v3973_v23  ;;  %4004 = vst [vmem:[%s7930_s4 + $0x10] sm:$0x8] %v4003_v22  ;;  %4007 = vst [vmem:[%s7930_s4 + $0x14] sm:$0x8] %v4006_v51  ;;  %v4012_v46 = vsel %vm7849_vm13, %v3987_v15, %v4011_v58 }
 0x8b2   :  { %4010 = vst [vmem:[%s7930_s4 + $0x18] sm:$0x8] %v4009_v41  ;;  %3979 = vst [vmem:[#allocation2 + $0x1] sm:$0x7f] %v3975_v10 }
 0x8b3   :  { %4013 = vst [vmem:[%s7930_s4 + $0x1c] sm:$0x8] %v4012_v46  ;;  %4018 = vst [vmem:[%s7932_s5 + $0x1] sm:$0x7f] %v3975_v10 }

</bundles_post_ra>
